<compile_context>
chip_gen: v7x
topology: tpu7x:2x2x1
jax: 0.10.0
libtpu: 0.0.40
codegen_flags: <defaults>
</compile_context>

<pallas_src>
import math
from functools import partial

import numpy as np
import jax
import jax.numpy as jnp
from jax import lax
from jax.experimental import pallas as pl
from jax.experimental.pallas import tpu as pltpu


MXU_INPUT_DTYPE = jnp.bfloat16       # bf16-native MXU on v5e/v6e/v7x
VMEM_LIMIT_BYTES = 32 * 1024 * 1024  # explicit scoped-VMEM budget (v7x-safe)


def _cparams(*sems):
    return pltpu.CompilerParams(dimension_semantics=sems,
                                vmem_limit_bytes=VMEM_LIMIT_BYTES)


def _pick_tile(M, target=512):
    """Largest row tile <= target dividing M, keeping >=2 grid steps when
    possible so both v7x TensorCores get work (no effect on v5e/v6e)."""
    if M % 8 != 0:
        return M  # TODO(synk): masked last tile for awkward M
    cap = min(target, M)
    if M >= 16:
        cap = min(cap, max(8, (M // 2) // 8 * 8))
    for t in range(cap, 7, -1):
        if M % t == 0 and t % 8 == 0:
            return t
    return M


# ----------------------------------------------------------------------------
# Pallas kernels
# ----------------------------------------------------------------------------

def ln_matmul(x, g, b, w, wb, *, eps=1e-6):
    """out = LayerNorm(x) @ w + wb, fused.  x: (M, C), w: (C, N)."""
    M, C = x.shape
    N = w.shape[1]
    tm = _pick_tile(M)

    def kernel(x_ref, g_ref, b_ref, w_ref, wb_ref, o_ref):
        xv = x_ref[...].astype(jnp.float32)
        mu = jnp.mean(xv, axis=-1, keepdims=True)
        xc = xv - mu
        var = jnp.mean(xc * xc, axis=-1, keepdims=True)
        ln = xc * lax.rsqrt(var + eps) * g_ref[...] + b_ref[...]
        acc = jnp.dot(ln.astype(MXU_INPUT_DTYPE),
                      w_ref[...].astype(MXU_INPUT_DTYPE),
                      preferred_element_type=jnp.float32)
        o_ref[...] = (acc + wb_ref[...]).astype(o_ref.dtype)

    return pl.pallas_call(
        kernel,
        out_shape=jax.ShapeDtypeStruct((M, N), x.dtype),
        grid_spec=pltpu.PrefetchScalarGridSpec(
            num_scalar_prefetch=0,
            grid=(M // tm,),
            in_specs=[
                pl.BlockSpec((tm, C), lambda i: (i, 0)),
                pl.BlockSpec((1, C), lambda i: (0, 0)),
                pl.BlockSpec((1, C), lambda i: (0, 0)),
                pl.BlockSpec((C, N), lambda i: (0, 0)),
                pl.BlockSpec((1, N), lambda i: (0, 0)),
            ],
            out_specs=pl.BlockSpec((tm, N), lambda i: (i, 0)),
        ),
        compiler_params=_cparams("parallel"),
    )(x, g.reshape(1, C), b.reshape(1, C), w, wb.reshape(1, N))


def ln_add2_matmul(y, r1, r2, x_res, g, b, w, wb, *, eps=1e-6):
    """out = (LayerNorm(y) + r1 + r2) @ w + wb + x_res
    (attention epilogue fused with the block residual)."""
    M, C = y.shape
    N = w.shape[1]
    tm = _pick_tile(M)

    def kernel(y_ref, r1_ref, r2_ref, xr_ref, g_ref, b_ref, w_ref, wb_ref, o_ref):
        yv = y_ref[...].astype(jnp.float32)
        mu = jnp.mean(yv, axis=-1, keepdims=True)
        yc = yv - mu
        var = jnp.mean(yc * yc, axis=-1, keepdims=True)
        ln = yc * lax.rsqrt(var + eps) * g_ref[...] + b_ref[...]
        z = ln + r1_ref[...].astype(jnp.float32) + r2_ref[...].astype(jnp.float32)
        acc = jnp.dot(z.astype(MXU_INPUT_DTYPE),
                      w_ref[...].astype(MXU_INPUT_DTYPE),
                      preferred_element_type=jnp.float32)
        acc = acc + wb_ref[...] + xr_ref[...].astype(jnp.float32)
        o_ref[...] = acc.astype(o_ref.dtype)

    return pl.pallas_call(
        kernel,
        out_shape=jax.ShapeDtypeStruct((M, N), y.dtype),
        grid_spec=pltpu.PrefetchScalarGridSpec(
            num_scalar_prefetch=0,
            grid=(M // tm,),
            in_specs=[
                pl.BlockSpec((tm, C), lambda i: (i, 0)),
                pl.BlockSpec((tm, C), lambda i: (i, 0)),
                pl.BlockSpec((tm, C), lambda i: (i, 0)),
                pl.BlockSpec((tm, N), lambda i: (i, 0)),
                pl.BlockSpec((1, C), lambda i: (0, 0)),
                pl.BlockSpec((1, C), lambda i: (0, 0)),
                pl.BlockSpec((C, N), lambda i: (0, 0)),
                pl.BlockSpec((1, N), lambda i: (0, 0)),
            ],
            out_specs=pl.BlockSpec((tm, N), lambda i: (i, 0)),
        ),
        compiler_params=_cparams("parallel"),
    )(y, r1, r2, x_res, g.reshape(1, C), b.reshape(1, C), w, wb.reshape(1, N))


def depthwise_conv2d(x, w, b, *, residual=False, act=None):
    """Depthwise KxK conv, 'same' zero padding, fused bias / SiLU / residual.
    Zero halo built in a VMEM scratch inside the kernel (no HBM pad copy).
    w: (KH, KW, C), b: (C,).  One grid step per batch item (parallel)."""
    B, H, W, C = x.shape
    KH, KW, _ = w.shape
    ph, pw = KH // 2, KW // 2
    Hp, Wp = H + 2 * ph, W + 2 * pw
    wf = w.reshape(KH * KW, C)

    def kernel(x_ref, w_ref, b_ref, o_ref, xp_ref):
        xv = x_ref[0].astype(jnp.float32)                     # (H, W, C)
        xp_ref[...] = jnp.zeros((Hp, Wp, C), jnp.float32)
        xp_ref[ph:ph + H, pw:pw + W, :] = xv
        acc = jnp.zeros((H, W, C), jnp.float32)
        for dy in range(KH):
            for dx in range(KW):
                tap = xp_ref[dy:dy + H, dx:dx + W, :]
                wrow = w_ref[dy * KW + dx:dy * KW + dx + 1, :].reshape(1, 1, C)
                acc = acc + tap * wrow
        acc = acc + b_ref[0:1, :].reshape(1, 1, C)
        if act == "silu":
            acc = acc * (1.0 / (1.0 + jnp.exp(-acc)))
        if residual:
            acc = acc + xv
        o_ref[0] = acc.astype(o_ref.dtype)

    return pl.pallas_call(
        kernel,
        out_shape=jax.ShapeDtypeStruct((B, H, W, C), x.dtype),
        grid_spec=pltpu.PrefetchScalarGridSpec(
            num_scalar_prefetch=0,
            grid=(B,),
            in_specs=[
                pl.BlockSpec((1, H, W, C), lambda b_: (b_, 0, 0, 0)),
                pl.BlockSpec((KH * KW, C), lambda b_: (0, 0)),
                pl.BlockSpec((1, C), lambda b_: (0, 0)),
            ],
            out_specs=pl.BlockSpec((1, H, W, C), lambda b_: (b_, 0, 0, 0)),
            scratch_shapes=[pltpu.VMEM((Hp, Wp, C), jnp.float32)],
        ),
        compiler_params=_cparams("parallel"),
    )(x, wf, b.reshape(1, C))


def ffn_tail(h, x_res, wdw, bdw, w2, b2):
    """FFN tail, fused: tanh-GELU -> h + dwconv3x3(h) -> fc2 -> + block residual.
    h: pre-activation fc1 output (B, H, W, F); x_res: (B, H, W, E)."""
    B, H, W, Fd = h.shape
    E = x_res.shape[-1]
    Hp, Wp = H + 2, W + 2
    wf = wdw.reshape(9, Fd)
    c0 = 0.7978845608028654  # sqrt(2/pi)

    def kernel(h_ref, x_ref, wdw_ref, bdw_ref, w2_ref, b2_ref, o_ref, hp_ref):
        hv = h_ref[0].astype(jnp.float32)                      # (H, W, Fd)
        # TODO(synk): tanh-approx GELU (reference uses exact erf GELU).
        h_act = 0.5 * hv * (1.0 + jnp.tanh(c0 * (hv + 0.044715 * hv * hv * hv)))
        hp_ref[...] = jnp.zeros((Hp, Wp, Fd), jnp.float32)
        hp_ref[1:1 + H, 1:1 + W, :] = h_act
        acc = jnp.zeros((H, W, Fd), jnp.float32)
        for dy in range(3):
            for dx in range(3):
                tap = hp_ref[dy:dy + H, dx:dx + W, :]
                wrow = wdw_ref[dy * 3 + dx:dy * 3 + dx + 1, :].reshape(1, 1, Fd)
                acc = acc + tap * wrow
        h2 = h_act + acc + bdw_ref[0:1, :].reshape(1, 1, Fd)
        out = jnp.dot(h2.reshape(H * W, Fd).astype(MXU_INPUT_DTYPE),
                      w2_ref[...].astype(MXU_INPUT_DTYPE),
                      preferred_element_type=jnp.float32) + b2_ref[...]
        o_ref[0] = (x_ref[0].astype(jnp.float32)
                    + out.reshape(H, W, E)).astype(o_ref.dtype)

    return pl.pallas_call(
        kernel,
        out_shape=jax.ShapeDtypeStruct((B, H, W, E), x_res.dtype),
        grid_spec=pltpu.PrefetchScalarGridSpec(
            num_scalar_prefetch=0,
            grid=(B,),
            in_specs=[
                pl.BlockSpec((1, H, W, Fd), lambda b_: (b_, 0, 0, 0)),
                pl.BlockSpec((1, H, W, E), lambda b_: (b_, 0, 0, 0)),
                pl.BlockSpec((9, Fd), lambda b_: (0, 0)),
                pl.BlockSpec((1, Fd), lambda b_: (0, 0)),
                pl.BlockSpec((Fd, E), lambda b_: (0, 0)),
                pl.BlockSpec((1, E), lambda b_: (0, 0)),
            ],
            out_specs=pl.BlockSpec((1, H, W, E), lambda b_: (b_, 0, 0, 0)),
            scratch_shapes=[pltpu.VMEM((Hp, Wp, Fd), jnp.float32)],
        ),
        compiler_params=_cparams("parallel"),
    )(h, x_res, wf, bdw.reshape(1, Fd), w2, b2.reshape(1, E))


def natten_mask(H, W, kh, kw):
    """Fallback dense NATTEN additive mask (only used when W is not a power of
    two; the main path builds the mask in-kernel from iota)."""
    assert kh <= H and kw <= W
    idx = np.arange(H * W)
    qi, qj = idx // W, idx % W
    si = np.clip(qi - kh // 2, 0, H - kh)
    sj = np.clip(qj - kw // 2, 0, W - kw)
    ki, kj = idx // W, idx % W
    valid_i = (ki[None, :] >= si[:, None]) & (ki[None, :] < si[:, None] + kh)
    valid_j = (kj[None, :] >= sj[:, None]) & (kj[None, :] < sj[:, None] + kw)
    valid = valid_i & valid_j
    return jnp.asarray(np.where(valid, 0.0, -1e30).astype(np.float32))


def fused_attention(q, k, v, num_heads, H, W, win_h, win_w):
    """softmax(q k^T + neighborhood mask) v for all heads of one batch item per
    grid step.  q/k/v: (B, L, C) lane-dense; output (B, L, C).
    The NATTEN window mask is generated in-kernel from iota (no L^2 HBM mask);
    head split/merge is done with lane slices (no XLA transposes)."""
    B, L, C = q.shape
    hd = C // num_heads
    assert win_h <= H and win_w <= W
    pow2 = W > 0 and (W & (W - 1)) == 0

    in_specs = [pl.BlockSpec((None, L, C), lambda b_: (b_, 0, 0)),
                pl.BlockSpec((None, L, C), lambda b_: (b_, 0, 0)),
                pl.BlockSpec((None, L, C), lambda b_: (b_, 0, 0))]
    args = [q, k, v]
    if not pow2:
        # TODO(synk): non-power-of-two W falls back to a precomputed dense mask.
        in_specs.append(pl.BlockSpec((L, L), lambda b_: (0, 0)))
        args.append(natten_mask(H, W, win_h, win_w))

    def kernel(*refs):
        q_ref, k_ref, v_ref = refs[:3]
        o_ref = refs[-1]
        if pow2:
            shift = W.bit_length() - 1
            ql = lax.broadcasted_iota(jnp.int32, (L, L), 0)
            kl = lax.broadcasted_iota(jnp.int32, (L, L), 1)
            qi, qj = ql >> shift, ql & (W - 1)
            ki, kj = kl >> shift, kl & (W - 1)
            si = jnp.clip(qi - win_h // 2, 0, H - win_h)
            sj = jnp.clip(qj - win_w // 2, 0, W - win_w)
            valid = ((ki >= si) & (ki < si + win_h)
                     & (kj >= sj) & (kj < sj + win_w))
        else:
            m_add = refs[3][...]
        for hh in range(num_heads):
            lo = hh * hd
            qh = q_ref[:, lo:lo + hd].astype(MXU_INPUT_DTYPE)
            kh = k_ref[:, lo:lo + hd].astype(MXU_INPUT_DTYPE)
            vh = v_ref[:, lo:lo + hd].astype(MXU_INPUT_DTYPE)
            s = lax.dot_general(qh, kh, (((1,), (1,)), ((), ())),
                                preferred_element_type=jnp.float32)
            if pow2:
                s = jnp.where(valid, s, jnp.float32(-1e30))
            else:
                s = s + m_add
            s = s - jnp.max(s, axis=-1, keepdims=True)
            p = jnp.exp(s)
            p = p * pl.reciprocal(jnp.sum(p, axis=-1, keepdims=True), approx=True)
            o = jnp.dot(p.astype(MXU_INPUT_DTYPE), vh,
                        preferred_element_type=jnp.float32)
            o_ref[:, lo:lo + hd] = o.astype(o_ref.dtype)

    return pl.pallas_call(
        kernel,
        out_shape=jax.ShapeDtypeStruct((B, L, C), q.dtype),
        grid_spec=pltpu.PrefetchScalarGridSpec(
            num_scalar_prefetch=0,
            grid=(B,),
            in_specs=in_specs,
            out_specs=pl.BlockSpec((None, L, C), lambda b_: (b_, 0, 0)),
        ),
        compiler_params=_cparams("parallel"),
    )(*args)


def fused_selective_scan(u, wx, A, Dp, dbias):
    """Fused VSSM core: single lane-dense projection matmul (dt_proj folded
    into wx) + selective scan (d_state=1, delta_softplus=True) for all four
    cross-scan directions at once.

    u:  (B, L, K*D)   channel = k*D + d
    wx: (K*D, 3*K*D)  block-diag [B_exp | C_exp | dt_proj@x_proj_dt] weight
    A/Dp/dbias: (K*D,)
    """
    B, L, KD = u.shape
    CH = 8
    Lp = ((L + CH - 1) // CH) * CH
    if Lp != L:
        u = jnp.pad(u, ((0, 0), (0, Lp - L), (0, 0)))   # only for awkward L
    n_tiles = Lp // CH

    def kernel(u_ref, wx_ref, a_ref, d_ref, bias_ref, y_ref, xd_ref):
        # One MXU matmul produces B_exp, C_exp and dt for every token; stored
        # to VMEM scratch and consumed per aligned (8, KD) tile.
        xd_ref[...] = jnp.dot(u_ref[...].astype(MXU_INPUT_DTYPE),
                              wx_ref[...].astype(MXU_INPUT_DTYPE),
                              preferred_element_type=jnp.float32)
        a_row = a_ref[...]
        d_row = d_ref[...]
        bias_row = bias_ref[...]

        def body(c, h):
            base = pl.multiple_of(c * CH, CH)
            u_t = u_ref[pl.ds(base, CH), :].astype(jnp.float32)     # (CH, KD)
            xd_t = xd_ref[pl.ds(base, CH), :]                       # (CH, 3KD)
            B_t = xd_t[:, 0:KD]
            C_t = xd_t[:, KD:2 * KD]
            t = xd_t[:, 2 * KD:3 * KD] + bias_row
            delta = jnp.where(t > 20.0, t,
                              jnp.log1p(jnp.exp(jnp.minimum(t, 20.0))))
            a = jnp.exp(delta * a_row)
            b = delta * B_t * u_t
            # Within-tile parallel prefix (Hillis-Steele) over the 8 rows on
            # full (8, KD) vregs — no per-row sequential chain.
            for s in (1, 2, 4):
                a_prev = jnp.concatenate(
                    [jnp.ones((s, KD), jnp.float32), a[:CH - s, :]], axis=0)
                b_prev = jnp.concatenate(
                    [jnp.zeros((s, KD), jnp.float32), b[:CH - s, :]], axis=0)
                b = a * b_prev + b
                a = a * a_prev
            h_tile = a * h + b                                       # (CH, KD)
            y_ref[pl.ds(base, CH), :] = (h_tile * C_t
                                         + u_t * d_row).astype(y_ref.dtype)
            return h_tile[CH - 1:CH, :]

        lax.fori_loop(0, n_tiles, body, jnp.zeros((1, KD), jnp.float32))

    out = pl.pallas_call(
        kernel,
        out_shape=jax.ShapeDtypeStruct((B, Lp, KD), u.dtype),
        grid_spec=pltpu.PrefetchScalarGridSpec(
            num_scalar_prefetch=0,
            grid=(B,),
            in_specs=[
                pl.BlockSpec((None, Lp, KD), lambda b_: (b_, 0, 0)),
                pl.BlockSpec(wx.shape, lambda b_: (0, 0)),
                pl.BlockSpec((1, KD), lambda b_: (0, 0)),
                pl.BlockSpec((1, KD), lambda b_: (0, 0)),
                pl.BlockSpec((1, KD), lambda b_: (0, 0)),
            ],
            out_specs=pl.BlockSpec((None, Lp, KD), lambda b_: (b_, 0, 0)),
            scratch_shapes=[pltpu.VMEM((Lp, 3 * KD), jnp.float32)],
        ),
        compiler_params=_cparams("parallel"),
    )(u, wx, A.reshape(1, KD), Dp.reshape(1, KD), dbias.reshape(1, KD))
    return out[:, :L, :] if Lp != L else out


# ----------------------------------------------------------------------------
# Plain-JAX glue (RoPE / positional encodings)
# ----------------------------------------------------------------------------

def rotate_every_two(x):
    x1 = x[..., ::2]
    x2 = x[..., 1::2]
    return jnp.stack([-x2, x1], axis=-1).reshape(x.shape)


def theta_shift(x, sin, cos):
    return x * cos + rotate_every_two(x) * sin


def make_pos_enc(H, W, head_dim):
    pos = jnp.arange(H * W, dtype=jnp.float32).reshape(H, W)
    inv_freq = 1.0 / (10000.0 ** (jnp.arange(0, head_dim, 2, dtype=jnp.float32) / head_dim))
    ang = pos[..., None] * inv_freq[None, None, :]
    ang = jnp.repeat(ang, 2, axis=-1)           # pairs share angle (RoPE style)
    return jnp.sin(ang), jnp.cos(ang)           # each (H, W, head_dim)


# ----------------------------------------------------------------------------
# Module forward passes
# ----------------------------------------------------------------------------

def vssm_forward(sp, x):
    """VSSM (d_state=1, expansion_ratio=1, ssm_split=False). x: (B,H,W,D)."""
    B, H, W, D = x.shape
    L = H * W
    K = 4
    R = sp["x_proj_w"].shape[1] - 2             # dt_rank (N = 1)
    KD = K * D

    # CrossScan (VMamba): row-major, col-major, and their flips, stacked on
    # the channel axis so the scan kernel is lane-dense (K*D channels).
    x_row = x.reshape(B, L, D)                                   # l = h*W + w
    x_col = x.transpose(0, 2, 1, 3).reshape(B, L, D)             # l = w*H + h
    xs = jnp.concatenate([x_row, x_col, x_row[:, ::-1, :], x_col[:, ::-1, :]],
                         axis=-1)                                # (B, L, K*D)

    # Block-diagonal projection weight with the dt projection pre-composed:
    # one MXU matmul yields [B_exp | C_exp | dt_full] directly.
    Wx = jnp.zeros((KD, 3 * KD), jnp.float32)
    for k in range(K):
        Wk = sp["x_proj_w"][k]                                   # (R+2, D)
        rows = slice(k * D, (k + 1) * D)
        Wx = Wx.at[rows, k * D:(k + 1) * D].set(
            jnp.broadcast_to(Wk[R][:, None], (D, D)))            # B coeff -> D lanes
        Wx = Wx.at[rows, KD + k * D:KD + (k + 1) * D].set(
            jnp.broadcast_to(Wk[R + 1][:, None], (D, D)))        # C coeff -> D lanes
        Wx = Wx.at[rows, 2 * KD + k * D:2 * KD + (k + 1) * D].set(
            Wk[:R].T @ sp["dt_proj_w"][k].T)                     # dt_proj folded

    A = -jnp.exp(sp["A_logs"].reshape(-1))
    Dp = sp["Ds"]
    dbias = sp["dt_bias"].reshape(-1)

    ys = fused_selective_scan(xs, Wx, A, Dp, dbias)              # (B, L, K*D)

    # CrossMerge.
    y0, y1, y2, y3 = (ys[..., i * D:(i + 1) * D] for i in range(4))
    y_a = y0 + y2[:, ::-1, :]
    y_b = y1 + y3[:, ::-1, :]
    y_b = y_b.reshape(B, W, H, D).transpose(0, 2, 1, 3).reshape(B, L, D)
    return (y_a + y_b).reshape(B, H, W, D)


def attention_forward(p, x, n1_g, n1_b, pos_enc, num_heads, window_size):
    """Returns x + token_mixer(norm1(x)); norm1 and the block residual are
    fused into the first/last matmul kernels."""
    B, H, W, C = x.shape
    hd = C // num_heads
    scale = hd ** -0.5
    sin, cos = pos_enc                                 # (H, W, hd)
    L = H * W
    M = B * L

    x2d = x.reshape(M, C)
    # Fused LayerNorm -> qkv 1x1 conv.
    qkv = ln_matmul(x2d, n1_g, n1_b, p["qkv_w"], p["qkv_b"]).reshape(B, L, 3 * C)
    q, k, v = qkv[..., :C], qkv[..., C:2 * C], qkv[..., 2 * C:]

    lepe = depthwise_conv2d(v.reshape(B, H, W, C), p["lepe_w"], p["lepe_b"])

    # RoPE on the flat (B, L, C) layout: rotation pairs never cross head
    # boundaries, so this matches the per-head reference exactly (no 5-D
    # head transposes around the attention kernel).
    sin_c = jnp.tile(sin.reshape(L, hd), (1, num_heads))[None]   # (1, L, C)
    cos_c = jnp.tile(cos.reshape(L, hd), (1, num_heads))[None]
    q = theta_shift(q, sin_c, cos_c) * scale
    k = theta_shift(k, sin_c, cos_c)
    # TODO(synk): rotate_every_two still runs in XLA; an in-kernel version
    #             needs a lane roll on a sub-128 minor dim.

    v_r = fused_attention(q, k, v, num_heads, H, W, window_size, window_size)

    # dwconv (+ folded eval-mode BN) fused with SiLU -> VSSM -> fused
    # (LayerNorm2d + v_r + lepe) @ proj + block-residual epilogue.
    v1 = depthwise_conv2d(v_r.reshape(B, H, W, C), p["attn_dw_w"],
                          p["attn_dw_b"], act="silu")
    y = vssm_forward(p["ssm"], v1)
    out = ln_add2_matmul(y.reshape(M, C), v_r.reshape(M, C), lepe.reshape(M, C),
                         x2d, p["attn_norm_g"], p["attn_norm_b"],
                         p["proj_w"], p["proj_b"])
    return out.reshape(B, H, W, C)


def block_forward(p, x, pos_enc, num_heads, window_size):
    B, H, W, E = x.shape
    M = B * H * W

    # x = x + cpe1(x)                 (residual fused in the depthwise kernel)
    x = depthwise_conv2d(x, p["cpe1_w"], p["cpe1_b"], residual=True)
    # x = x + attn(norm1(x))          (norm1 + residual fused into kernels)
    x = attention_forward(p["attn"], x, p["norm1_g"], p["norm1_b"],
                          pos_enc, num_heads, window_size)
    # x = x + cpe2(x)
    x = depthwise_conv2d(x, p["cpe2_w"], p["cpe2_b"], residual=True)

    # FFN: fused (norm2 -> fc1), then fused (GELU + dw + skip + fc2 + residual).
    h = ln_matmul(x.reshape(M, E), p["norm2_g"], p["norm2_b"],
                  p["fc1_w"], p["fc1_b"])
    Fd = h.shape[-1]
    x = ffn_tail(h.reshape(B, H, W, Fd), x, p["ffn_dw_w"], p["ffn_dw_b"],
                 p["fc2_w"], p["fc2_b"])
    return x


# ----------------------------------------------------------------------------
# Deterministic parameter init (shapes follow the PyTorch module __init__)
# ----------------------------------------------------------------------------

def init_params(key, E, num_heads, ffn_dim):
    K, d_state = 4, 1
    R = max(1, math.ceil(E / 16))
    keys = iter(jax.random.split(key, 40))

    def nrm(shape, s=0.02):
        return jax.random.normal(next(keys), shape, jnp.float32) * s

    p = {}
    p["cpe1_w"] = nrm((3, 3, E)); p["cpe1_b"] = nrm((E,))
    p["norm1_g"] = 1.0 + nrm((E,), 0.1); p["norm1_b"] = nrm((E,), 0.1)

    attn = {}
    attn["qkv_w"] = nrm((E, 3 * E)); attn["qkv_b"] = nrm((3 * E,))
    attn["lepe_w"] = nrm((5, 5, E)); attn["lepe_b"] = nrm((E,))
    attn["proj_w"] = nrm((E, E)); attn["proj_b"] = nrm((E,))

    # Attention.dwconv = depthwise 3x3 + BatchNorm2d (eval), folded here.
    dw_w, dw_b = nrm((3, 3, E)), nrm((E,))
    bn_g = 1.0 + nrm((E,), 0.1); bn_b = nrm((E,), 0.1)
    bn_rm = nrm((E,), 0.1); bn_rv = 1.0 + jnp.abs(nrm((E,), 0.1))
    sc = bn_g / jnp.sqrt(bn_rv + 1e-5)
    attn["attn_dw_w"] = dw_w * sc[None, None, :]
    attn["attn_dw_b"] = (dw_b - bn_rm) * sc + bn_b
    attn["attn_norm_g"] = 1.0 + nrm((E,), 0.1); attn["attn_norm_b"] = nrm((E,), 0.1)

    ssm = {}
    ssm["x_proj_w"] = nrm((K, R + 2 * d_state, E), E ** -0.5)
    dt_std = R ** -0.5
    ssm["dt_proj_w"] = jax.random.uniform(next(keys), (K, E, R), jnp.float32,
                                          -dt_std, dt_std)
    dt = jnp.exp(jax.random.uniform(next(keys), (K, E), jnp.float32)
                 * (math.log(0.1) - math.log(0.001)) + math.log(0.001))
    dt = jnp.maximum(dt, 1e-4)
    ssm["dt_bias"] = dt + jnp.log(-jnp.expm1(-dt))           # inverse-softplus init
    ssm["A_logs"] = jnp.zeros((K * E, d_state), jnp.float32)  # log(arange(1,2)) == 0
    ssm["Ds"] = jnp.ones((K * E,), jnp.float32)
    attn["ssm"] = ssm
    p["attn"] = attn

    p["cpe2_w"] = nrm((3, 3, E)); p["cpe2_b"] = nrm((E,))
    p["norm2_g"] = 1.0 + nrm((E,), 0.1); p["norm2_b"] = nrm((E,), 0.1)
    p["fc1_w"] = nrm((E, ffn_dim)); p["fc1_b"] = nrm((ffn_dim,))
    p["ffn_dw_w"] = nrm((3, 3, ffn_dim)); p["ffn_dw_b"] = nrm((ffn_dim,))
    p["fc2_w"] = nrm((ffn_dim, E)); p["fc2_b"] = nrm((E,))
    return p


# ----------------------------------------------------------------------------
# Main
# ----------------------------------------------------------------------------

if __name__ == "__main__":
    B, E, H, W = 2, 32, 8, 8
    num_heads, window_size, ffn_dim = 2, 7, 64

    key = jax.random.PRNGKey(0)
    kp, kx = jax.random.split(key)
    params = init_params(kp, E, num_heads, ffn_dim)
    x = jax.random.normal(kx, (B, H, W, E), jnp.float32)      # NHWC input
    pos_enc = make_pos_enc(H, W, E // num_heads)

    fwd = jax.jit(partial(block_forward, num_heads=num_heads,
                          window_size=window_size))
    out = fwd(params, x, pos_enc)
    jax.block_until_ready(out)
    assert out.shape == (B, H, W, E)
    assert bool(jnp.all(jnp.isfinite(out)))
    print("KERNEL_OK")
</pallas_src>

<mosaic_0001>
module attributes {stable_mosaic.version = 11 : i64} {
  func.func @kernel(%arg0: i32, %arg1: memref<64x32xf32, #tpu.memory_space<vmem>>, %arg2: memref<1x32xf32, #tpu.memory_space<vmem>>, %arg3: memref<1x32xf32, #tpu.memory_space<vmem>>, %arg4: memref<32x96xf32, #tpu.memory_space<vmem>>, %arg5: memref<1x96xf32, #tpu.memory_space<vmem>>, %arg6: memref<64x96xf32, #tpu.memory_space<vmem>>) attributes {dimension_semantics = [#tpu.dimension_semantics<parallel>], iteration_bounds = array<i64: 2>, scalar_prefetch = 0 : i64, scratch_operands = 0 : i64, tpu.core_type = #tpu.core_type<tc>, window_params = [{transform_indices = @transform_0, window_bounds = array<i64: 64, 32>}, {pipeline_mode = #tpu.pipeline_mode<synchronous>, transform_indices = @transform_1, window_bounds = array<i64: 1, 32>}, {pipeline_mode = #tpu.pipeline_mode<synchronous>, transform_indices = @transform_2, window_bounds = array<i64: 1, 32>}, {pipeline_mode = #tpu.pipeline_mode<synchronous>, transform_indices = @transform_3, window_bounds = array<i64: 32, 96>}, {pipeline_mode = #tpu.pipeline_mode<synchronous>, transform_indices = @transform_4, window_bounds = array<i64: 1, 96>}, {transform_indices = @transform_5, window_bounds = array<i64: 64, 96>}]} {
    %c0 = arith.constant 0 : index
    %c0_0 = arith.constant 0 : index
    %0 = vector.load %arg1[%c0, %c0_0] : memref<64x32xf32, #tpu.memory_space<vmem>>, vector<64x32xf32>
    %cst = arith.constant dense<0.000000e+00> : vector<64xf32>
    %1 = vector.multi_reduction <add>, %0, %cst [1] : vector<64x32xf32> to vector<64xf32>
    %2 = vector.shape_cast %1 : vector<64xf32> to vector<64x1xf32>
    %cst_1 = arith.constant 3.200000e+01 : f32
    %3 = vector.broadcast %cst_1 : f32 to vector<64x1xf32>
    %4 = arith.divf %2, %3 : vector<64x1xf32>
    %5 = vector.broadcast %4 : vector<64x1xf32> to vector<64x32xf32>
    %6 = arith.subf %0, %5 : vector<64x32xf32>
    %7 = arith.mulf %6, %6 : vector<64x32xf32>
    %cst_2 = arith.constant dense<0.000000e+00> : vector<64xf32>
    %8 = vector.multi_reduction <add>, %7, %cst_2 [1] : vector<64x32xf32> to vector<64xf32>
    %9 = vector.shape_cast %8 : vector<64xf32> to vector<64x1xf32>
    %cst_3 = arith.constant 3.200000e+01 : f32
    %10 = vector.broadcast %cst_3 : f32 to vector<64x1xf32>
    %11 = arith.divf %9, %10 : vector<64x1xf32>
    %cst_4 = arith.constant 9.99999997E-7 : f32
    %12 = vector.broadcast %cst_4 : f32 to vector<64x1xf32>
    %13 = arith.addf %11, %12 : vector<64x1xf32>
    %14 = math.rsqrt %13 : vector<64x1xf32>
    %15 = vector.broadcast %14 : vector<64x1xf32> to vector<64x32xf32>
    %16 = arith.mulf %6, %15 : vector<64x32xf32>
    %c0_5 = arith.constant 0 : index
    %c0_6 = arith.constant 0 : index
    %17 = vector.load %arg2[%c0_5, %c0_6] : memref<1x32xf32, #tpu.memory_space<vmem>>, vector<1x32xf32>
    %18 = vector.broadcast %17 : vector<1x32xf32> to vector<64x32xf32>
    %19 = arith.mulf %16, %18 : vector<64x32xf32>
    %c0_7 = arith.constant 0 : index
    %c0_8 = arith.constant 0 : index
    %20 = vector.load %arg3[%c0_7, %c0_8] : memref<1x32xf32, #tpu.memory_space<vmem>>, vector<1x32xf32>
    %21 = vector.broadcast %20 : vector<1x32xf32> to vector<64x32xf32>
    %22 = arith.addf %19, %21 : vector<64x32xf32>
    %23 = arith.truncf %22 : vector<64x32xf32> to vector<64x32xbf16>
    %c0_9 = arith.constant 0 : index
    %c0_10 = arith.constant 0 : index
    %24 = vector.load %arg4[%c0_9, %c0_10] : memref<32x96xf32, #tpu.memory_space<vmem>>, vector<32x96xf32>
    %25 = arith.truncf %24 : vector<32x96xf32> to vector<32x96xbf16>
    %cst_11 = arith.constant dense<0.000000e+00> : vector<64x96xf32>
    %26 = tpu.matmul %23, %25, %cst_11 {dimension_numbers = #tpu.dot_dimension_numbers<[1], [0], [0], [1], [0, 0, 1, 1], [], []>} : vector<64x32xbf16>, vector<32x96xbf16>, vector<64x96xf32> -> vector<64x96xf32>
    %c0_12 = arith.constant 0 : index
    %c0_13 = arith.constant 0 : index
    %27 = vector.load %arg5[%c0_12, %c0_13] : memref<1x96xf32, #tpu.memory_space<vmem>>, vector<1x96xf32>
    %28 = vector.broadcast %27 : vector<1x96xf32> to vector<64x96xf32>
    %29 = arith.addf %26, %28 : vector<64x96xf32>
    %c0_14 = arith.constant 0 : index
    %c0_15 = arith.constant 0 : index
    %30 = vector.load %arg6[%c0_14, %c0_15] : memref<64x96xf32, #tpu.memory_space<vmem>>, vector<64x96xf32>
    tpu.vector_store %arg6[%c0_14, %c0_15], %29 {strides = array<i32>} : memref<64x96xf32, #tpu.memory_space<vmem>>, vector<64x96xf32>,
    return
  }
  func.func @transform_0(%arg0: i32) -> (i32, i32) {
    %c0_i32 = arith.constant 0 : i32
    %c0_i32_0 = arith.constant 0 : i32
    return %arg0, %c0_i32 : i32, i32
  }
  func.func @transform_1(%arg0: i32) -> (i32, i32) {
    %c0_i32 = arith.constant 0 : i32
    %c0_i32_0 = arith.constant 0 : i32
    %c0_i32_1 = arith.constant 0 : i32
    return %c0_i32, %c0_i32_0 : i32, i32
  }
  func.func @transform_2(%arg0: i32) -> (i32, i32) {
    %c0_i32 = arith.constant 0 : i32
    %c0_i32_0 = arith.constant 0 : i32
    %c0_i32_1 = arith.constant 0 : i32
    return %c0_i32, %c0_i32_0 : i32, i32
  }
  func.func @transform_3(%arg0: i32) -> (i32, i32) {
    %c0_i32 = arith.constant 0 : i32
    %c0_i32_0 = arith.constant 0 : i32
    %c0_i32_1 = arith.constant 0 : i32
    return %c0_i32, %c0_i32_0 : i32, i32
  }
  func.func @transform_4(%arg0: i32) -> (i32, i32) {
    %c0_i32 = arith.constant 0 : i32
    %c0_i32_0 = arith.constant 0 : i32
    %c0_i32_1 = arith.constant 0 : i32
    return %c0_i32, %c0_i32_0 : i32, i32
  }
  func.func @transform_5(%arg0: i32) -> (i32, i32) {
    %c0_i32 = arith.constant 0 : i32
    %c0_i32_0 = arith.constant 0 : i32
    return %arg0, %c0_i32 : i32, i32
  }
}

module attributes {stable_mosaic.version = 11 : i64} {
  func.func @kernel(%arg0: i32, %arg1: memref<1x8x8x32xf32, #tpu.memory_space<vmem>>, %arg2: memref<9x32xf32, #tpu.memory_space<vmem>>, %arg3: memref<1x32xf32, #tpu.memory_space<vmem>>, %arg4: memref<1x8x8x32xf32, #tpu.memory_space<vmem>>, %arg5: memref<10x10x32xf32, #tpu.memory_space<vmem>>) attributes {dimension_semantics = [#tpu.dimension_semantics<parallel>], iteration_bounds = array<i64: 2>, scalar_prefetch = 0 : i64, scratch_operands = 1 : i64, tpu.core_type = #tpu.core_type<tc>, window_params = [{transform_indices = @transform_0, window_bounds = array<i64: 1, 8, 8, 32>}, {pipeline_mode = #tpu.pipeline_mode<synchronous>, transform_indices = @transform_1, window_bounds = array<i64: 9, 32>}, {pipeline_mode = #tpu.pipeline_mode<synchronous>, transform_indices = @transform_2, window_bounds = array<i64: 1, 32>}, {transform_indices = @transform_3, window_bounds = array<i64: 1, 8, 8, 32>}]} {
    %c0 = arith.constant 0 : index
    %c0_0 = arith.constant 0 : index
    %c0_1 = arith.constant 0 : index
    %c0_2 = arith.constant 0 : index
    %0 = vector.load %arg1[%c0, %c0_0, %c0_1, %c0_2] : memref<1x8x8x32xf32, #tpu.memory_space<vmem>>, vector<1x8x8x32xf32>
    %1 = vector.shape_cast %0 : vector<1x8x8x32xf32> to vector<8x8x32xf32>
    %cst = arith.constant 0.000000e+00 : f32
    %2 = vector.broadcast %cst : f32 to vector<10x10x32xf32>
    %c0_3 = arith.constant 0 : index
    %c0_4 = arith.constant 0 : index
    %c0_5 = arith.constant 0 : index
    %3 = vector.load %arg5[%c0_3, %c0_4, %c0_5] : memref<10x10x32xf32, #tpu.memory_space<vmem>>, vector<10x10x32xf32>
    tpu.vector_store %arg5[%c0_3, %c0_4, %c0_5], %2 {strides = array<i32>} : memref<10x10x32xf32, #tpu.memory_space<vmem>>, vector<10x10x32xf32>,
    %c1 = arith.constant 1 : index
    %c1_6 = arith.constant 1 : index
    %c0_7 = arith.constant 0 : index
    %4 = vector.load %arg5[%c1, %c1_6, %c0_7] : memref<10x10x32xf32, #tpu.memory_space<vmem>>, vector<8x8x32xf32>
    tpu.vector_store %arg5[%c1, %c1_6, %c0_7], %1 {strides = array<i32>} : memref<10x10x32xf32, #tpu.memory_space<vmem>>, vector<8x8x32xf32>,
    %cst_8 = arith.constant 0.000000e+00 : f32
    %5 = vector.broadcast %cst_8 : f32 to vector<8x8x32xf32>
    %c0_9 = arith.constant 0 : index
    %c0_10 = arith.constant 0 : index
    %c0_11 = arith.constant 0 : index
    %6 = vector.load %arg5[%c0_9, %c0_10, %c0_11] : memref<10x10x32xf32, #tpu.memory_space<vmem>>, vector<8x8x32xf32>
    %c0_12 = arith.constant 0 : index
    %c0_13 = arith.constant 0 : index
    %7 = vector.load %arg2[%c0_12, %c0_13] : memref<9x32xf32, #tpu.memory_space<vmem>>, vector<1x32xf32>
    %8 = vector.shape_cast %7 : vector<1x32xf32> to vector<1x1x32xf32>
    %9 = vector.broadcast %8 : vector<1x1x32xf32> to vector<8x8x32xf32>
    %10 = arith.mulf %6, %9 : vector<8x8x32xf32>
    %11 = arith.addf %5, %10 : vector<8x8x32xf32>
    %c0_14 = arith.constant 0 : index
    %c1_15 = arith.constant 1 : index
    %c0_16 = arith.constant 0 : index
    %12 = vector.load %arg5[%c0_14, %c1_15, %c0_16] : memref<10x10x32xf32, #tpu.memory_space<vmem>>, vector<8x8x32xf32>
    %c1_17 = arith.constant 1 : index
    %c0_18 = arith.constant 0 : index
    %13 = vector.load %arg2[%c1_17, %c0_18] : memref<9x32xf32, #tpu.memory_space<vmem>>, vector<1x32xf32>
    %14 = vector.shape_cast %13 : vector<1x32xf32> to vector<1x1x32xf32>
    %15 = vector.broadcast %14 : vector<1x1x32xf32> to vector<8x8x32xf32>
    %16 = arith.mulf %12, %15 : vector<8x8x32xf32>
    %17 = arith.addf %11, %16 : vector<8x8x32xf32>
    %c0_19 = arith.constant 0 : index
    %c2 = arith.constant 2 : index
    %c0_20 = arith.constant 0 : index
    %18 = vector.load %arg5[%c0_19, %c2, %c0_20] : memref<10x10x32xf32, #tpu.memory_space<vmem>>, vector<8x8x32xf32>
    %c2_21 = arith.constant 2 : index
    %c0_22 = arith.constant 0 : index
    %19 = vector.load %arg2[%c2_21, %c0_22] : memref<9x32xf32, #tpu.memory_space<vmem>>, vector<1x32xf32>
    %20 = vector.shape_cast %19 : vector<1x32xf32> to vector<1x1x32xf32>
    %21 = vector.broadcast %20 : vector<1x1x32xf32> to vector<8x8x32xf32>
    %22 = arith.mulf %18, %21 : vector<8x8x32xf32>
    %23 = arith.addf %17, %22 : vector<8x8x32xf32>
    %c1_23 = arith.constant 1 : index
    %c0_24 = arith.constant 0 : index
    %c0_25 = arith.constant 0 : index
    %24 = vector.load %arg5[%c1_23, %c0_24, %c0_25] : memref<10x10x32xf32, #tpu.memory_space<vmem>>, vector<8x8x32xf32>
    %c3 = arith.constant 3 : index
    %c0_26 = arith.constant 0 : index
    %25 = vector.load %arg2[%c3, %c0_26] : memref<9x32xf32, #tpu.memory_space<vmem>>, vector<1x32xf32>
    %26 = vector.shape_cast %25 : vector<1x32xf32> to vector<1x1x32xf32>
    %27 = vector.broadcast %26 : vector<1x1x32xf32> to vector<8x8x32xf32>
    %28 = arith.mulf %24, %27 : vector<8x8x32xf32>
    %29 = arith.addf %23, %28 : vector<8x8x32xf32>
    %c1_27 = arith.constant 1 : index
    %c1_28 = arith.constant 1 : index
    %c0_29 = arith.constant 0 : index
    %30 = vector.load %arg5[%c1_27, %c1_28, %c0_29] : memref<10x10x32xf32, #tpu.memory_space<vmem>>, vector<8x8x32xf32>
    %c4 = arith.constant 4 : index
    %c0_30 = arith.constant 0 : index
    %31 = vector.load %arg2[%c4, %c0_30] : memref<9x32xf32, #tpu.memory_space<vmem>>, vector<1x32xf32>
    %32 = vector.shape_cast %31 : vector<1x32xf32> to vector<1x1x32xf32>
    %33 = vector.broadcast %32 : vector<1x1x32xf32> to vector<8x8x32xf32>
    %34 = arith.mulf %30, %33 : vector<8x8x32xf32>
    %35 = arith.addf %29, %34 : vector<8x8x32xf32>
    %c1_31 = arith.constant 1 : index
    %c2_32 = arith.constant 2 : index
    %c0_33 = arith.constant 0 : index
    %36 = vector.load %arg5[%c1_31, %c2_32, %c0_33] : memref<10x10x32xf32, #tpu.memory_space<vmem>>, vector<8x8x32xf32>
    %c5 = arith.constant 5 : index
    %c0_34 = arith.constant 0 : index
    %37 = vector.load %arg2[%c5, %c0_34] : memref<9x32xf32, #tpu.memory_space<vmem>>, vector<1x32xf32>
    %38 = vector.shape_cast %37 : vector<1x32xf32> to vector<1x1x32xf32>
    %39 = vector.broadcast %38 : vector<1x1x32xf32> to vector<8x8x32xf32>
    %40 = arith.mulf %36, %39 : vector<8x8x32xf32>
    %41 = arith.addf %35, %40 : vector<8x8x32xf32>
    %c2_35 = arith.constant 2 : index
    %c0_36 = arith.constant 0 : index
    %c0_37 = arith.constant 0 : index
    %42 = vector.load %arg5[%c2_35, %c0_36, %c0_37] : memref<10x10x32xf32, #tpu.memory_space<vmem>>, vector<8x8x32xf32>
    %c6 = arith.constant 6 : index
    %c0_38 = arith.constant 0 : index
    %43 = vector.load %arg2[%c6, %c0_38] : memref<9x32xf32, #tpu.memory_space<vmem>>, vector<1x32xf32>
    %44 = vector.shape_cast %43 : vector<1x32xf32> to vector<1x1x32xf32>
    %45 = vector.broadcast %44 : vector<1x1x32xf32> to vector<8x8x32xf32>
    %46 = arith.mulf %42, %45 : vector<8x8x32xf32>
    %47 = arith.addf %41, %46 : vector<8x8x32xf32>
    %c2_39 = arith.constant 2 : index
    %c1_40 = arith.constant 1 : index
    %c0_41 = arith.constant 0 : index
    %48 = vector.load %arg5[%c2_39, %c1_40, %c0_41] : memref<10x10x32xf32, #tpu.memory_space<vmem>>, vector<8x8x32xf32>
    %c7 = arith.constant 7 : index
    %c0_42 = arith.constant 0 : index
    %49 = vector.load %arg2[%c7, %c0_42] : memref<9x32xf32, #tpu.memory_space<vmem>>, vector<1x32xf32>
    %50 = vector.shape_cast %49 : vector<1x32xf32> to vector<1x1x32xf32>
    %51 = vector.broadcast %50 : vector<1x1x32xf32> to vector<8x8x32xf32>
    %52 = arith.mulf %48, %51 : vector<8x8x32xf32>
    %53 = arith.addf %47, %52 : vector<8x8x32xf32>
    %c2_43 = arith.constant 2 : index
    %c2_44 = arith.constant 2 : index
    %c0_45 = arith.constant 0 : index
    %54 = vector.load %arg5[%c2_43, %c2_44, %c0_45] : memref<10x10x32xf32, #tpu.memory_space<vmem>>, vector<8x8x32xf32>
    %c8 = arith.constant 8 : index
    %c0_46 = arith.constant 0 : index
    %55 = vector.load %arg2[%c8, %c0_46] : memref<9x32xf32, #tpu.memory_space<vmem>>, vector<1x32xf32>
    %56 = vector.shape_cast %55 : vector<1x32xf32> to vector<1x1x32xf32>
    %57 = vector.broadcast %56 : vector<1x1x32xf32> to vector<8x8x32xf32>
    %58 = arith.mulf %54, %57 : vector<8x8x32xf32>
    %59 = arith.addf %53, %58 : vector<8x8x32xf32>
    %c0_47 = arith.constant 0 : index
    %c0_48 = arith.constant 0 : index
    %60 = vector.load %arg3[%c0_47, %c0_48] : memref<1x32xf32, #tpu.memory_space<vmem>>, vector<1x32xf32>
    %61 = vector.shape_cast %60 : vector<1x32xf32> to vector<1x1x32xf32>
    %62 = vector.broadcast %61 : vector<1x1x32xf32> to vector<8x8x32xf32>
    %63 = arith.addf %59, %62 : vector<8x8x32xf32>
    %64 = arith.addf %63, %1 : vector<8x8x32xf32>
    %c0_49 = arith.constant 0 : index
    %c0_50 = arith.constant 0 : index
    %c0_51 = arith.constant 0 : index
    %c0_52 = arith.constant 0 : index
    %65 = vector.load %arg4[%c0_49, %c0_50, %c0_51, %c0_52] : memref<1x8x8x32xf32, #tpu.memory_space<vmem>>, vector<1x8x8x32xf32>
    %66 = vector.shape_cast %65 : vector<1x8x8x32xf32> to vector<8x8x32xf32>
    %67 = vector.shape_cast %64 : vector<8x8x32xf32> to vector<1x8x8x32xf32>
    tpu.vector_store %arg4[%c0_49, %c0_50, %c0_51, %c0_52], %67 {strides = array<i32>} : memref<1x8x8x32xf32, #tpu.memory_space<vmem>>, vector<1x8x8x32xf32>,
    return
  }
  func.func @transform_0(%arg0: i32) -> (i32, i32, i32, i32) {
    %c0_i32 = arith.constant 0 : i32
    %c0_i32_0 = arith.constant 0 : i32
    %c0_i32_1 = arith.constant 0 : i32
    %c0_i32_2 = arith.constant 0 : i32
    return %arg0, %c0_i32, %c0_i32_0, %c0_i32_1 : i32, i32, i32, i32
  }
  func.func @transform_1(%arg0: i32) -> (i32, i32) {
    %c0_i32 = arith.constant 0 : i32
    %c0_i32_0 = arith.constant 0 : i32
    %c0_i32_1 = arith.constant 0 : i32
    return %c0_i32, %c0_i32_0 : i32, i32
  }
  func.func @transform_2(%arg0: i32) -> (i32, i32) {
    %c0_i32 = arith.constant 0 : i32
    %c0_i32_0 = arith.constant 0 : i32
    %c0_i32_1 = arith.constant 0 : i32
    return %c0_i32, %c0_i32_0 : i32, i32
  }
  func.func @transform_3(%arg0: i32) -> (i32, i32, i32, i32) {
    %c0_i32 = arith.constant 0 : i32
    %c0_i32_0 = arith.constant 0 : i32
    %c0_i32_1 = arith.constant 0 : i32
    %c0_i32_2 = arith.constant 0 : i32
    return %arg0, %c0_i32, %c0_i32_0, %c0_i32_1 : i32, i32, i32, i32
  }
}

module attributes {stable_mosaic.version = 11 : i64} {
  func.func @kernel(%arg0: i32, %arg1: memref<1x64x32xf32, #tpu.memory_space<vmem>>, %arg2: memref<1x64x32xf32, #tpu.memory_space<vmem>>, %arg3: memref<1x64x32xf32, #tpu.memory_space<vmem>>, %arg4: memref<1x64x32xf32, #tpu.memory_space<vmem>>) attributes {dimension_semantics = [#tpu.dimension_semantics<parallel>], iteration_bounds = array<i64: 2>, scalar_prefetch = 0 : i64, scratch_operands = 0 : i64, tpu.core_type = #tpu.core_type<tc>, window_params = [{transform_indices = @transform_0, window_bounds = array<i64: 1, 64, 32>}, {transform_indices = @transform_1, window_bounds = array<i64: 1, 64, 32>}, {transform_indices = @transform_2, window_bounds = array<i64: 1, 64, 32>}, {transform_indices = @transform_3, window_bounds = array<i64: 1, 64, 32>}]} {
    %0 = tpu.iota {dimensions = array<i32: 0>} : vector<64x64xi32>
    %1 = tpu.iota {dimensions = array<i32: 1>} : vector<64x64xi32>
    %c3_i32 = arith.constant 3 : i32
    %2 = vector.broadcast %c3_i32 : i32 to vector<64x64xi32>
    %3 = arith.shrsi %0, %2 : vector<64x64xi32>
    %c7_i32 = arith.constant 7 : i32
    %4 = vector.broadcast %c7_i32 : i32 to vector<64x64xi32>
    %5 = arith.andi %0, %4 : vector<64x64xi32>
    %c3_i32_0 = arith.constant 3 : i32
    %6 = vector.broadcast %c3_i32_0 : i32 to vector<64x64xi32>
    %7 = arith.shrsi %1, %6 : vector<64x64xi32>
    %c7_i32_1 = arith.constant 7 : i32
    %8 = vector.broadcast %c7_i32_1 : i32 to vector<64x64xi32>
    %9 = arith.andi %1, %8 : vector<64x64xi32>
    %c3_i32_2 = arith.constant 3 : i32
    %10 = vector.broadcast %c3_i32_2 : i32 to vector<64x64xi32>
    %11 = arith.subi %3, %10 : vector<64x64xi32>
    %c0_i32 = arith.constant 0 : i32
    %c1_i32 = arith.constant 1 : i32
    %12 = vector.broadcast %c0_i32 : i32 to vector<64x64xi32>
    %13 = arith.maxsi %12, %11 : vector<64x64xi32>
    %14 = vector.broadcast %c1_i32 : i32 to vector<64x64xi32>
    %15 = arith.minsi %14, %13 : vector<64x64xi32>
    %c3_i32_3 = arith.constant 3 : i32
    %16 = vector.broadcast %c3_i32_3 : i32 to vector<64x64xi32>
    %17 = arith.subi %5, %16 : vector<64x64xi32>
    %c0_i32_4 = arith.constant 0 : i32
    %c1_i32_5 = arith.constant 1 : i32
    %18 = vector.broadcast %c0_i32_4 : i32 to vector<64x64xi32>
    %19 = arith.maxsi %18, %17 : vector<64x64xi32>
    %20 = vector.broadcast %c1_i32_5 : i32 to vector<64x64xi32>
    %21 = arith.minsi %20, %19 : vector<64x64xi32>
    %22 = arith.cmpi sge, %7, %15 : vector<64x64xi32>
    %c7_i32_6 = arith.constant 7 : i32
    %23 = vector.broadcast %c7_i32_6 : i32 to vector<64x64xi32>
    %24 = arith.addi %15, %23 : vector<64x64xi32>
    %25 = arith.cmpi slt, %7, %24 : vector<64x64xi32>
    %26 = arith.andi %22, %25 : vector<64x64xi1>
    %27 = arith.cmpi sge, %9, %21 : vector<64x64xi32>
    %28 = arith.andi %26, %27 : vector<64x64xi1>
    %c7_i32_7 = arith.constant 7 : i32
    %29 = vector.broadcast %c7_i32_7 : i32 to vector<64x64xi32>
    %30 = arith.addi %21, %29 : vector<64x64xi32>
    %31 = arith.cmpi slt, %9, %30 : vector<64x64xi32>
    %32 = arith.andi %28, %31 : vector<64x64xi1>
    %c0 = arith.constant 0 : index
    %c0_8 = arith.constant 0 : index
    %c0_9 = arith.constant 0 : index
    %33 = vector.load %arg1[%c0, %c0_8, %c0_9] : memref<1x64x32xf32, #tpu.memory_space<vmem>>, vector<1x64x16xf32>
    %34 = vector.shape_cast %33 : vector<1x64x16xf32> to vector<64x16xf32>
    %35 = arith.truncf %34 : vector<64x16xf32> to vector<64x16xbf16>
    %c0_10 = arith.constant 0 : index
    %c0_11 = arith.constant 0 : index
    %c0_12 = arith.constant 0 : index
    %36 = vector.load %arg2[%c0_10, %c0_11, %c0_12] : memref<1x64x32xf32, #tpu.memory_space<vmem>>, vector<1x64x16xf32>
    %37 = vector.shape_cast %36 : vector<1x64x16xf32> to vector<64x16xf32>
    %38 = arith.truncf %37 : vector<64x16xf32> to vector<64x16xbf16>
    %c0_13 = arith.constant 0 : index
    %c0_14 = arith.constant 0 : index
    %c0_15 = arith.constant 0 : index
    %39 = vector.load %arg3[%c0_13, %c0_14, %c0_15] : memref<1x64x32xf32, #tpu.memory_space<vmem>>, vector<1x64x16xf32>
    %40 = vector.shape_cast %39 : vector<1x64x16xf32> to vector<64x16xf32>
    %41 = arith.truncf %40 : vector<64x16xf32> to vector<64x16xbf16>
    %cst = arith.constant dense<0.000000e+00> : vector<64x64xf32>
    %42 = tpu.matmul %35, %38, %cst {dimension_numbers = #tpu.dot_dimension_numbers<[1], [1], [0], [0], [0, 0, 1, 0], [], []>} : vector<64x16xbf16>, vector<64x16xbf16>, vector<64x64xf32> -> vector<64x64xf32>
    %cst_16 = arith.constant -1.000000e+30 : f32
    %43 = vector.broadcast %cst_16 : f32 to vector<64x64xf32>
    %44 = arith.select %32, %42, %43 : vector<64x64xi1>, vector<64x64xf32>
    %cst_17 = arith.constant dense<0xFF800000> : vector<64xf32>
    %45 = vector.multi_reduction <maximumf>, %44, %cst_17 [1] : vector<64x64xf32> to vector<64xf32>
    %46 = vector.shape_cast %45 : vector<64xf32> to vector<64x1xf32>
    %47 = vector.broadcast %46 : vector<64x1xf32> to vector<64x64xf32>
    %48 = arith.subf %44, %47 : vector<64x64xf32>
    %49 = math.exp %48 : vector<64x64xf32>
    %cst_18 = arith.constant dense<0.000000e+00> : vector<64xf32>
    %50 = vector.multi_reduction <add>, %49, %cst_18 [1] : vector<64x64xf32> to vector<64xf32>
    %51 = vector.shape_cast %50 : vector<64xf32> to vector<64x1xf32>
    %52 = tpu.reciprocal %51 {approx = true} : vector<64x1xf32> -> vector<64x1xf32>
    %53 = vector.broadcast %52 : vector<64x1xf32> to vector<64x64xf32>
    %54 = arith.mulf %49, %53 : vector<64x64xf32>
    %55 = arith.truncf %54 : vector<64x64xf32> to vector<64x64xbf16>
    %cst_19 = arith.constant dense<0.000000e+00> : vector<64x16xf32>
    %56 = tpu.matmul %55, %41, %cst_19 {dimension_numbers = #tpu.dot_dimension_numbers<[1], [0], [0], [1], [0, 0, 1, 1], [], []>} : vector<64x64xbf16>, vector<64x16xbf16>, vector<64x16xf32> -> vector<64x16xf32>
    %c0_20 = arith.constant 0 : index
    %c0_21 = arith.constant 0 : index
    %c0_22 = arith.constant 0 : index
    %57 = vector.load %arg4[%c0_20, %c0_21, %c0_22] : memref<1x64x32xf32, #tpu.memory_space<vmem>>, vector<1x64x16xf32>
    %58 = vector.shape_cast %57 : vector<1x64x16xf32> to vector<64x16xf32>
    %59 = vector.shape_cast %56 : vector<64x16xf32> to vector<1x64x16xf32>
    tpu.vector_store %arg4[%c0_20, %c0_21, %c0_22], %59 {strides = array<i32>} : memref<1x64x32xf32, #tpu.memory_space<vmem>>, vector<1x64x16xf32>,
    %c0_23 = arith.constant 0 : index
    %c0_24 = arith.constant 0 : index
    %c16 = arith.constant 16 : index
    %60 = vector.load %arg1[%c0_23, %c0_24, %c16] : memref<1x64x32xf32, #tpu.memory_space<vmem>>, vector<1x64x16xf32>
    %61 = vector.shape_cast %60 : vector<1x64x16xf32> to vector<64x16xf32>
    %62 = arith.truncf %61 : vector<64x16xf32> to vector<64x16xbf16>
    %c0_25 = arith.constant 0 : index
    %c0_26 = arith.constant 0 : index
    %c16_27 = arith.constant 16 : index
    %63 = vector.load %arg2[%c0_25, %c0_26, %c16_27] : memref<1x64x32xf32, #tpu.memory_space<vmem>>, vector<1x64x16xf32>
    %64 = vector.shape_cast %63 : vector<1x64x16xf32> to vector<64x16xf32>
    %65 = arith.truncf %64 : vector<64x16xf32> to vector<64x16xbf16>
    %c0_28 = arith.constant 0 : index
    %c0_29 = arith.constant 0 : index
    %c16_30 = arith.constant 16 : index
    %66 = vector.load %arg3[%c0_28, %c0_29, %c16_30] : memref<1x64x32xf32, #tpu.memory_space<vmem>>, vector<1x64x16xf32>
    %67 = vector.shape_cast %66 : vector<1x64x16xf32> to vector<64x16xf32>
    %68 = arith.truncf %67 : vector<64x16xf32> to vector<64x16xbf16>
    %cst_31 = arith.constant dense<0.000000e+00> : vector<64x64xf32>
    %69 = tpu.matmul %62, %65, %cst_31 {dimension_numbers = #tpu.dot_dimension_numbers<[1], [1], [0], [0], [0, 0, 1, 0], [], []>} : vector<64x16xbf16>, vector<64x16xbf16>, vector<64x64xf32> -> vector<64x64xf32>
    %cst_32 = arith.constant -1.000000e+30 : f32
    %70 = vector.broadcast %cst_32 : f32 to vector<64x64xf32>
    %71 = arith.select %32, %69, %70 : vector<64x64xi1>, vector<64x64xf32>
    %cst_33 = arith.constant dense<0xFF800000> : vector<64xf32>
    %72 = vector.multi_reduction <maximumf>, %71, %cst_33 [1] : vector<64x64xf32> to vector<64xf32>
    %73 = vector.shape_cast %72 : vector<64xf32> to vector<64x1xf32>
    %74 = vector.broadcast %73 : vector<64x1xf32> to vector<64x64xf32>
    %75 = arith.subf %71, %74 : vector<64x64xf32>
    %76 = math.exp %75 : vector<64x64xf32>
    %cst_34 = arith.constant dense<0.000000e+00> : vector<64xf32>
    %77 = vector.multi_reduction <add>, %76, %cst_34 [1] : vector<64x64xf32> to vector<64xf32>
    %78 = vector.shape_cast %77 : vector<64xf32> to vector<64x1xf32>
    %79 = tpu.reciprocal %78 {approx = true} : vector<64x1xf32> -> vector<64x1xf32>
    %80 = vector.broadcast %79 : vector<64x1xf32> to vector<64x64xf32>
    %81 = arith.mulf %76, %80 : vector<64x64xf32>
    %82 = arith.truncf %81 : vector<64x64xf32> to vector<64x64xbf16>
    %cst_35 = arith.constant dense<0.000000e+00> : vector<64x16xf32>
    %83 = tpu.matmul %82, %68, %cst_35 {dimension_numbers = #tpu.dot_dimension_numbers<[1], [0], [0], [1], [0, 0, 1, 1], [], []>} : vector<64x64xbf16>, vector<64x16xbf16>, vector<64x16xf32> -> vector<64x16xf32>
    %c0_36 = arith.constant 0 : index
    %c0_37 = arith.constant 0 : index
    %c16_38 = arith.constant 16 : index
    %84 = vector.load %arg4[%c0_36, %c0_37, %c16_38] : memref<1x64x32xf32, #tpu.memory_space<vmem>>, vector<1x64x16xf32>
    %85 = vector.shape_cast %84 : vector<1x64x16xf32> to vector<64x16xf32>
    %86 = vector.shape_cast %83 : vector<64x16xf32> to vector<1x64x16xf32>
    tpu.vector_store %arg4[%c0_36, %c0_37, %c16_38], %86 {strides = array<i32>} : memref<1x64x32xf32, #tpu.memory_space<vmem>>, vector<1x64x16xf32>,
    return
  }
  func.func @transform_0(%arg0: i32) -> (i32, i32, i32) {
    %c0_i32 = arith.constant 0 : i32
    %c0_i32_0 = arith.constant 0 : i32
    %c0_i32_1 = arith.constant 0 : i32
    return %arg0, %c0_i32, %c0_i32_0 : i32, i32, i32
  }
  func.func @transform_1(%arg0: i32) -> (i32, i32, i32) {
    %c0_i32 = arith.constant 0 : i32
    %c0_i32_0 = arith.constant 0 : i32
    %c0_i32_1 = arith.constant 0 : i32
    return %arg0, %c0_i32, %c0_i32_0 : i32, i32, i32
  }
  func.func @transform_2(%arg0: i32) -> (i32, i32, i32) {
    %c0_i32 = arith.constant 0 : i32
    %c0_i32_0 = arith.constant 0 : i32
    %c0_i32_1 = arith.constant 0 : i32
    return %arg0, %c0_i32, %c0_i32_0 : i32, i32, i32
  }
  func.func @transform_3(%arg0: i32) -> (i32, i32, i32) {
    %c0_i32 = arith.constant 0 : i32
    %c0_i32_0 = arith.constant 0 : i32
    %c0_i32_1 = arith.constant 0 : i32
    return %arg0, %c0_i32, %c0_i32_0 : i32, i32, i32
  }
}

module attributes {stable_mosaic.version = 11 : i64} {
  func.func @kernel(%arg0: i32, %arg1: memref<1x8x8x32xf32, #tpu.memory_space<vmem>>, %arg2: memref<9x32xf32, #tpu.memory_space<vmem>>, %arg3: memref<1x32xf32, #tpu.memory_space<vmem>>, %arg4: memref<1x8x8x32xf32, #tpu.memory_space<vmem>>, %arg5: memref<10x10x32xf32, #tpu.memory_space<vmem>>) attributes {dimension_semantics = [#tpu.dimension_semantics<parallel>], iteration_bounds = array<i64: 2>, scalar_prefetch = 0 : i64, scratch_operands = 1 : i64, tpu.core_type = #tpu.core_type<tc>, window_params = [{transform_indices = @transform_0, window_bounds = array<i64: 1, 8, 8, 32>}, {pipeline_mode = #tpu.pipeline_mode<synchronous>, transform_indices = @transform_1, window_bounds = array<i64: 9, 32>}, {pipeline_mode = #tpu.pipeline_mode<synchronous>, transform_indices = @transform_2, window_bounds = array<i64: 1, 32>}, {transform_indices = @transform_3, window_bounds = array<i64: 1, 8, 8, 32>}]} {
    %c0 = arith.constant 0 : index
    %c0_0 = arith.constant 0 : index
    %c0_1 = arith.constant 0 : index
    %c0_2 = arith.constant 0 : index
    %0 = vector.load %arg1[%c0, %c0_0, %c0_1, %c0_2] : memref<1x8x8x32xf32, #tpu.memory_space<vmem>>, vector<1x8x8x32xf32>
    %1 = vector.shape_cast %0 : vector<1x8x8x32xf32> to vector<8x8x32xf32>
    %cst = arith.constant 0.000000e+00 : f32
    %2 = vector.broadcast %cst : f32 to vector<10x10x32xf32>
    %c0_3 = arith.constant 0 : index
    %c0_4 = arith.constant 0 : index
    %c0_5 = arith.constant 0 : index
    %3 = vector.load %arg5[%c0_3, %c0_4, %c0_5] : memref<10x10x32xf32, #tpu.memory_space<vmem>>, vector<10x10x32xf32>
    tpu.vector_store %arg5[%c0_3, %c0_4, %c0_5], %2 {strides = array<i32>} : memref<10x10x32xf32, #tpu.memory_space<vmem>>, vector<10x10x32xf32>,
    %c1 = arith.constant 1 : index
    %c1_6 = arith.constant 1 : index
    %c0_7 = arith.constant 0 : index
    %4 = vector.load %arg5[%c1, %c1_6, %c0_7] : memref<10x10x32xf32, #tpu.memory_space<vmem>>, vector<8x8x32xf32>
    tpu.vector_store %arg5[%c1, %c1_6, %c0_7], %1 {strides = array<i32>} : memref<10x10x32xf32, #tpu.memory_space<vmem>>, vector<8x8x32xf32>,
    %cst_8 = arith.constant 0.000000e+00 : f32
    %5 = vector.broadcast %cst_8 : f32 to vector<8x8x32xf32>
    %c0_9 = arith.constant 0 : index
    %c0_10 = arith.constant 0 : index
    %c0_11 = arith.constant 0 : index
    %6 = vector.load %arg5[%c0_9, %c0_10, %c0_11] : memref<10x10x32xf32, #tpu.memory_space<vmem>>, vector<8x8x32xf32>
    %c0_12 = arith.constant 0 : index
    %c0_13 = arith.constant 0 : index
    %7 = vector.load %arg2[%c0_12, %c0_13] : memref<9x32xf32, #tpu.memory_space<vmem>>, vector<1x32xf32>
    %8 = vector.shape_cast %7 : vector<1x32xf32> to vector<1x1x32xf32>
    %9 = vector.broadcast %8 : vector<1x1x32xf32> to vector<8x8x32xf32>
    %10 = arith.mulf %6, %9 : vector<8x8x32xf32>
    %11 = arith.addf %5, %10 : vector<8x8x32xf32>
    %c0_14 = arith.constant 0 : index
    %c1_15 = arith.constant 1 : index
    %c0_16 = arith.constant 0 : index
    %12 = vector.load %arg5[%c0_14, %c1_15, %c0_16] : memref<10x10x32xf32, #tpu.memory_space<vmem>>, vector<8x8x32xf32>
    %c1_17 = arith.constant 1 : index
    %c0_18 = arith.constant 0 : index
    %13 = vector.load %arg2[%c1_17, %c0_18] : memref<9x32xf32, #tpu.memory_space<vmem>>, vector<1x32xf32>
    %14 = vector.shape_cast %13 : vector<1x32xf32> to vector<1x1x32xf32>
    %15 = vector.broadcast %14 : vector<1x1x32xf32> to vector<8x8x32xf32>
    %16 = arith.mulf %12, %15 : vector<8x8x32xf32>
    %17 = arith.addf %11, %16 : vector<8x8x32xf32>
    %c0_19 = arith.constant 0 : index
    %c2 = arith.constant 2 : index
    %c0_20 = arith.constant 0 : index
    %18 = vector.load %arg5[%c0_19, %c2, %c0_20] : memref<10x10x32xf32, #tpu.memory_space<vmem>>, vector<8x8x32xf32>
    %c2_21 = arith.constant 2 : index
    %c0_22 = arith.constant 0 : index
    %19 = vector.load %arg2[%c2_21, %c0_22] : memref<9x32xf32, #tpu.memory_space<vmem>>, vector<1x32xf32>
    %20 = vector.shape_cast %19 : vector<1x32xf32> to vector<1x1x32xf32>
    %21 = vector.broadcast %20 : vector<1x1x32xf32> to vector<8x8x32xf32>
    %22 = arith.mulf %18, %21 : vector<8x8x32xf32>
    %23 = arith.addf %17, %22 : vector<8x8x32xf32>
    %c1_23 = arith.constant 1 : index
    %c0_24 = arith.constant 0 : index
    %c0_25 = arith.constant 0 : index
    %24 = vector.load %arg5[%c1_23, %c0_24, %c0_25] : memref<10x10x32xf32, #tpu.memory_space<vmem>>, vector<8x8x32xf32>
    %c3 = arith.constant 3 : index
    %c0_26 = arith.constant 0 : index
    %25 = vector.load %arg2[%c3, %c0_26] : memref<9x32xf32, #tpu.memory_space<vmem>>, vector<1x32xf32>
    %26 = vector.shape_cast %25 : vector<1x32xf32> to vector<1x1x32xf32>
    %27 = vector.broadcast %26 : vector<1x1x32xf32> to vector<8x8x32xf32>
    %28 = arith.mulf %24, %27 : vector<8x8x32xf32>
    %29 = arith.addf %23, %28 : vector<8x8x32xf32>
    %c1_27 = arith.constant 1 : index
    %c1_28 = arith.constant 1 : index
    %c0_29 = arith.constant 0 : index
    %30 = vector.load %arg5[%c1_27, %c1_28, %c0_29] : memref<10x10x32xf32, #tpu.memory_space<vmem>>, vector<8x8x32xf32>
    %c4 = arith.constant 4 : index
    %c0_30 = arith.constant 0 : index
    %31 = vector.load %arg2[%c4, %c0_30] : memref<9x32xf32, #tpu.memory_space<vmem>>, vector<1x32xf32>
    %32 = vector.shape_cast %31 : vector<1x32xf32> to vector<1x1x32xf32>
    %33 = vector.broadcast %32 : vector<1x1x32xf32> to vector<8x8x32xf32>
    %34 = arith.mulf %30, %33 : vector<8x8x32xf32>
    %35 = arith.addf %29, %34 : vector<8x8x32xf32>
    %c1_31 = arith.constant 1 : index
    %c2_32 = arith.constant 2 : index
    %c0_33 = arith.constant 0 : index
    %36 = vector.load %arg5[%c1_31, %c2_32, %c0_33] : memref<10x10x32xf32, #tpu.memory_space<vmem>>, vector<8x8x32xf32>
    %c5 = arith.constant 5 : index
    %c0_34 = arith.constant 0 : index
    %37 = vector.load %arg2[%c5, %c0_34] : memref<9x32xf32, #tpu.memory_space<vmem>>, vector<1x32xf32>
    %38 = vector.shape_cast %37 : vector<1x32xf32> to vector<1x1x32xf32>
    %39 = vector.broadcast %38 : vector<1x1x32xf32> to vector<8x8x32xf32>
    %40 = arith.mulf %36, %39 : vector<8x8x32xf32>
    %41 = arith.addf %35, %40 : vector<8x8x32xf32>
    %c2_35 = arith.constant 2 : index
    %c0_36 = arith.constant 0 : index
    %c0_37 = arith.constant 0 : index
    %42 = vector.load %arg5[%c2_35, %c0_36, %c0_37] : memref<10x10x32xf32, #tpu.memory_space<vmem>>, vector<8x8x32xf32>
    %c6 = arith.constant 6 : index
    %c0_38 = arith.constant 0 : index
    %43 = vector.load %arg2[%c6, %c0_38] : memref<9x32xf32, #tpu.memory_space<vmem>>, vector<1x32xf32>
    %44 = vector.shape_cast %43 : vector<1x32xf32> to vector<1x1x32xf32>
    %45 = vector.broadcast %44 : vector<1x1x32xf32> to vector<8x8x32xf32>
    %46 = arith.mulf %42, %45 : vector<8x8x32xf32>
    %47 = arith.addf %41, %46 : vector<8x8x32xf32>
    %c2_39 = arith.constant 2 : index
    %c1_40 = arith.constant 1 : index
    %c0_41 = arith.constant 0 : index
    %48 = vector.load %arg5[%c2_39, %c1_40, %c0_41] : memref<10x10x32xf32, #tpu.memory_space<vmem>>, vector<8x8x32xf32>
    %c7 = arith.constant 7 : index
    %c0_42 = arith.constant 0 : index
    %49 = vector.load %arg2[%c7, %c0_42] : memref<9x32xf32, #tpu.memory_space<vmem>>, vector<1x32xf32>
    %50 = vector.shape_cast %49 : vector<1x32xf32> to vector<1x1x32xf32>
    %51 = vector.broadcast %50 : vector<1x1x32xf32> to vector<8x8x32xf32>
    %52 = arith.mulf %48, %51 : vector<8x8x32xf32>
    %53 = arith.addf %47, %52 : vector<8x8x32xf32>
    %c2_43 = arith.constant 2 : index
    %c2_44 = arith.constant 2 : index
    %c0_45 = arith.constant 0 : index
    %54 = vector.load %arg5[%c2_43, %c2_44, %c0_45] : memref<10x10x32xf32, #tpu.memory_space<vmem>>, vector<8x8x32xf32>
    %c8 = arith.constant 8 : index
    %c0_46 = arith.constant 0 : index
    %55 = vector.load %arg2[%c8, %c0_46] : memref<9x32xf32, #tpu.memory_space<vmem>>, vector<1x32xf32>
    %56 = vector.shape_cast %55 : vector<1x32xf32> to vector<1x1x32xf32>
    %57 = vector.broadcast %56 : vector<1x1x32xf32> to vector<8x8x32xf32>
    %58 = arith.mulf %54, %57 : vector<8x8x32xf32>
    %59 = arith.addf %53, %58 : vector<8x8x32xf32>
    %c0_47 = arith.constant 0 : index
    %c0_48 = arith.constant 0 : index
    %60 = vector.load %arg3[%c0_47, %c0_48] : memref<1x32xf32, #tpu.memory_space<vmem>>, vector<1x32xf32>
    %61 = vector.shape_cast %60 : vector<1x32xf32> to vector<1x1x32xf32>
    %62 = vector.broadcast %61 : vector<1x1x32xf32> to vector<8x8x32xf32>
    %63 = arith.addf %59, %62 : vector<8x8x32xf32>
    %cst_49 = arith.constant 0.000000e+00 : f32
    %64 = vector.broadcast %cst_49 : f32 to vector<8x8x32xf32>
    %65 = arith.subf %64, %63 : vector<8x8x32xf32>
    %66 = math.exp %65 : vector<8x8x32xf32>
    %cst_50 = arith.constant 1.000000e+00 : f32
    %67 = vector.broadcast %cst_50 : f32 to vector<8x8x32xf32>
    %68 = arith.addf %67, %66 : vector<8x8x32xf32>
    %cst_51 = arith.constant 1.000000e+00 : f32
    %69 = vector.broadcast %cst_51 : f32 to vector<8x8x32xf32>
    %70 = arith.divf %69, %68 : vector<8x8x32xf32>
    %71 = arith.mulf %63, %70 : vector<8x8x32xf32>
    %c0_52 = arith.constant 0 : index
    %c0_53 = arith.constant 0 : index
    %c0_54 = arith.constant 0 : index
    %c0_55 = arith.constant 0 : index
    %72 = vector.load %arg4[%c0_52, %c0_53, %c0_54, %c0_55] : memref<1x8x8x32xf32, #tpu.memory_space<vmem>>, vector<1x8x8x32xf32>
    %73 = vector.shape_cast %72 : vector<1x8x8x32xf32> to vector<8x8x32xf32>
    %74 = vector.shape_cast %71 : vector<8x8x32xf32> to vector<1x8x8x32xf32>
    tpu.vector_store %arg4[%c0_52, %c0_53, %c0_54, %c0_55], %74 {strides = array<i32>} : memref<1x8x8x32xf32, #tpu.memory_space<vmem>>, vector<1x8x8x32xf32>,
    return
  }
  func.func @transform_0(%arg0: i32) -> (i32, i32, i32, i32) {
    %c0_i32 = arith.constant 0 : i32
    %c0_i32_0 = arith.constant 0 : i32
    %c0_i32_1 = arith.constant 0 : i32
    %c0_i32_2 = arith.constant 0 : i32
    return %arg0, %c0_i32, %c0_i32_0, %c0_i32_1 : i32, i32, i32, i32
  }
  func.func @transform_1(%arg0: i32) -> (i32, i32) {
    %c0_i32 = arith.constant 0 : i32
    %c0_i32_0 = arith.constant 0 : i32
    %c0_i32_1 = arith.constant 0 : i32
    return %c0_i32, %c0_i32_0 : i32, i32
  }
  func.func @transform_2(%arg0: i32) -> (i32, i32) {
    %c0_i32 = arith.constant 0 : i32
    %c0_i32_0 = arith.constant 0 : i32
    %c0_i32_1 = arith.constant 0 : i32
    return %c0_i32, %c0_i32_0 : i32, i32
  }
  func.func @transform_3(%arg0: i32) -> (i32, i32, i32, i32) {
    %c0_i32 = arith.constant 0 : i32
    %c0_i32_0 = arith.constant 0 : i32
    %c0_i32_1 = arith.constant 0 : i32
    %c0_i32_2 = arith.constant 0 : i32
    return %arg0, %c0_i32, %c0_i32_0, %c0_i32_1 : i32, i32, i32, i32
  }
}

module attributes {stable_mosaic.version = 11 : i64} {
  func.func @kernel(%arg0: i32, %arg1: memref<1x64x128xf32, #tpu.memory_space<vmem>>, %arg2: memref<128x384xf32, #tpu.memory_space<vmem>>, %arg3: memref<1x128xf32, #tpu.memory_space<vmem>>, %arg4: memref<1x128xf32, #tpu.memory_space<vmem>>, %arg5: memref<1x128xf32, #tpu.memory_space<vmem>>, %arg6: memref<1x64x128xf32, #tpu.memory_space<vmem>>, %arg7: memref<64x384xf32, #tpu.memory_space<vmem>>) attributes {dimension_semantics = [#tpu.dimension_semantics<parallel>], iteration_bounds = array<i64: 2>, scalar_prefetch = 0 : i64, scratch_operands = 1 : i64, tpu.core_type = #tpu.core_type<tc>, window_params = [{transform_indices = @transform_0, window_bounds = array<i64: 1, 64, 128>}, {pipeline_mode = #tpu.pipeline_mode<synchronous>, transform_indices = @transform_1, window_bounds = array<i64: 128, 384>}, {pipeline_mode = #tpu.pipeline_mode<synchronous>, transform_indices = @transform_2, window_bounds = array<i64: 1, 128>}, {pipeline_mode = #tpu.pipeline_mode<synchronous>, transform_indices = @transform_3, window_bounds = array<i64: 1, 128>}, {pipeline_mode = #tpu.pipeline_mode<synchronous>, transform_indices = @transform_4, window_bounds = array<i64: 1, 128>}, {transform_indices = @transform_5, window_bounds = array<i64: 1, 64, 128>}]} {
    %c0 = arith.constant 0 : index
    %c0_0 = arith.constant 0 : index
    %c0_1 = arith.constant 0 : index
    %0 = vector.load %arg1[%c0, %c0_0, %c0_1] : memref<1x64x128xf32, #tpu.memory_space<vmem>>, vector<1x64x128xf32>
    %1 = vector.shape_cast %0 : vector<1x64x128xf32> to vector<64x128xf32>
    %2 = arith.truncf %1 : vector<64x128xf32> to vector<64x128xbf16>
    %c0_2 = arith.constant 0 : index
    %c0_3 = arith.constant 0 : index
    %3 = vector.load %arg2[%c0_2, %c0_3] : memref<128x384xf32, #tpu.memory_space<vmem>>, vector<128x384xf32>
    %4 = arith.truncf %3 : vector<128x384xf32> to vector<128x384xbf16>
    %cst = arith.constant dense<0.000000e+00> : vector<64x384xf32>
    %5 = tpu.matmul %2, %4, %cst {dimension_numbers = #tpu.dot_dimension_numbers<[1], [0], [0], [1], [0, 0, 1, 1], [], []>} : vector<64x128xbf16>, vector<128x384xbf16>, vector<64x384xf32> -> vector<64x384xf32>
    %c0_4 = arith.constant 0 : index
    %c0_5 = arith.constant 0 : index
    %6 = vector.load %arg7[%c0_4, %c0_5] : memref<64x384xf32, #tpu.memory_space<vmem>>, vector<64x384xf32>
    tpu.vector_store %arg7[%c0_4, %c0_5], %5 {strides = array<i32>} : memref<64x384xf32, #tpu.memory_space<vmem>>, vector<64x384xf32>,
    %c0_6 = arith.constant 0 : index
    %c0_7 = arith.constant 0 : index
    %7 = vector.load %arg3[%c0_6, %c0_7] : memref<1x128xf32, #tpu.memory_space<vmem>>, vector<1x128xf32>
    %c0_8 = arith.constant 0 : index
    %c0_9 = arith.constant 0 : index
    %8 = vector.load %arg4[%c0_8, %c0_9] : memref<1x128xf32, #tpu.memory_space<vmem>>, vector<1x128xf32>
    %c0_10 = arith.constant 0 : index
    %c0_11 = arith.constant 0 : index
    %9 = vector.load %arg5[%c0_10, %c0_11] : memref<1x128xf32, #tpu.memory_space<vmem>>, vector<1x128xf32>
    %cst_12 = arith.constant 0.000000e+00 : f32
    %10 = vector.broadcast %cst_12 : f32 to vector<1x128xf32>
    %c0_i32 = arith.constant 0 : i32
    %c8_i32 = arith.constant 8 : i32
    %11 = arith.addi %c0_i32, %c8_i32 : i32
    %c1_i32 = arith.constant 1 : i32
    %12 = scf.for %arg8 = %c0_i32 to %11 step %c1_i32 iter_args(%arg9 = %10) -> (vector<1x128xf32>)  : i32 {
      %c8_i32_14 = arith.constant 8 : i32
      %13 = arith.muli %arg8, %c8_i32_14 : i32
      %14 = tpu.assume_multiple %13, 8 : i32
      %c0_15 = arith.constant 0 : index
      %15 = arith.index_cast %14 : i32 to index
      %c0_16 = arith.constant 0 : index
      %16 = vector.load %arg1[%c0_15, %15, %c0_16] : memref<1x64x128xf32, #tpu.memory_space<vmem>>, vector<1x8x128xf32>
      %17 = vector.shape_cast %16 : vector<1x8x128xf32> to vector<8x128xf32>
      %18 = arith.index_cast %14 : i32 to index
      %c0_17 = arith.constant 0 : index
      %19 = vector.load %arg7[%18, %c0_17] : memref<64x384xf32, #tpu.memory_space<vmem>>, vector<8x384xf32>
      %20 = vector.extract_strided_slice %19 {offsets = [0, 0], sizes = [8, 128], strides = [1, 1]} : vector<8x384xf32> to vector<8x128xf32>
      %21 = vector.extract_strided_slice %19 {offsets = [0, 128], sizes = [8, 128], strides = [1, 1]} : vector<8x384xf32> to vector<8x128xf32>
      %22 = vector.extract_strided_slice %19 {offsets = [0, 256], sizes = [8, 128], strides = [1, 1]} : vector<8x384xf32> to vector<8x128xf32>
      %23 = vector.broadcast %9 : vector<1x128xf32> to vector<8x128xf32>
      %24 = arith.addf %22, %23 : vector<8x128xf32>
      %cst_18 = arith.constant 2.000000e+01 : f32
      %25 = vector.broadcast %cst_18 : f32 to vector<8x128xf32>
      %26 = arith.cmpf ogt, %24, %25 : vector<8x128xf32>
      %cst_19 = arith.constant 2.000000e+01 : f32
      %27 = vector.broadcast %cst_19 : f32 to vector<8x128xf32>
      %28 = arith.minimumf %24, %27 : vector<8x128xf32>
      %29 = math.exp %28 : vector<8x128xf32>
      %30 = math.log1p %29 : vector<8x128xf32>
      %31 = arith.select %26, %24, %30 : vector<8x128xi1>, vector<8x128xf32>
      %32 = vector.broadcast %7 : vector<1x128xf32> to vector<8x128xf32>
      %33 = arith.mulf %31, %32 : vector<8x128xf32>
      %34 = math.exp %33 : vector<8x128xf32>
      %35 = arith.mulf %31, %20 : vector<8x128xf32>
      %36 = arith.mulf %35, %17 : vector<8x128xf32>
      %cst_20 = arith.constant 1.000000e+00 : f32
      %37 = vector.broadcast %cst_20 : f32 to vector<1x128xf32>
      %38 = vector.extract_strided_slice %34 {offsets = [0, 0], sizes = [7, 128], strides = [1, 1]} : vector<8x128xf32> to vector<7x128xf32>
      %39 = tpu.concatenate %37, %38 in 0 : vector<1x128xf32>, vector<7x128xf32> -> vector<8x128xf32>
      %cst_21 = arith.constant 0.000000e+00 : f32
      %40 = vector.broadcast %cst_21 : f32 to vector<1x128xf32>
      %41 = vector.extract_strided_slice %36 {offsets = [0, 0], sizes = [7, 128], strides = [1, 1]} : vector<8x128xf32> to vector<7x128xf32>
      %42 = tpu.concatenate %40, %41 in 0 : vector<1x128xf32>, vector<7x128xf32> -> vector<8x128xf32>
      %43 = arith.mulf %34, %42 : vector<8x128xf32>
      %44 = arith.addf %43, %36 : vector<8x128xf32>
      %45 = arith.mulf %34, %39 : vector<8x128xf32>
      %cst_22 = arith.constant 1.000000e+00 : f32
      %46 = vector.broadcast %cst_22 : f32 to vector<2x128xf32>
      %47 = vector.extract_strided_slice %45 {offsets = [0, 0], sizes = [6, 128], strides = [1, 1]} : vector<8x128xf32> to vector<6x128xf32>
      %48 = tpu.concatenate %46, %47 in 0 : vector<2x128xf32>, vector<6x128xf32> -> vector<8x128xf32>
      %cst_23 = arith.constant 0.000000e+00 : f32
      %49 = vector.broadcast %cst_23 : f32 to vector<2x128xf32>
      %50 = vector.extract_strided_slice %44 {offsets = [0, 0], sizes = [6, 128], strides = [1, 1]} : vector<8x128xf32> to vector<6x128xf32>
      %51 = tpu.concatenate %49, %50 in 0 : vector<2x128xf32>, vector<6x128xf32> -> vector<8x128xf32>
      %52 = arith.mulf %45, %51 : vector<8x128xf32>
      %53 = arith.addf %52, %44 : vector<8x128xf32>
      %54 = arith.mulf %45, %48 : vector<8x128xf32>
      %cst_24 = arith.constant 1.000000e+00 : f32
      %55 = vector.broadcast %cst_24 : f32 to vector<4x128xf32>
      %56 = vector.extract_strided_slice %54 {offsets = [0, 0], sizes = [4, 128], strides = [1, 1]} : vector<8x128xf32> to vector<4x128xf32>
      %57 = tpu.concatenate %55, %56 in 0 : vector<4x128xf32>, vector<4x128xf32> -> vector<8x128xf32>
      %cst_25 = arith.constant 0.000000e+00 : f32
      %58 = vector.broadcast %cst_25 : f32 to vector<4x128xf32>
      %59 = vector.extract_strided_slice %53 {offsets = [0, 0], sizes = [4, 128], strides = [1, 1]} : vector<8x128xf32> to vector<4x128xf32>
      %60 = tpu.concatenate %58, %59 in 0 : vector<4x128xf32>, vector<4x128xf32> -> vector<8x128xf32>
      %61 = arith.mulf %54, %60 : vector<8x128xf32>
      %62 = arith.addf %61, %53 : vector<8x128xf32>
      %63 = arith.mulf %54, %57 : vector<8x128xf32>
      %64 = vector.broadcast %arg9 : vector<1x128xf32> to vector<8x128xf32>
      %65 = arith.mulf %63, %64 : vector<8x128xf32>
      %66 = arith.addf %65, %62 : vector<8x128xf32>
      %67 = arith.mulf %66, %21 : vector<8x128xf32>
      %68 = vector.broadcast %8 : vector<1x128xf32> to vector<8x128xf32>
      %69 = arith.mulf %17, %68 : vector<8x128xf32>
      %70 = arith.addf %67, %69 : vector<8x128xf32>
      %c0_26 = arith.constant 0 : index
      %71 = arith.index_cast %14 : i32 to index
      %c0_27 = arith.constant 0 : index
      %72 = vector.load %arg6[%c0_26, %71, %c0_27] : memref<1x64x128xf32, #tpu.memory_space<vmem>>, vector<1x8x128xf32>
      %73 = vector.shape_cast %72 : vector<1x8x128xf32> to vector<8x128xf32>
      %74 = vector.shape_cast %70 : vector<8x128xf32> to vector<1x8x128xf32>
      tpu.vector_store %arg6[%c0_26, %71, %c0_27], %74 {strides = array<i32>} : memref<1x64x128xf32, #tpu.memory_space<vmem>>, vector<1x8x128xf32>,
      %75 = vector.extract_strided_slice %66 {offsets = [7, 0], sizes = [1, 128], strides = [1, 1]} : vector<8x128xf32> to vector<1x128xf32>
      scf.yield %75 : vector<1x128xf32>
    }
    %c8_i32_13 = arith.constant 8 : i32
    return
  }
  func.func @transform_0(%arg0: i32) -> (i32, i32, i32) {
    %c0_i32 = arith.constant 0 : i32
    %c0_i32_0 = arith.constant 0 : i32
    %c0_i32_1 = arith.constant 0 : i32
    return %arg0, %c0_i32, %c0_i32_0 : i32, i32, i32
  }
  func.func @transform_1(%arg0: i32) -> (i32, i32) {
    %c0_i32 = arith.constant 0 : i32
    %c0_i32_0 = arith.constant 0 : i32
    %c0_i32_1 = arith.constant 0 : i32
    return %c0_i32, %c0_i32_0 : i32, i32
  }
  func.func @transform_2(%arg0: i32) -> (i32, i32) {
    %c0_i32 = arith.constant 0 : i32
    %c0_i32_0 = arith.constant 0 : i32
    %c0_i32_1 = arith.constant 0 : i32
    return %c0_i32, %c0_i32_0 : i32, i32
  }
  func.func @transform_3(%arg0: i32) -> (i32, i32) {
    %c0_i32 = arith.constant 0 : i32
    %c0_i32_0 = arith.constant 0 : i32
    %c0_i32_1 = arith.constant 0 : i32
    return %c0_i32, %c0_i32_0 : i32, i32
  }
  func.func @transform_4(%arg0: i32) -> (i32, i32) {
    %c0_i32 = arith.constant 0 : i32
    %c0_i32_0 = arith.constant 0 : i32
    %c0_i32_1 = arith.constant 0 : i32
    return %c0_i32, %c0_i32_0 : i32, i32
  }
  func.func @transform_5(%arg0: i32) -> (i32, i32, i32) {
    %c0_i32 = arith.constant 0 : i32
    %c0_i32_0 = arith.constant 0 : i32
    %c0_i32_1 = arith.constant 0 : i32
    return %arg0, %c0_i32, %c0_i32_0 : i32, i32, i32
  }
}

module attributes {stable_mosaic.version = 11 : i64} {
  func.func @kernel(%arg0: i32, %arg1: memref<64x32xf32, #tpu.memory_space<vmem>>, %arg2: memref<64x32xf32, #tpu.memory_space<vmem>>, %arg3: memref<64x32xf32, #tpu.memory_space<vmem>>, %arg4: memref<64x32xf32, #tpu.memory_space<vmem>>, %arg5: memref<1x32xf32, #tpu.memory_space<vmem>>, %arg6: memref<1x32xf32, #tpu.memory_space<vmem>>, %arg7: memref<32x32xf32, #tpu.memory_space<vmem>>, %arg8: memref<1x32xf32, #tpu.memory_space<vmem>>, %arg9: memref<64x32xf32, #tpu.memory_space<vmem>>) attributes {dimension_semantics = [#tpu.dimension_semantics<parallel>], iteration_bounds = array<i64: 2>, scalar_prefetch = 0 : i64, scratch_operands = 0 : i64, tpu.core_type = #tpu.core_type<tc>, window_params = [{transform_indices = @transform_0, window_bounds = array<i64: 64, 32>}, {transform_indices = @transform_1, window_bounds = array<i64: 64, 32>}, {transform_indices = @transform_2, window_bounds = array<i64: 64, 32>}, {transform_indices = @transform_3, window_bounds = array<i64: 64, 32>}, {pipeline_mode = #tpu.pipeline_mode<synchronous>, transform_indices = @transform_4, window_bounds = array<i64: 1, 32>}, {pipeline_mode = #tpu.pipeline_mode<synchronous>, transform_indices = @transform_5, window_bounds = array<i64: 1, 32>}, {pipeline_mode = #tpu.pipeline_mode<synchronous>, transform_indices = @transform_6, window_bounds = array<i64: 32, 32>}, {pipeline_mode = #tpu.pipeline_mode<synchronous>, transform_indices = @transform_7, window_bounds = array<i64: 1, 32>}, {transform_indices = @transform_8, window_bounds = array<i64: 64, 32>}]} {
    %c0 = arith.constant 0 : index
    %c0_0 = arith.constant 0 : index
    %0 = vector.load %arg1[%c0, %c0_0] : memref<64x32xf32, #tpu.memory_space<vmem>>, vector<64x32xf32>
    %cst = arith.constant dense<0.000000e+00> : vector<64xf32>
    %1 = vector.multi_reduction <add>, %0, %cst [1] : vector<64x32xf32> to vector<64xf32>
    %2 = vector.shape_cast %1 : vector<64xf32> to vector<64x1xf32>
    %cst_1 = arith.constant 3.200000e+01 : f32
    %3 = vector.broadcast %cst_1 : f32 to vector<64x1xf32>
    %4 = arith.divf %2, %3 : vector<64x1xf32>
    %5 = vector.broadcast %4 : vector<64x1xf32> to vector<64x32xf32>
    %6 = arith.subf %0, %5 : vector<64x32xf32>
    %7 = arith.mulf %6, %6 : vector<64x32xf32>
    %cst_2 = arith.constant dense<0.000000e+00> : vector<64xf32>
    %8 = vector.multi_reduction <add>, %7, %cst_2 [1] : vector<64x32xf32> to vector<64xf32>
    %9 = vector.shape_cast %8 : vector<64xf32> to vector<64x1xf32>
    %cst_3 = arith.constant 3.200000e+01 : f32
    %10 = vector.broadcast %cst_3 : f32 to vector<64x1xf32>
    %11 = arith.divf %9, %10 : vector<64x1xf32>
    %cst_4 = arith.constant 9.99999997E-7 : f32
    %12 = vector.broadcast %cst_4 : f32 to vector<64x1xf32>
    %13 = arith.addf %11, %12 : vector<64x1xf32>
    %14 = math.rsqrt %13 : vector<64x1xf32>
    %15 = vector.broadcast %14 : vector<64x1xf32> to vector<64x32xf32>
    %16 = arith.mulf %6, %15 : vector<64x32xf32>
    %c0_5 = arith.constant 0 : index
    %c0_6 = arith.constant 0 : index
    %17 = vector.load %arg5[%c0_5, %c0_6] : memref<1x32xf32, #tpu.memory_space<vmem>>, vector<1x32xf32>
    %18 = vector.broadcast %17 : vector<1x32xf32> to vector<64x32xf32>
    %19 = arith.mulf %16, %18 : vector<64x32xf32>
    %c0_7 = arith.constant 0 : index
    %c0_8 = arith.constant 0 : index
    %20 = vector.load %arg6[%c0_7, %c0_8] : memref<1x32xf32, #tpu.memory_space<vmem>>, vector<1x32xf32>
    %21 = vector.broadcast %20 : vector<1x32xf32> to vector<64x32xf32>
    %22 = arith.addf %19, %21 : vector<64x32xf32>
    %c0_9 = arith.constant 0 : index
    %c0_10 = arith.constant 0 : index
    %23 = vector.load %arg2[%c0_9, %c0_10] : memref<64x32xf32, #tpu.memory_space<vmem>>, vector<64x32xf32>
    %24 = arith.addf %22, %23 : vector<64x32xf32>
    %c0_11 = arith.constant 0 : index
    %c0_12 = arith.constant 0 : index
    %25 = vector.load %arg3[%c0_11, %c0_12] : memref<64x32xf32, #tpu.memory_space<vmem>>, vector<64x32xf32>
    %26 = arith.addf %24, %25 : vector<64x32xf32>
    %27 = arith.truncf %26 : vector<64x32xf32> to vector<64x32xbf16>
    %c0_13 = arith.constant 0 : index
    %c0_14 = arith.constant 0 : index
    %28 = vector.load %arg7[%c0_13, %c0_14] : memref<32x32xf32, #tpu.memory_space<vmem>>, vector<32x32xf32>
    %29 = arith.truncf %28 : vector<32x32xf32> to vector<32x32xbf16>
    %cst_15 = arith.constant dense<0.000000e+00> : vector<64x32xf32>
    %30 = tpu.matmul %27, %29, %cst_15 {dimension_numbers = #tpu.dot_dimension_numbers<[1], [0], [0], [1], [0, 0, 1, 1], [], []>} : vector<64x32xbf16>, vector<32x32xbf16>, vector<64x32xf32> -> vector<64x32xf32>
    %c0_16 = arith.constant 0 : index
    %c0_17 = arith.constant 0 : index
    %31 = vector.load %arg8[%c0_16, %c0_17] : memref<1x32xf32, #tpu.memory_space<vmem>>, vector<1x32xf32>
    %32 = vector.broadcast %31 : vector<1x32xf32> to vector<64x32xf32>
    %33 = arith.addf %30, %32 : vector<64x32xf32>
    %c0_18 = arith.constant 0 : index
    %c0_19 = arith.constant 0 : index
    %34 = vector.load %arg4[%c0_18, %c0_19] : memref<64x32xf32, #tpu.memory_space<vmem>>, vector<64x32xf32>
    %35 = arith.addf %33, %34 : vector<64x32xf32>
    %c0_20 = arith.constant 0 : index
    %c0_21 = arith.constant 0 : index
    %36 = vector.load %arg9[%c0_20, %c0_21] : memref<64x32xf32, #tpu.memory_space<vmem>>, vector<64x32xf32>
    tpu.vector_store %arg9[%c0_20, %c0_21], %35 {strides = array<i32>} : memref<64x32xf32, #tpu.memory_space<vmem>>, vector<64x32xf32>,
    return
  }
  func.func @transform_0(%arg0: i32) -> (i32, i32) {
    %c0_i32 = arith.constant 0 : i32
    %c0_i32_0 = arith.constant 0 : i32
    return %arg0, %c0_i32 : i32, i32
  }
  func.func @transform_1(%arg0: i32) -> (i32, i32) {
    %c0_i32 = arith.constant 0 : i32
    %c0_i32_0 = arith.constant 0 : i32
    return %arg0, %c0_i32 : i32, i32
  }
  func.func @transform_2(%arg0: i32) -> (i32, i32) {
    %c0_i32 = arith.constant 0 : i32
    %c0_i32_0 = arith.constant 0 : i32
    return %arg0, %c0_i32 : i32, i32
  }
  func.func @transform_3(%arg0: i32) -> (i32, i32) {
    %c0_i32 = arith.constant 0 : i32
    %c0_i32_0 = arith.constant 0 : i32
    return %arg0, %c0_i32 : i32, i32
  }
  func.func @transform_4(%arg0: i32) -> (i32, i32) {
    %c0_i32 = arith.constant 0 : i32
    %c0_i32_0 = arith.constant 0 : i32
    %c0_i32_1 = arith.constant 0 : i32
    return %c0_i32, %c0_i32_0 : i32, i32
  }
  func.func @transform_5(%arg0: i32) -> (i32, i32) {
    %c0_i32 = arith.constant 0 : i32
    %c0_i32_0 = arith.constant 0 : i32
    %c0_i32_1 = arith.constant 0 : i32
    return %c0_i32, %c0_i32_0 : i32, i32
  }
  func.func @transform_6(%arg0: i32) -> (i32, i32) {
    %c0_i32 = arith.constant 0 : i32
    %c0_i32_0 = arith.constant 0 : i32
    %c0_i32_1 = arith.constant 0 : i32
    return %c0_i32, %c0_i32_0 : i32, i32
  }
  func.func @transform_7(%arg0: i32) -> (i32, i32) {
    %c0_i32 = arith.constant 0 : i32
    %c0_i32_0 = arith.constant 0 : i32
    %c0_i32_1 = arith.constant 0 : i32
    return %c0_i32, %c0_i32_0 : i32, i32
  }
  func.func @transform_8(%arg0: i32) -> (i32, i32) {
    %c0_i32 = arith.constant 0 : i32
    %c0_i32_0 = arith.constant 0 : i32
    return %arg0, %c0_i32 : i32, i32
  }
}

module attributes {stable_mosaic.version = 11 : i64} {
  func.func @kernel(%arg0: i32, %arg1: memref<1x8x8x32xf32, #tpu.memory_space<vmem>>, %arg2: memref<25x32xf32, #tpu.memory_space<vmem>>, %arg3: memref<1x32xf32, #tpu.memory_space<vmem>>, %arg4: memref<1x8x8x32xf32, #tpu.memory_space<vmem>>, %arg5: memref<12x12x32xf32, #tpu.memory_space<vmem>>) attributes {dimension_semantics = [#tpu.dimension_semantics<parallel>], iteration_bounds = array<i64: 2>, scalar_prefetch = 0 : i64, scratch_operands = 1 : i64, tpu.core_type = #tpu.core_type<tc>, window_params = [{transform_indices = @transform_0, window_bounds = array<i64: 1, 8, 8, 32>}, {pipeline_mode = #tpu.pipeline_mode<synchronous>, transform_indices = @transform_1, window_bounds = array<i64: 25, 32>}, {pipeline_mode = #tpu.pipeline_mode<synchronous>, transform_indices = @transform_2, window_bounds = array<i64: 1, 32>}, {transform_indices = @transform_3, window_bounds = array<i64: 1, 8, 8, 32>}]} {
    %c0 = arith.constant 0 : index
    %c0_0 = arith.constant 0 : index
    %c0_1 = arith.constant 0 : index
    %c0_2 = arith.constant 0 : index
    %0 = vector.load %arg1[%c0, %c0_0, %c0_1, %c0_2] : memref<1x8x8x32xf32, #tpu.memory_space<vmem>>, vector<1x8x8x32xf32>
    %1 = vector.shape_cast %0 : vector<1x8x8x32xf32> to vector<8x8x32xf32>
    %cst = arith.constant 0.000000e+00 : f32
    %2 = vector.broadcast %cst : f32 to vector<12x12x32xf32>
    %c0_3 = arith.constant 0 : index
    %c0_4 = arith.constant 0 : index
    %c0_5 = arith.constant 0 : index
    %3 = vector.load %arg5[%c0_3, %c0_4, %c0_5] : memref<12x12x32xf32, #tpu.memory_space<vmem>>, vector<12x12x32xf32>
    tpu.vector_store %arg5[%c0_3, %c0_4, %c0_5], %2 {strides = array<i32>} : memref<12x12x32xf32, #tpu.memory_space<vmem>>, vector<12x12x32xf32>,
    %c2 = arith.constant 2 : index
    %c2_6 = arith.constant 2 : index
    %c0_7 = arith.constant 0 : index
    %4 = vector.load %arg5[%c2, %c2_6, %c0_7] : memref<12x12x32xf32, #tpu.memory_space<vmem>>, vector<8x8x32xf32>
    tpu.vector_store %arg5[%c2, %c2_6, %c0_7], %1 {strides = array<i32>} : memref<12x12x32xf32, #tpu.memory_space<vmem>>, vector<8x8x32xf32>,
    %cst_8 = arith.constant 0.000000e+00 : f32
    %5 = vector.broadcast %cst_8 : f32 to vector<8x8x32xf32>
    %c0_9 = arith.constant 0 : index
    %c0_10 = arith.constant 0 : index
    %c0_11 = arith.constant 0 : index
    %6 = vector.load %arg5[%c0_9, %c0_10, %c0_11] : memref<12x12x32xf32, #tpu.memory_space<vmem>>, vector<8x8x32xf32>
    %c0_12 = arith.constant 0 : index
    %c0_13 = arith.constant 0 : index
    %7 = vector.load %arg2[%c0_12, %c0_13] : memref<25x32xf32, #tpu.memory_space<vmem>>, vector<1x32xf32>
    %8 = vector.shape_cast %7 : vector<1x32xf32> to vector<1x1x32xf32>
    %9 = vector.broadcast %8 : vector<1x1x32xf32> to vector<8x8x32xf32>
    %10 = arith.mulf %6, %9 : vector<8x8x32xf32>
    %11 = arith.addf %5, %10 : vector<8x8x32xf32>
    %c0_14 = arith.constant 0 : index
    %c1 = arith.constant 1 : index
    %c0_15 = arith.constant 0 : index
    %12 = vector.load %arg5[%c0_14, %c1, %c0_15] : memref<12x12x32xf32, #tpu.memory_space<vmem>>, vector<8x8x32xf32>
    %c1_16 = arith.constant 1 : index
    %c0_17 = arith.constant 0 : index
    %13 = vector.load %arg2[%c1_16, %c0_17] : memref<25x32xf32, #tpu.memory_space<vmem>>, vector<1x32xf32>
    %14 = vector.shape_cast %13 : vector<1x32xf32> to vector<1x1x32xf32>
    %15 = vector.broadcast %14 : vector<1x1x32xf32> to vector<8x8x32xf32>
    %16 = arith.mulf %12, %15 : vector<8x8x32xf32>
    %17 = arith.addf %11, %16 : vector<8x8x32xf32>
    %c0_18 = arith.constant 0 : index
    %c2_19 = arith.constant 2 : index
    %c0_20 = arith.constant 0 : index
    %18 = vector.load %arg5[%c0_18, %c2_19, %c0_20] : memref<12x12x32xf32, #tpu.memory_space<vmem>>, vector<8x8x32xf32>
    %c2_21 = arith.constant 2 : index
    %c0_22 = arith.constant 0 : index
    %19 = vector.load %arg2[%c2_21, %c0_22] : memref<25x32xf32, #tpu.memory_space<vmem>>, vector<1x32xf32>
    %20 = vector.shape_cast %19 : vector<1x32xf32> to vector<1x1x32xf32>
    %21 = vector.broadcast %20 : vector<1x1x32xf32> to vector<8x8x32xf32>
    %22 = arith.mulf %18, %21 : vector<8x8x32xf32>
    %23 = arith.addf %17, %22 : vector<8x8x32xf32>
    %c0_23 = arith.constant 0 : index
    %c3 = arith.constant 3 : index
    %c0_24 = arith.constant 0 : index
    %24 = vector.load %arg5[%c0_23, %c3, %c0_24] : memref<12x12x32xf32, #tpu.memory_space<vmem>>, vector<8x8x32xf32>
    %c3_25 = arith.constant 3 : index
    %c0_26 = arith.constant 0 : index
    %25 = vector.load %arg2[%c3_25, %c0_26] : memref<25x32xf32, #tpu.memory_space<vmem>>, vector<1x32xf32>
    %26 = vector.shape_cast %25 : vector<1x32xf32> to vector<1x1x32xf32>
    %27 = vector.broadcast %26 : vector<1x1x32xf32> to vector<8x8x32xf32>
    %28 = arith.mulf %24, %27 : vector<8x8x32xf32>
    %29 = arith.addf %23, %28 : vector<8x8x32xf32>
    %c0_27 = arith.constant 0 : index
    %c4 = arith.constant 4 : index
    %c0_28 = arith.constant 0 : index
    %30 = vector.load %arg5[%c0_27, %c4, %c0_28] : memref<12x12x32xf32, #tpu.memory_space<vmem>>, vector<8x8x32xf32>
    %c4_29 = arith.constant 4 : index
    %c0_30 = arith.constant 0 : index
    %31 = vector.load %arg2[%c4_29, %c0_30] : memref<25x32xf32, #tpu.memory_space<vmem>>, vector<1x32xf32>
    %32 = vector.shape_cast %31 : vector<1x32xf32> to vector<1x1x32xf32>
    %33 = vector.broadcast %32 : vector<1x1x32xf32> to vector<8x8x32xf32>
    %34 = arith.mulf %30, %33 : vector<8x8x32xf32>
    %35 = arith.addf %29, %34 : vector<8x8x32xf32>
    %c1_31 = arith.constant 1 : index
    %c0_32 = arith.constant 0 : index
    %c0_33 = arith.constant 0 : index
    %36 = vector.load %arg5[%c1_31, %c0_32, %c0_33] : memref<12x12x32xf32, #tpu.memory_space<vmem>>, vector<8x8x32xf32>
    %c5 = arith.constant 5 : index
    %c0_34 = arith.constant 0 : index
    %37 = vector.load %arg2[%c5, %c0_34] : memref<25x32xf32, #tpu.memory_space<vmem>>, vector<1x32xf32>
    %38 = vector.shape_cast %37 : vector<1x32xf32> to vector<1x1x32xf32>
    %39 = vector.broadcast %38 : vector<1x1x32xf32> to vector<8x8x32xf32>
    %40 = arith.mulf %36, %39 : vector<8x8x32xf32>
    %41 = arith.addf %35, %40 : vector<8x8x32xf32>
    %c1_35 = arith.constant 1 : index
    %c1_36 = arith.constant 1 : index
    %c0_37 = arith.constant 0 : index
    %42 = vector.load %arg5[%c1_35, %c1_36, %c0_37] : memref<12x12x32xf32, #tpu.memory_space<vmem>>, vector<8x8x32xf32>
    %c6 = arith.constant 6 : index
    %c0_38 = arith.constant 0 : index
    %43 = vector.load %arg2[%c6, %c0_38] : memref<25x32xf32, #tpu.memory_space<vmem>>, vector<1x32xf32>
    %44 = vector.shape_cast %43 : vector<1x32xf32> to vector<1x1x32xf32>
    %45 = vector.broadcast %44 : vector<1x1x32xf32> to vector<8x8x32xf32>
    %46 = arith.mulf %42, %45 : vector<8x8x32xf32>
    %47 = arith.addf %41, %46 : vector<8x8x32xf32>
    %c1_39 = arith.constant 1 : index
    %c2_40 = arith.constant 2 : index
    %c0_41 = arith.constant 0 : index
    %48 = vector.load %arg5[%c1_39, %c2_40, %c0_41] : memref<12x12x32xf32, #tpu.memory_space<vmem>>, vector<8x8x32xf32>
    %c7 = arith.constant 7 : index
    %c0_42 = arith.constant 0 : index
    %49 = vector.load %arg2[%c7, %c0_42] : memref<25x32xf32, #tpu.memory_space<vmem>>, vector<1x32xf32>
    %50 = vector.shape_cast %49 : vector<1x32xf32> to vector<1x1x32xf32>
    %51 = vector.broadcast %50 : vector<1x1x32xf32> to vector<8x8x32xf32>
    %52 = arith.mulf %48, %51 : vector<8x8x32xf32>
    %53 = arith.addf %47, %52 : vector<8x8x32xf32>
    %c1_43 = arith.constant 1 : index
    %c3_44 = arith.constant 3 : index
    %c0_45 = arith.constant 0 : index
    %54 = vector.load %arg5[%c1_43, %c3_44, %c0_45] : memref<12x12x32xf32, #tpu.memory_space<vmem>>, vector<8x8x32xf32>
    %c8 = arith.constant 8 : index
    %c0_46 = arith.constant 0 : index
    %55 = vector.load %arg2[%c8, %c0_46] : memref<25x32xf32, #tpu.memory_space<vmem>>, vector<1x32xf32>
    %56 = vector.shape_cast %55 : vector<1x32xf32> to vector<1x1x32xf32>
    %57 = vector.broadcast %56 : vector<1x1x32xf32> to vector<8x8x32xf32>
    %58 = arith.mulf %54, %57 : vector<8x8x32xf32>
    %59 = arith.addf %53, %58 : vector<8x8x32xf32>
    %c1_47 = arith.constant 1 : index
    %c4_48 = arith.constant 4 : index
    %c0_49 = arith.constant 0 : index
    %60 = vector.load %arg5[%c1_47, %c4_48, %c0_49] : memref<12x12x32xf32, #tpu.memory_space<vmem>>, vector<8x8x32xf32>
    %c9 = arith.constant 9 : index
    %c0_50 = arith.constant 0 : index
    %61 = vector.load %arg2[%c9, %c0_50] : memref<25x32xf32, #tpu.memory_space<vmem>>, vector<1x32xf32>
    %62 = vector.shape_cast %61 : vector<1x32xf32> to vector<1x1x32xf32>
    %63 = vector.broadcast %62 : vector<1x1x32xf32> to vector<8x8x32xf32>
    %64 = arith.mulf %60, %63 : vector<8x8x32xf32>
    %65 = arith.addf %59, %64 : vector<8x8x32xf32>
    %c2_51 = arith.constant 2 : index
    %c0_52 = arith.constant 0 : index
    %c0_53 = arith.constant 0 : index
    %66 = vector.load %arg5[%c2_51, %c0_52, %c0_53] : memref<12x12x32xf32, #tpu.memory_space<vmem>>, vector<8x8x32xf32>
    %c10 = arith.constant 10 : index
    %c0_54 = arith.constant 0 : index
    %67 = vector.load %arg2[%c10, %c0_54] : memref<25x32xf32, #tpu.memory_space<vmem>>, vector<1x32xf32>
    %68 = vector.shape_cast %67 : vector<1x32xf32> to vector<1x1x32xf32>
    %69 = vector.broadcast %68 : vector<1x1x32xf32> to vector<8x8x32xf32>
    %70 = arith.mulf %66, %69 : vector<8x8x32xf32>
    %71 = arith.addf %65, %70 : vector<8x8x32xf32>
    %c2_55 = arith.constant 2 : index
    %c1_56 = arith.constant 1 : index
    %c0_57 = arith.constant 0 : index
    %72 = vector.load %arg5[%c2_55, %c1_56, %c0_57] : memref<12x12x32xf32, #tpu.memory_space<vmem>>, vector<8x8x32xf32>
    %c11 = arith.constant 11 : index
    %c0_58 = arith.constant 0 : index
    %73 = vector.load %arg2[%c11, %c0_58] : memref<25x32xf32, #tpu.memory_space<vmem>>, vector<1x32xf32>
    %74 = vector.shape_cast %73 : vector<1x32xf32> to vector<1x1x32xf32>
    %75 = vector.broadcast %74 : vector<1x1x32xf32> to vector<8x8x32xf32>
    %76 = arith.mulf %72, %75 : vector<8x8x32xf32>
    %77 = arith.addf %71, %76 : vector<8x8x32xf32>
    %c2_59 = arith.constant 2 : index
    %c2_60 = arith.constant 2 : index
    %c0_61 = arith.constant 0 : index
    %78 = vector.load %arg5[%c2_59, %c2_60, %c0_61] : memref<12x12x32xf32, #tpu.memory_space<vmem>>, vector<8x8x32xf32>
    %c12 = arith.constant 12 : index
    %c0_62 = arith.constant 0 : index
    %79 = vector.load %arg2[%c12, %c0_62] : memref<25x32xf32, #tpu.memory_space<vmem>>, vector<1x32xf32>
    %80 = vector.shape_cast %79 : vector<1x32xf32> to vector<1x1x32xf32>
    %81 = vector.broadcast %80 : vector<1x1x32xf32> to vector<8x8x32xf32>
    %82 = arith.mulf %78, %81 : vector<8x8x32xf32>
    %83 = arith.addf %77, %82 : vector<8x8x32xf32>
    %c2_63 = arith.constant 2 : index
    %c3_64 = arith.constant 3 : index
    %c0_65 = arith.constant 0 : index
    %84 = vector.load %arg5[%c2_63, %c3_64, %c0_65] : memref<12x12x32xf32, #tpu.memory_space<vmem>>, vector<8x8x32xf32>
    %c13 = arith.constant 13 : index
    %c0_66 = arith.constant 0 : index
    %85 = vector.load %arg2[%c13, %c0_66] : memref<25x32xf32, #tpu.memory_space<vmem>>, vector<1x32xf32>
    %86 = vector.shape_cast %85 : vector<1x32xf32> to vector<1x1x32xf32>
    %87 = vector.broadcast %86 : vector<1x1x32xf32> to vector<8x8x32xf32>
    %88 = arith.mulf %84, %87 : vector<8x8x32xf32>
    %89 = arith.addf %83, %88 : vector<8x8x32xf32>
    %c2_67 = arith.constant 2 : index
    %c4_68 = arith.constant 4 : index
    %c0_69 = arith.constant 0 : index
    %90 = vector.load %arg5[%c2_67, %c4_68, %c0_69] : memref<12x12x32xf32, #tpu.memory_space<vmem>>, vector<8x8x32xf32>
    %c14 = arith.constant 14 : index
    %c0_70 = arith.constant 0 : index
    %91 = vector.load %arg2[%c14, %c0_70] : memref<25x32xf32, #tpu.memory_space<vmem>>, vector<1x32xf32>
    %92 = vector.shape_cast %91 : vector<1x32xf32> to vector<1x1x32xf32>
    %93 = vector.broadcast %92 : vector<1x1x32xf32> to vector<8x8x32xf32>
    %94 = arith.mulf %90, %93 : vector<8x8x32xf32>
    %95 = arith.addf %89, %94 : vector<8x8x32xf32>
    %c3_71 = arith.constant 3 : index
    %c0_72 = arith.constant 0 : index
    %c0_73 = arith.constant 0 : index
    %96 = vector.load %arg5[%c3_71, %c0_72, %c0_73] : memref<12x12x32xf32, #tpu.memory_space<vmem>>, vector<8x8x32xf32>
    %c15 = arith.constant 15 : index
    %c0_74 = arith.constant 0 : index
    %97 = vector.load %arg2[%c15, %c0_74] : memref<25x32xf32, #tpu.memory_space<vmem>>, vector<1x32xf32>
    %98 = vector.shape_cast %97 : vector<1x32xf32> to vector<1x1x32xf32>
    %99 = vector.broadcast %98 : vector<1x1x32xf32> to vector<8x8x32xf32>
    %100 = arith.mulf %96, %99 : vector<8x8x32xf32>
    %101 = arith.addf %95, %100 : vector<8x8x32xf32>
    %c3_75 = arith.constant 3 : index
    %c1_76 = arith.constant 1 : index
    %c0_77 = arith.constant 0 : index
    %102 = vector.load %arg5[%c3_75, %c1_76, %c0_77] : memref<12x12x32xf32, #tpu.memory_space<vmem>>, vector<8x8x32xf32>
    %c16 = arith.constant 16 : index
    %c0_78 = arith.constant 0 : index
    %103 = vector.load %arg2[%c16, %c0_78] : memref<25x32xf32, #tpu.memory_space<vmem>>, vector<1x32xf32>
    %104 = vector.shape_cast %103 : vector<1x32xf32> to vector<1x1x32xf32>
    %105 = vector.broadcast %104 : vector<1x1x32xf32> to vector<8x8x32xf32>
    %106 = arith.mulf %102, %105 : vector<8x8x32xf32>
    %107 = arith.addf %101, %106 : vector<8x8x32xf32>
    %c3_79 = arith.constant 3 : index
    %c2_80 = arith.constant 2 : index
    %c0_81 = arith.constant 0 : index
    %108 = vector.load %arg5[%c3_79, %c2_80, %c0_81] : memref<12x12x32xf32, #tpu.memory_space<vmem>>, vector<8x8x32xf32>
    %c17 = arith.constant 17 : index
    %c0_82 = arith.constant 0 : index
    %109 = vector.load %arg2[%c17, %c0_82] : memref<25x32xf32, #tpu.memory_space<vmem>>, vector<1x32xf32>
    %110 = vector.shape_cast %109 : vector<1x32xf32> to vector<1x1x32xf32>
    %111 = vector.broadcast %110 : vector<1x1x32xf32> to vector<8x8x32xf32>
    %112 = arith.mulf %108, %111 : vector<8x8x32xf32>
    %113 = arith.addf %107, %112 : vector<8x8x32xf32>
    %c3_83 = arith.constant 3 : index
    %c3_84 = arith.constant 3 : index
    %c0_85 = arith.constant 0 : index
    %114 = vector.load %arg5[%c3_83, %c3_84, %c0_85] : memref<12x12x32xf32, #tpu.memory_space<vmem>>, vector<8x8x32xf32>
    %c18 = arith.constant 18 : index
    %c0_86 = arith.constant 0 : index
    %115 = vector.load %arg2[%c18, %c0_86] : memref<25x32xf32, #tpu.memory_space<vmem>>, vector<1x32xf32>
    %116 = vector.shape_cast %115 : vector<1x32xf32> to vector<1x1x32xf32>
    %117 = vector.broadcast %116 : vector<1x1x32xf32> to vector<8x8x32xf32>
    %118 = arith.mulf %114, %117 : vector<8x8x32xf32>
    %119 = arith.addf %113, %118 : vector<8x8x32xf32>
    %c3_87 = arith.constant 3 : index
    %c4_88 = arith.constant 4 : index
    %c0_89 = arith.constant 0 : index
    %120 = vector.load %arg5[%c3_87, %c4_88, %c0_89] : memref<12x12x32xf32, #tpu.memory_space<vmem>>, vector<8x8x32xf32>
    %c19 = arith.constant 19 : index
    %c0_90 = arith.constant 0 : index
    %121 = vector.load %arg2[%c19, %c0_90] : memref<25x32xf32, #tpu.memory_space<vmem>>, vector<1x32xf32>
    %122 = vector.shape_cast %121 : vector<1x32xf32> to vector<1x1x32xf32>
    %123 = vector.broadcast %122 : vector<1x1x32xf32> to vector<8x8x32xf32>
    %124 = arith.mulf %120, %123 : vector<8x8x32xf32>
    %125 = arith.addf %119, %124 : vector<8x8x32xf32>
    %c4_91 = arith.constant 4 : index
    %c0_92 = arith.constant 0 : index
    %c0_93 = arith.constant 0 : index
    %126 = vector.load %arg5[%c4_91, %c0_92, %c0_93] : memref<12x12x32xf32, #tpu.memory_space<vmem>>, vector<8x8x32xf32>
    %c20 = arith.constant 20 : index
    %c0_94 = arith.constant 0 : index
    %127 = vector.load %arg2[%c20, %c0_94] : memref<25x32xf32, #tpu.memory_space<vmem>>, vector<1x32xf32>
    %128 = vector.shape_cast %127 : vector<1x32xf32> to vector<1x1x32xf32>
    %129 = vector.broadcast %128 : vector<1x1x32xf32> to vector<8x8x32xf32>
    %130 = arith.mulf %126, %129 : vector<8x8x32xf32>
    %131 = arith.addf %125, %130 : vector<8x8x32xf32>
    %c4_95 = arith.constant 4 : index
    %c1_96 = arith.constant 1 : index
    %c0_97 = arith.constant 0 : index
    %132 = vector.load %arg5[%c4_95, %c1_96, %c0_97] : memref<12x12x32xf32, #tpu.memory_space<vmem>>, vector<8x8x32xf32>
    %c21 = arith.constant 21 : index
    %c0_98 = arith.constant 0 : index
    %133 = vector.load %arg2[%c21, %c0_98] : memref<25x32xf32, #tpu.memory_space<vmem>>, vector<1x32xf32>
    %134 = vector.shape_cast %133 : vector<1x32xf32> to vector<1x1x32xf32>
    %135 = vector.broadcast %134 : vector<1x1x32xf32> to vector<8x8x32xf32>
    %136 = arith.mulf %132, %135 : vector<8x8x32xf32>
    %137 = arith.addf %131, %136 : vector<8x8x32xf32>
    %c4_99 = arith.constant 4 : index
    %c2_100 = arith.constant 2 : index
    %c0_101 = arith.constant 0 : index
    %138 = vector.load %arg5[%c4_99, %c2_100, %c0_101] : memref<12x12x32xf32, #tpu.memory_space<vmem>>, vector<8x8x32xf32>
    %c22 = arith.constant 22 : index
    %c0_102 = arith.constant 0 : index
    %139 = vector.load %arg2[%c22, %c0_102] : memref<25x32xf32, #tpu.memory_space<vmem>>, vector<1x32xf32>
    %140 = vector.shape_cast %139 : vector<1x32xf32> to vector<1x1x32xf32>
    %141 = vector.broadcast %140 : vector<1x1x32xf32> to vector<8x8x32xf32>
    %142 = arith.mulf %138, %141 : vector<8x8x32xf32>
    %143 = arith.addf %137, %142 : vector<8x8x32xf32>
    %c4_103 = arith.constant 4 : index
    %c3_104 = arith.constant 3 : index
    %c0_105 = arith.constant 0 : index
    %144 = vector.load %arg5[%c4_103, %c3_104, %c0_105] : memref<12x12x32xf32, #tpu.memory_space<vmem>>, vector<8x8x32xf32>
    %c23 = arith.constant 23 : index
    %c0_106 = arith.constant 0 : index
    %145 = vector.load %arg2[%c23, %c0_106] : memref<25x32xf32, #tpu.memory_space<vmem>>, vector<1x32xf32>
    %146 = vector.shape_cast %145 : vector<1x32xf32> to vector<1x1x32xf32>
    %147 = vector.broadcast %146 : vector<1x1x32xf32> to vector<8x8x32xf32>
    %148 = arith.mulf %144, %147 : vector<8x8x32xf32>
    %149 = arith.addf %143, %148 : vector<8x8x32xf32>
    %c4_107 = arith.constant 4 : index
    %c4_108 = arith.constant 4 : index
    %c0_109 = arith.constant 0 : index
    %150 = vector.load %arg5[%c4_107, %c4_108, %c0_109] : memref<12x12x32xf32, #tpu.memory_space<vmem>>, vector<8x8x32xf32>
    %c24 = arith.constant 24 : index
    %c0_110 = arith.constant 0 : index
    %151 = vector.load %arg2[%c24, %c0_110] : memref<25x32xf32, #tpu.memory_space<vmem>>, vector<1x32xf32>
    %152 = vector.shape_cast %151 : vector<1x32xf32> to vector<1x1x32xf32>
    %153 = vector.broadcast %152 : vector<1x1x32xf32> to vector<8x8x32xf32>
    %154 = arith.mulf %150, %153 : vector<8x8x32xf32>
    %155 = arith.addf %149, %154 : vector<8x8x32xf32>
    %c0_111 = arith.constant 0 : index
    %c0_112 = arith.constant 0 : index
    %156 = vector.load %arg3[%c0_111, %c0_112] : memref<1x32xf32, #tpu.memory_space<vmem>>, vector<1x32xf32>
    %157 = vector.shape_cast %156 : vector<1x32xf32> to vector<1x1x32xf32>
    %158 = vector.broadcast %157 : vector<1x1x32xf32> to vector<8x8x32xf32>
    %159 = arith.addf %155, %158 : vector<8x8x32xf32>
    %c0_113 = arith.constant 0 : index
    %c0_114 = arith.constant 0 : index
    %c0_115 = arith.constant 0 : index
    %c0_116 = arith.constant 0 : index
    %160 = vector.load %arg4[%c0_113, %c0_114, %c0_115, %c0_116] : memref<1x8x8x32xf32, #tpu.memory_space<vmem>>, vector<1x8x8x32xf32>
    %161 = vector.shape_cast %160 : vector<1x8x8x32xf32> to vector<8x8x32xf32>
    %162 = vector.shape_cast %159 : vector<8x8x32xf32> to vector<1x8x8x32xf32>
    tpu.vector_store %arg4[%c0_113, %c0_114, %c0_115, %c0_116], %162 {strides = array<i32>} : memref<1x8x8x32xf32, #tpu.memory_space<vmem>>, vector<1x8x8x32xf32>,
    return
  }
  func.func @transform_0(%arg0: i32) -> (i32, i32, i32, i32) {
    %c0_i32 = arith.constant 0 : i32
    %c0_i32_0 = arith.constant 0 : i32
    %c0_i32_1 = arith.constant 0 : i32
    %c0_i32_2 = arith.constant 0 : i32
    return %arg0, %c0_i32, %c0_i32_0, %c0_i32_1 : i32, i32, i32, i32
  }
  func.func @transform_1(%arg0: i32) -> (i32, i32) {
    %c0_i32 = arith.constant 0 : i32
    %c0_i32_0 = arith.constant 0 : i32
    %c0_i32_1 = arith.constant 0 : i32
    return %c0_i32, %c0_i32_0 : i32, i32
  }
  func.func @transform_2(%arg0: i32) -> (i32, i32) {
    %c0_i32 = arith.constant 0 : i32
    %c0_i32_0 = arith.constant 0 : i32
    %c0_i32_1 = arith.constant 0 : i32
    return %c0_i32, %c0_i32_0 : i32, i32
  }
  func.func @transform_3(%arg0: i32) -> (i32, i32, i32, i32) {
    %c0_i32 = arith.constant 0 : i32
    %c0_i32_0 = arith.constant 0 : i32
    %c0_i32_1 = arith.constant 0 : i32
    %c0_i32_2 = arith.constant 0 : i32
    return %arg0, %c0_i32, %c0_i32_0, %c0_i32_1 : i32, i32, i32, i32
  }
}

module attributes {stable_mosaic.version = 11 : i64} {
  func.func @kernel(%arg0: i32, %arg1: memref<64x32xf32, #tpu.memory_space<vmem>>, %arg2: memref<1x32xf32, #tpu.memory_space<vmem>>, %arg3: memref<1x32xf32, #tpu.memory_space<vmem>>, %arg4: memref<32x64xf32, #tpu.memory_space<vmem>>, %arg5: memref<1x64xf32, #tpu.memory_space<vmem>>, %arg6: memref<64x64xf32, #tpu.memory_space<vmem>>) attributes {dimension_semantics = [#tpu.dimension_semantics<parallel>], iteration_bounds = array<i64: 2>, scalar_prefetch = 0 : i64, scratch_operands = 0 : i64, tpu.core_type = #tpu.core_type<tc>, window_params = [{transform_indices = @transform_0, window_bounds = array<i64: 64, 32>}, {pipeline_mode = #tpu.pipeline_mode<synchronous>, transform_indices = @transform_1, window_bounds = array<i64: 1, 32>}, {pipeline_mode = #tpu.pipeline_mode<synchronous>, transform_indices = @transform_2, window_bounds = array<i64: 1, 32>}, {pipeline_mode = #tpu.pipeline_mode<synchronous>, transform_indices = @transform_3, window_bounds = array<i64: 32, 64>}, {pipeline_mode = #tpu.pipeline_mode<synchronous>, transform_indices = @transform_4, window_bounds = array<i64: 1, 64>}, {transform_indices = @transform_5, window_bounds = array<i64: 64, 64>}]} {
    %c0 = arith.constant 0 : index
    %c0_0 = arith.constant 0 : index
    %0 = vector.load %arg1[%c0, %c0_0] : memref<64x32xf32, #tpu.memory_space<vmem>>, vector<64x32xf32>
    %cst = arith.constant dense<0.000000e+00> : vector<64xf32>
    %1 = vector.multi_reduction <add>, %0, %cst [1] : vector<64x32xf32> to vector<64xf32>
    %2 = vector.shape_cast %1 : vector<64xf32> to vector<64x1xf32>
    %cst_1 = arith.constant 3.200000e+01 : f32
    %3 = vector.broadcast %cst_1 : f32 to vector<64x1xf32>
    %4 = arith.divf %2, %3 : vector<64x1xf32>
    %5 = vector.broadcast %4 : vector<64x1xf32> to vector<64x32xf32>
    %6 = arith.subf %0, %5 : vector<64x32xf32>
    %7 = arith.mulf %6, %6 : vector<64x32xf32>
    %cst_2 = arith.constant dense<0.000000e+00> : vector<64xf32>
    %8 = vector.multi_reduction <add>, %7, %cst_2 [1] : vector<64x32xf32> to vector<64xf32>
    %9 = vector.shape_cast %8 : vector<64xf32> to vector<64x1xf32>
    %cst_3 = arith.constant 3.200000e+01 : f32
    %10 = vector.broadcast %cst_3 : f32 to vector<64x1xf32>
    %11 = arith.divf %9, %10 : vector<64x1xf32>
    %cst_4 = arith.constant 9.99999997E-7 : f32
    %12 = vector.broadcast %cst_4 : f32 to vector<64x1xf32>
    %13 = arith.addf %11, %12 : vector<64x1xf32>
    %14 = math.rsqrt %13 : vector<64x1xf32>
    %15 = vector.broadcast %14 : vector<64x1xf32> to vector<64x32xf32>
    %16 = arith.mulf %6, %15 : vector<64x32xf32>
    %c0_5 = arith.constant 0 : index
    %c0_6 = arith.constant 0 : index
    %17 = vector.load %arg2[%c0_5, %c0_6] : memref<1x32xf32, #tpu.memory_space<vmem>>, vector<1x32xf32>
    %18 = vector.broadcast %17 : vector<1x32xf32> to vector<64x32xf32>
    %19 = arith.mulf %16, %18 : vector<64x32xf32>
    %c0_7 = arith.constant 0 : index
    %c0_8 = arith.constant 0 : index
    %20 = vector.load %arg3[%c0_7, %c0_8] : memref<1x32xf32, #tpu.memory_space<vmem>>, vector<1x32xf32>
    %21 = vector.broadcast %20 : vector<1x32xf32> to vector<64x32xf32>
    %22 = arith.addf %19, %21 : vector<64x32xf32>
    %23 = arith.truncf %22 : vector<64x32xf32> to vector<64x32xbf16>
    %c0_9 = arith.constant 0 : index
    %c0_10 = arith.constant 0 : index
    %24 = vector.load %arg4[%c0_9, %c0_10] : memref<32x64xf32, #tpu.memory_space<vmem>>, vector<32x64xf32>
    %25 = arith.truncf %24 : vector<32x64xf32> to vector<32x64xbf16>
    %cst_11 = arith.constant dense<0.000000e+00> : vector<64x64xf32>
    %26 = tpu.matmul %23, %25, %cst_11 {dimension_numbers = #tpu.dot_dimension_numbers<[1], [0], [0], [1], [0, 0, 1, 1], [], []>} : vector<64x32xbf16>, vector<32x64xbf16>, vector<64x64xf32> -> vector<64x64xf32>
    %c0_12 = arith.constant 0 : index
    %c0_13 = arith.constant 0 : index
    %27 = vector.load %arg5[%c0_12, %c0_13] : memref<1x64xf32, #tpu.memory_space<vmem>>, vector<1x64xf32>
    %28 = vector.broadcast %27 : vector<1x64xf32> to vector<64x64xf32>
    %29 = arith.addf %26, %28 : vector<64x64xf32>
    %c0_14 = arith.constant 0 : index
    %c0_15 = arith.constant 0 : index
    %30 = vector.load %arg6[%c0_14, %c0_15] : memref<64x64xf32, #tpu.memory_space<vmem>>, vector<64x64xf32>
    tpu.vector_store %arg6[%c0_14, %c0_15], %29 {strides = array<i32>} : memref<64x64xf32, #tpu.memory_space<vmem>>, vector<64x64xf32>,
    return
  }
  func.func @transform_0(%arg0: i32) -> (i32, i32) {
    %c0_i32 = arith.constant 0 : i32
    %c0_i32_0 = arith.constant 0 : i32
    return %arg0, %c0_i32 : i32, i32
  }
  func.func @transform_1(%arg0: i32) -> (i32, i32) {
    %c0_i32 = arith.constant 0 : i32
    %c0_i32_0 = arith.constant 0 : i32
    %c0_i32_1 = arith.constant 0 : i32
    return %c0_i32, %c0_i32_0 : i32, i32
  }
  func.func @transform_2(%arg0: i32) -> (i32, i32) {
    %c0_i32 = arith.constant 0 : i32
    %c0_i32_0 = arith.constant 0 : i32
    %c0_i32_1 = arith.constant 0 : i32
    return %c0_i32, %c0_i32_0 : i32, i32
  }
  func.func @transform_3(%arg0: i32) -> (i32, i32) {
    %c0_i32 = arith.constant 0 : i32
    %c0_i32_0 = arith.constant 0 : i32
    %c0_i32_1 = arith.constant 0 : i32
    return %c0_i32, %c0_i32_0 : i32, i32
  }
  func.func @transform_4(%arg0: i32) -> (i32, i32) {
    %c0_i32 = arith.constant 0 : i32
    %c0_i32_0 = arith.constant 0 : i32
    %c0_i32_1 = arith.constant 0 : i32
    return %c0_i32, %c0_i32_0 : i32, i32
  }
  func.func @transform_5(%arg0: i32) -> (i32, i32) {
    %c0_i32 = arith.constant 0 : i32
    %c0_i32_0 = arith.constant 0 : i32
    return %arg0, %c0_i32 : i32, i32
  }
}

module attributes {stable_mosaic.version = 11 : i64} {
  func.func @kernel(%arg0: i32, %arg1: memref<1x8x8x64xf32, #tpu.memory_space<vmem>>, %arg2: memref<1x8x8x32xf32, #tpu.memory_space<vmem>>, %arg3: memref<9x64xf32, #tpu.memory_space<vmem>>, %arg4: memref<1x64xf32, #tpu.memory_space<vmem>>, %arg5: memref<64x32xf32, #tpu.memory_space<vmem>>, %arg6: memref<1x32xf32, #tpu.memory_space<vmem>>, %arg7: memref<1x8x8x32xf32, #tpu.memory_space<vmem>>, %arg8: memref<10x10x64xf32, #tpu.memory_space<vmem>>) attributes {dimension_semantics = [#tpu.dimension_semantics<parallel>], iteration_bounds = array<i64: 2>, scalar_prefetch = 0 : i64, scratch_operands = 1 : i64, tpu.core_type = #tpu.core_type<tc>, window_params = [{transform_indices = @transform_0, window_bounds = array<i64: 1, 8, 8, 64>}, {transform_indices = @transform_1, window_bounds = array<i64: 1, 8, 8, 32>}, {pipeline_mode = #tpu.pipeline_mode<synchronous>, transform_indices = @transform_2, window_bounds = array<i64: 9, 64>}, {pipeline_mode = #tpu.pipeline_mode<synchronous>, transform_indices = @transform_3, window_bounds = array<i64: 1, 64>}, {pipeline_mode = #tpu.pipeline_mode<synchronous>, transform_indices = @transform_4, window_bounds = array<i64: 64, 32>}, {pipeline_mode = #tpu.pipeline_mode<synchronous>, transform_indices = @transform_5, window_bounds = array<i64: 1, 32>}, {transform_indices = @transform_6, window_bounds = array<i64: 1, 8, 8, 32>}]} {
    %c0 = arith.constant 0 : index
    %c0_0 = arith.constant 0 : index
    %c0_1 = arith.constant 0 : index
    %c0_2 = arith.constant 0 : index
    %0 = vector.load %arg1[%c0, %c0_0, %c0_1, %c0_2] : memref<1x8x8x64xf32, #tpu.memory_space<vmem>>, vector<1x8x8x64xf32>
    %1 = vector.shape_cast %0 : vector<1x8x8x64xf32> to vector<8x8x64xf32>
    %cst = arith.constant 5.000000e-01 : f32
    %2 = vector.broadcast %cst : f32 to vector<8x8x64xf32>
    %3 = arith.mulf %2, %1 : vector<8x8x64xf32>
    %cst_3 = arith.constant 4.471500e-02 : f32
    %4 = vector.broadcast %cst_3 : f32 to vector<8x8x64xf32>
    %5 = arith.mulf %4, %1 : vector<8x8x64xf32>
    %6 = arith.mulf %5, %1 : vector<8x8x64xf32>
    %7 = arith.mulf %6, %1 : vector<8x8x64xf32>
    %8 = arith.addf %1, %7 : vector<8x8x64xf32>
    %cst_4 = arith.constant 0.797884583 : f32
    %9 = vector.broadcast %cst_4 : f32 to vector<8x8x64xf32>
    %10 = arith.mulf %9, %8 : vector<8x8x64xf32>
    %11 = math.tanh %10 : vector<8x8x64xf32>
    %cst_5 = arith.constant 1.000000e+00 : f32
    %12 = vector.broadcast %cst_5 : f32 to vector<8x8x64xf32>
    %13 = arith.addf %12, %11 : vector<8x8x64xf32>
    %14 = arith.mulf %3, %13 : vector<8x8x64xf32>
    %cst_6 = arith.constant 0.000000e+00 : f32
    %15 = vector.broadcast %cst_6 : f32 to vector<10x10x64xf32>
    %c0_7 = arith.constant 0 : index
    %c0_8 = arith.constant 0 : index
    %c0_9 = arith.constant 0 : index
    %16 = vector.load %arg8[%c0_7, %c0_8, %c0_9] : memref<10x10x64xf32, #tpu.memory_space<vmem>>, vector<10x10x64xf32>
    tpu.vector_store %arg8[%c0_7, %c0_8, %c0_9], %15 {strides = array<i32>} : memref<10x10x64xf32, #tpu.memory_space<vmem>>, vector<10x10x64xf32>,
    %c1 = arith.constant 1 : index
    %c1_10 = arith.constant 1 : index
    %c0_11 = arith.constant 0 : index
    %17 = vector.load %arg8[%c1, %c1_10, %c0_11] : memref<10x10x64xf32, #tpu.memory_space<vmem>>, vector<8x8x64xf32>
    tpu.vector_store %arg8[%c1, %c1_10, %c0_11], %14 {strides = array<i32>} : memref<10x10x64xf32, #tpu.memory_space<vmem>>, vector<8x8x64xf32>,
    %cst_12 = arith.constant 0.000000e+00 : f32
    %18 = vector.broadcast %cst_12 : f32 to vector<8x8x64xf32>
    %c0_13 = arith.constant 0 : index
    %c0_14 = arith.constant 0 : index
    %c0_15 = arith.constant 0 : index
    %19 = vector.load %arg8[%c0_13, %c0_14, %c0_15] : memref<10x10x64xf32, #tpu.memory_space<vmem>>, vector<8x8x64xf32>
    %c0_16 = arith.constant 0 : index
    %c0_17 = arith.constant 0 : index
    %20 = vector.load %arg3[%c0_16, %c0_17] : memref<9x64xf32, #tpu.memory_space<vmem>>, vector<1x64xf32>
    %21 = vector.shape_cast %20 : vector<1x64xf32> to vector<1x1x64xf32>
    %22 = vector.broadcast %21 : vector<1x1x64xf32> to vector<8x8x64xf32>
    %23 = arith.mulf %19, %22 : vector<8x8x64xf32>
    %24 = arith.addf %18, %23 : vector<8x8x64xf32>
    %c0_18 = arith.constant 0 : index
    %c1_19 = arith.constant 1 : index
    %c0_20 = arith.constant 0 : index
    %25 = vector.load %arg8[%c0_18, %c1_19, %c0_20] : memref<10x10x64xf32, #tpu.memory_space<vmem>>, vector<8x8x64xf32>
    %c1_21 = arith.constant 1 : index
    %c0_22 = arith.constant 0 : index
    %26 = vector.load %arg3[%c1_21, %c0_22] : memref<9x64xf32, #tpu.memory_space<vmem>>, vector<1x64xf32>
    %27 = vector.shape_cast %26 : vector<1x64xf32> to vector<1x1x64xf32>
    %28 = vector.broadcast %27 : vector<1x1x64xf32> to vector<8x8x64xf32>
    %29 = arith.mulf %25, %28 : vector<8x8x64xf32>
    %30 = arith.addf %24, %29 : vector<8x8x64xf32>
    %c0_23 = arith.constant 0 : index
    %c2 = arith.constant 2 : index
    %c0_24 = arith.constant 0 : index
    %31 = vector.load %arg8[%c0_23, %c2, %c0_24] : memref<10x10x64xf32, #tpu.memory_space<vmem>>, vector<8x8x64xf32>
    %c2_25 = arith.constant 2 : index
    %c0_26 = arith.constant 0 : index
    %32 = vector.load %arg3[%c2_25, %c0_26] : memref<9x64xf32, #tpu.memory_space<vmem>>, vector<1x64xf32>
    %33 = vector.shape_cast %32 : vector<1x64xf32> to vector<1x1x64xf32>
    %34 = vector.broadcast %33 : vector<1x1x64xf32> to vector<8x8x64xf32>
    %35 = arith.mulf %31, %34 : vector<8x8x64xf32>
    %36 = arith.addf %30, %35 : vector<8x8x64xf32>
    %c1_27 = arith.constant 1 : index
    %c0_28 = arith.constant 0 : index
    %c0_29 = arith.constant 0 : index
    %37 = vector.load %arg8[%c1_27, %c0_28, %c0_29] : memref<10x10x64xf32, #tpu.memory_space<vmem>>, vector<8x8x64xf32>
    %c3 = arith.constant 3 : index
    %c0_30 = arith.constant 0 : index
    %38 = vector.load %arg3[%c3, %c0_30] : memref<9x64xf32, #tpu.memory_space<vmem>>, vector<1x64xf32>
    %39 = vector.shape_cast %38 : vector<1x64xf32> to vector<1x1x64xf32>
    %40 = vector.broadcast %39 : vector<1x1x64xf32> to vector<8x8x64xf32>
    %41 = arith.mulf %37, %40 : vector<8x8x64xf32>
    %42 = arith.addf %36, %41 : vector<8x8x64xf32>
    %c1_31 = arith.constant 1 : index
    %c1_32 = arith.constant 1 : index
    %c0_33 = arith.constant 0 : index
    %43 = vector.load %arg8[%c1_31, %c1_32, %c0_33] : memref<10x10x64xf32, #tpu.memory_space<vmem>>, vector<8x8x64xf32>
    %c4 = arith.constant 4 : index
    %c0_34 = arith.constant 0 : index
    %44 = vector.load %arg3[%c4, %c0_34] : memref<9x64xf32, #tpu.memory_space<vmem>>, vector<1x64xf32>
    %45 = vector.shape_cast %44 : vector<1x64xf32> to vector<1x1x64xf32>
    %46 = vector.broadcast %45 : vector<1x1x64xf32> to vector<8x8x64xf32>
    %47 = arith.mulf %43, %46 : vector<8x8x64xf32>
    %48 = arith.addf %42, %47 : vector<8x8x64xf32>
    %c1_35 = arith.constant 1 : index
    %c2_36 = arith.constant 2 : index
    %c0_37 = arith.constant 0 : index
    %49 = vector.load %arg8[%c1_35, %c2_36, %c0_37] : memref<10x10x64xf32, #tpu.memory_space<vmem>>, vector<8x8x64xf32>
    %c5 = arith.constant 5 : index
    %c0_38 = arith.constant 0 : index
    %50 = vector.load %arg3[%c5, %c0_38] : memref<9x64xf32, #tpu.memory_space<vmem>>, vector<1x64xf32>
    %51 = vector.shape_cast %50 : vector<1x64xf32> to vector<1x1x64xf32>
    %52 = vector.broadcast %51 : vector<1x1x64xf32> to vector<8x8x64xf32>
    %53 = arith.mulf %49, %52 : vector<8x8x64xf32>
    %54 = arith.addf %48, %53 : vector<8x8x64xf32>
    %c2_39 = arith.constant 2 : index
    %c0_40 = arith.constant 0 : index
    %c0_41 = arith.constant 0 : index
    %55 = vector.load %arg8[%c2_39, %c0_40, %c0_41] : memref<10x10x64xf32, #tpu.memory_space<vmem>>, vector<8x8x64xf32>
    %c6 = arith.constant 6 : index
    %c0_42 = arith.constant 0 : index
    %56 = vector.load %arg3[%c6, %c0_42] : memref<9x64xf32, #tpu.memory_space<vmem>>, vector<1x64xf32>
    %57 = vector.shape_cast %56 : vector<1x64xf32> to vector<1x1x64xf32>
    %58 = vector.broadcast %57 : vector<1x1x64xf32> to vector<8x8x64xf32>
    %59 = arith.mulf %55, %58 : vector<8x8x64xf32>
    %60 = arith.addf %54, %59 : vector<8x8x64xf32>
    %c2_43 = arith.constant 2 : index
    %c1_44 = arith.constant 1 : index
    %c0_45 = arith.constant 0 : index
    %61 = vector.load %arg8[%c2_43, %c1_44, %c0_45] : memref<10x10x64xf32, #tpu.memory_space<vmem>>, vector<8x8x64xf32>
    %c7 = arith.constant 7 : index
    %c0_46 = arith.constant 0 : index
    %62 = vector.load %arg3[%c7, %c0_46] : memref<9x64xf32, #tpu.memory_space<vmem>>, vector<1x64xf32>
    %63 = vector.shape_cast %62 : vector<1x64xf32> to vector<1x1x64xf32>
    %64 = vector.broadcast %63 : vector<1x1x64xf32> to vector<8x8x64xf32>
    %65 = arith.mulf %61, %64 : vector<8x8x64xf32>
    %66 = arith.addf %60, %65 : vector<8x8x64xf32>
    %c2_47 = arith.constant 2 : index
    %c2_48 = arith.constant 2 : index
    %c0_49 = arith.constant 0 : index
    %67 = vector.load %arg8[%c2_47, %c2_48, %c0_49] : memref<10x10x64xf32, #tpu.memory_space<vmem>>, vector<8x8x64xf32>
    %c8 = arith.constant 8 : index
    %c0_50 = arith.constant 0 : index
    %68 = vector.load %arg3[%c8, %c0_50] : memref<9x64xf32, #tpu.memory_space<vmem>>, vector<1x64xf32>
    %69 = vector.shape_cast %68 : vector<1x64xf32> to vector<1x1x64xf32>
    %70 = vector.broadcast %69 : vector<1x1x64xf32> to vector<8x8x64xf32>
    %71 = arith.mulf %67, %70 : vector<8x8x64xf32>
    %72 = arith.addf %66, %71 : vector<8x8x64xf32>
    %73 = arith.addf %14, %72 : vector<8x8x64xf32>
    %c0_51 = arith.constant 0 : index
    %c0_52 = arith.constant 0 : index
    %74 = vector.load %arg4[%c0_51, %c0_52] : memref<1x64xf32, #tpu.memory_space<vmem>>, vector<1x64xf32>
    %75 = vector.shape_cast %74 : vector<1x64xf32> to vector<1x1x64xf32>
    %76 = vector.broadcast %75 : vector<1x1x64xf32> to vector<8x8x64xf32>
    %77 = arith.addf %73, %76 : vector<8x8x64xf32>
    %78 = vector.shape_cast %77 : vector<8x8x64xf32> to vector<64x64xf32>
    %79 = arith.truncf %78 : vector<64x64xf32> to vector<64x64xbf16>
    %c0_53 = arith.constant 0 : index
    %c0_54 = arith.constant 0 : index
    %80 = vector.load %arg5[%c0_53, %c0_54] : memref<64x32xf32, #tpu.memory_space<vmem>>, vector<64x32xf32>
    %81 = arith.truncf %80 : vector<64x32xf32> to vector<64x32xbf16>
    %cst_55 = arith.constant dense<0.000000e+00> : vector<64x32xf32>
    %82 = tpu.matmul %79, %81, %cst_55 {dimension_numbers = #tpu.dot_dimension_numbers<[1], [0], [0], [1], [0, 0, 1, 1], [], []>} : vector<64x64xbf16>, vector<64x32xbf16>, vector<64x32xf32> -> vector<64x32xf32>
    %c0_56 = arith.constant 0 : index
    %c0_57 = arith.constant 0 : index
    %83 = vector.load %arg6[%c0_56, %c0_57] : memref<1x32xf32, #tpu.memory_space<vmem>>, vector<1x32xf32>
    %84 = vector.broadcast %83 : vector<1x32xf32> to vector<64x32xf32>
    %85 = arith.addf %82, %84 : vector<64x32xf32>
    %c0_58 = arith.constant 0 : index
    %c0_59 = arith.constant 0 : index
    %c0_60 = arith.constant 0 : index
    %c0_61 = arith.constant 0 : index
    %86 = vector.load %arg2[%c0_58, %c0_59, %c0_60, %c0_61] : memref<1x8x8x32xf32, #tpu.memory_space<vmem>>, vector<1x8x8x32xf32>
    %87 = vector.shape_cast %86 : vector<1x8x8x32xf32> to vector<8x8x32xf32>
    %88 = vector.shape_cast %85 : vector<64x32xf32> to vector<8x8x32xf32>
    %89 = arith.addf %87, %88 : vector<8x8x32xf32>
    %c0_62 = arith.constant 0 : index
    %c0_63 = arith.constant 0 : index
    %c0_64 = arith.constant 0 : index
    %c0_65 = arith.constant 0 : index
    %90 = vector.load %arg7[%c0_62, %c0_63, %c0_64, %c0_65] : memref<1x8x8x32xf32, #tpu.memory_space<vmem>>, vector<1x8x8x32xf32>
    %91 = vector.shape_cast %90 : vector<1x8x8x32xf32> to vector<8x8x32xf32>
    %92 = vector.shape_cast %89 : vector<8x8x32xf32> to vector<1x8x8x32xf32>
    tpu.vector_store %arg7[%c0_62, %c0_63, %c0_64, %c0_65], %92 {strides = array<i32>} : memref<1x8x8x32xf32, #tpu.memory_space<vmem>>, vector<1x8x8x32xf32>,
    return
  }
  func.func @transform_0(%arg0: i32) -> (i32, i32, i32, i32) {
    %c0_i32 = arith.constant 0 : i32
    %c0_i32_0 = arith.constant 0 : i32
    %c0_i32_1 = arith.constant 0 : i32
    %c0_i32_2 = arith.constant 0 : i32
    return %arg0, %c0_i32, %c0_i32_0, %c0_i32_1 : i32, i32, i32, i32
  }
  func.func @transform_1(%arg0: i32) -> (i32, i32, i32, i32) {
    %c0_i32 = arith.constant 0 : i32
    %c0_i32_0 = arith.constant 0 : i32
    %c0_i32_1 = arith.constant 0 : i32
    %c0_i32_2 = arith.constant 0 : i32
    return %arg0, %c0_i32, %c0_i32_0, %c0_i32_1 : i32, i32, i32, i32
  }
  func.func @transform_2(%arg0: i32) -> (i32, i32) {
    %c0_i32 = arith.constant 0 : i32
    %c0_i32_0 = arith.constant 0 : i32
    %c0_i32_1 = arith.constant 0 : i32
    return %c0_i32, %c0_i32_0 : i32, i32
  }
  func.func @transform_3(%arg0: i32) -> (i32, i32) {
    %c0_i32 = arith.constant 0 : i32
    %c0_i32_0 = arith.constant 0 : i32
    %c0_i32_1 = arith.constant 0 : i32
    return %c0_i32, %c0_i32_0 : i32, i32
  }
  func.func @transform_4(%arg0: i32) -> (i32, i32) {
    %c0_i32 = arith.constant 0 : i32
    %c0_i32_0 = arith.constant 0 : i32
    %c0_i32_1 = arith.constant 0 : i32
    return %c0_i32, %c0_i32_0 : i32, i32
  }
  func.func @transform_5(%arg0: i32) -> (i32, i32) {
    %c0_i32 = arith.constant 0 : i32
    %c0_i32_0 = arith.constant 0 : i32
    %c0_i32_1 = arith.constant 0 : i32
    return %c0_i32, %c0_i32_0 : i32, i32
  }
  func.func @transform_6(%arg0: i32) -> (i32, i32, i32, i32) {
    %c0_i32 = arith.constant 0 : i32
    %c0_i32_0 = arith.constant 0 : i32
    %c0_i32_1 = arith.constant 0 : i32
    %c0_i32_2 = arith.constant 0 : i32
    return %arg0, %c0_i32, %c0_i32_0, %c0_i32_1 : i32, i32, i32, i32
  }
}

</mosaic_0001>

<bundles_post_ra>
// kernel: block_forward.11
= control target key start
LH: loop header
LB: loop body
LE: loop exit
PB: predicated region body
PF: predicated region fallthrough
CT: control target
= control target key end

     0   :  { %s634_s18 = smov 0   ;;  %s747_s0 = inlined_call_operand.vmem [shape: f32[128,32], index: 0, kind: input, shape index: {}]   ;;  %s748_s1 = inlined_call_operand.vmem [shape: f32[1,32], index: 1, kind: input, shape index: {}]   ;;  %s749_s2 = inlined_call_operand.vmem [shape: f32[1,32], index: 2, kind: input, shape index: {}]   ;;  %s750_s3 = inlined_call_operand.vmem [shape: f32[32,96], index: 3, kind: input, shape index: {}]   ;;  %s751_s4 = inlined_call_operand.vmem [shape: f32[1,96], index: 4, kind: input, shape index: {}]   ;;  %s752_s5 = inlined_call_operand.vmem [shape: f32[128,96], index: 5, kind: output, shape index: {}]  }
   0x1 LB: > { %s532_s19 = sadd.s32 4294967295, %s602_s18   ;;  %p536_p0 = scmp.ge.s32.totalorder %s602_s18, 1  ;;  %s602_s18 = sphi %s634_s18, %s15_s18  }
   0x2   : > { %p188_p1 = scmp.lt.s32.totalorder %s602_s18, 3 }
   0x4   : > { %p189_p2 = pnand %p536_p0, %p188_p1 }
   0x5   : > { %s537_s20 = sshll.u32 (!%p189_p2), %s532_s19, 3  ;;  %vm237_vm0 = vcmask (!%p189_p2), 261120   ;;  %v377_v56 = vld [vmem:[%s750_s3] sm:$0xff] (!%p189_p2)  ;;  %v378_v57 = vld [vmem:[%s750_s3 + $0x8] sm:$0xff] (!%p189_p2)  ;;  %v379_v59 = vld [vmem:[%s750_s3 + $0x10] sm:$0xff] (!%p189_p2)  ;;  %vm467_vm1 = vcmask (!%p189_p2), 785408  }
   0x6   : > { %192 = sbr.rel (%p189_p2) target bundleno = 566 (0x236), region = 40  ;;  %p217_p3 = scmp.lt.s32.totalorder (!%p189_p2), %s537_s20, 15  ;;  %v381_v58 = vpack.c.bf16 (!%p189_p2), %v378_v57, %v377_v56  ;;  %v380_v60 = vld [vmem:[%s750_s3 + $0x18] sm:$0xff] (!%p189_p2) }
   0x7   : > { %v382_v61 = vpack.c.bf16 (!%p189_p2), %v380_v60, %v379_v59 }
   0x8   : > { %556 = vmatprep.subr.bf16.mxu0 (!%p189_p2), %v381_v58  ;;  %568 = vmatprep.subr.bf16.mxu1 (!%p189_p2), %v381_v58 }
   0x9   : > { %557 = vmatpush3.bf16.msra.mxu0 (!%p189_p2), %v381_v58  ;;  %570 = vmatpush3.bf16.msra.mxu1 (!%p189_p2), %v381_v58 }
   0xa   : > { %558 = vmatprep.subr.bf16.mxu0 (!%p189_p2), %v382_v61  ;;  %569 = vmatprep.subr.bf16.mxu1 (!%p189_p2), %v382_v61 }
   0xd   : > { %s754_s20 = smov (!%p217_p3, %s537_s20), 15  ;;  %559 = vmatpush3.bf16.msra.mxu0 %v382_v61  ;;  %571 = vmatpush3.bf16.msra.mxu1 %v382_v61 }
   0xe   : > { %s538_s21 = sshll.u32 %s754_s20, 3 }
   0xf   : > { %s220_s24 = scalar_lea.vmem %s747_s0, %s538_s21  ;;  %s226_s16 = scalar_lea.vmem %s752_s5, %s538_s21 }
  0x10   : > { %v229_v0 = vld [vmem:[%s220_s24] sm:$0xff]  ;;  %v230_v2 = vld [vmem:[%s220_s24 + $0x8] sm:$0xff]  ;;  %v231_v8 = vld [vmem:[%s220_s24 + $0x10] sm:$0xff] }
  0x11   : > { %v233_v1 = vld [vmem:[%s220_s24 + $0x20] sm:$0xff]  ;;  %v238_v3 = vsel %vm237_vm0, %v229_v0, 0.0  ;;  %v234_v5 = vld [vmem:[%s220_s24 + $0x28] sm:$0xff]  ;;  %v241_v6 = vsel %vm237_vm0, %v230_v2, 0.0  ;;  %v232_v9 = vld [vmem:[%s220_s24 + $0x18] sm:$0xff]  ;;  %v244_v10 = vsel %vm237_vm0, %v231_v8, 0.0 }
  0x12   : > { %v250_v4 = vsel %vm237_vm0, %v233_v1, 0.0  ;;  %239 = vadd.xlane.f32.xlu0 %v238_v3  ;;  %v253_v7 = vsel %vm237_vm0, %v234_v5, 0.0  ;;  %v247_v11 = vsel %vm237_vm0, %v232_v9, 0.0  ;;  %v235_v12 = vld [vmem:[%s220_s24 + $0x30] sm:$0xff]  ;;  %v236_v13 = vld [vmem:[%s220_s24 + $0x38] sm:$0xff] }
  0x13   : > { %251 = vadd.xlane.f32.xlu1 %v250_v4  ;;  %v256_v14 = vsel %vm237_vm0, %v235_v12, 0.0  ;;  %v259_v15 = vsel %vm237_vm0, %v236_v13, 0.0 }
  0x16   : > { %242 = vadd.xlane.f32.xlu0 %v241_v6 }
  0x17   : > { %254 = vadd.xlane.f32.xlu1 %v253_v7 }
  0x1a   : > { %245 = vadd.xlane.f32.xlu0 %v244_v10 }
  0x1b   : > { %248 = vadd.xlane.f32.xlu1 %v247_v11 }
  0x1e   : > { %257 = vadd.xlane.f32.xlu0 %v256_v14 }
  0x1f   : > { %260 = vadd.xlane.f32.xlu1 %v259_v15 }
  0x9f   : > { %v240_v16 = vpop.xlane.xlu0 %239 }
  0xa0   : > { %v252_v17 = vpop.xlane.xlu1 %251  ;;  %v263_v18 = vmul.f32 0.03125, %v240_v16 }
  0xa1   : > { %v267_v19 = vmul.f32 0.03125, %v252_v17 }
  0xa2   : > { %v658_v20 = vsub.f32 %v229_v0, %v263_v18 }
  0xa3   : > { %v660_v21 = vsub.f32 %v233_v1, %v267_v19  ;;  %v243_v22 = vpop.xlane.xlu0 %242 }
  0xa4   : > { %v255_v23 = vpop.xlane.xlu1 %254  ;;  %v264_v24 = vmul.f32 0.03125, %v243_v22  ;;  %v279_v26 = vmul.f32 %v658_v20, %v658_v20 }
  0xa5   : > { %v268_v25 = vmul.f32 0.03125, %v255_v23  ;;  %v283_v27 = vmul.f32 %v660_v21, %v660_v21 }
  0xa6   : > { %v666_v28 = vsub.f32 %v230_v2, %v264_v24  ;;  %v287_v30 = vsel %vm237_vm0, %v279_v26, 0.0 }
  0xa7   : > { %v668_v29 = vsub.f32 %v234_v5, %v268_v25  ;;  %288 = vadd.xlane.f32.xlu0 %v287_v30  ;;  %v246_v31 = vpop.xlane.xlu0 %245  ;;  %v299_v33 = vsel %vm237_vm0, %v283_v27, 0.0  ;;  %v541_v25 = vld [vmem:[%s748_s1] ss:$0 sm:$0xff] }
  0xa8   : > { %v249_v32 = vpop.xlane.xlu1 %248  ;;  %v265_v34 = vmul.f32 0.03125, %v246_v31  ;;  %v280_v36 = vmul.f32 %v666_v28, %v666_v28 }
  0xa9   : > { %v266_v35 = vmul.f32 0.03125, %v249_v32  ;;  %v284_v37 = vmul.f32 %v668_v29, %v668_v29 }
  0xaa   : > { %v676_v38 = vsub.f32 %v231_v8, %v265_v34  ;;  %v290_v40 = vsel %vm237_vm0, %v280_v36, 0.0 }
  0xab   : > { %v678_v39 = vsub.f32 %v232_v9, %v266_v35  ;;  %300 = vadd.xlane.f32.xlu0 %v299_v33  ;;  %291 = vadd.xlane.f32.xlu1 %v290_v40  ;;  %v258_v41 = vpop.xlane.xlu0 %257  ;;  %v302_v43 = vsel %vm237_vm0, %v284_v37, 0.0  ;;  %v542_v33 = vld [vmem:[%s749_s2] ss:$0 sm:$0xff] }
  0xac   : > { %v261_v42 = vpop.xlane.xlu1 %260  ;;  %v269_v44 = vmul.f32 0.03125, %v258_v41  ;;  %v281_v46 = vmul.f32 %v676_v38, %v676_v38 }
  0xad   : > { %v270_v45 = vmul.f32 0.03125, %v261_v42  ;;  %v282_v47 = vmul.f32 %v678_v39, %v678_v39 }
  0xae   : > { %v686_v48 = vsub.f32 %v235_v12, %v269_v44  ;;  %v293_v50 = vsel %vm237_vm0, %v281_v46, 0.0 }
  0xaf   : > { %v688_v49 = vsub.f32 %v236_v13, %v270_v45  ;;  %303 = vadd.xlane.f32.xlu1 %v302_v43  ;;  %294 = vadd.xlane.f32.xlu0 %v293_v50  ;;  %v296_v51 = vsel %vm237_vm0, %v282_v47, 0.0 }
  0xb0   : > { %v285_v52 = vmul.f32 %v686_v48, %v686_v48 }
  0xb1   : > { %v286_v53 = vmul.f32 %v688_v49, %v688_v49 }
  0xb2   : > { %v305_v54 = vsel %vm237_vm0, %v285_v52, 0.0 }
  0xb3   : > { %297 = vadd.xlane.f32.xlu1 %v296_v51  ;;  %306 = vadd.xlane.f32.xlu0 %v305_v54  ;;  %v308_v55 = vsel %vm237_vm0, %v286_v53, 0.0 }
  0xb7   : > { %309 = vadd.xlane.f32.xlu1 %v308_v55 }
 0x134   : > { %v289_v62 = vpop.xlane.xlu0 %288 }
 0x135   : > { %v311_v63 = vmul.f32 0.03125, %v289_v62 }
 0x137   : > { %v319_v0 = vadd.f32 1e-06, %v311_v63 }
 0x138   : > { %v292_v1 = vpop.xlane.xlu1 %291  ;;  %v301_v2 = vpop.xlane.xlu0 %300 }
 0x139   : > { %580 = vrsqrt.f32 %v319_v0  ;;  %v312_v3 = vmul.f32 0.03125, %v292_v1  ;;  %v315_v4 = vmul.f32 0.03125, %v301_v2 }
 0x13b   : > { %v320_v5 = vadd.f32 1e-06, %v312_v3  ;;  %v323_v6 = vadd.f32 1e-06, %v315_v4 }
 0x13c   : > { %v304_v7 = vpop.xlane.xlu1 %303  ;;  %v295_v8 = vpop.xlane.xlu0 %294 }
 0x13d   : > { %582 = vrsqrt.f32 %v320_v5  ;;  %v316_v9 = vmul.f32 0.03125, %v304_v7  ;;  %v313_v10 = vmul.f32 0.03125, %v295_v8 }
 0x13e   : > { %584 = vrsqrt.f32 %v323_v6 }
 0x13f   : > { %v324_v11 = vadd.f32 1e-06, %v316_v9  ;;  %v321_v12 = vadd.f32 1e-06, %v313_v10 }
 0x140   : > { %v298_v13 = vpop.xlane.xlu1 %297  ;;  %v307_v14 = vpop.xlane.xlu0 %306 }
 0x141   : > { %586 = vrsqrt.f32 %v324_v11  ;;  %v314_v15 = vmul.f32 0.03125, %v298_v13  ;;  %v317_v16 = vmul.f32 0.03125, %v307_v14 }
 0x142   : > { %588 = vrsqrt.f32 %v321_v12 }
 0x143   : > { %v581_v17 = vpop.eup %580  ;;  %v322_v18 = vadd.f32 1e-06, %v314_v15  ;;  %v325_v19 = vadd.f32 1e-06, %v317_v16 }
 0x144   : > { %v310_v22 = vpop.xlane.xlu1 %309  ;;  %v335_v23 = vmul.f32 %v581_v17, %v658_v20 }
 0x145   : > { %590 = vrsqrt.f32 %v322_v18  ;;  %v318_v24 = vmul.f32 0.03125, %v310_v22 }
 0x146   : > { %592 = vrsqrt.f32 %v325_v19  ;;  %v350_v32 = vmul.f32 %v541_v25, %v335_v23 }
 0x147   : > { %v583_v26 = vpop.eup %582  ;;  %v326_v27 = vadd.f32 1e-06, %v318_v24 }
 0x148   : > { %v585_v30 = vpop.eup %584  ;;  %v336_v31 = vmul.f32 %v583_v26, %v666_v28  ;;  %v365_v37 = vadd.f32 %v542_v33, %v350_v32 }
 0x149   : > { %594 = vrsqrt.f32 %v326_v27  ;;  %v339_v20 = vmul.f32 %v585_v30, %v660_v21 }
 0x14a   : > { %v351_v34 = vmul.f32 %v541_v25, %v336_v31 }
 0x14b   : > { %v587_v35 = vpop.eup %586  ;;  %v354_v42 = vmul.f32 %v541_v25, %v339_v20 }
 0x14c   : > { %v589_v36 = vpop.eup %588  ;;  %v366_v40 = vadd.f32 %v542_v33, %v351_v34  ;;  %v340_v41 = vmul.f32 %v587_v35, %v668_v29 }
 0x14d   : > { %v337_v43 = vmul.f32 %v589_v36, %v676_v38  ;;  %v369_v50 = vadd.f32 %v542_v33, %v354_v42 }
 0x14e   : > { %v373_v44 = vpack.c.bf16 %v366_v40, %v365_v37  ;;  %v355_v28 = vmul.f32 %v541_v25, %v340_v41 }
 0x14f   : > { %v591_v45 = vpop.eup %590  ;;  %v352_v51 = vmul.f32 %v541_v25, %v337_v43 }
 0x150   : > { %v593_v46 = vpop.eup %592  ;;  %v338_v47 = vmul.f32 %v591_v45, %v678_v39  ;;  %560 = vmatprep.mubr.msk.bf16.mxu0 %vm237_vm0, %v373_v44  ;;  %v370_v21 = vadd.f32 %v542_v33, %v355_v28 }
 0x151   : > { %v341_v52 = vmul.f32 %v593_v46, %v686_v48  ;;  %v367_v38 = vadd.f32 %v542_v33, %v352_v51  ;;  %v543_v48 = vld [vmem:[%s751_s4] ss:$0 sm:$0xff] }
 0x152   : > { %v375_v53 = vpack.c.bf16 %v370_v21, %v369_v50  ;;  %v353_v54 = vmul.f32 %v541_v25, %v338_v47 }
 0x153   : > { %v595_v29 = vpop.eup %594  ;;  %v356_v57 = vmul.f32 %v541_v25, %v341_v52 }
 0x154   : > { %v342_v55 = vmul.f32 %v595_v29, %v688_v49  ;;  %564 = vmatprep.mubr.msk.bf16.mxu1 %vm237_vm0, %v375_v53  ;;  %v368_v56 = vadd.f32 %v542_v33, %v353_v54 }
 0x155   : > { %v371_v59 = vadd.f32 %v542_v33, %v356_v57 }
 0x156   : > { %v374_v58 = vpack.c.bf16 %v368_v56, %v367_v38  ;;  %v357_v39 = vmul.f32 %v541_v25, %v342_v55 }
 0x158   : > { %561 = vmatmul.mubr.msk.bf16.vlgmr.msra.gmra.mrb[0].mxu0 %vm237_vm0, %v374_v58  ;;  %v372_v60 = vadd.f32 %v542_v33, %v357_v39 }
 0x15a   : > { %v376_v61 = vpack.c.bf16 %v372_v60, %v371_v59 }
 0x15c   : > { %565 = vmatmul.mubr.msk.bf16.vlgmr.msra.gmra.mrb[0].mxu1 %vm237_vm0, %v376_v61 }
 0x22b   : > { %v562_v49 = vpop.f32.mrb[0].mxu0 }
 0x22c   : > { %v445_v62 = vadd.f32 %v562_v49, %v543_v48  ;;  %v436_v63 = vpop.f32.mrb[1].mxu0 }
 0x22d   : > { %v437_v0 = vadd.f32 %v543_v48, %v436_v63  ;;  %v563_v1 = vpop.f32.mrb[2].mxu0 }
 0x22e   : > { %470 = vst.msk [vmem:[%s226_s16 + $0x10] sm:$0xff] %vm467_vm1, %v445_v62  ;;  %v448_v2 = vadd.f32 %v563_v1, %v543_v48  ;;  %v439_v3 = vpop.f32.mrb[3].mxu0 }
 0x22f   : > { %468 = vst.msk [vmem:[%s226_s16] sm:$0xff] %vm467_vm1, %v437_v0  ;;  %v440_v4 = vadd.f32 %v543_v48, %v439_v3  ;;  %v566_v5 = vpop.f32.mrb[0].mxu1 }
 0x230   : > { %471 = vst.msk [vmem:[%s226_s16 + $0x18] sm:$0xff] %vm467_vm1, %v448_v2  ;;  %v461_v6 = vadd.f32 %v566_v5, %v543_v48  ;;  %v452_v7 = vpop.f32.mrb[1].mxu1 }
 0x231   : > { %469 = vst.msk [vmem:[%s226_s16 + $0x8] sm:$0xff] %vm467_vm1, %v440_v4  ;;  %v453_v8 = vadd.f32 %v543_v48, %v452_v7  ;;  %v567_v9 = vpop.f32.mrb[2].mxu1 }
 0x232   : > { %474 = vst.msk [vmem:[%s226_s16 + $0x30] sm:$0xff] %vm467_vm1, %v461_v6  ;;  %v464_v10 = vadd.f32 %v567_v9, %v543_v48  ;;  %v455_v11 = vpop.f32.mrb[3].mxu1 }
 0x233   : > { %472 = vst.msk [vmem:[%s226_s16 + $0x20] sm:$0xff] %vm467_vm1, %v453_v8  ;;  %v456_v12 = vadd.f32 %v543_v48, %v455_v11 }
 0x234   : > { %475 = vst.msk [vmem:[%s226_s16 + $0x38] sm:$0xff] %vm467_vm1, %v464_v10 }
 0x235   : > { %473 = vst.msk [vmem:[%s226_s16 + $0x28] sm:$0xff] %vm467_vm1, %v456_v12 }
 0x236 PF: > { %s15_s18 = sadd.s32 1, %s602_s18  }
 0x237   : > { %p12_p4 = scmp.ge.s32.totalorder %s15_s18, 4  }
 0x239   :  { %14 = sbr.rel (!%p12_p4) target bundleno = 1 (0x1), region = 70 }

// kernel: block_forward.10
= control target key start
LH: loop header
LB: loop body
LE: loop exit
PB: predicated region body
PF: predicated region fallthrough
CT: control target
= control target key end

     0   :  { %s619_s12 = smov 0   ;;  %s857_s0 = inlined_call_operand.vmem [shape: f32[2,8,8,32], index: 0, kind: input, shape index: {}]   ;;  %s858_s1 = inlined_call_operand.vmem [shape: f32[9,32], index: 1, kind: input, shape index: {}]   ;;  %s859_s2 = inlined_call_operand.vmem [shape: f32[1,32], index: 2, kind: input, shape index: {}]   ;;  %s860_s3 = inlined_call_operand.vmem [shape: f32[2,8,8,32], index: 3, kind: output, shape index: {}]  }
   0x1 LB: > { %s558_s13 = sadd.s32 4294967295, %s596_s12   ;;  %p562_p0 = scmp.ge.s32.totalorder %s596_s12, 1  ;;  %s596_s12 = sphi %s619_s12, %s13_s12  }
   0x2   : > { %p137_p1 = scmp.lt.s32.totalorder %s596_s12, 3 }
   0x4   : > { %p138_p2 = pnand %p562_p0, %p137_p1 }
   0x5   : > { %vm179_vm0 = vcmask (!%p138_p2), 261120   ;;  %vm181_vm1 = vcmask (!%p138_p2), 254976   ;;  %p627_p3 = scmp.lt.s32.totalorder (!%p138_p2), %s558_s13, 1  ;;  %v598_v0 = vmov (!%p138_p2), 0.0   ;;  %v664_v1 = vld [vmem:[%s858_s1] ss:$0 sm:$0xff] (!%p138_p2) }
   0x6   : > { %141 = sbr.rel (%p138_p2) target bundleno = 74 (0x4a), region = 32  ;;  %180 = vst.msk [vmem:[#allocation2] sm:$0xff] (!%p138_p2), %vm179_vm0, %v598_v0  ;;  %183 = vst.msk [vmem:[#allocation2 + $0x10] sm:$0xff] (!%p138_p2), %vm179_vm0, %v598_v0  ;;  %v669_v2 = vld [vmem:[%s858_s1 + $0x1] ss:$0 sm:$0xff] (!%p138_p2) }
   0x7   : > { %185 = vst.msk [vmem:[#allocation2 + $0x20] sm:$0xff] (!%p138_p2), %vm179_vm0, %v598_v0  ;;  %187 = vst.msk [vmem:[#allocation2 + $0x30] sm:$0xff] (!%p138_p2), %vm179_vm0, %v598_v0  ;;  %v674_v3 = vld [vmem:[%s858_s1 + $0x2] ss:$0 sm:$0xff] (!%p138_p2)  ;;  %v714_v19 = vld [vmem:[%s858_s1 + $0x3] ss:$0 sm:$0xff] (!%p138_p2) }
   0x8   : > { %189 = vst.msk [vmem:[#allocation2 + $0x40] sm:$0xff] (!%p138_p2), %vm179_vm0, %v598_v0  ;;  %191 = vst.msk [vmem:[#allocation2 + $0x50] sm:$0xff] (!%p138_p2), %vm179_vm0, %v598_v0  ;;  %v719_v20 = vld [vmem:[%s858_s1 + $0x4] ss:$0 sm:$0xff] (!%p138_p2)  ;;  %v724_v24 = vld [vmem:[%s858_s1 + $0x5] ss:$0 sm:$0xff] (!%p138_p2) }
   0x9   : > { %193 = vst.msk [vmem:[#allocation2 + $0x60] sm:$0xff] (!%p138_p2), %vm179_vm0, %v598_v0  ;;  %195 = vst.msk [vmem:[#allocation2 + $0x70] sm:$0xff] (!%p138_p2), %vm179_vm0, %v598_v0  ;;  %v730_v28 = vld [vmem:[%s858_s1 + $0x6] ss:$0 sm:$0xff] (!%p138_p2)  ;;  %v736_v31 = vld [vmem:[%s858_s1 + $0x7] ss:$0 sm:$0xff] (!%p138_p2) }
   0xa   : > { %197 = vst.msk [vmem:[#allocation2 + $0x80] sm:$0xff] (!%p138_p2), %vm179_vm0, %v598_v0  ;;  %199 = vst.msk [vmem:[#allocation2 + $0x90] sm:$0xff] (!%p138_p2), %vm179_vm0, %v598_v0  ;;  %v743_v36 = vld [vmem:[%s858_s1 + $0x8] ss:$0 sm:$0xff] (!%p138_p2) }
   0xb   : > { %182 = vst.msk [vmem:[#allocation2 + $0x8] sm:$0x3] (!%p138_p2), %vm181_vm1, %v598_v0  ;;  %184 = vst.msk [vmem:[#allocation2 + $0x18] sm:$0x3] (!%p138_p2), %vm181_vm1, %v598_v0 }
   0xc   : > { %186 = vst.msk [vmem:[#allocation2 + $0x28] sm:$0x3] (!%p138_p2), %vm181_vm1, %v598_v0  ;;  %188 = vst.msk [vmem:[#allocation2 + $0x38] sm:$0x3] (!%p138_p2), %vm181_vm1, %v598_v0 }
   0xd   : > { %190 = vst.msk [vmem:[#allocation2 + $0x48] sm:$0x3] %vm181_vm1, %v598_v0  ;;  %192 = vst.msk [vmem:[#allocation2 + $0x58] sm:$0x3] %vm181_vm1, %v598_v0  ;;  %s863_s13 = smov (!%p627_p3, %s558_s13), 1  ;;  %v210_v12 = vld [vmem:[#allocation2] sm:$0xff] }
   0xe   : > { %194 = vst.msk [vmem:[#allocation2 + $0x68] sm:$0x3] %vm181_vm1, %v598_v0  ;;  %196 = vst.msk [vmem:[#allocation2 + $0x78] sm:$0x3] %vm181_vm1, %v598_v0  ;;  %s579_s15 = sshll.u32 %s863_s13, 6  ;;  %v223_v13 = vmul.f32 %v664_v1, %v210_v12 }
   0xf   : > { %198 = vst.msk [vmem:[#allocation2 + $0x88] sm:$0x3] %vm181_vm1, %v598_v0  ;;  %200 = vst.msk [vmem:[#allocation2 + $0x98] sm:$0x3] %vm181_vm1, %v598_v0  ;;  %s165_s18 = scalar_lea.vmem %s857_s0, %s579_s15  ;;  %s783_s17 = scalar_lea.vmem %s860_s3, %s579_s15 }
  0x10   : > { %v676_v4 = vld [vmem:[%s165_s18] sm:$0xff]  ;;  %v678_v5 = vld [vmem:[%s165_s18 + $0x8] sm:$0xff]  ;;  %v680_v6 = vld [vmem:[%s165_s18 + $0x10] sm:$0xff] }
  0x11   : > { %202 = vst.msk [vmem:[#allocation2 + $0x11] sm:$0xff] %vm179_vm0, %v676_v4  ;;  %203 = vst.msk [vmem:[#allocation2 + $0x21] sm:$0xff] %vm179_vm0, %v678_v5  ;;  %v688_v7 = vld [vmem:[%s165_s18 + $0x18] sm:$0xff]  ;;  %v690_v8 = vld [vmem:[%s165_s18 + $0x20] sm:$0xff] }
  0x12   : > { %204 = vst.msk [vmem:[#allocation2 + $0x31] sm:$0xff] %vm179_vm0, %v680_v6  ;;  %v692_v9 = vld [vmem:[%s165_s18 + $0x28] sm:$0xff]  ;;  %205 = vst.msk [vmem:[#allocation2 + $0x41] sm:$0xff] %vm179_vm0, %v688_v7  ;;  %v700_v10 = vld [vmem:[%s165_s18 + $0x30] sm:$0xff] }
  0x13   : > { %206 = vst.msk [vmem:[#allocation2 + $0x51] sm:$0xff] %vm179_vm0, %v690_v8  ;;  %207 = vst.msk [vmem:[#allocation2 + $0x61] sm:$0xff] %vm179_vm0, %v692_v9  ;;  %v702_v11 = vld [vmem:[%s165_s18 + $0x38] sm:$0xff]  ;;  %v239_v14 = vld [vmem:[#allocation2 + $0x1] sm:$0xff] }
  0x14   : > { %208 = vst.msk [vmem:[#allocation2 + $0x71] sm:$0xff] %vm179_vm0, %v700_v10  ;;  %209 = vst.msk [vmem:[#allocation2 + $0x81] sm:$0xff] %vm179_vm0, %v702_v11  ;;  %v268_v15 = vld [vmem:[#allocation2 + $0x2] sm:$0xff]  ;;  %v252_v16 = vmul.f32 %v669_v2, %v239_v14 }
  0x15   : > { %v281_v17 = vmul.f32 %v674_v3, %v268_v15 }
  0x16   : > { %v260_v18 = vadd.f32 %v252_v16, %v223_v13 }
  0x18   : > { %v289_v21 = vadd.f32 %v281_v17, %v260_v18  ;;  %v297_v22 = vld [vmem:[#allocation2 + $0x10] sm:$0xff]  ;;  %v385_v27 = vld [vmem:[#allocation2 + $0x20] sm:$0xff] }
  0x19   : > { %v326_v23 = vld [vmem:[#allocation2 + $0x11] sm:$0xff]  ;;  %v310_v25 = vmul.f32 %v714_v19, %v297_v22  ;;  %v224_v29 = vmul.f32 %v664_v1, %v297_v22  ;;  %v414_v30 = vld [vmem:[#allocation2 + $0x21] sm:$0xff]  ;;  %v398_v38 = vmul.f32 %v730_v28, %v385_v27  ;;  %v225_v45 = vmul.f32 %v664_v1, %v385_v27 }
  0x1a   : > { %v355_v26 = vld [vmem:[#allocation2 + $0x12] sm:$0xff]  ;;  %v253_v32 = vmul.f32 %v669_v2, %v326_v23  ;;  %v339_v34 = vmul.f32 %v719_v20, %v326_v23  ;;  %v443_v35 = vld [vmem:[#allocation2 + $0x22] sm:$0xff]  ;;  %v427_v42 = vmul.f32 %v736_v31, %v414_v30  ;;  %v254_v46 = vmul.f32 %v669_v2, %v414_v30 }
  0x1b   : > { %v318_v33 = vadd.f32 %v310_v25, %v289_v21  ;;  %v368_v37 = vmul.f32 %v724_v24, %v355_v26  ;;  %v282_v40 = vmul.f32 %v674_v3, %v355_v26  ;;  %v386_v43 = vld [vmem:[#allocation2 + $0x30] sm:$0xff]  ;;  %v456_v47 = vmul.f32 %v743_v36, %v443_v35  ;;  %v387_v63 = vld [vmem:[#allocation2 + $0x40] sm:$0xff] }
  0x1c   : > { %v261_v39 = vadd.f32 %v253_v32, %v224_v29  ;;  %v415_v44 = vld [vmem:[#allocation2 + $0x31] sm:$0xff]  ;;  %v311_v49 = vmul.f32 %v714_v19, %v385_v27  ;;  %v340_v50 = vmul.f32 %v719_v20, %v414_v30  ;;  %v369_v52 = vmul.f32 %v724_v24, %v443_v35  ;;  %v416_v16 = vld [vmem:[#allocation2 + $0x41] sm:$0xff]  ;;  %v768_v25 = vld [vmem:[%s859_s2] ss:$0 sm:$0xff] }
  0x1d   : > { %v347_v41 = vadd.f32 %v339_v34, %v318_v33  ;;  %v444_v53 = vld [vmem:[#allocation2 + $0x32] sm:$0xff]  ;;  %v262_v54 = vadd.f32 %v254_v46, %v225_v45  ;;  %v283_v55 = vmul.f32 %v674_v3, %v443_v35  ;;  %v399_v57 = vmul.f32 %v730_v28, %v386_v43  ;;  %v445_v21 = vld [vmem:[#allocation2 + $0x42] sm:$0xff] }
  0x1e   : > { %v290_v48 = vadd.f32 %v282_v40, %v261_v39  ;;  %v428_v58 = vmul.f32 %v736_v31, %v415_v44  ;;  %v226_v59 = vmul.f32 %v664_v1, %v386_v43  ;;  %v312_v62 = vmul.f32 %v714_v19, %v386_v43  ;;  %v388_v35 = vld [vmem:[#allocation2 + $0x50] sm:$0xff] }
  0x1f   : > { %v376_v51 = vadd.f32 %v368_v37, %v347_v41  ;;  %v291_v61 = vadd.f32 %v283_v55, %v262_v54  ;;  %v255_v0 = vmul.f32 %v669_v2, %v415_v44  ;;  %v457_v13 = vmul.f32 %v743_v36, %v444_v53  ;;  %v417_v45 = vld [vmem:[#allocation2 + $0x51] sm:$0xff] }
  0x20   : > { %v319_v56 = vadd.f32 %v311_v49, %v290_v48  ;;  %v341_v14 = vmul.f32 %v719_v20, %v415_v44  ;;  %v370_v15 = vmul.f32 %v724_v24, %v444_v53  ;;  %v284_v23 = vmul.f32 %v674_v3, %v444_v53  ;;  %v446_v54 = vld [vmem:[#allocation2 + $0x52] sm:$0xff] }
  0x21   : > { %v406_v60 = vadd.f32 %v398_v38, %v376_v51  ;;  %v320_v18 = vadd.f32 %v312_v62, %v291_v61  ;;  %v263_v22 = vadd.f32 %v255_v0, %v226_v59  ;;  %v400_v27 = vmul.f32 %v730_v28, %v387_v63  ;;  %v389_v0 = vld [vmem:[#allocation2 + $0x60] sm:$0xff] }
  0x22   : > { %v348_v12 = vadd.f32 %v340_v50, %v319_v56  ;;  %v313_v29 = vmul.f32 %v714_v19, %v387_v63  ;;  %v227_v30 = vmul.f32 %v664_v1, %v387_v63  ;;  %v256_v37 = vmul.f32 %v669_v2, %v416_v16 }
  0x23   : > { %v435_v17 = vadd.f32 %v427_v42, %v406_v60  ;;  %v349_v33 = vadd.f32 %v341_v14, %v320_v18  ;;  %v292_v34 = vadd.f32 %v284_v23, %v263_v22  ;;  %v429_v39 = vmul.f32 %v736_v31, %v416_v16 }
  0x24   : > { %v377_v26 = vadd.f32 %v369_v52, %v348_v12  ;;  %v342_v40 = vmul.f32 %v719_v20, %v416_v16  ;;  %v285_v41 = vmul.f32 %v674_v3, %v445_v21  ;;  %v264_v46 = vadd.f32 %v256_v37, %v227_v30 }
  0x25   : > { %v464_v32 = vadd.f32 %v456_v47, %v435_v17  ;;  %v378_v43 = vadd.f32 %v370_v15, %v349_v33  ;;  %v321_v44 = vadd.f32 %v313_v29, %v292_v34  ;;  %v458_v48 = vmul.f32 %v743_v36, %v445_v21  ;;  %v447_v34 = vld [vmem:[#allocation2 + $0x62] sm:$0xff] }
  0x26   : > { %v407_v38 = vadd.f32 %v399_v57, %v377_v26  ;;  %v371_v49 = vmul.f32 %v724_v24, %v445_v21  ;;  %v314_v50 = vmul.f32 %v714_v19, %v388_v35  ;;  %v293_v55 = vadd.f32 %v285_v41, %v264_v46  ;;  %v418_v21 = vld [vmem:[#allocation2 + $0x61] sm:$0xff]  ;;  %v419_v46 = vld [vmem:[#allocation2 + $0x71] sm:$0xff] }
  0x27   : > { %v479_v42 = vadd.f32 %v768_v25, %v464_v32  ;;  %v408_v52 = vadd.f32 %v400_v27, %v378_v43  ;;  %v350_v53 = vadd.f32 %v342_v40, %v321_v44  ;;  %v401_v57 = vmul.f32 %v730_v28, %v388_v35 }
  0x28   : > { %v436_v47 = vadd.f32 %v428_v58, %v407_v38  ;;  %v228_v59 = vmul.f32 %v664_v1, %v388_v35  ;;  %v257_v60 = vmul.f32 %v669_v2, %v417_v45  ;;  %v322_v62 = vadd.f32 %v314_v50, %v293_v55  ;;  %v390_v38 = vld [vmem:[#allocation2 + $0x70] sm:$0xff] }
  0x29   : > { %v487_v51 = vadd.f32 %v479_v42, %v676_v4  ;;  %v437_v58 = vadd.f32 %v429_v39, %v408_v52  ;;  %v379_v61 = vadd.f32 %v371_v49, %v350_v53  ;;  %v343_v63 = vmul.f32 %v719_v20, %v417_v45  ;;  %v448_v53 = vld [vmem:[#allocation2 + $0x72] sm:$0xff] }
  0x2a   : > { %v465_v56 = vadd.f32 %v457_v13, %v436_v47  ;;  %v430_v12 = vmul.f32 %v736_v31, %v417_v45  ;;  %v265_v14 = vadd.f32 %v257_v60, %v228_v59  ;;  %v286_v13 = vmul.f32 %v674_v3, %v446_v54 }
  0x2b   : > { %495 = vst.msk [vmem:[%s783_s17] sm:$0xff] %vm179_vm0, %v487_v51  ;;  %v466_v15 = vadd.f32 %v458_v48, %v437_v58  ;;  %v409_v16 = vadd.f32 %v401_v57, %v379_v61  ;;  %v351_v17 = vadd.f32 %v343_v63, %v322_v62  ;;  %v372_v18 = vmul.f32 %v724_v24, %v446_v54 }
  0x2c   : > { %v480_v4 = vadd.f32 %v768_v25, %v465_v56  ;;  %v459_v23 = vmul.f32 %v743_v36, %v446_v54  ;;  %v294_v26 = vadd.f32 %v286_v13, %v265_v14  ;;  %v315_v27 = vmul.f32 %v714_v19, %v389_v0  ;;  %v391_v56 = vld [vmem:[#allocation2 + $0x80] sm:$0xff] }
  0x2d   : > { %v481_v29 = vadd.f32 %v768_v25, %v466_v15  ;;  %v438_v30 = vadd.f32 %v430_v12, %v409_v16  ;;  %v380_v32 = vadd.f32 %v372_v18, %v351_v17  ;;  %v402_v33 = vmul.f32 %v730_v28, %v389_v0  ;;  %v420_v16 = vld [vmem:[#allocation2 + $0x81] sm:$0xff] }
  0x2e   : > { %v488_v22 = vadd.f32 %v480_v4, %v678_v5  ;;  %v323_v35 = vadd.f32 %v315_v27, %v294_v26  ;;  %v344_v37 = vmul.f32 %v719_v20, %v418_v21  ;;  %v229_v5 = vmul.f32 %v664_v1, %v389_v0  ;;  %v449_v26 = vld [vmem:[#allocation2 + $0x82] sm:$0xff]  ;;  %v392_v27 = vld [vmem:[#allocation2 + $0x90] sm:$0xff] }
  0x2f   : > { %v258_v39 = vmul.f32 %v669_v2, %v418_v21  ;;  %v489_v40 = vadd.f32 %v481_v29, %v680_v6  ;;  %v467_v41 = vadd.f32 %v459_v23, %v438_v30  ;;  %v410_v42 = vadd.f32 %v402_v33, %v380_v32 }
  0x30   : > { %496 = vst.msk [vmem:[%s783_s17 + $0x8] sm:$0xff] %vm179_vm0, %v488_v22  ;;  %v431_v43 = vmul.f32 %v736_v31, %v418_v21  ;;  %v352_v44 = vadd.f32 %v344_v37, %v323_v35  ;;  %v373_v45 = vmul.f32 %v724_v24, %v447_v34  ;;  %v287_v48 = vmul.f32 %v674_v3, %v447_v34 }
  0x31   : > { %v266_v47 = vadd.f32 %v258_v39, %v229_v5  ;;  %497 = vst.msk [vmem:[%s783_s17 + $0x10] sm:$0xff] %vm179_vm0, %v489_v40  ;;  %v482_v49 = vadd.f32 %v768_v25, %v467_v41  ;;  %v460_v51 = vmul.f32 %v743_v36, %v447_v34  ;;  %v403_v6 = vmul.f32 %v730_v28, %v390_v38  ;;  %v421_v5 = vld [vmem:[#allocation2 + $0x91] sm:$0xff] }
  0x32   : > { %v439_v50 = vadd.f32 %v431_v43, %v410_v42  ;;  %v381_v52 = vadd.f32 %v373_v45, %v352_v44  ;;  %v316_v55 = vmul.f32 %v714_v19, %v390_v38  ;;  %v230_v57 = vmul.f32 %v664_v1, %v390_v38  ;;  %v450_v40 = vld [vmem:[#allocation2 + $0x92] sm:$0xff] }
  0x33   : > { %v295_v54 = vadd.f32 %v287_v48, %v266_v47  ;;  %v490_v59 = vadd.f32 %v482_v49, %v688_v7  ;;  %v259_v58 = vmul.f32 %v669_v2, %v419_v46  ;;  %v432_v62 = vmul.f32 %v736_v31, %v419_v46 }
  0x34   : > { %v468_v60 = vadd.f32 %v460_v51, %v439_v50  ;;  %v411_v61 = vadd.f32 %v403_v6, %v381_v52  ;;  %v345_v0 = vmul.f32 %v719_v20, %v419_v46  ;;  %v288_v14 = vmul.f32 %v674_v3, %v448_v53 }
  0x35   : > { %v324_v63 = vadd.f32 %v316_v55, %v295_v54  ;;  %498 = vst.msk [vmem:[%s783_s17 + $0x18] sm:$0xff] %vm179_vm0, %v490_v59  ;;  %v267_v12 = vadd.f32 %v259_v58, %v230_v57  ;;  %v317_v1 = vmul.f32 %v714_v19, %v391_v56  ;;  %v461_v13 = vmul.f32 %v743_v36, %v448_v53 }
  0x36   : > { %v483_v4 = vadd.f32 %v768_v25, %v468_v60  ;;  %v440_v7 = vadd.f32 %v432_v62, %v411_v61  ;;  %v374_v15 = vmul.f32 %v724_v24, %v448_v53  ;;  %v404_v23 = vmul.f32 %v730_v28, %v391_v56 }
  0x37   : > { %v353_v2 = vadd.f32 %v345_v0, %v324_v63  ;;  %v296_v18 = vadd.f32 %v288_v14, %v267_v12  ;;  %v346_v19 = vmul.f32 %v719_v20, %v420_v16  ;;  %v433_v32 = vmul.f32 %v736_v31, %v420_v16 }
  0x38   : > { %v491_v17 = vadd.f32 %v483_v4, %v690_v8  ;;  %v469_v21 = vadd.f32 %v461_v13, %v440_v7  ;;  %v375_v8 = vmul.f32 %v724_v24, %v449_v26  ;;  %v405_v34 = vmul.f32 %v730_v28, %v392_v27 }
  0x39   : > { %v382_v22 = vadd.f32 %v374_v15, %v353_v2  ;;  %v325_v3 = vadd.f32 %v317_v1, %v296_v18  ;;  %v462_v38 = vmul.f32 %v743_v36, %v449_v26  ;;  %v434_v42 = vmul.f32 %v736_v31, %v421_v5 }
  0x3a   : > { %499 = vst.msk [vmem:[%s783_s17 + $0x20] sm:$0xff] %vm179_vm0, %v491_v17  ;;  %v484_v29 = vadd.f32 %v768_v25, %v469_v21  ;;  %v463_v28 = vmul.f32 %v743_v36, %v450_v40 }
  0x3b   : > { %v412_v30 = vadd.f32 %v404_v23, %v382_v22  ;;  %v354_v33 = vadd.f32 %v346_v19, %v325_v3 }
  0x3c   : > { %v492_v35 = vadd.f32 %v484_v29, %v692_v9 }
  0x3d   : > { %v441_v37 = vadd.f32 %v433_v32, %v412_v30  ;;  %v383_v39 = vadd.f32 %v375_v8, %v354_v33 }
  0x3e   : > { %500 = vst.msk [vmem:[%s783_s17 + $0x28] sm:$0xff] %vm179_vm0, %v492_v35 }
  0x3f   : > { %v470_v20 = vadd.f32 %v462_v38, %v441_v37  ;;  %v413_v41 = vadd.f32 %v405_v34, %v383_v39 }
  0x41   : > { %v485_v24 = vadd.f32 %v768_v25, %v470_v20  ;;  %v442_v43 = vadd.f32 %v434_v42, %v413_v41 }
  0x43   : > { %v493_v9 = vadd.f32 %v485_v24, %v700_v10  ;;  %v471_v44 = vadd.f32 %v463_v28, %v442_v43 }
  0x45   : > { %501 = vst.msk [vmem:[%s783_s17 + $0x30] sm:$0xff] %vm179_vm0, %v493_v9  ;;  %v486_v45 = vadd.f32 %v768_v25, %v471_v44 }
  0x47   : > { %v494_v46 = vadd.f32 %v486_v45, %v702_v11 }
  0x49   : > { %502 = vst.msk [vmem:[%s783_s17 + $0x38] sm:$0xff] %vm179_vm0, %v494_v46 }
  0x4a PF: > { %s13_s12 = sadd.s32 1, %s596_s12  }
  0x4b   : > { %p10_p4 = scmp.ge.s32.totalorder %s13_s12, 4  }
  0x4d   :  { %12 = sbr.rel (!%p10_p4) target bundleno = 1 (0x1), region = 64 }

// kernel: block_forward.14
= control target key start
LH: loop header
LB: loop body
LE: loop exit
PB: predicated region body
PF: predicated region fallthrough
CT: control target
= control target key end

     0   :  { %s699_s12 = smov 0   ;;  %s929_s0 = inlined_call_operand.vmem [shape: f32[2,8,8,32], index: 0, kind: input, shape index: {}]   ;;  %s930_s1 = inlined_call_operand.vmem [shape: f32[9,32], index: 1, kind: input, shape index: {}]   ;;  %s931_s2 = inlined_call_operand.vmem [shape: f32[1,32], index: 2, kind: input, shape index: {}]   ;;  %s932_s3 = inlined_call_operand.vmem [shape: f32[2,8,8,32], index: 3, kind: output, shape index: {}]  }
   0x1 LB: > { %s606_s13 = sadd.s32 4294967295, %s676_s12   ;;  %p610_p0 = scmp.ge.s32.totalorder %s676_s12, 1  ;;  %s676_s12 = sphi %s699_s12, %s13_s12  }
   0x2   : > { %p137_p1 = scmp.lt.s32.totalorder %s676_s12, 3 }
   0x4   : > { %p138_p2 = pnand %p610_p0, %p137_p1 }
   0x5   : > { %vm179_vm0 = vcmask (!%p138_p2), 261120   ;;  %vm181_vm1 = vcmask (!%p138_p2), 254976   ;;  %p707_p3 = scmp.lt.s32.totalorder (!%p138_p2), %s606_s13, 1  ;;  %v678_v0 = vmov (!%p138_p2), 0.0   ;;  %v744_v1 = vld [vmem:[%s930_s1] ss:$0 sm:$0xff] (!%p138_p2) }
   0x6   : > { %141 = sbr.rel (%p138_p2) target bundleno = 105 (0x69), region = 32  ;;  %180 = vst.msk [vmem:[#allocation2] sm:$0xff] (!%p138_p2), %vm179_vm0, %v678_v0  ;;  %183 = vst.msk [vmem:[#allocation2 + $0x10] sm:$0xff] (!%p138_p2), %vm179_vm0, %v678_v0  ;;  %v749_v2 = vld [vmem:[%s930_s1 + $0x1] ss:$0 sm:$0xff] (!%p138_p2) }
   0x7   : > { %185 = vst.msk [vmem:[#allocation2 + $0x20] sm:$0xff] (!%p138_p2), %vm179_vm0, %v678_v0  ;;  %187 = vst.msk [vmem:[#allocation2 + $0x30] sm:$0xff] (!%p138_p2), %vm179_vm0, %v678_v0  ;;  %v754_v3 = vld [vmem:[%s930_s1 + $0x2] ss:$0 sm:$0xff] (!%p138_p2)  ;;  %v770_v19 = vld [vmem:[%s930_s1 + $0x3] ss:$0 sm:$0xff] (!%p138_p2) }
   0x8   : > { %189 = vst.msk [vmem:[#allocation2 + $0x40] sm:$0xff] (!%p138_p2), %vm179_vm0, %v678_v0  ;;  %191 = vst.msk [vmem:[#allocation2 + $0x50] sm:$0xff] (!%p138_p2), %vm179_vm0, %v678_v0  ;;  %v775_v20 = vld [vmem:[%s930_s1 + $0x4] ss:$0 sm:$0xff] (!%p138_p2)  ;;  %v780_v21 = vld [vmem:[%s930_s1 + $0x5] ss:$0 sm:$0xff] (!%p138_p2) }
   0x9   : > { %193 = vst.msk [vmem:[#allocation2 + $0x60] sm:$0xff] (!%p138_p2), %vm179_vm0, %v678_v0  ;;  %195 = vst.msk [vmem:[#allocation2 + $0x70] sm:$0xff] (!%p138_p2), %vm179_vm0, %v678_v0  ;;  %v785_v22 = vld [vmem:[%s930_s1 + $0x6] ss:$0 sm:$0xff] (!%p138_p2)  ;;  %v790_v23 = vld [vmem:[%s930_s1 + $0x7] ss:$0 sm:$0xff] (!%p138_p2) }
   0xa   : > { %197 = vst.msk [vmem:[#allocation2 + $0x80] sm:$0xff] (!%p138_p2), %vm179_vm0, %v678_v0  ;;  %199 = vst.msk [vmem:[#allocation2 + $0x90] sm:$0xff] (!%p138_p2), %vm179_vm0, %v678_v0  ;;  %v795_v24 = vld [vmem:[%s930_s1 + $0x8] ss:$0 sm:$0xff] (!%p138_p2) }
   0xb   : > { %182 = vst.msk [vmem:[#allocation2 + $0x8] sm:$0x3] (!%p138_p2), %vm181_vm1, %v678_v0  ;;  %184 = vst.msk [vmem:[#allocation2 + $0x18] sm:$0x3] (!%p138_p2), %vm181_vm1, %v678_v0 }
   0xc   : > { %186 = vst.msk [vmem:[#allocation2 + $0x28] sm:$0x3] (!%p138_p2), %vm181_vm1, %v678_v0  ;;  %188 = vst.msk [vmem:[#allocation2 + $0x38] sm:$0x3] (!%p138_p2), %vm181_vm1, %v678_v0 }
   0xd   : > { %190 = vst.msk [vmem:[#allocation2 + $0x48] sm:$0x3] %vm181_vm1, %v678_v0  ;;  %192 = vst.msk [vmem:[#allocation2 + $0x58] sm:$0x3] %vm181_vm1, %v678_v0  ;;  %s935_s13 = smov (!%p707_p3, %s606_s13), 1  ;;  %v210_v12 = vld [vmem:[#allocation2] sm:$0xff] }
   0xe   : > { %194 = vst.msk [vmem:[#allocation2 + $0x68] sm:$0x3] %vm181_vm1, %v678_v0  ;;  %196 = vst.msk [vmem:[#allocation2 + $0x78] sm:$0x3] %vm181_vm1, %v678_v0  ;;  %s627_s15 = sshll.u32 %s935_s13, 6  ;;  %v223_v13 = vmul.f32 %v744_v1, %v210_v12 }
   0xf   : > { %198 = vst.msk [vmem:[#allocation2 + $0x88] sm:$0x3] %vm181_vm1, %v678_v0  ;;  %200 = vst.msk [vmem:[#allocation2 + $0x98] sm:$0x3] %vm181_vm1, %v678_v0  ;;  %s165_s18 = scalar_lea.vmem %s929_s0, %s627_s15  ;;  %s899_s17 = scalar_lea.vmem %s932_s3, %s627_s15 }
  0x10   : > { %v171_v4 = vld [vmem:[%s165_s18] sm:$0xff]  ;;  %v172_v5 = vld [vmem:[%s165_s18 + $0x8] sm:$0xff]  ;;  %v173_v6 = vld [vmem:[%s165_s18 + $0x10] sm:$0xff] }
  0x11   : > { %202 = vst.msk [vmem:[#allocation2 + $0x11] sm:$0xff] %vm179_vm0, %v171_v4  ;;  %203 = vst.msk [vmem:[#allocation2 + $0x21] sm:$0xff] %vm179_vm0, %v172_v5  ;;  %v174_v7 = vld [vmem:[%s165_s18 + $0x18] sm:$0xff]  ;;  %v175_v8 = vld [vmem:[%s165_s18 + $0x20] sm:$0xff] }
  0x12   : > { %204 = vst.msk [vmem:[#allocation2 + $0x31] sm:$0xff] %vm179_vm0, %v173_v6  ;;  %v176_v9 = vld [vmem:[%s165_s18 + $0x28] sm:$0xff]  ;;  %205 = vst.msk [vmem:[#allocation2 + $0x41] sm:$0xff] %vm179_vm0, %v174_v7  ;;  %v177_v10 = vld [vmem:[%s165_s18 + $0x30] sm:$0xff] }
  0x13   : > { %206 = vst.msk [vmem:[#allocation2 + $0x51] sm:$0xff] %vm179_vm0, %v175_v8  ;;  %207 = vst.msk [vmem:[#allocation2 + $0x61] sm:$0xff] %vm179_vm0, %v176_v9  ;;  %v178_v11 = vld [vmem:[%s165_s18 + $0x38] sm:$0xff]  ;;  %v239_v14 = vld [vmem:[#allocation2 + $0x1] sm:$0xff] }
  0x14   : > { %208 = vst.msk [vmem:[#allocation2 + $0x71] sm:$0xff] %vm179_vm0, %v177_v10  ;;  %209 = vst.msk [vmem:[#allocation2 + $0x81] sm:$0xff] %vm179_vm0, %v178_v11  ;;  %v268_v15 = vld [vmem:[#allocation2 + $0x2] sm:$0xff]  ;;  %v252_v16 = vmul.f32 %v749_v2, %v239_v14 }
  0x15   : > { %v281_v17 = vmul.f32 %v754_v3, %v268_v15 }
  0x16   : > { %v260_v18 = vadd.f32 %v252_v16, %v223_v13 }
  0x18   : > { %v289_v25 = vadd.f32 %v281_v17, %v260_v18  ;;  %v297_v26 = vld [vmem:[#allocation2 + $0x10] sm:$0xff]  ;;  %v385_v30 = vld [vmem:[#allocation2 + $0x20] sm:$0xff] }
  0x19   : > { %v326_v27 = vld [vmem:[#allocation2 + $0x11] sm:$0xff]  ;;  %v310_v29 = vmul.f32 %v770_v19, %v297_v26  ;;  %v414_v31 = vld [vmem:[#allocation2 + $0x21] sm:$0xff]  ;;  %v224_v33 = vmul.f32 %v744_v1, %v297_v26  ;;  %v398_v38 = vmul.f32 %v785_v22, %v385_v30  ;;  %v311_v45 = vmul.f32 %v770_v19, %v385_v30  ;;  %v827_v18 = vld [vmem:[%s931_s2] ss:$0 sm:$0xff] }
  0x1a   : > { %v355_v28 = vld [vmem:[#allocation2 + $0x12] sm:$0xff]  ;;  %v443_v32 = vld [vmem:[#allocation2 + $0x22] sm:$0xff]  ;;  %v339_v34 = vmul.f32 %v775_v20, %v326_v27  ;;  %v253_v35 = vmul.f32 %v749_v2, %v326_v27  ;;  %v427_v39 = vmul.f32 %v790_v23, %v414_v31  ;;  %v340_v48 = vmul.f32 %v775_v20, %v414_v31 }
  0x1b   : > { %v318_v36 = vadd.f32 %v310_v29, %v289_v25  ;;  %v368_v37 = vmul.f32 %v780_v21, %v355_v28  ;;  %v386_v40 = vld [vmem:[#allocation2 + $0x30] sm:$0xff]  ;;  %v456_v42 = vmul.f32 %v795_v24, %v443_v32  ;;  %v282_v44 = vmul.f32 %v754_v3, %v355_v28  ;;  %v387_v59 = vld [vmem:[#allocation2 + $0x40] sm:$0xff] }
  0x1c   : > { %v415_v41 = vld [vmem:[#allocation2 + $0x31] sm:$0xff]  ;;  %v261_v43 = vadd.f32 %v253_v35, %v224_v33  ;;  %v225_v49 = vmul.f32 %v744_v1, %v385_v30  ;;  %v254_v50 = vmul.f32 %v749_v2, %v414_v31  ;;  %v369_v52 = vmul.f32 %v780_v21, %v443_v32  ;;  %v416_v60 = vld [vmem:[#allocation2 + $0x41] sm:$0xff] }
  0x1d   : > { %v444_v46 = vld [vmem:[#allocation2 + $0x32] sm:$0xff]  ;;  %v347_v47 = vadd.f32 %v339_v34, %v318_v36  ;;  %v399_v53 = vmul.f32 %v785_v22, %v386_v40  ;;  %v428_v54 = vmul.f32 %v790_v23, %v415_v41  ;;  %v283_v58 = vmul.f32 %v754_v3, %v443_v32  ;;  %v445_v61 = vld [vmem:[#allocation2 + $0x42] sm:$0xff] }
  0x1e   : > { %v290_v51 = vadd.f32 %v282_v44, %v261_v43  ;;  %v457_v56 = vmul.f32 %v795_v24, %v444_v46  ;;  %v262_v57 = vadd.f32 %v254_v50, %v225_v49  ;;  %v312_v63 = vmul.f32 %v770_v19, %v386_v40  ;;  %v388_v17 = vld [vmem:[#allocation2 + $0x50] sm:$0xff] }
  0x1f   : > { %v376_v55 = vadd.f32 %v368_v37, %v347_v47  ;;  %v341_v0 = vmul.f32 %v775_v20, %v415_v41  ;;  %v226_v4 = vmul.f32 %v744_v1, %v386_v40  ;;  %v370_v7 = vmul.f32 %v780_v21, %v444_v46  ;;  %v417_v32 = vld [vmem:[#allocation2 + $0x51] sm:$0xff] }
  0x20   : > { %v319_v62 = vadd.f32 %v311_v45, %v290_v51  ;;  %v291_v6 = vadd.f32 %v283_v58, %v262_v57  ;;  %v255_v8 = vmul.f32 %v749_v2, %v415_v41  ;;  %v400_v10 = vmul.f32 %v785_v22, %v387_v59  ;;  %v446_v33 = vld [vmem:[#allocation2 + $0x52] sm:$0xff] }
  0x21   : > { %v406_v5 = vadd.f32 %v398_v38, %v376_v55  ;;  %v429_v11 = vmul.f32 %v790_v23, %v416_v60  ;;  %v458_v12 = vmul.f32 %v795_v24, %v445_v61  ;;  %v284_v16 = vmul.f32 %v754_v3, %v444_v46 }
  0x22   : > { %v348_v9 = vadd.f32 %v340_v48, %v319_v62  ;;  %v320_v14 = vadd.f32 %v312_v63, %v291_v6  ;;  %v263_v15 = vadd.f32 %v255_v8, %v226_v4  ;;  %v313_v26 = vmul.f32 %v770_v19, %v387_v59  ;;  %v418_v63 = vld [vmem:[#allocation2 + $0x61] sm:$0xff] }
  0x23   : > { %v435_v13 = vadd.f32 %v427_v39, %v406_v5  ;;  %v342_v27 = vmul.f32 %v775_v20, %v416_v60  ;;  %v227_v28 = vmul.f32 %v744_v1, %v387_v59  ;;  %v256_v34 = vmul.f32 %v749_v2, %v416_v60  ;;  %v389_v60 = vld [vmem:[#allocation2 + $0x60] sm:$0xff] }
  0x24   : > { %v377_v25 = vadd.f32 %v369_v52, %v348_v9  ;;  %v349_v30 = vadd.f32 %v341_v0, %v320_v14  ;;  %v292_v31 = vadd.f32 %v284_v16, %v263_v15  ;;  %v371_v36 = vmul.f32 %v780_v21, %v445_v61 }
  0x25   : > { %v464_v29 = vadd.f32 %v456_v42, %v435_v13  ;;  %v401_v37 = vmul.f32 %v785_v22, %v388_v17  ;;  %v285_v38 = vmul.f32 %v754_v3, %v445_v61  ;;  %v264_v43 = vadd.f32 %v256_v34, %v227_v28 }
  0x26   : > { %v407_v35 = vadd.f32 %v399_v53, %v377_v25  ;;  %v378_v40 = vadd.f32 %v370_v7, %v349_v30  ;;  %v321_v41 = vadd.f32 %v313_v26, %v292_v31  ;;  %v430_v44 = vmul.f32 %v790_v23, %v417_v32  ;;  %v447_v7 = vld [vmem:[#allocation2 + $0x62] sm:$0xff]  ;;  %v419_v31 = vld [vmem:[#allocation2 + $0x71] sm:$0xff] }
  0x27   : > { %v837_v39 = vadd.f32 %v827_v18, %v464_v29  ;;  %v459_v45 = vmul.f32 %v795_v24, %v446_v33  ;;  %v314_v46 = vmul.f32 %v770_v19, %v388_v17  ;;  %v293_v50 = vadd.f32 %v285_v38, %v264_v43 }
  0x28   : > { %v436_v42 = vadd.f32 %v428_v54, %v407_v35  ;;  %v408_v48 = vadd.f32 %v400_v10, %v378_v40  ;;  %v350_v49 = vadd.f32 %v342_v27, %v321_v41  ;;  %v343_v52 = vmul.f32 %v775_v20, %v417_v32  ;;  %v390_v27 = vld [vmem:[#allocation2 + $0x70] sm:$0xff] }
  0x29   : > { %v487_v47 = vsub.f32 0.0, %v837_v39  ;;  %v228_v53 = vmul.f32 %v744_v1, %v388_v17  ;;  %v257_v55 = vmul.f32 %v749_v2, %v417_v32  ;;  %v322_v59 = vadd.f32 %v314_v46, %v293_v50  ;;  %v448_v35 = vld [vmem:[#allocation2 + $0x72] sm:$0xff] }
  0x2a   : > { %v465_v51 = vadd.f32 %v457_v56, %v436_v42  ;;  %v437_v54 = vadd.f32 %v429_v11, %v408_v48  ;;  %v379_v58 = vadd.f32 %v371_v36, %v350_v49  ;;  %v372_v62 = vmul.f32 %v780_v21, %v446_v33 }
  0x2b   : > { %v495_v57 = vmul.f32 1.442695, %v487_v47  ;;  %v265_v0 = vadd.f32 %v257_v55, %v228_v53  ;;  %v286_v56 = vmul.f32 %v754_v3, %v446_v33  ;;  %v351_v6 = vadd.f32 %v343_v52, %v322_v59  ;;  %v391_v53 = vld [vmem:[#allocation2 + $0x80] sm:$0xff] }
  0x2c   : > { %v847_v61 = vadd.f32 %v827_v18, %v465_v51  ;;  %v466_v4 = vadd.f32 %v458_v12, %v437_v54  ;;  %v409_v5 = vadd.f32 %v401_v37, %v379_v58  ;;  %v402_v9 = vmul.f32 %v785_v22, %v389_v60 }
  0x2d   : > { %638 = vpow2.f32 %v495_v57  ;;  %v294_v10 = vadd.f32 %v286_v56, %v265_v0  ;;  %v315_v11 = vmul.f32 %v770_v19, %v389_v60  ;;  %v380_v15 = vadd.f32 %v372_v62, %v351_v6 }
  0x2e   : > { %v488_v8 = vsub.f32 0.0, %v847_v61  ;;  %v855_v13 = vadd.f32 %v827_v18, %v466_v4  ;;  %v438_v14 = vadd.f32 %v430_v44, %v409_v5  ;;  %v431_v16 = vmul.f32 %v790_v23, %v418_v63 }
  0x2f   : > { %v460_v12 = vmul.f32 %v795_v24, %v447_v7  ;;  %v323_v25 = vadd.f32 %v315_v11, %v294_v10  ;;  %v344_v26 = vmul.f32 %v775_v20, %v418_v63  ;;  %v410_v30 = vadd.f32 %v402_v9, %v380_v15  ;;  %v420_v9 = vld [vmem:[#allocation2 + $0x81] sm:$0xff] }
  0x30   : > { %v497_v17 = vmul.f32 1.442695, %v488_v8  ;;  %v489_v28 = vsub.f32 0.0, %v855_v13  ;;  %v467_v29 = vadd.f32 %v459_v45, %v438_v14  ;;  %v229_v32 = vmul.f32 %v744_v1, %v389_v60  ;;  %v449_v15 = vld [vmem:[#allocation2 + $0x82] sm:$0xff] }
  0x31   : > { %v352_v33 = vadd.f32 %v344_v26, %v323_v25  ;;  %v373_v34 = vmul.f32 %v780_v21, %v447_v7  ;;  %v258_v36 = vmul.f32 %v749_v2, %v418_v63  ;;  %v439_v40 = vadd.f32 %v431_v16, %v410_v30  ;;  %v392_v16 = vld [vmem:[#allocation2 + $0x90] sm:$0xff] }
  0x32   : > { %640 = vpow2.f32 %v497_v17  ;;  %v499_v37 = vmul.f32 1.442695, %v489_v28  ;;  %v865_v38 = vadd.f32 %v827_v18, %v467_v29  ;;  %v403_v41 = vmul.f32 %v785_v22, %v390_v27 }
  0x33   : > { %v381_v43 = vadd.f32 %v373_v34, %v352_v33  ;;  %v432_v42 = vmul.f32 %v790_v23, %v419_v31  ;;  %v266_v44 = vadd.f32 %v258_v36, %v229_v32  ;;  %v287_v45 = vmul.f32 %v754_v3, %v447_v7  ;;  %v421_v36 = vld [vmem:[#allocation2 + $0x91] sm:$0xff] }
  0x34   : > { %642 = vpow2.f32 %v499_v37  ;;  %v490_v46 = vsub.f32 0.0, %v865_v38  ;;  %v468_v47 = vadd.f32 %v460_v12, %v439_v40  ;;  %v461_v48 = vmul.f32 %v795_v24, %v448_v35  ;;  %v450_v40 = vld [vmem:[#allocation2 + $0x92] sm:$0xff] }
  0x35   : > { %v411_v49 = vadd.f32 %v403_v41, %v381_v43  ;;  %v295_v50 = vadd.f32 %v287_v45, %v266_v44  ;;  %v316_v51 = vmul.f32 %v770_v19, %v390_v27  ;;  %v345_v52 = vmul.f32 %v775_v20, %v419_v31 }
  0x36   : > { %v501_v57 = vmul.f32 1.442695, %v490_v46  ;;  %v875_v54 = vadd.f32 %v827_v18, %v468_v47  ;;  %v230_v58 = vmul.f32 %v744_v1, %v390_v27  ;;  %v259_v59 = vmul.f32 %v749_v2, %v419_v31 }
  0x37   : > { %v639_v55 = vpop.eup %638  ;;  %v440_v62 = vadd.f32 %v432_v42, %v411_v49  ;;  %v324_v63 = vadd.f32 %v316_v51, %v295_v50  ;;  %v288_v0 = vmul.f32 %v754_v3, %v448_v35  ;;  %v317_v5 = vmul.f32 %v770_v19, %v391_v53 }
  0x38   : > { %v511_v60 = vadd.f32 1.0, %v639_v55  ;;  %644 = vpow2.f32 %v501_v57  ;;  %v491_v56 = vsub.f32 0.0, %v875_v54  ;;  %v267_v4 = vadd.f32 %v259_v59, %v230_v58 }
  0x39   : > { %v469_v6 = vadd.f32 %v461_v48, %v440_v62  ;;  %v353_v7 = vadd.f32 %v345_v52, %v324_v63  ;;  %v374_v8 = vmul.f32 %v780_v21, %v448_v35  ;;  %v404_v3 = vmul.f32 %v785_v22, %v391_v53 }
  0x3a   : > { %646 = vrcp.f32 %v511_v60  ;;  %v503_v1 = vmul.f32 1.442695, %v491_v56  ;;  %v296_v10 = vadd.f32 %v288_v0, %v267_v4  ;;  %v346_v12 = vmul.f32 %v775_v20, %v420_v9 }
  0x3b   : > { %v884_v11 = vadd.f32 %v827_v18, %v469_v6  ;;  %v382_v14 = vadd.f32 %v374_v8, %v353_v7  ;;  %v433_v27 = vmul.f32 %v790_v23, %v420_v9  ;;  %v375_v30 = vmul.f32 %v780_v21, %v449_v15 }
  0x3c   : > { %v641_v2 = vpop.eup %640  ;;  %648 = vpow2.f32 %v503_v1  ;;  %v325_v19 = vadd.f32 %v317_v5, %v296_v10  ;;  %v405_v31 = vmul.f32 %v785_v22, %v392_v16  ;;  %v462_v35 = vmul.f32 %v795_v24, %v449_v15 }
  0x3d   : > { %v512_v17 = vadd.f32 1.0, %v641_v2  ;;  %v492_v25 = vsub.f32 0.0, %v884_v11  ;;  %v412_v26 = vadd.f32 %v404_v3, %v382_v14  ;;  %v434_v42 = vmul.f32 %v790_v23, %v421_v36 }
  0x3e   : > { %v643_v28 = vpop.eup %642  ;;  %v354_v29 = vadd.f32 %v346_v12, %v325_v19  ;;  %v463_v47 = vmul.f32 %v795_v24, %v450_v40 }
  0x3f   : > { %650 = vrcp.f32 %v512_v17  ;;  %v513_v32 = vadd.f32 1.0, %v643_v28  ;;  %v505_v33 = vmul.f32 1.442695, %v492_v25  ;;  %v441_v34 = vadd.f32 %v433_v27, %v412_v26 }
  0x40   : > { %v383_v20 = vadd.f32 %v375_v30, %v354_v29 }
  0x41   : > { %652 = vrcp.f32 %v513_v32  ;;  %v470_v37 = vadd.f32 %v462_v35, %v441_v34 }
  0x42   : > { %v645_v41 = vpop.eup %644  ;;  %654 = vpow2.f32 %v505_v33  ;;  %v413_v43 = vadd.f32 %v405_v31, %v383_v20 }
  0x43   : > { %v514_v21 = vadd.f32 1.0, %v645_v41  ;;  %v485_v22 = vadd.f32 %v827_v18, %v470_v37 }
  0x44   : > { %v647_v44 = vpop.eup %646  ;;  %v442_v46 = vadd.f32 %v434_v42, %v413_v43 }
  0x45   : > { %v535_v45 = vmul.f32 %v647_v44, %v837_v39  ;;  %656 = vrcp.f32 %v514_v21  ;;  %v493_v48 = vsub.f32 0.0, %v485_v22 }
  0x46   : > { %v649_v23 = vpop.eup %648  ;;  %v471_v49 = vadd.f32 %v463_v47, %v442_v46 }
  0x47   : > { %543 = vst.msk [vmem:[%s899_s17] sm:$0xff] %vm179_vm0, %v535_v45  ;;  %v515_v50 = vadd.f32 1.0, %v649_v23  ;;  %v507_v51 = vmul.f32 1.442695, %v493_v48 }
  0x48   : > { %v486_v53 = vadd.f32 %v827_v18, %v471_v49 }
  0x49   : > { %v651_v52 = vpop.eup %650  ;;  %658 = vrcp.f32 %v515_v50 }
  0x4a   : > { %v536_v55 = vmul.f32 %v651_v52, %v847_v61  ;;  %660 = vpow2.f32 %v507_v51  ;;  %v494_v39 = vsub.f32 0.0, %v486_v53 }
  0x4b   : > { %v653_v57 = vpop.eup %652 }
  0x4c   : > { %544 = vst.msk [vmem:[%s899_s17 + $0x8] sm:$0xff] %vm179_vm0, %v536_v55  ;;  %v655_v24 = vpop.eup %654  ;;  %v537_v58 = vmul.f32 %v653_v57, %v855_v13  ;;  %v509_v59 = vmul.f32 1.442695, %v494_v39 }
  0x4d   : > { %v516_v60 = vadd.f32 1.0, %v655_v24 }
  0x4e   : > { %545 = vst.msk [vmem:[%s899_s17 + $0x10] sm:$0xff] %vm179_vm0, %v537_v58  ;;  %662 = vpow2.f32 %v509_v59 }
  0x4f   : > { %v657_v18 = vpop.eup %656  ;;  %664 = vrcp.f32 %v516_v60 }
  0x50   : > { %v538_v61 = vmul.f32 %v657_v18, %v865_v38 }
  0x52   : > { %546 = vst.msk [vmem:[%s899_s17 + $0x18] sm:$0xff] %vm179_vm0, %v538_v61 }
  0x53   : > { %v659_v62 = vpop.eup %658 }
  0x54   : > { %v661_v63 = vpop.eup %660  ;;  %v539_v0 = vmul.f32 %v659_v62, %v875_v54 }
  0x55   : > { %v517_v56 = vadd.f32 1.0, %v661_v63 }
  0x56   : > { %547 = vst.msk [vmem:[%s899_s17 + $0x20] sm:$0xff] %vm179_vm0, %v539_v0 }
  0x57   : > { %666 = vrcp.f32 %v517_v56 }
  0x58   : > { %v663_v13 = vpop.eup %662 }
  0x59   : > { %v665_v4 = vpop.eup %664  ;;  %v518_v5 = vadd.f32 1.0, %v663_v13 }
  0x5a   : > { %v540_v6 = vmul.f32 %v665_v4, %v884_v11 }
  0x5b   : > { %668 = vrcp.f32 %v518_v5 }
  0x5c   : > { %548 = vst.msk [vmem:[%s899_s17 + $0x28] sm:$0xff] %vm179_vm0, %v540_v6 }
  0x61   : > { %v667_v38 = vpop.eup %666 }
  0x62   : > { %v541_v7 = vmul.f32 %v667_v38, %v485_v22 }
  0x64   : > { %549 = vst.msk [vmem:[%s899_s17 + $0x30] sm:$0xff] %vm179_vm0, %v541_v7 }
  0x65   : > { %v669_v8 = vpop.eup %668 }
  0x66   : > { %v542_v9 = vmul.f32 %v669_v8, %v486_v53 }
  0x68   : > { %550 = vst.msk [vmem:[%s899_s17 + $0x38] sm:$0xff] %vm179_vm0, %v542_v9 }
  0x69 PF: > { %s13_s12 = sadd.s32 1, %s676_s12  }
  0x6a   : > { %p10_p4 = scmp.ge.s32.totalorder %s13_s12, 4  }
  0x6c   :  { %12 = sbr.rel (!%p10_p4) target bundleno = 1 (0x1), region = 64 }

// kernel: block_forward.13
= control target key start
LH: loop header
LB: loop body
LE: loop exit
PB: predicated region body
PF: predicated region fallthrough
CT: control target
= control target key end

     0   :  { %s1426_s12 = smov 0   ;;  %s1828_s0 = inlined_call_operand.vmem [shape: f32[2,64,32], index: 0, kind: input, shape index: {}]   ;;  %s1829_s1 = inlined_call_operand.vmem [shape: f32[2,64,32], index: 1, kind: input, shape index: {}]   ;;  %s1830_s2 = inlined_call_operand.vmem [shape: f32[2,64,32], index: 2, kind: input, shape index: {}]   ;;  %s1831_s3 = inlined_call_operand.vmem [shape: f32[2,64,32], index: 3, kind: output, shape index: {}]  }
   0x1 LB: > { %s1167_s13 = sadd.s32 4294967295, %s1402_s12   ;;  %p1171_p0 = scmp.ge.s32.totalorder %s1402_s12, 1  ;;  %s1402_s12 = sphi %s1426_s12, %s13_s12  }
   0x2   : > { %p157_p1 = scmp.lt.s32.totalorder %s1402_s12, 3 }
   0x4   : > { %p158_p2 = pnand %p1171_p0, %p157_p1 }
   0x5   : > { %p191_p3 = scmp.lt.s32.totalorder (!%p158_p2), %s1167_s13, 1  ;;  %vm1832_vm0 = vcmask (!%p158_p2), 130048   ;;  %v212_v28 = vlaneseq (!%p158_p2)  ;;  %s1404_s24 = smov (!%p158_p2), 112  }
   0x6   : > { %161 = sbr.rel (%p158_p2) target bundleno = 1597 (0x63d), region = 32  ;;  %s1405_s28 = smov (!%p158_p2), 16  }
   0x7   : > { %v213_v29 = vshrl.u32 (!%p158_p2), %v212_v28, 7  ;;  %v222_v47 = vand.u32 (!%p158_p2), 127, %v212_v28 }
   0x9   : > { %v215_v30 = vadd.s32 (!%p158_p2), 16, %v213_v29  ;;  %v216_v33 = vadd.s32 (!%p158_p2), 24, %v213_v29  ;;  %v223_v36 = vshra.s32 (!%p158_p2), %v213_v29, 3  ;;  %v231_v38 = vand.u32 (!%p158_p2), 7, %v213_v29 }
   0xa   : > { %v214_v40 = vadd.s32 (!%p158_p2), 8, %v213_v29  ;;  %v219_v42 = vadd.s32 (!%p158_p2), 48, %v213_v29  ;;  %v1494_v52 = vshra.s32 (!%p158_p2), %v222_v47, 3  ;;  %v217_v55 = vadd.s32 (!%p158_p2), 32, %v213_v29 }
   0xb   : > { %v225_v31 = vshra.s32 (!%p158_p2), %v215_v30, 3  ;;  %v233_v32 = vand.u32 (!%p158_p2), 7, %v215_v30  ;;  %v226_v37 = vshra.s32 (!%p158_p2), %v216_v33, 3  ;;  %v1180_v39 = vadd.s32 (!%p158_p2), 4294967293, %v223_v36 }
   0xc   : > { %v1188_v45 = vadd.s32 (!%p158_p2), 4294967293, %v231_v38  ;;  %v234_v46 = vand.u32 (!%p158_p2), 7, %v216_v33  ;;  %v224_v48 = vshra.s32 (!%p158_p2), %v214_v40, 3  ;;  %v229_v49 = vshra.s32 (!%p158_p2), %v219_v42, 3 }
   0xd   : > { %s1923_s13 = smov (!%p191_p3, %s1167_s13), 1  ;;  %v1182_v34 = vadd.s32 4294967293, %v225_v31  ;;  %v1190_v35 = vadd.s32 4294967293, %v233_v32  ;;  %v1183_v41 = vadd.s32 4294967293, %v226_v37  ;;  %vm249_vm3 = vcmp.gt.s32.totalorder %v1180_v39, 0 }
   0xe   : > { %s1434_s14 = sshll.u32 %s1923_s13, 6  ;;  %v250_v50 = vsel %vm249_vm3, %v1180_v39, 0  ;;  %vm289_vm7 = vcmp.gt.s32.totalorder %v1188_v45, 0  ;;  %v1191_v51 = vadd.s32 4294967293, %v234_v46  ;;  %v1181_v54 = vadd.s32 4294967293, %v224_v48 }
   0xf   : > { %s200_s17 = scalar_lea.vmem %s1829_s1, %s1434_s14  ;;  %s1444_s20 = scalar_lea.vmem %s1828_s0, %s1434_s14  ;;  %vm253_vm1 = vcmp.gt.s32.totalorder %v1182_v34, 0  ;;  %vm293_vm2 = vcmp.gt.s32.totalorder %v1190_v35, 0  ;;  %vm255_vm4 = vcmp.gt.s32.totalorder %v1183_v41, 0  ;;  %v1186_v58 = vadd.s32 4294967293, %v229_v49 }
  0x10   : > { %v405_v0 = vld [vmem:[%s200_s17] sm:$0xff]  ;;  %v406_v1 = vld [vmem:[%s200_s17 + $0x8] sm:$0xff]  ;;  %v407_v2 = vld [vmem:[%s200_s17 + $0x10] sm:$0xff]  ;;  %v254_v43 = vsel %vm253_vm1, %v1182_v34, 0  ;;  %v294_v44 = vsel %vm293_vm2, %v1190_v35, 0  ;;  %v256_v53 = vsel %vm255_vm4, %v1183_v41, 0  ;;  %s205_s23 = scalar_lea.vmem %s1830_s2, %s1434_s14  ;;  %s1731_s27 = scalar_lea.vmem %s1831_s3, %s1434_s14 }
  0x11   : > { %v1446_v3 = vpack.c.bf16 %v406_v1, %v405_v0  ;;  %v408_v4 = vld [vmem:[%s200_s17 + $0x18] sm:$0xff]  ;;  %v393_v6 = vld [vmem:[%s1444_s20] sm:$0xff]  ;;  %v394_v8 = vld [vmem:[%s1444_s20 + $0x8] sm:$0xff]  ;;  %vm269_vm5 = vcmp.lt.s32.totalorder %v254_v43, 1  ;;  %vm309_vm6 = vcmp.lt.s32.totalorder %v294_v44, 1  ;;  %v220_v59 = vadd.s32 56, %v213_v29 }
  0x12   : > { %v1448_v5 = vpack.c.bf16 %v408_v4, %v407_v2  ;;  %v1456_v9 = vpack.c.bf16 %v394_v8, %v393_v6  ;;  %v409_v10 = vld [vmem:[%s200_s17 + $0x20] sm:$0xff]  ;;  %v410_v11 = vld [vmem:[%s200_s17 + $0x28] sm:$0xff]  ;;  %v411_v14 = vld [vmem:[%s200_s17 + $0x30] sm:$0xff]  ;;  %v270_v56 = vsel %vm269_vm5, %v254_v43, 1  ;;  %v1496_v57 = vsel %vm309_vm6, %v294_v44, 1 }
  0x13   : > { %1314 = vmatprep.subr.msk.bf16.mxu0 %vm1832_vm0, %v1446_v3  ;;  %v443_v7 = vsel %vm1832_vm0, %v1446_v3, 0  ;;  %v1464_v13 = vpack.c.bf16 %v410_v11, %v409_v10  ;;  %v412_v15 = vld [vmem:[%s200_s17 + $0x38] sm:$0xff]  ;;  %v395_v19 = vld [vmem:[%s1444_s20 + $0x10] sm:$0xff]  ;;  %v397_v21 = vld [vmem:[%s1444_s20 + $0x20] sm:$0xff]  ;;  %vm265_vm8 = vcmp.lt.s32.totalorder %v250_v50, 1  ;;  %v290_v60 = vsel %vm289_vm7, %v1188_v45, 0 }
  0x14   : > { %1251 = vmatpush3.bf16.xpose.msra.mxu0 %v443_v7  ;;  %1258 = vmatprep.mubr.msk.bf16.mxu0 %vm1832_vm0, %v1456_v9  ;;  %v446_v12 = vsel %vm1832_vm0, %v1448_v5, 0  ;;  %v1470_v17 = vpack.c.bf16 %v412_v15, %v411_v14  ;;  %v396_v20 = vld [vmem:[%s1444_s20 + $0x18] sm:$0xff]  ;;  %v398_v22 = vld [vmem:[%s1444_s20 + $0x28] sm:$0xff]  ;;  %v399_v25 = vld [vmem:[%s1444_s20 + $0x30] sm:$0xff]  ;;  %v232_v61 = vand.u32 7, %v214_v40  ;;  %v218_v62 = vadd.s32 40, %v213_v29 }
  0x15   : > { %1315 = vmatprep.subr.msk.bf16.mxu0 %vm1832_vm0, %v1448_v5  ;;  %v449_v16 = vsel %vm1832_vm0, %v1464_v13, 0  ;;  %v1480_v23 = vpack.c.bf16 %v396_v20, %v395_v19  ;;  %v1482_v24 = vpack.c.bf16 %v398_v22, %v397_v21  ;;  %v400_v26 = vld [vmem:[%s1444_s20 + $0x38] sm:$0xff]  ;;  %v1498_v63 = vand.u32 7, %v222_v47 }
  0x16   : > { %v452_v18 = vsel %vm1832_vm0, %v1470_v17, 0  ;;  %v1490_v27 = vpack.c.bf16 %v400_v26, %v399_v25  ;;  %vm271_vm9 = vcmp.lt.s32.totalorder %v256_v53, 1  ;;  %vm295_vm10 = vcmp.gt.s32.totalorder %v1191_v51, 0 }
  0x17   : > { %v237_v0 = vand.u32 7, %v219_v42  ;;  %v331_v1 = vadd.s32 7, %v270_v56  ;;  %v1501_v2 = vadd.s32 7, %v1496_v57  ;;  %vm251_vm11 = vcmp.gt.s32.totalorder %v1181_v54, 0 }
  0x18   : > { %v227_v4 = vshra.s32 %v217_v55, 3  ;;  %v266_v6 = vsel %vm265_vm8, %v250_v50, 1  ;;  %vm305_vm12 = vcmp.lt.s32.totalorder %v290_v60, 1  ;;  %vm261_vm13 = vcmp.gt.s32.totalorder %v1186_v58, 0 }
  0x19   : > { %v230_v7 = vshra.s32 %v220_v59, 3  ;;  %v1503_v8 = vsel %vm271_vm9, %v256_v53, 1  ;;  %v296_v10 = vsel %vm295_vm10, %v1191_v51, 0  ;;  %v1189_v11 = vadd.s32 4294967293, %v232_v61 }
  0x1a   : > { %vm323_vm14 = vcmp.ge.s32.totalorder %v1494_v52, %v270_v56  ;;  %vm355_vm15 = vcmp.ge.s32.totalorder %v1498_v63, %v1496_v57  ;;  %v252_v14 = vsel %vm251_vm11, %v1181_v54, 0  ;;  %v1194_v15 = vadd.s32 4294967293, %v237_v0 }
  0x1b   : > { %vm339_vm1 = vcmp.lt.s32.totalorder %v1494_v52, %v331_v1  ;;  %v1184_v19 = vadd.s32 4294967293, %v227_v4  ;;  %v306_v20 = vsel %vm305_vm12, %v290_v60, 1  ;;  %vm311_vm3 = vcmp.lt.s32.totalorder %v296_v10, 1 }
  0x1c   : > { %1253 = vmatpush3.bf16.xpose.msra.mxu0 %v446_v12  ;;  %v228_v12 = vshra.s32 %v218_v62, 3  ;;  %v332_v21 = vadd.s32 7, %v1503_v8  ;;  %v1187_v22 = vadd.s32 4294967293, %v230_v7  ;;  %vm267_vm4 = vcmp.lt.s32.totalorder %v252_v14, 1  ;;  %vm347_vm12 = vmand %vm323_vm14, %vm339_vm1 }
  0x1d   : > { %1316 = vmatprep.subr.msk.bf16.mxu0 %vm1832_vm0, %v1464_v13  ;;  %vm291_vm5 = vcmp.gt.s32.totalorder %v1189_v11, 0  ;;  %v235_v25 = vand.u32 7, %v217_v55  ;;  %vm321_vm6 = vcmp.ge.s32.totalorder %v1494_v52, %v266_v6  ;;  %vm301_vm8 = vcmp.gt.s32.totalorder %v1194_v15, 0  ;;  %vm363_vm14 = vmand %vm347_vm12, %vm355_vm15 }
  0x1e   : > { %v1185_v26 = vadd.s32 4294967293, %v228_v12  ;;  %v238_v28 = vand.u32 7, %v220_v59  ;;  %v369_v29 = vadd.s32 7, %v306_v20  ;;  %vm257_vm10 = vcmp.gt.s32.totalorder %v1184_v19, 0 }
  0x1f   : > { %v236_v30 = vand.u32 7, %v218_v62  ;;  %v312_v31 = vsel %vm311_vm3, %v296_v10, 1  ;;  %v268_v32 = vsel %vm267_vm4, %v252_v14, 1  ;;  %v292_v33 = vsel %vm291_vm5, %v1189_v11, 0 }
  0x20   : > { %vm263_vm11 = vcmp.gt.s32.totalorder %v1187_v22, 0  ;;  %v302_v35 = vsel %vm301_vm8, %v1194_v15, 0  ;;  %v1192_v36 = vadd.s32 4294967293, %v235_v25  ;;  %vm353_vm2 = vcmp.ge.s32.totalorder %v1498_v63, %v306_v20 }
  0x21   : > { %v258_v37 = vsel %vm257_vm10, %v1184_v19, 0  ;;  %v1195_v38 = vadd.s32 4294967293, %v238_v28  ;;  %vm307_vm4 = vcmp.lt.s32.totalorder %v292_v33, 1  ;;  %v330_v39 = vadd.s32 7, %v268_v32 }
  0x22   : > { %v264_v40 = vsel %vm263_vm11, %v1187_v22, 0  ;;  %v1193_v41 = vadd.s32 4294967293, %v236_v30  ;;  %vm317_vm5 = vcmp.lt.s32.totalorder %v302_v35, 1  ;;  %v372_v44 = vadd.s32 7, %v312_v31 }
  0x23   : > { %vm273_vm8 = vcmp.lt.s32.totalorder %v258_v37, 1  ;;  %v308_v45 = vsel %vm307_vm4, %v292_v33, 1  ;;  %vm279_vm11 = vcmp.lt.s32.totalorder %v264_v40, 1  ;;  %vm303_vm3 = vcmp.gt.s32.totalorder %v1195_v38, 0 }
  0x24   : > { %1255 = vmatpush3.bf16.xpose.msra.mxu0 %v449_v16  ;;  %v329_v16 = vadd.s32 7, %v266_v6  ;;  %vm1838_vm12 = vcmp.lt.s32.totalorder %v1498_v63, %v1501_v2  ;;  %v1839_v46 = vmov 0  ;;  %v318_v47 = vsel %vm317_vm5, %v302_v35, 1 }
  0x25   : > { %1317 = vmatprep.subr.msk.bf16.mxu0 %vm1832_vm0, %v1470_v17  ;;  %vm1533_vm15 = vmand %vm363_vm14, %vm1838_vm12  ;;  %v1841_v48 = vmov 0  ;;  %v274_v49 = vsel %vm273_vm8, %v258_v37, 1  ;;  %vm1843_vm14 = vcmp.lt.s32.totalorder %v1494_v52, %v332_v21  ;;  %vm1844_vm12 = vcmp.ge.s32.totalorder %v1494_v52, %v1503_v8 }
  0x26   : > { %vm337_vm9 = vcmp.lt.s32.totalorder %v1494_v52, %v329_v16  ;;  %v1840_v46 = vsel %vm1533_vm15, 4294967295, %v1839_v46  ;;  %vm348_vm15 = vmand %vm1844_vm12, %vm1843_vm14  ;;  %vm356_vm5 = vcmp.ge.s32.totalorder %v1498_v63, %v312_v31  ;;  %v370_v51 = vadd.s32 7, %v308_v45 }
  0x27   : > { %v280_v53 = vsel %vm279_vm11, %v264_v40, 1  ;;  %v304_v54 = vsel %vm303_vm3, %v1195_v38, 0  ;;  %v375_v55 = vadd.s32 7, %v318_v47  ;;  %vm364_vm14 = vmand %vm348_vm15, %vm356_vm5  ;;  %vm380_vm11 = vcmp.lt.s32.totalorder %v1498_v63, %v372_v44 }
  0x28   : > { %vm319_vm3 = vcmp.lt.s32.totalorder %v304_v54, 1  ;;  %v336_v59 = vadd.s32 7, %v280_v53  ;;  %v1846_v62 = vmov 0  ;;  %vm325_vm5 = vcmp.ge.s32.totalorder %v1494_v52, %v274_v49 }
  0x29   : > { %v320_v0 = vsel %vm319_vm3, %v304_v54, 1  ;;  %v1848_v1 = vmov 0  ;;  %vm1852_vm3 = vnez %v1840_v46 }
  0x2a   : > { %v376_v12 = vadd.s32 7, %v320_v0 }
  0x2c   : > { %1257 = vmatpush3.bf16.xpose.msra.mxu0 %v452_v18  ;;  %v262_v18 = vsel %vm261_vm13, %v1186_v58, 0  ;;  %vm259_vm13 = vcmp.gt.s32.totalorder %v1185_v26, 0  ;;  %v333_v58 = vadd.s32 7, %v274_v49 }
  0x2d   : > { %vm277_vm7 = vcmp.lt.s32.totalorder %v262_v18, 1  ;;  %v260_v43 = vsel %vm259_vm13, %v1185_v26, 0  ;;  %vm338_vm13 = vcmp.lt.s32.totalorder %v1494_v52, %v330_v39 }
  0x2e   : > { %v278_v34 = vsel %vm277_vm7, %v262_v18, 1  ;;  %vm377_vm7 = vcmp.lt.s32.totalorder %v1498_v63, %v369_v29  ;;  %vm341_vm15 = vcmp.lt.s32.totalorder %v1494_v52, %v333_v58 }
  0x2f   : > { %v335_v42 = vadd.s32 7, %v278_v34  ;;  %vm327_vm4 = vcmp.ge.s32.totalorder %v1494_v52, %v278_v34 }
  0x31   : > { %vm343_vm10 = vcmp.lt.s32.totalorder %v1494_v52, %v335_v42 }
  0x32   : > { %vm351_vm8 = vmand %vm327_vm4, %vm343_vm10  ;;  %vm383_vm4 = vcmp.lt.s32.totalorder %v1498_v63, %v375_v55 }
  0x33   : > { %1259 = vmatmul.mubr.msk.bf16.vlgmr.msra.gmra.mrb[0].mxu0 %vm1832_vm0, %v1480_v23  ;;  %vm1557_vm10 = vmand %vm364_vm14, %vm380_vm11 }
  0x34   : > { %1262 = vmatprep.mubr.msk.bf16.mxu0 %vm1832_vm0, %v1482_v24  ;;  %v1847_v62 = vsel %vm1557_vm10, 4294967295, %v1846_v62 }
  0x3b   : > { %1263 = vmatmul.mubr.msk.bf16.gmra.mrb[4].mxu0 %vm1832_vm0, %v1490_v27  ;;  %vm345_vm0 = vmand %vm321_vm6, %vm337_vm9  ;;  %vm297_vm9 = vcmp.gt.s32.totalorder %v1192_v36, 0 }
  0x3c   : > { %vm361_vm6 = vmand %vm345_vm0, %vm353_vm2  ;;  %vm275_vm0 = vcmp.lt.s32.totalorder %v260_v43, 1  ;;  %vm299_vm2 = vcmp.gt.s32.totalorder %v1193_v41, 0  ;;  %v298_v50 = vsel %vm297_vm9, %v1192_v36, 0  ;;  %vm359_vm9 = vcmp.ge.s32.totalorder %v1498_v63, %v318_v47 }
  0x3d   : > { %vm1538_vm1 = vmand %vm361_vm6, %vm377_vm7  ;;  %vm1845_vm6 = vcmp.ge.s32.totalorder %v1494_v52, %v268_v32  ;;  %v276_v56 = vsel %vm275_vm0, %v260_v43, 1  ;;  %v300_v57 = vsel %vm299_vm2, %v1193_v41, 0  ;;  %vm313_vm12 = vcmp.lt.s32.totalorder %v298_v50, 1 }
  0x3e   : > { %v1842_v48 = vsel %vm1538_vm1, 4294967295, %v1841_v48  ;;  %vm346_vm7 = vmand %vm1845_vm6, %vm338_vm13  ;;  %vm354_vm1 = vcmp.ge.s32.totalorder %v1498_v63, %v308_v45  ;;  %vm378_vm13 = vcmp.lt.s32.totalorder %v1498_v63, %v370_v51  ;;  %vm315_vm0 = vcmp.lt.s32.totalorder %v300_v57, 1 }
  0x3f   : > { %vm362_vm6 = vmand %vm346_vm7, %vm354_vm1  ;;  %v334_v60 = vadd.s32 7, %v276_v56  ;;  %v314_v61 = vsel %vm313_vm12, %v298_v50, 1  ;;  %vm1836_vm1 = vcmask 523264   ;;  %v316_v2 = vsel %vm315_vm0, %v300_v57, 1 }
  0x40   : > { %vm367_vm2 = vmand %vm351_vm8, %vm359_vm9  ;;  %vm328_vm8 = vcmp.ge.s32.totalorder %v1494_v52, %v280_v53  ;;  %vm344_vm9 = vcmp.lt.s32.totalorder %v1494_v52, %v336_v59  ;;  %v373_v7 = vadd.s32 7, %v314_v61  ;;  %vm326_vm14 = vcmp.ge.s32.totalorder %v1494_v52, %v276_v56 }
  0x41   : > { %vm1563_vm7 = vmand %vm362_vm6, %vm378_vm13  ;;  %vm342_vm11 = vcmp.lt.s32.totalorder %v1494_v52, %v334_v60  ;;  %vm357_vm13 = vcmp.ge.s32.totalorder %v1498_v63, %v314_v61  ;;  %vm1855_vm0 = vnez %v1842_v48  ;;  %v374_v18 = vadd.s32 7, %v316_v2 }
  0x42   : > { %v1849_v1 = vsel %vm1563_vm7, 4294967295, %v1848_v1  ;;  %vm1569_vm12 = vmand %vm367_vm2, %vm383_vm4  ;;  %vm360_vm4 = vcmp.ge.s32.totalorder %v1498_v63, %v320_v0 }
  0x43   : > { %vm1579_vm6 = vmand %vm325_vm5, %vm341_vm15  ;;  %vm358_vm15 = vcmp.ge.s32.totalorder %v1498_v63, %v316_v2 }
  0x44   : > { %vm352_vm2 = vmand %vm328_vm8, %vm344_vm9  ;;  %vm381_vm9 = vcmp.lt.s32.totalorder %v1498_v63, %v373_v7 }
  0x45   : > { %vm350_vm5 = vmand %vm326_vm14, %vm342_vm11  ;;  %vm382_vm14 = vcmp.lt.s32.totalorder %v1498_v63, %v374_v18  ;;  %v417_v18 = vld [vmem:[%s205_s23] sm:$0xff] }
  0x46   : > { %vm365_vm8 = vmand %vm1579_vm6, %vm357_vm13 }
 0x106   : > { %v1260_v4 = vpop.f32.mrb[0].mxu0 }
 0x107   : > { %v521_v8 = vsel %vm1852_vm3, %v1260_v4, -1e+30  ;;  %v488_v10 = vpop.f32.mrb[1].mxu0  ;;  %vm1856_vm3 = vcmask 523264  }
 0x108   : > { %v519_v14 = vsel %vm1855_vm0, %v488_v10, -1e+30  ;;  %v1261_v15 = vpop.f32.mrb[2].mxu0  ;;  %v534_v16 = vsel %vm1836_vm1, %v521_v8, -inf  ;;  %vm366_vm0 = vmand %vm350_vm5, %vm358_vm15 }
 0x109   : > { %v522_v19 = vsel %vm1557_vm10, %v1261_v15, -1e+30  ;;  %535 = vmax.xlane.f32.xlu1 %v534_v16  ;;  %v491_v20 = vpop.f32.mrb[3].mxu0  ;;  %v528_v21 = vsel %vm1836_vm1, %v519_v14, -inf  ;;  %vm368_vm10 = vmand %vm352_vm2, %vm360_vm4  ;;  %vm384_vm1 = vcmp.lt.s32.totalorder %v1498_v63, %v376_v12 }
 0x10a   : > { %v520_v22 = vsel %vm1563_vm7, %v491_v20, -1e+30  ;;  %529 = vmax.xlane.f32.xlu0 %v528_v21  ;;  %v537_v25 = vsel %vm1856_vm3, %v522_v19, -inf  ;;  %vm1857_vm11 = vmmov %vm1856_vm3 }
 0x10b   : > { %v531_v52 = vsel %vm1857_vm11, %v520_v22, -inf  ;;  %vm1611_vm7 = vmand %vm365_vm8, %vm381_vm9 }
 0x10c   : > { %vm1615_vm6 = vmand %vm368_vm10, %vm384_vm1 }
 0x10d   : > { %538 = vmax.xlane.f32.xlu1 %v537_v25  ;;  %vm1619_vm13 = vmand %vm366_vm0, %vm382_vm14  ;;  %v420_v25 = vld [vmem:[%s205_s23 + $0x18] sm:$0xff] }
 0x10e   : > { %532 = vmax.xlane.f32.xlu0 %v531_v52  ;;  %v1264_v28 = vpop.f32.mrb[4].mxu0  ;;  %vm1864_vm10 = vmmov %vm1856_vm3 }
 0x10f   : > { %v504_v30 = vpop.f32.mrb[5].mxu0  ;;  %v525_v63 = vsel %vm1569_vm12, %v1264_v28, -1e+30  ;;  %vm1865_vm1 = vmmov %vm1856_vm3  ;;  %v421_v28 = vld [vmem:[%s205_s23 + $0x20] sm:$0xff] }
 0x110   : > { %v523_v32 = vsel %vm1611_vm7, %v504_v30, -1e+30  ;;  %v1265_v33 = vpop.f32.mrb[6].mxu0  ;;  %v546_v39 = vsel %vm1865_vm1, %v525_v63, -inf  ;;  %vm1866_vm0 = vmmov %vm1865_vm1  ;;  %v422_v30 = vld [vmem:[%s205_s23 + $0x28] sm:$0xff] }
 0x111   : > { %v507_v34 = vpop.f32.mrb[7].mxu0  ;;  %v540_v35 = vsel %vm1856_vm3, %v523_v32, -inf  ;;  %v1630_v36 = vsel %vm1615_vm6, %v1265_v33, -1e+30  ;;  %vm1867_vm2 = vmmov %vm1866_vm0  ;;  %v424_v33 = vld [vmem:[%s205_s23 + $0x38] sm:$0xff]  ;;  %vm1875_vm3 = vcmask 130048  }
 0x112   : > { %v1634_v37 = vsel %vm1619_vm13, %v507_v34, -1e+30  ;;  %541 = vmax.xlane.f32.xlu0 %v540_v35  ;;  %v549_v40 = vsel %vm1866_vm0, %v1630_v36, -inf  ;;  %vm1868_vm4 = vmmov %vm1866_vm0 }
 0x113   : > { %v543_v38 = vsel %vm1864_vm10, %v1634_v37, -inf  ;;  %vm1869_vm5 = vmmov %vm1866_vm0 }
 0x114   : > { %544 = vmax.xlane.f32.xlu1 %v543_v38  ;;  %vm1870_vm15 = vmmov %vm1866_vm0 }
 0x115   : > { %vm1871_vm8 = vmmov %vm1866_vm0 }
 0x116   : > { %547 = vmax.xlane.f32.xlu0 %v546_v39  ;;  %vm1872_vm9 = vmmov %vm1866_vm0 }
 0x117   : > { %vm1873_vm14 = vmmov %vm1866_vm0 }
 0x118   : > { %550 = vmax.xlane.f32.xlu1 %v549_v40  ;;  %vm1874_vm11 = vmmov %vm1866_vm0 }
 0x119   : > { %vm1876_vm10 = vmmov %vm1875_vm3 }
 0x11a   : > { %vm1877_vm1 = vmmov %vm1866_vm0 }
 0x196   : > { %v536_v41 = vpop.xlane.xlu1 %535 }
 0x197   : > { %v554_v42 = vsub.f32 %v521_v8, %v536_v41  ;;  %v530_v43 = vpop.xlane.xlu0 %529 }
 0x198   : > { %v552_v44 = vsub.f32 %v519_v14, %v530_v43 }
 0x199   : > { %v564_v45 = vmul.f32 1.442695, %v554_v42 }
 0x19a   : > { %v560_v47 = vmul.f32 1.442695, %v552_v44  ;;  %v539_v49 = vpop.xlane.xlu1 %538 }
 0x19b   : > { %1332 = vpow2.f32 %v564_v45  ;;  %v555_v50 = vsub.f32 %v522_v19, %v539_v49  ;;  %v533_v51 = vpop.xlane.xlu0 %532  ;;  %v418_v19 = vld [vmem:[%s205_s23 + $0x8] sm:$0xff] }
 0x19c   : > { %v553_v53 = vsub.f32 %v520_v22, %v533_v51  ;;  %1334 = vpow2.f32 %v560_v47  ;;  %v1667_v20 = vpack.c.bf16 %v418_v19, %v417_v18  ;;  %v419_v22 = vld [vmem:[%s205_s23 + $0x10] sm:$0xff] }
 0x19d   : > { %v566_v54 = vmul.f32 1.442695, %v555_v50  ;;  %v1673_v52 = vpack.c.bf16 %v420_v25, %v419_v22 }
 0x19e   : > { %v562_v55 = vmul.f32 1.442695, %v553_v53  ;;  %1266 = vmatprep.subr.bf16.mxu1 %v1667_v20 }
 0x19f   : > { %1336 = vpow2.f32 %v566_v54  ;;  %v542_v56 = vpop.xlane.xlu0 %541  ;;  %1267 = vmatpush3.bf16.msra.mxu1 %v1667_v20 }
 0x1a0   : > { %1338 = vpow2.f32 %v562_v55  ;;  %v556_v57 = vsub.f32 %v523_v32, %v542_v56  ;;  %1268 = vmatprep.subr.bf16.mxu1 %v1673_v52  ;;  %v423_v32 = vld [vmem:[%s205_s23 + $0x30] sm:$0xff] }
 0x1a1   : > { %v1683_v34 = vpack.c.bf16 %v424_v33, %v423_v32  ;;  %v545_v35 = vpop.xlane.xlu1 %544 }
 0x1a2   : > { %v568_v61 = vmul.f32 1.442695, %v556_v57  ;;  %v557_v39 = vsub.f32 %v1634_v37, %v545_v35 }
 0x1a3   : > { %v548_v58 = vpop.xlane.xlu0 %547  ;;  %1269 = vmatpush3.bf16.msra.mxu1 %v1673_v52 }
 0x1a4   : > { %v558_v59 = vsub.f32 %v525_v63, %v548_v58  ;;  %v1677_v63 = vpack.c.bf16 %v422_v30, %v421_v28 }
 0x1a5   : > { %v1641_v60 = vpop.eup %1332 }
 0x1a6   : > { %v572_v0 = vmul.f32 1.442695, %v558_v59  ;;  %v582_v2 = vsel %vm1867_vm2, %v1641_v60, 0.0  ;;  %v1645_v4 = vpop.eup %1334  ;;  %1270 = vmatprep.subr.bf16.mxu1 %v1677_v63  ;;  %vm1878_vm2 = vmmov %vm1875_vm3 }
 0x1a7   : > { %583 = vadd.xlane.f32.xlu0 %v582_v2  ;;  %v576_v8 = vsel %vm1868_vm4, %v1645_v4, 0.0  ;;  %1271 = vmatpush3.bf16.msra.mxu1 %v1677_v63  ;;  %vm1879_vm4 = vmmov %vm1878_vm2 }
 0x1a8   : > { %1340 = vpow2.f32 %v572_v0  ;;  %1272 = vmatprep.subr.bf16.mxu1 %v1683_v34 }
 0x1a9   : > { %v1647_v7 = vpop.eup %1336  ;;  %1342 = vpow2.f32 %v568_v61 }
 0x1aa   : > { %v585_v10 = vsel %vm1869_vm5, %v1647_v7, 0.0  ;;  %v1653_v11 = vpop.eup %1338  ;;  %vm1880_vm5 = vmmov %vm1878_vm2 }
 0x1ab   : > { %577 = vadd.xlane.f32.xlu0 %v576_v8  ;;  %586 = vadd.xlane.f32.xlu1 %v585_v10  ;;  %v579_v12 = vsel %vm1870_vm15, %v1653_v11, 0.0  ;;  %vm1881_vm15 = vmmov %vm1878_vm2 }
 0x1ac   : > { %1273 = vmatpush3.bf16.msra.mxu1 %v1683_v34 }
 0x1af   : > { %580 = vadd.xlane.f32.xlu1 %v579_v12 }
 0x1b2   : > { %v1657_v14 = vpop.eup %1340 }
 0x1b3   : > { %v594_v15 = vsel %vm1871_vm8, %v1657_v14, 0.0  ;;  %v1665_v16 = vpop.eup %1342  ;;  %vm1882_vm8 = vmmov %vm1878_vm2 }
 0x1b4   : > { %595 = vadd.xlane.f32.xlu0 %v594_v15  ;;  %v588_v21 = vsel %vm1872_vm9, %v1665_v16, 0.0  ;;  %vm1883_vm9 = vmmov %vm1878_vm2 }
 0x1b8   : > { %589 = vadd.xlane.f32.xlu0 %v588_v21 }
 0x1c0   : > { %759 = vrot.lane.b32.xlu1 %v1448_v5, %s1404_s24  ;;  %v551_v5 = vpop.xlane.xlu1 %550 }
 0x1c1   : > { %v559_v38 = vsub.f32 %v1630_v36, %v551_v5 }
 0x1c3   : > { %v574_v40 = vmul.f32 1.442695, %v559_v38 }
 0x1c4   : > { %761 = vrot.lane.b32.xlu1 %v1464_v13, %s1404_s24  ;;  %v570_v13 = vmul.f32 1.442695, %v557_v39 }
 0x1c5   : > { %1344 = vpow2.f32 %v574_v40 }
 0x1c6   : > { %1346 = vpow2.f32 %v570_v13 }
 0x1ce   : > { %757 = vrot.lane.b32.xlu0 %v1446_v3, %s1404_s24 }
 0x1cf   : > { %v1345_v41 = vpop.eup %1344 }
 0x1d0   : > { %v597_v42 = vsel %vm1873_vm14, %v1345_v41, 0.0  ;;  %v1347_v43 = vpop.eup %1346  ;;  %vm1884_vm14 = vmmov %vm1866_vm0 }
 0x1d1   : > { %v591_v3 = vsel %vm1874_vm11, %v1347_v43, 0.0  ;;  %vm1885_vm11 = vmmov %vm1866_vm0 }
 0x1d2   : > { %745 = vrot.lane.b32.xlu0 %v1456_v9, %s1404_s24 }
 0x1d6   : > { %749 = vrot.lane.b32.xlu0 %v1482_v24, %s1404_s24 }
 0x1e8   : > { %598 = vadd.xlane.f32.xlu1 %v597_v42 }
 0x1ec   : > { %592 = vadd.xlane.f32.xlu1 %v591_v3 }
 0x1fd   : > { %763 = vrot.lane.b32.xlu1 %v1470_v17, %s1404_s24 }
 0x201   : > { %747 = vrot.lane.b32.xlu1 %v1480_v23, %s1404_s24 }
 0x205   : > { %751 = vrot.lane.b32.xlu1 %v1490_v27, %s1404_s24 }
 0x234   : > { %v584_v9 = vpop.xlane.xlu0 %583 }
 0x238   : > { %v578_v24 = vpop.xlane.xlu0 %577  ;;  %v587_v36 = vpop.xlane.xlu1 %586 }
 0x239   : > { %1348 = vrcp.f32 %v587_v36 }
 0x23a   : > { %1350 = vrcp.f32 %v578_v24 }
 0x23b   : > { %1352 = vrcp.f32 %v584_v9 }
 0x23c   : > { %v581_v37 = vpop.xlane.xlu1 %580 }
 0x23d   : > { %1354 = vrcp.f32 %v581_v37 }
 0x240   : > { %v760_v58 = vpop.permute.xlu1 %759 }
 0x241   : > { %v596_v44 = vpop.xlane.xlu0 %595  ;;  %v781_v59 = vsel %vm1879_vm4, %v760_v58, 0 }
 0x243   : > { %v1349_v45 = vpop.eup %1348 }
 0x244   : > { %v1351_v47 = vpop.eup %1350  ;;  %v611_v51 = vmul.f32 %v1349_v45, %v1647_v7  ;;  %v762_v61 = vpop.permute.xlu1 %761 }
 0x245   : > { %v590_v49 = vpop.xlane.xlu0 %589  ;;  %v1353_v50 = vpop.eup %1352  ;;  %v608_v23 = vmul.f32 %v1351_v47, %v1645_v4 }
 0x246   : > { %v610_v54 = vmul.f32 %v1353_v50, %v1641_v60  ;;  %v784_v60 = vsel %vm1881_vm15, %v762_v61, 0 }
 0x247   : > { %v1355_v17 = vpop.eup %1354 }
 0x248   : > { %v609_v27 = vmul.f32 %v1355_v17, %v1653_v11  ;;  %v617_v57 = vpack.c.bf16 %v611_v51, %v610_v54 }
 0x249   : > { %v758_v53 = vpop.permute.xlu0 %757 }
 0x24a   : > { %v616_v55 = vpack.c.bf16 %v609_v27, %v608_v23  ;;  %1318 = vmatprep.subr.msk.bf16.mxu1 %vm1875_vm3, %v758_v53  ;;  %v778_v56 = vsel %vm1876_vm10, %v758_v53, 0  ;;  %vm1886_vm3 = vmmov %vm1878_vm2 }
 0x24b   : > { %vm1887_vm10 = vmmov %vm1878_vm2 }
 0x24c   : > { %1274 = vmatprep.mubr.msk.bf16.mxu1 %vm1877_vm1, %v616_v55  ;;  %vm1888_vm1 = vmmov %vm1878_vm2 }
 0x24d   : > { %1275 = vmatmul.mubr.msk.bf16.vlgmr.msra.gmra.mrb[0].mxu1 %vm1866_vm0, %v617_v57  ;;  %v746_v28 = vpop.permute.xlu0 %745  ;;  %vm1889_vm0 = vmmov %vm1888_vm1 }
 0x24e   : > { %1283 = vmatpush3.bf16.xpose.msra.mxu1 %v778_v56  ;;  %vm1891_vm4 = vmmov %vm1889_vm0 }
 0x24f   : > { %1319 = vmatprep.subr.msk.bf16.mxu1 %vm1878_vm2, %v760_v58  ;;  %vm1890_vm2 = vmmov %vm1889_vm0 }
 0x250   : > { %vm1893_vm15 = vmmov %vm1889_vm0 }
 0x251   : > { %v750_v32 = vpop.permute.xlu0 %749 }
 0x256   : > { %1285 = vmatpush3.bf16.xpose.msra.mxu1 %v781_v59 }
 0x257   : > { %1320 = vmatprep.subr.msk.bf16.mxu1 %vm1880_vm5, %v762_v61  ;;  %vm1892_vm5 = vmmov %vm1889_vm0 }
 0x25e   : > { %1287 = vmatpush3.bf16.xpose.msra.mxu1 %v784_v60 }
 0x275   : > { %v599_v0 = vpop.xlane.xlu1 %598 }
 0x276   : > { %1356 = vrcp.f32 %v599_v0 }
 0x277   : > { %1358 = vrcp.f32 %v590_v49 }
 0x278   : > { %1360 = vrcp.f32 %v596_v44 }
 0x279   : > { %v593_v2 = vpop.xlane.xlu1 %592 }
 0x27a   : > { %1362 = vrcp.f32 %v593_v2 }
 0x27d   : > { %v764_v4 = vpop.permute.xlu1 %763 }
 0x27e   : > { %v787_v7 = vsel %vm1882_vm8, %v764_v4, 0  ;;  %1321 = vmatprep.subr.msk.bf16.mxu1 %vm1883_vm9, %v764_v4  ;;  %vm1894_vm8 = vmmov %vm1889_vm0 }
 0x27f   : > { %1289 = vmatpush3.bf16.xpose.msra.mxu1 %v787_v7  ;;  %vm1895_vm9 = vmmov %vm1889_vm0 }
 0x280   : > { %v1357_v8 = vpop.eup %1356 }
 0x281   : > { %v1359_v10 = vpop.eup %1358  ;;  %v615_v15 = vmul.f32 %v1357_v8, %v1345_v41  ;;  %v748_v30 = vpop.permute.xlu1 %747 }
 0x282   : > { %v1361_v11 = vpop.eup %1360  ;;  %v612_v18 = vmul.f32 %v1359_v10, %v1665_v16 }
 0x283   : > { %v614_v21 = vmul.f32 %v1361_v11, %v1657_v14 }
 0x284   : > { %v1363_v12 = vpop.eup %1362 }
 0x285   : > { %v613_v19 = vmul.f32 %v1363_v12, %v1347_v43  ;;  %v619_v25 = vpack.c.bf16 %v615_v15, %v614_v21  ;;  %v752_v33 = vpop.permute.xlu1 %751 }
 0x287   : > { %v618_v22 = vpack.c.bf16 %v613_v19, %v612_v18 }
 0x289   : > { %1278 = vmatprep.mubr.msk.bf16.mxu1 %vm1884_vm14, %v618_v22  ;;  %vm1896_vm14 = vmmov %vm1889_vm0 }
 0x28a   : > { %1279 = vmatmul.mubr.msk.bf16.gmra.mrb[4].mxu1 %vm1885_vm11, %v619_v25  ;;  %vm1897_vm11 = vmmov %vm1889_vm0 }
 0x28b   : > { %1290 = vmatprep.mubr.msk.bf16.mxu1 %vm1886_vm3, %v746_v28  ;;  %vm1898_vm3 = vnez %v1842_v48 }
 0x292   : > { %1291 = vmatmul.mubr.msk.bf16.vlgmr.msra.gmra.mrb[8].mxu1 %vm1887_vm10, %v748_v30  ;;  %vm1899_vm10 = vcmask 523264  }
 0x293   : > { %1294 = vmatprep.mubr.msk.bf16.mxu1 %vm1888_vm1, %v750_v32  ;;  %vm1900_vm1 = vnez %v1840_v46 }
 0x29a   : > { %1295 = vmatmul.mubr.msk.bf16.gmra.mrb[12].mxu1 %vm1889_vm0, %v752_v33  ;;  %vm1901_vm0 = vnez %v1849_v1 }
 0x320   : > { %v1276_v14 = vpop.f32.mrb[0].mxu1 }
 0x321   : > { %699 = vst.msk [vmem:[%s1731_s27 + $0x10] sm:$0xff] %vm1890_vm2, %v1276_v14  ;;  %v666_v16 = vpop.f32.mrb[1].mxu1  ;;  %vm1902_vm2 = vmmov %vm1899_vm10 }
 0x322   : > { %697 = vst.msk [vmem:[%s1731_s27] sm:$0xff] %vm1891_vm4, %v666_v16  ;;  %v1277_v35 = vpop.f32.mrb[2].mxu1  ;;  %vm1903_vm4 = vmmov %vm1902_vm2 }
 0x323   : > { %700 = vst.msk [vmem:[%s1731_s27 + $0x18] sm:$0xff] %vm1892_vm5, %v1277_v35  ;;  %v669_v5 = vpop.f32.mrb[3].mxu1  ;;  %vm1904_vm5 = vnez %v1847_v62 }
 0x324   : > { %698 = vst.msk [vmem:[%s1731_s27 + $0x8] sm:$0xff] %vm1893_vm15, %v669_v5  ;;  %vm1905_vm15 = vmmov %vm1902_vm2 }
 0x35d   : > { %v1280_v38 = vpop.f32.mrb[4].mxu1 }
 0x35e   : > { %703 = vst.msk [vmem:[%s1731_s27 + $0x30] sm:$0xff] %vm1894_vm8, %v1280_v38  ;;  %v682_v39 = vpop.f32.mrb[5].mxu1  ;;  %vm1906_vm8 = vmmov %vm1902_vm2 }
 0x35f   : > { %701 = vst.msk [vmem:[%s1731_s27 + $0x20] sm:$0xff] %vm1895_vm9, %v682_v39  ;;  %v1281_v40 = vpop.f32.mrb[6].mxu1  ;;  %vm1907_vm9 = vmmov %vm1902_vm2 }
 0x360   : > { %704 = vst.msk [vmem:[%s1731_s27 + $0x38] sm:$0xff] %vm1896_vm14, %v1281_v40  ;;  %v685_v13 = vpop.f32.mrb[7].mxu1  ;;  %vm1909_vm14 = vmmov %vm1902_vm2 }
 0x361   : > { %702 = vst.msk [vmem:[%s1731_s27 + $0x28] sm:$0xff] %vm1897_vm11, %v685_v13  ;;  %vm1913_vm11 = vmmov %vm1902_vm2 }
 0x365   : > { %v1292_v41 = vpop.f32.mrb[8].mxu1 }
 0x366   : > { %v823_v42 = vpop.f32.mrb[9].mxu1  ;;  %v856_v36 = vsel %vm1900_vm1, %v1292_v41, -1e+30  ;;  %vm1916_vm1 = vmmov %vm1902_vm2 }
 0x367   : > { %v854_v43 = vsel %vm1898_vm3, %v823_v42, -1e+30  ;;  %v1293_v3 = vpop.f32.mrb[10].mxu1  ;;  %v868_v45 = vsel %vm1903_vm4, %v856_v36, -inf  ;;  %vm1914_vm3 = vmmov %vm1902_vm2 }
 0x368   : > { %v826_v9 = vpop.f32.mrb[11].mxu1  ;;  %v862_v24 = vsel %vm1899_vm10, %v854_v43, -inf  ;;  %v857_v48 = vsel %vm1904_vm5, %v1293_v3, -1e+30  ;;  %vm1915_vm10 = vmmov %vm1902_vm2 }
 0x369   : > { %v855_v37 = vsel %vm1901_vm0, %v826_v9, -1e+30  ;;  %863 = vmax.xlane.f32.xlu0 %v862_v24  ;;  %v871_v1 = vsel %vm1905_vm15, %v857_v48, -inf  ;;  %vm1917_vm0 = vmmov %vm1916_vm1 }
 0x36a   : > { %v865_v44 = vsel %vm1902_vm2, %v855_v37, -inf  ;;  %vm1919_vm4 = vmmov %vm1917_vm0 }
 0x36b   : > { %866 = vmax.xlane.f32.xlu1 %v865_v44  ;;  %vm1920_vm5 = vmmov %vm1917_vm0 }
 0x36c   : > { %vm1921_vm15 = vmmov %vm1917_vm0 }
 0x36d   : > { %869 = vmax.xlane.f32.xlu0 %v868_v45  ;;  %v1296_v47 = vpop.f32.mrb[12].mxu1 }
 0x36e   : > { %v839_v49 = vpop.f32.mrb[13].mxu1  ;;  %v860_v53 = vsel %vm1569_vm12, %v1296_v47, -1e+30  ;;  %vm1910_vm12 = vmmov %vm1902_vm2 }
 0x36f   : > { %v858_v50 = vsel %vm1611_vm7, %v839_v49, -1e+30  ;;  %v1297_v46 = vpop.f32.mrb[14].mxu1  ;;  %vm1908_vm7 = vmmov %vm1902_vm2  ;;  %v880_v54 = vsel %vm1909_vm14, %v860_v53, -inf }
 0x370   : > { %v842_v17 = vpop.f32.mrb[15].mxu1  ;;  %v861_v51 = vsel %vm1615_vm6, %v1297_v46, -1e+30  ;;  %v874_v27 = vsel %vm1907_vm9, %v858_v50, -inf  ;;  %vm1911_vm6 = vmmov %vm1902_vm2 }
 0x371   : > { %v859_v23 = vsel %vm1619_vm13, %v842_v17, -1e+30  ;;  %872 = vmax.xlane.f32.xlu0 %v871_v1  ;;  %v883_v26 = vsel %vm1908_vm7, %v861_v51, -inf  ;;  %vm1912_vm13 = vmmov %vm1902_vm2 }
 0x372   : > { %v877_v62 = vsel %vm1906_vm8, %v859_v23, -inf  ;;  %vm1918_vm2 = vmmov %vm1917_vm0  ;;  %vm1079_vm8 = vcmask 261248  }
 0x373   : > { %878 = vmax.xlane.f32.xlu1 %v877_v62 }
 0x375   : > { %875 = vmax.xlane.f32.xlu0 %v874_v27 }
 0x377   : > { %884 = vmax.xlane.f32.xlu1 %v883_v26 }
 0x379   : > { %881 = vmax.xlane.f32.xlu0 %v880_v54 }
 0x3f6   : > { %v864_v29 = vpop.xlane.xlu0 %863 }
 0x3f7   : > { %v886_v55 = vsub.f32 %v854_v43, %v864_v29 }
 0x3f8   : > { %v867_v31 = vpop.xlane.xlu1 %866 }
 0x3f9   : > { %v894_v58 = vmul.f32 1.442695, %v886_v55  ;;  %v887_v59 = vsub.f32 %v855_v37, %v867_v31 }
 0x3fa   : > { %v870_v56 = vpop.xlane.xlu0 %869 }
 0x3fb   : > { %v888_v57 = vsub.f32 %v856_v36, %v870_v56  ;;  %v896_v0 = vmul.f32 1.442695, %v887_v59 }
 0x3fd   : > { %v898_v61 = vmul.f32 1.442695, %v888_v57 }
 0x3fe   : > { %v873_v60 = vpop.xlane.xlu0 %872 }
 0x3ff   : > { %1364 = vpow2.f32 %v898_v61  ;;  %v889_v6 = vsub.f32 %v857_v48, %v873_v60 }
 0x400   : > { %1366 = vpow2.f32 %v894_v58  ;;  %v879_v35 = vpop.xlane.xlu1 %878 }
 0x401   : > { %v900_v2 = vmul.f32 1.442695, %v889_v6  ;;  %v891_v39 = vsub.f32 %v859_v23, %v879_v35 }
 0x402   : > { %v876_v4 = vpop.xlane.xlu0 %875 }
 0x403   : > { %1368 = vpow2.f32 %v900_v2  ;;  %v890_v7 = vsub.f32 %v858_v50, %v876_v4  ;;  %v904_v13 = vmul.f32 1.442695, %v891_v39 }
 0x404   : > { %1370 = vpow2.f32 %v896_v0  ;;  %v885_v5 = vpop.xlane.xlu1 %884 }
 0x405   : > { %v902_v12 = vmul.f32 1.442695, %v890_v7  ;;  %v893_v38 = vsub.f32 %v861_v51, %v885_v5 }
 0x406   : > { %v882_v8 = vpop.xlane.xlu0 %881 }
 0x407   : > { %v892_v10 = vsub.f32 %v860_v53, %v882_v8  ;;  %v908_v40 = vmul.f32 1.442695, %v893_v38 }
 0x409   : > { %v1773_v11 = vpop.eup %1364  ;;  %v906_v15 = vmul.f32 1.442695, %v892_v10 }
 0x40a   : > { %v916_v18 = vsel %vm1910_vm12, %v1773_v11, 0.0  ;;  %v1367_v19 = vpop.eup %1366 }
 0x40b   : > { %1372 = vpow2.f32 %v906_v15  ;;  %917 = vadd.xlane.f32.xlu0 %v916_v18  ;;  %v910_v22 = vsel %vm1911_vm6, %v1367_v19, 0.0 }
 0x40c   : > { %1374 = vpow2.f32 %v902_v12 }
 0x40d   : > { %v1777_v21 = vpop.eup %1368  ;;  %1376 = vpow2.f32 %v908_v40 }
 0x40e   : > { %v919_v25 = vsel %vm1912_vm13, %v1777_v21, 0.0  ;;  %v1371_v28 = vpop.eup %1370  ;;  %1378 = vpow2.f32 %v904_v13 }
 0x40f   : > { %911 = vadd.xlane.f32.xlu0 %v910_v22  ;;  %920 = vadd.xlane.f32.xlu1 %v919_v25  ;;  %v913_v30 = vsel %vm1913_vm11, %v1371_v28, 0.0 }
 0x413   : > { %914 = vadd.xlane.f32.xlu1 %v913_v30 }
 0x415   : > { %v1783_v32 = vpop.eup %1372 }
 0x416   : > { %v928_v33 = vsel %vm1914_vm3, %v1783_v32, 0.0  ;;  %v1787_v14 = vpop.eup %1374 }
 0x417   : > { %929 = vadd.xlane.f32.xlu0 %v928_v33  ;;  %v922_v16 = vsel %vm1915_vm10, %v1787_v14, 0.0  ;;  %v1377_v41 = vpop.eup %1376 }
 0x418   : > { %v931_v42 = vsel %vm1916_vm1, %v1377_v41, 0.0  ;;  %v1379_v43 = vpop.eup %1378 }
 0x41b   : > { %923 = vadd.xlane.f32.xlu0 %v922_v16 }
 0x424   : > { %960 = vrot.lane.b32.xlu1 %v1673_v52, %s1404_s24  ;;  %v925_v52 = vsel %vm1917_vm0, %v1379_v43, 0.0 }
 0x428   : > { %962 = vrot.lane.b32.xlu1 %v1677_v63, %s1404_s24 }
 0x431   : > { %958 = vrot.lane.b32.xlu0 %v1667_v20, %s1404_s24 }
 0x44c   : > { %932 = vadd.xlane.f32.xlu1 %v931_v42 }
 0x450   : > { %926 = vadd.xlane.f32.xlu1 %v925_v52 }
 0x461   : > { %964 = vrot.lane.b32.xlu1 %v1683_v34, %s1404_s24 }
 0x498   : > { %v918_v63 = vpop.xlane.xlu0 %917 }
 0x49c   : > { %v912_v20 = vpop.xlane.xlu0 %911  ;;  %v921_v3 = vpop.xlane.xlu1 %920 }
 0x49d   : > { %1380 = vrcp.f32 %v912_v20 }
 0x4a0   : > { %v915_v9 = vpop.xlane.xlu1 %914 }
 0x4a1   : > { %1382 = vrcp.f32 %v915_v9 }
 0x4a2   : > { %1384 = vrcp.f32 %v921_v3 }
 0x4a3   : > { %1386 = vrcp.f32 %v918_v63 }
 0x4a4   : > { %v930_v24 = vpop.xlane.xlu0 %929  ;;  %v961_v45 = vpop.permute.xlu1 %960 }
 0x4a7   : > { %v1381_v37 = vpop.eup %1380 }
 0x4a8   : > { %v924_v36 = vpop.xlane.xlu0 %923  ;;  %v942_v47 = vmul.f32 %v1381_v37, %v1367_v19  ;;  %v963_v34 = vpop.permute.xlu1 %962 }
 0x4ab   : > { %v1383_v44 = vpop.eup %1382 }
 0x4ac   : > { %v959_v48 = vpop.permute.xlu0 %958  ;;  %v943_v49 = vmul.f32 %v1383_v44, %v1371_v28  ;;  %v1385_v17 = vpop.eup %1384 }
 0x4ad   : > { %1298 = vmatprep.subr.bf16.mxu0 %v959_v48  ;;  %v1387_v51 = vpop.eup %1386  ;;  %v945_v23 = vmul.f32 %v1385_v17, %v1777_v21 }
 0x4ae   : > { %1299 = vmatpush3.bf16.msra.mxu0 %v959_v48  ;;  %v950_v50 = vpack.c.bf16 %v943_v49, %v942_v47  ;;  %v944_v27 = vmul.f32 %v1387_v51, %v1773_v11 }
 0x4af   : > { %1300 = vmatprep.subr.bf16.mxu0 %v961_v45 }
 0x4b0   : > { %1306 = vmatprep.mubr.msk.bf16.mxu0 %vm1918_vm2, %v950_v50  ;;  %v951_v53 = vpack.c.bf16 %v945_v23, %v944_v27 }
 0x4b2   : > { %1301 = vmatpush3.bf16.msra.mxu0 %v961_v45 }
 0x4b3   : > { %1302 = vmatprep.subr.bf16.mxu0 %v963_v34 }
 0x4b6   : > { %1303 = vmatpush3.bf16.msra.mxu0 %v963_v34 }
 0x4d9   : > { %v933_v46 = vpop.xlane.xlu1 %932 }
 0x4da   : > { %1388 = vrcp.f32 %v933_v46 }
 0x4db   : > { %1390 = vrcp.f32 %v924_v36 }
 0x4dc   : > { %1392 = vrcp.f32 %v930_v24 }
 0x4dd   : > { %v927_v1 = vpop.xlane.xlu1 %926 }
 0x4de   : > { %1394 = vrcp.f32 %v927_v1 }
 0x4e1   : > { %v965_v62 = vpop.permute.xlu1 %964 }
 0x4e2   : > { %1304 = vmatprep.subr.bf16.mxu0 %v965_v62 }
 0x4e3   : > { %1305 = vmatpush3.bf16.msra.mxu0 %v965_v62 }
 0x4e4   : > { %v1389_v26 = vpop.eup %1388 }
 0x4e5   : > { %v1391_v54 = vpop.eup %1390  ;;  %v949_v31 = vmul.f32 %v1389_v26, %v1377_v41 }
 0x4e6   : > { %1307 = vmatmul.mubr.msk.bf16.vlgmr.msra.gmra.mrb[8].mxu0 %vm1919_vm4, %v951_v53  ;;  %v1393_v29 = vpop.eup %1392  ;;  %v946_v56 = vmul.f32 %v1391_v54, %v1787_v14 }
 0x4e7   : > { %v948_v58 = vmul.f32 %v1393_v29, %v1783_v32 }
 0x4e8   : > { %v1395_v55 = vpop.eup %1394 }
 0x4e9   : > { %v947_v57 = vmul.f32 %v1395_v55, %v1379_v43  ;;  %v953_v61 = vpack.c.bf16 %v949_v31, %v948_v58 }
 0x4eb   : > { %v952_v59 = vpack.c.bf16 %v947_v57, %v946_v56 }
 0x4ed   : > { %1310 = vmatprep.mubr.msk.bf16.mxu0 %vm1920_vm5, %v952_v59 }
 0x4ee   : > { %1311 = vmatmul.mubr.msk.bf16.gmra.mrb[12].mxu0 %vm1921_vm15, %v953_v61 }
 0x5b9   : > { %v1308_v60 = vpop.f32.mrb[8].mxu0 }
 0x5ba   : > { %1059 = vrot.lane.b32.xlu0 %v1308_v60, %s1405_s28  ;;  %v1016_v6 = vpop.f32.mrb[9].mxu0 }
 0x5bb   : > { %v1309_v0 = vpop.f32.mrb[10].mxu0 }
 0x5bc   : > { %1061 = vrot.lane.b32.xlu1 %v1309_v0, %s1405_s28  ;;  %v1019_v2 = vpop.f32.mrb[11].mxu0 }
 0x5be   : > { %1055 = vrot.lane.b32.xlu0 %v1016_v6, %s1405_s28 }
 0x5c0   : > { %1057 = vrot.lane.b32.xlu1 %v1019_v2, %s1405_s28 }
 0x5c1   : > { %v1312_v4 = vpop.f32.mrb[12].mxu0 }
 0x5c2   : > { %v1032_v7 = vpop.f32.mrb[13].mxu0 }
 0x5c3   : > { %1063 = vrot.lane.b32.xlu0 %v1032_v7, %s1405_s28  ;;  %v1313_v8 = vpop.f32.mrb[14].mxu0 }
 0x5c4   : > { %v1035_v10 = vpop.f32.mrb[15].mxu0 }
 0x5c5   : > { %1065 = vrot.lane.b32.xlu1 %v1035_v10, %s1405_s28 }
 0x5c7   : > { %1067 = vrot.lane.b32.xlu0 %v1312_v4, %s1405_s28 }
 0x5c9   : > { %1069 = vrot.lane.b32.xlu1 %v1313_v8, %s1405_s28 }
 0x62c   : > { %v1060_v11 = vpop.permute.xlu0 %1059 }
 0x62d   : > { %1082 = vst.msk [vmem:[%s1731_s27 + $0x10] sm:$0xff] %vm1079_vm8, %v1060_v11 }
 0x62e   : > { %v1062_v12 = vpop.permute.xlu1 %1061 }
 0x62f   : > { %1083 = vst.msk [vmem:[%s1731_s27 + $0x18] sm:$0xff] %vm1079_vm8, %v1062_v12 }
 0x630   : > { %v1056_v15 = vpop.permute.xlu0 %1055 }
 0x631   : > { %1080 = vst.msk [vmem:[%s1731_s27] sm:$0xff] %vm1079_vm8, %v1056_v15 }
 0x632   : > { %v1058_v18 = vpop.permute.xlu1 %1057 }
 0x633   : > { %1081 = vst.msk [vmem:[%s1731_s27 + $0x8] sm:$0xff] %vm1079_vm8, %v1058_v18 }
 0x635   : > { %v1064_v19 = vpop.permute.xlu0 %1063 }
 0x636   : > { %1084 = vst.msk [vmem:[%s1731_s27 + $0x20] sm:$0xff] %vm1079_vm8, %v1064_v19 }
 0x637   : > { %v1066_v21 = vpop.permute.xlu1 %1065 }
 0x638   : > { %1085 = vst.msk [vmem:[%s1731_s27 + $0x28] sm:$0xff] %vm1079_vm8, %v1066_v21 }
 0x639   : > { %v1068_v22 = vpop.permute.xlu0 %1067 }
 0x63a   : > { %1086 = vst.msk [vmem:[%s1731_s27 + $0x30] sm:$0xff] %vm1079_vm8, %v1068_v22 }
 0x63b   : > { %v1070_v25 = vpop.permute.xlu1 %1069 }
 0x63c   : > { %1087 = vst.msk [vmem:[%s1731_s27 + $0x38] sm:$0xff] %vm1079_vm8, %v1070_v25 }
 0x63d PF: > { %s13_s12 = sadd.s32 1, %s1402_s12  }
 0x63e   : > { %p10_p4 = scmp.ge.s32.totalorder %s13_s12, 4  }
 0x640   :  { %12 = sbr.rel (!%p10_p4) target bundleno = 1 (0x1), region = 68 }

// kernel: block_forward.15
= control target key start
LH: loop header
LB: loop body
LE: loop exit
PB: predicated region body
PF: predicated region fallthrough
CT: control target
= control target key end

     0   :  { %s788_s18 = smov 0   ;;  %s1016_s0 = inlined_call_operand.vmem [shape: f32[2,64,128], index: 0, kind: input, shape index: {}]   ;;  %s1017_s1 = inlined_call_operand.vmem [shape: f32[128,384], index: 1, kind: input, shape index: {}]   ;;  %s1018_s2 = inlined_call_operand.vmem [shape: f32[1,128], index: 2, kind: input, shape index: {}]   ;;  %s1019_s3 = inlined_call_operand.vmem [shape: f32[1,128], index: 3, kind: input, shape index: {}]   ;;  %s1020_s4 = inlined_call_operand.vmem [shape: f32[1,128], index: 4, kind: input, shape index: {}]   ;;  %s1021_s5 = inlined_call_operand.vmem [shape: f32[2,64,128], index: 5, kind: output, shape index: {}]  }
   0x1 LB: > { %s647_s19 = sadd.s32 4294967295, %s747_s18   ;;  %p651_p0 = scmp.ge.s32.totalorder %s747_s18, 1  ;;  %s747_s18 = sphi %s788_s18, %s15_s18  }
   0x2   : > { %p187_p1 = scmp.lt.s32.totalorder %s747_s18, 3 }
   0x4   : > { %p188_p2 = pnand %p651_p0, %p187_p1 }
   0x5   : > { %v239_v0 = vld [vmem:[%s1017_s1 + $0x8] sm:$0xff] (!%p188_p2)  ;;  %v242_v1 = vld [vmem:[%s1017_s1 + $0x20] sm:$0xff] (!%p188_p2)  ;;  %p215_p3 = scmp.lt.s32.totalorder (!%p188_p2), %s647_s19, 1  ;;  %v241_v4 = vld [vmem:[%s1017_s1 + $0x18] sm:$0xff] (!%p188_p2)  ;;  %v757_v7 = vmov (!%p188_p2), 0  }
   0x6   : > { %191 = sbr.rel (%p188_p2) target bundleno = 361 (0x169), region = 40  ;;  %v238_v2 = vld [vmem:[%s1017_s1] sm:$0xff] (!%p188_p2)  ;;  %v287_v3 = vpack.c.bf16 (!%p188_p2), %v242_v1, %v239_v0  ;;  %v245_v5 = vld [vmem:[%s1017_s1 + $0x38] sm:$0xff] (!%p188_p2)  ;;  %v248_v6 = vld [vmem:[%s1017_s1 + $0x50] sm:$0xff] (!%p188_p2)  ;;  %342 = vmatprep.mubr.bf16.mxu0 (!%p188_p2), %v757_v7 }
   0x7   : > { %v286_v8 = vpack.c.bf16 (!%p188_p2), %v241_v4, %v238_v2  ;;  %v290_v9 = vpack.c.bf16 (!%p188_p2), %v248_v6, %v245_v5  ;;  %v244_v10 = vld [vmem:[%s1017_s1 + $0x30] sm:$0xff] (!%p188_p2)  ;;  %v247_v11 = vld [vmem:[%s1017_s1 + $0x48] sm:$0xff] (!%p188_p2)  ;;  %v254_v13 = vld [vmem:[%s1017_s1 + $0x80] sm:$0xff] (!%p188_p2) }
   0x8   : > { %v251_v12 = vld [vmem:[%s1017_s1 + $0x68] sm:$0xff] (!%p188_p2)  ;;  %310 = vmatprep.subr.bf16.mxu0 (!%p188_p2), %v287_v3  ;;  %v289_v14 = vpack.c.bf16 (!%p188_p2), %v247_v11, %v244_v10  ;;  %v250_v15 = vld [vmem:[%s1017_s1 + $0x60] sm:$0xff] (!%p188_p2)  ;;  %v253_v17 = vld [vmem:[%s1017_s1 + $0x78] sm:$0xff] (!%p188_p2) }
   0x9   : > { %311 = vmatpush1.bf16.msra.mxu0 (!%p188_p2), %v286_v8  ;;  %v293_v16 = vpack.c.bf16 (!%p188_p2), %v254_v13, %v251_v12  ;;  %v240_v18 = vld [vmem:[%s1017_s1 + $0x10] sm:$0xff] (!%p188_p2)  ;;  %v243_v19 = vld [vmem:[%s1017_s1 + $0x28] sm:$0xff] (!%p188_p2)  ;;  %v257_v20 = vld [vmem:[%s1017_s1 + $0x98] sm:$0xff] (!%p188_p2)  ;;  %v292_v25 = vpack.c.bf16 (!%p188_p2), %v253_v17, %v250_v15 }
   0xa   : > { %312 = vmatprep.subr.bf16.mxu0 (!%p188_p2), %v290_v9  ;;  %v260_v21 = vld [vmem:[%s1017_s1 + $0xb0] sm:$0xff] (!%p188_p2)  ;;  %v288_v22 = vpack.c.bf16 (!%p188_p2), %v243_v19, %v240_v18  ;;  %v246_v23 = vld [vmem:[%s1017_s1 + $0x40] sm:$0xff] (!%p188_p2)  ;;  %v249_v24 = vld [vmem:[%s1017_s1 + $0x58] sm:$0xff] (!%p188_p2) }
   0xb   : > { %v256_v26 = vld [vmem:[%s1017_s1 + $0x90] sm:$0xff] (!%p188_p2)  ;;  %v291_v27 = vpack.c.bf16 (!%p188_p2), %v249_v24, %v246_v23  ;;  %v296_v28 = vpack.c.bf16 (!%p188_p2), %v260_v21, %v257_v20  ;;  %v259_v29 = vld [vmem:[%s1017_s1 + $0xa8] sm:$0xff] (!%p188_p2)  ;;  %v266_v33 = vld [vmem:[%s1017_s1 + $0xe0] sm:$0xff] (!%p188_p2) }
   0xc   : > { %678 = vmatprep.subr.bf16.mxu1 (!%p188_p2), %v288_v22  ;;  %v252_v30 = vld [vmem:[%s1017_s1 + $0x70] sm:$0xff] (!%p188_p2)  ;;  %v255_v31 = vld [vmem:[%s1017_s1 + $0x88] sm:$0xff] (!%p188_p2)  ;;  %v258_v35 = vld [vmem:[%s1017_s1 + $0xa0] sm:$0xff] (!%p188_p2)  ;;  %v295_v37 = vpack.c.bf16 (!%p188_p2), %v259_v29, %v256_v26 }
   0xd   : > { %s1023_s19 = smov (!%p215_p3, %s647_s19), 1  ;;  %313 = vmatpush1.bf16.msra.mxu0 %v289_v14  ;;  %679 = vmatpush3.bf16.msra.mxu1 %v288_v22  ;;  %v263_v32 = vld [vmem:[%s1017_s1 + $0xc8] sm:$0xff]  ;;  %v294_v34 = vpack.c.bf16 %v255_v31, %v252_v30  ;;  %v261_v36 = vld [vmem:[%s1017_s1 + $0xb8] sm:$0xff]  ;;  %v262_v39 = vld [vmem:[%s1017_s1 + $0xc0] sm:$0xff] }
   0xe   : > { %s663_s17 = sshll.u32 %s1023_s19, 6  ;;  %314 = vmatprep.subr.bf16.mxu0 %v293_v16  ;;  %680 = vmatprep.subr.bf16.mxu1 %v291_v27  ;;  %v299_v38 = vpack.c.bf16 %v266_v33, %v263_v32  ;;  %v265_v40 = vld [vmem:[%s1017_s1 + $0xd8] sm:$0xff]  ;;  %v272_v42 = vld [vmem:[%s1017_s1 + $0x110] sm:$0xff]  ;;  %v297_v43 = vpack.c.bf16 %v261_v36, %v258_v35  ;;  %v267_v47 = vld [vmem:[%s1017_s1 + $0xe8] sm:$0xff] }
   0xf   : > { %s847_s28 = scalar_lea.vmem %s1021_s5, %s663_s17  ;;  %s890_s9 = scalar_lea.vmem %s1016_s0, %s663_s17  ;;  %v269_v41 = vld [vmem:[%s1017_s1 + $0xf8] sm:$0xff]  ;;  %v264_v46 = vld [vmem:[%s1017_s1 + $0xd0] sm:$0xff]  ;;  %v298_v48 = vpack.c.bf16 %v265_v40, %v262_v39  ;;  %v271_v52 = vld [vmem:[%s1017_s1 + $0x108] sm:$0xff] }
  0x10   : > { %v226_v44 = vld [vmem:[%s890_s9] sm:$0xff]  ;;  %v227_v45 = vld [vmem:[%s890_s9 + $0x8] sm:$0xff]  ;;  %v302_v50 = vpack.c.bf16 %v272_v42, %v269_v41  ;;  %v268_v51 = vld [vmem:[%s1017_s1 + $0xf0] sm:$0xff]  ;;  %v300_v55 = vpack.c.bf16 %v267_v47, %v264_v46  ;;  %s986_s17 = smov 0  }
  0x11   : > { %315 = vmatpush1.bf16.msra.mxu0 %v292_v25  ;;  %681 = vmatpush3.bf16.msra.mxu1 %v291_v27  ;;  %v234_v49 = vpack.c.bf16 %v227_v45, %v226_v44  ;;  %v275_v53 = vld [vmem:[%s1017_s1 + $0x128] sm:$0xff]  ;;  %v278_v54 = vld [vmem:[%s1017_s1 + $0x140] sm:$0xff]  ;;  %v273_v57 = vld [vmem:[%s1017_s1 + $0x118] sm:$0xff]  ;;  %v301_v58 = vpack.c.bf16 %v271_v52, %v268_v51 }
  0x12   : > { %316 = vmatprep.subr.bf16.mxu0 %v296_v28  ;;  %682 = vmatprep.subr.bf16.mxu1 %v294_v34  ;;  %v270_v56 = vld [vmem:[%s1017_s1 + $0x100] sm:$0xff]  ;;  %v305_v59 = vpack.c.bf16 %v278_v54, %v275_v53  ;;  %v277_v61 = vld [vmem:[%s1017_s1 + $0x138] sm:$0xff]  ;;  %v284_v63 = vld [vmem:[%s1017_s1 + $0x170] sm:$0xff] }
  0x13   : > { %694 = vmatprep.mubr.bf16.mxu1 %v234_v49  ;;  %v274_v60 = vld [vmem:[%s1017_s1 + $0x120] sm:$0xff]  ;;  %v281_v62 = vld [vmem:[%s1017_s1 + $0x158] sm:$0xff]  ;;  %v303_v0 = vpack.c.bf16 %v273_v57, %v270_v56  ;;  %v276_v1 = vld [vmem:[%s1017_s1 + $0x130] sm:$0xff] }
  0x14   : > { %v279_v2 = vld [vmem:[%s1017_s1 + $0x148] sm:$0xff]  ;;  %v304_v3 = vpack.c.bf16 %v277_v61, %v274_v60  ;;  %v308_v4 = vpack.c.bf16 %v284_v63, %v281_v62  ;;  %v280_v5 = vld [vmem:[%s1017_s1 + $0x150] sm:$0xff]  ;;  %v282_v9 = vld [vmem:[%s1017_s1 + $0x160] sm:$0xff] }
  0x15   : > { %317 = vmatpush1.bf16.msra.mxu0 %v295_v37  ;;  %683 = vmatpush3.bf16.msra.mxu1 %v294_v34  ;;  %v283_v6 = vld [vmem:[%s1017_s1 + $0x168] sm:$0xff]  ;;  %v306_v8 = vpack.c.bf16 %v279_v2, %v276_v1  ;;  %v285_v10 = vld [vmem:[%s1017_s1 + $0x178] sm:$0xff]  ;;  %v228_v13 = vld [vmem:[%s890_s9 + $0x10] sm:$0xff] }
  0x16   : > { %318 = vmatprep.subr.bf16.mxu0 %v299_v38  ;;  %684 = vmatprep.subr.bf16.mxu1 %v297_v43  ;;  %v307_v11 = vpack.c.bf16 %v283_v6, %v280_v5  ;;  %v309_v12 = vpack.c.bf16 %v285_v10, %v282_v9  ;;  %v229_v14 = vld [vmem:[%s890_s9 + $0x18] sm:$0xff]  ;;  %v230_v15 = vld [vmem:[%s890_s9 + $0x20] sm:$0xff]  ;;  %v231_v16 = vld [vmem:[%s890_s9 + $0x28] sm:$0xff] }
  0x17   : > { %v235_v17 = vpack.c.bf16 %v229_v14, %v228_v13  ;;  %v236_v18 = vpack.c.bf16 %v231_v16, %v230_v15  ;;  %v232_v19 = vld [vmem:[%s890_s9 + $0x30] sm:$0xff]  ;;  %v233_v20 = vld [vmem:[%s890_s9 + $0x38] sm:$0xff]  ;;  %v972_v22 = vld [vmem:[%s1018_s2] ss:$0 sm:$0xff] }
  0x18   : > { %v237_v21 = vpack.c.bf16 %v233_v20, %v232_v19  ;;  %v977_v23 = vld [vmem:[%s1019_s3] ss:$0 sm:$0xff] }
  0x19   : > { %319 = vmatpush1.bf16.msra.mxu0 %v298_v48  ;;  %685 = vmatpush3.bf16.msra.mxu1 %v297_v43  ;;  %v982_v24 = vld [vmem:[%s1020_s4] ss:$0 sm:$0xff]  ;;  %v984_v48 = vmov 0.0  }
  0x1a   : > { %320 = vmatprep.subr.bf16.mxu0 %v302_v50  ;;  %686 = vmatprep.subr.bf16.mxu1 %v300_v55 }
  0x1d   : > { %321 = vmatpush1.bf16.msra.mxu0 %v301_v58  ;;  %687 = vmatpush3.bf16.msra.mxu1 %v300_v55 }
  0x1e   : > { %322 = vmatprep.subr.bf16.mxu0 %v305_v59  ;;  %688 = vmatprep.subr.bf16.mxu1 %v303_v0 }
  0x21   : > { %323 = vmatpush1.bf16.msra.mxu0 %v304_v3  ;;  %689 = vmatpush3.bf16.msra.mxu1 %v303_v0 }
  0x22   : > { %324 = vmatprep.subr.bf16.mxu0 %v308_v4  ;;  %690 = vmatprep.subr.bf16.mxu1 %v306_v8 }
  0x25   : > { %325 = vmatpush1.bf16.msra.mxu0 %v307_v11  ;;  %691 = vmatpush3.bf16.msra.mxu1 %v306_v8 }
  0x26   : > { %692 = vmatprep.subr.bf16.mxu1 %v309_v12 }
  0x28   : > { %343 = vmatmul.mubr.bf16.vlgmr.msra.gmra.mrb[0].mxu0 %v234_v49 }
  0x29   : > { %352 = vmatprep.mubr.bf16.mxu0 %v757_v7  ;;  %693 = vmatpush3.bf16.msra.mxu1 %v309_v12 }
  0x2c   : > { %695 = vmatmul.mubr.bf16.vlgmr.msra.gmra.mrb[0].mxu1 %v235_v17 }
  0x2d   : > { %698 = vmatprep.mubr.bf16.mxu1 %v236_v18 }
  0x30   : > { %353 = vmatmul.mubr.bf16.gmra.mrb[4].mxu0 %v235_v17 }
  0x31   : > { %362 = vmatprep.mubr.bf16.mxu0 %v757_v7 }
  0x34   : > { %699 = vmatmul.mubr.bf16.gmra.mrb[4].mxu1 %v237_v21 }
  0x38   : > { %363 = vmatmul.mubr.bf16.gmra.mrb[8].mxu0 %v236_v18 }
  0x39   : > { %372 = vmatprep.mubr.bf16.mxu0 %v757_v7 }
  0x40   : > { %373 = vmatmul.mubr.bf16.gmra.mrb[12].mxu0 %v237_v21 }
  0xfb   : > { %v344_v25 = vpop.f32.mrb[0].mxu0 }
  0xfc   : > { %448 = vst [vmem:[#allocation2] sm:$0xff] %v344_v25  ;;  %v346_v26 = vpop.f32.mrb[1].mxu0 }
  0xfd   : > { %449 = vst [vmem:[#allocation2 + $0x8] sm:$0xff] %v346_v26  ;;  %v348_v7 = vpop.f32.mrb[2].mxu0 }
  0xfe   : > { %451 = vst [vmem:[#allocation2 + $0x18] sm:$0xff] %v348_v7  ;;  %v350_v27 = vpop.f32.mrb[3].mxu0 }
  0xff   : > { %452 = vst [vmem:[#allocation2 + $0x20] sm:$0xff] %v350_v27  ;;  %v696_v28 = vpop.f32.mrb[0].mxu1 }
 0x100   : > { %456 = vst [vmem:[#allocation2 + $0x40] sm:$0xff] %v696_v28  ;;  %v417_v29 = vpop.f32.mrb[1].mxu1 }
 0x101   : > { %450 = vst [vmem:[#allocation2 + $0x10] sm:$0xff] %v417_v29  ;;  %v697_v30 = vpop.f32.mrb[2].mxu1 }
 0x102   : > { %459 = vst [vmem:[#allocation2 + $0x58] sm:$0xff] %v697_v30  ;;  %v420_v32 = vpop.f32.mrb[3].mxu1 }
 0x103   : > { %v354_v31 = vpop.f32.mrb[4].mxu0  ;;  %453 = vst [vmem:[#allocation2 + $0x28] sm:$0xff] %v420_v32 }
 0x104   : > { %454 = vst [vmem:[#allocation2 + $0x30] sm:$0xff] %v354_v31  ;;  %v356_v33 = vpop.f32.mrb[5].mxu0 }
 0x105   : > { %455 = vst [vmem:[#allocation2 + $0x38] sm:$0xff] %v356_v33  ;;  %v358_v34 = vpop.f32.mrb[6].mxu0 }
 0x106   : > { %457 = vst [vmem:[#allocation2 + $0x48] sm:$0xff] %v358_v34  ;;  %v360_v35 = vpop.f32.mrb[7].mxu0 }
 0x107   : > { %458 = vst [vmem:[#allocation2 + $0x50] sm:$0xff] %v360_v35  ;;  %v700_v36 = vpop.f32.mrb[4].mxu1 }
 0x108   : > { %468 = vst [vmem:[#allocation2 + $0xa0] sm:$0xff] %v700_v36  ;;  %v433_v37 = vpop.f32.mrb[5].mxu1 }
 0x109   : > { %462 = vst [vmem:[#allocation2 + $0x70] sm:$0xff] %v433_v37  ;;  %v701_v38 = vpop.f32.mrb[6].mxu1 }
 0x10a   : > { %471 = vst [vmem:[#allocation2 + $0xb8] sm:$0xff] %v701_v38  ;;  %v436_v40 = vpop.f32.mrb[7].mxu1 }
 0x10b   : > { %v364_v39 = vpop.f32.mrb[8].mxu0  ;;  %465 = vst [vmem:[#allocation2 + $0x88] sm:$0xff] %v436_v40 }
 0x10c   : > { %460 = vst [vmem:[#allocation2 + $0x60] sm:$0xff] %v364_v39  ;;  %v366_v41 = vpop.f32.mrb[9].mxu0 }
 0x10d   : > { %461 = vst [vmem:[#allocation2 + $0x68] sm:$0xff] %v366_v41  ;;  %v368_v42 = vpop.f32.mrb[10].mxu0 }
 0x10e   : > { %463 = vst [vmem:[#allocation2 + $0x78] sm:$0xff] %v368_v42  ;;  %v370_v43 = vpop.f32.mrb[11].mxu0 }
 0x10f   : > { %464 = vst [vmem:[#allocation2 + $0x80] sm:$0xff] %v370_v43 }
 0x113   : > { %v374_v44 = vpop.f32.mrb[12].mxu0 }
 0x114   : > { %466 = vst [vmem:[#allocation2 + $0x90] sm:$0xff] %v374_v44  ;;  %v376_v45 = vpop.f32.mrb[13].mxu0 }
 0x115   : > { %467 = vst [vmem:[#allocation2 + $0x98] sm:$0xff] %v376_v45  ;;  %v378_v46 = vpop.f32.mrb[14].mxu0 }
 0x116   : > { %469 = vst [vmem:[#allocation2 + $0xa8] sm:$0xff] %v378_v46  ;;  %v380_v47 = vpop.f32.mrb[15].mxu0 }
 0x117   : > { %470 = vst [vmem:[#allocation2 + $0xb0] sm:$0xff] %v380_v47 }
 0x118 LB: >> { %s993_s15 = sshll.u32 %s755_s17, 3  ;;  %vm528_vm2 = vcmask 1040384   ;;  %v561_v9 = vlaneseq  ;;  %vm540_vm3 = vcmask 1041408   ;;  %vm552_vm4 = vcmask 1043456   ;;  %s480_s17 = sadd.s32 1, %s755_s17   ;;  %s755_s17 = sphi %s986_s17, %s480_s17   ;;  %v751_v48 = vphi %v984_v48, %v566_v48  }
 0x119   : >> { %s485_s16 = sshra.s32 %s993_s15, 3  ;;  %s483_s22 = scalar_lea.vmem %s890_s9, %s993_s15 }
 0x11a   : >> { %s665_s20 = smul.u32 24, %s485_s16  ;;  %v484_v2 = vld [vmem:[%s483_s22] sm:$0xff]  ;;  %v562_v15 = vshrl.u32 %v561_v9, 7  ;;  %s576_s23 = scalar_lea.vmem %s847_s28, %s993_s15 }
 0x11b   : >> { %v574_v36 = vmul.f32 %v977_v23, %v484_v2  ;;  %p477_p4 = scmp.ge.s32.totalorder %s480_s17, 8  }
 0x11c   : >> { %s996_s21 = scalar_lea.vmem [#allocation2], %s665_s20  ;;  %v563_v21 = vsub.s32 7, %v562_v15 }
 0x11e   : >> { %v492_v49 = vld [vmem:[%s996_s21 + $0x10] sm:$0xff]  ;;  %v490_v61 = vld [vmem:[%s996_s21] sm:$0xff]  ;;  %v564_v28 = vrot.slane %v751_v48, %v563_v21  ;;  %v491_v35 = vld [vmem:[%s996_s21 + $0x8] sm:$0xff] }
 0x11f   : >> { %v499_v50 = vadd.f32 %v982_v24, %v492_v49 }
 0x121   : >> { %v501_v51 = vmin.f32 %v499_v50, 20.0  ;;  %vm500_vm1 = vcmp.gt.f32.partialorder %v499_v50, 20.0 }
 0x123   : >> { %v502_v52 = vmul.f32 1.442695, %v501_v51 }
 0x125   : >> { %727 = vpow2.f32 %v502_v52 }
 0x12f   : >> { %v728_v53 = vpop.eup %727 }
 0x130   : >> { %v504_v54 = vadd.f32 1.0, %v728_v53  ;;  %v507_v55 = vmul.f32 -0.5, %v728_v53  ;;  %v510_v57 = vand.u32 2147483647, %v728_v53 }
 0x132   : >> { %729 = vlog2.f32 %v504_v54  ;;  %v508_v56 = vadd.f32 1.0, %v507_v55  ;;  %vm511_vm0 = vcmp.lt.f32.partialorder %v510_v57, 0.0004427343 }
 0x134   : >> { %v509_v58 = vmul.f32 %v728_v53, %v508_v56 }
 0x13c   : >> { %v730_v59 = vpop.eup %729 }
 0x13d   : >> { %v506_v60 = vmul.f32 0.6931472, %v730_v59 }
 0x13f   : >> { %v512_v62 = vsel %vm511_vm0, %v509_v58, %v506_v60 }
 0x140   : >> { %v513_v63 = vsel %vm500_vm1, %v499_v50, %v512_v62 }
 0x141   : >> { %v520_v0 = vmul.f32 %v972_v22, %v513_v63  ;;  %v523_v1 = vmul.f32 %v513_v63, %v490_v61 }
 0x143   : >> { %v521_v3 = vmul.f32 1.442695, %v520_v0  ;;  %v524_v4 = vmul.f32 %v523_v1, %v484_v2 }
 0x145   : >> { %731 = vpow2.f32 %v521_v3  ;;  %v531_v5 = vrot.slane %v524_v4, 7 }
 0x147   : >> { %v533_v6 = vsel %vm528_vm2, 0.0, %v531_v5 }
 0x14f   : >> { %v732_v8 = vpop.eup %731 }
 0x150   : >> { %v526_v10 = vrot.slane %v732_v8, 7  ;;  %v534_v11 = vmul.f32 %v732_v8, %v533_v6 }
 0x152   : >> { %v529_v12 = vsel %vm528_vm2, 1.0, %v526_v10  ;;  %v535_v13 = vadd.f32 %v534_v11, %v524_v4 }
 0x153   : >> { %v536_v14 = vmul.f32 %v732_v8, %v529_v12 }
 0x154   : >> { %v543_v16 = vrot.slane %v535_v13, 6 }
 0x155   : >> { %v538_v17 = vrot.slane %v536_v14, 6 }
 0x156   : >> { %v545_v18 = vsel %vm540_vm3, 0.0, %v543_v16 }
 0x157   : >> { %v541_v19 = vsel %vm540_vm3, 1.0, %v538_v17  ;;  %v546_v20 = vmul.f32 %v545_v18, %v536_v14 }
 0x158   : >> { %v548_v25 = vmul.f32 %v541_v19, %v536_v14 }
 0x159   : >> { %v547_v26 = vadd.f32 %v546_v20, %v535_v13 }
 0x15a   : >> { %v550_v7 = vrot.slane %v548_v25, 4 }
 0x15b   : >> { %v555_v27 = vrot.slane %v547_v26, 4 }
 0x15c   : >> { %v553_v29 = vsel %vm552_vm4, 1.0, %v550_v7 }
 0x15d   : >> { %v557_v30 = vsel %vm552_vm4, 0.0, %v555_v27  ;;  %v560_v31 = vmul.f32 %v553_v29, %v548_v25 }
 0x15e   : >> { %v558_v32 = vmul.f32 %v557_v30, %v548_v25 }
 0x15f   : >> { %v565_v33 = vmul.f32 %v564_v28, %v560_v31 }
 0x160   : >> { %v559_v34 = vadd.f32 %v558_v32, %v547_v26 }
 0x162   : >> { %v566_v48 = vadd.f32 %v565_v33, %v559_v34   ;;  %479 = sbr.rel (!%p477_p4) target bundleno = 280 (0x118), region = 80 }
 0x164   : >> { %v567_v37 = vmul.f32 %v566_v48, %v491_v35 }
 0x166   : >> { %v575_v38 = vadd.f32 %v574_v36, %v567_v37 }
 0x168   : >> { %577 = vst [vmem:[%s576_s23] sm:$0xff] %v575_v38 }
 0x169 PF: > { %s15_s18 = sadd.s32 1, %s747_s18  }
 0x16a   : > { %p12_p5 = scmp.ge.s32.totalorder %s15_s18, 4  }
 0x16c   :  { %14 = sbr.rel (!%p12_p5) target bundleno = 1 (0x1), region = 91 }

// kernel: block_forward.16
= control target key start
LH: loop header
LB: loop body
LE: loop exit
PB: predicated region body
PF: predicated region fallthrough
CT: control target
= control target key end

     0   :  { %s885_s27 = smov 0   ;;  %s1067_s0 = inlined_call_operand.vmem [shape: f32[128,32], index: 0, kind: input, shape index: {}]   ;;  %s1068_s1 = inlined_call_operand.vmem [shape: f32[128,32], index: 1, kind: input, shape index: {}]   ;;  %s1069_s2 = inlined_call_operand.vmem [shape: f32[128,32], index: 2, kind: input, shape index: {}]   ;;  %s1070_s3 = inlined_call_operand.vmem [shape: f32[128,32], index: 3, kind: input, shape index: {}]   ;;  %s1071_s4 = inlined_call_operand.vmem [shape: f32[1,32], index: 4, kind: input, shape index: {}]   ;;  %s1072_s5 = inlined_call_operand.vmem [shape: f32[1,32], index: 5, kind: input, shape index: {}]   ;;  %s1073_s6 = inlined_call_operand.vmem [shape: f32[32,32], index: 6, kind: input, shape index: {}]   ;;  %s1074_s7 = inlined_call_operand.vmem [shape: f32[1,32], index: 7, kind: input, shape index: {}]   ;;  %s1075_s8 = inlined_call_operand.vmem [shape: f32[128,32], index: 8, kind: output, shape index: {}]  }
   0x1 LB: > { %s762_s28 = sadd.s32 4294967295, %s838_s27   ;;  %p766_p0 = scmp.ge.s32.totalorder %s838_s27, 1  ;;  %s838_s27 = sphi %s885_s27, %s18_s27  }
   0x2   : > { %p296_p1 = scmp.lt.s32.totalorder %s838_s27, 3 }
   0x4   : > { %p297_p2 = pnand %p766_p0, %p296_p1 }
   0x5   : > { %s767_s29 = sshll.u32 (!%p297_p2), %s762_s28, 3  ;;  %vm384_vm0 = vcmask (!%p297_p2), 261120   ;;  %v556_v56 = vld [vmem:[%s1073_s6] sm:$0xff] (!%p297_p2)  ;;  %v557_v57 = vld [vmem:[%s1073_s6 + $0x8] sm:$0xff] (!%p297_p2)  ;;  %v558_v59 = vld [vmem:[%s1073_s6 + $0x10] sm:$0xff] (!%p297_p2) }
   0x6   : > { %300 = sbr.rel (%p297_p2) target bundleno = 572 (0x23c), region = 52  ;;  %p346_p3 = scmp.lt.s32.totalorder (!%p297_p2), %s767_s29, 15  ;;  %v560_v58 = vpack.c.bf16 (!%p297_p2), %v557_v57, %v556_v56  ;;  %v559_v60 = vld [vmem:[%s1073_s6 + $0x18] sm:$0xff] (!%p297_p2) }
   0x7   : > { %v561_v61 = vpack.c.bf16 (!%p297_p2), %v559_v60, %v558_v59 }
   0x8   : > { %792 = vmatprep.subr.bf16.mxu0 (!%p297_p2), %v560_v58  ;;  %804 = vmatprep.subr.bf16.mxu1 (!%p297_p2), %v560_v58 }
   0x9   : > { %793 = vmatpush3.bf16.msra.mxu0 (!%p297_p2), %v560_v58  ;;  %806 = vmatpush3.bf16.msra.mxu1 (!%p297_p2), %v560_v58 }
   0xa   : > { %794 = vmatprep.subr.bf16.mxu0 (!%p297_p2), %v561_v61  ;;  %805 = vmatprep.subr.bf16.mxu1 (!%p297_p2), %v561_v61 }
   0xd   : > { %s1077_s29 = smov (!%p346_p3, %s767_s29), 15  ;;  %795 = vmatpush3.bf16.msra.mxu0 %v561_v61  ;;  %807 = vmatpush3.bf16.msra.mxu1 %v561_v61 }
   0xe   : > { %s893_s30 = sshll.u32 %s1077_s29, 3 }
   0xf   : > { %s349_s11 = scalar_lea.vmem %s1067_s0, %s893_s30  ;;  %s974_s26 = scalar_lea.vmem %s1068_s1, %s893_s30 }
  0x10   : > { %v376_v0 = vld [vmem:[%s349_s11] sm:$0xff]  ;;  %v377_v2 = vld [vmem:[%s349_s11 + $0x8] sm:$0xff]  ;;  %v378_v8 = vld [vmem:[%s349_s11 + $0x10] sm:$0xff]  ;;  %s985_s9 = scalar_lea.vmem %s1069_s2, %s893_s30  ;;  %s1029_s12 = scalar_lea.vmem %s1070_s3, %s893_s30 }
  0x11   : > { %v380_v1 = vld [vmem:[%s349_s11 + $0x20] sm:$0xff]  ;;  %v385_v3 = vsel %vm384_vm0, %v376_v0, 0.0  ;;  %v381_v5 = vld [vmem:[%s349_s11 + $0x28] sm:$0xff]  ;;  %v388_v6 = vsel %vm384_vm0, %v377_v2, 0.0  ;;  %v379_v9 = vld [vmem:[%s349_s11 + $0x18] sm:$0xff]  ;;  %v391_v10 = vsel %vm384_vm0, %v378_v8, 0.0  ;;  %s1040_s17 = scalar_lea.vmem %s1075_s8, %s893_s30 }
  0x12   : > { %v397_v4 = vsel %vm384_vm0, %v380_v1, 0.0  ;;  %386 = vadd.xlane.f32.xlu0 %v385_v3  ;;  %v400_v7 = vsel %vm384_vm0, %v381_v5, 0.0  ;;  %v394_v11 = vsel %vm384_vm0, %v379_v9, 0.0  ;;  %v382_v12 = vld [vmem:[%s349_s11 + $0x30] sm:$0xff]  ;;  %v383_v13 = vld [vmem:[%s349_s11 + $0x38] sm:$0xff]  ;;  %v540_v60 = vld [vmem:[%s985_s9 + $0x20] sm:$0xff] }
  0x13   : > { %398 = vadd.xlane.f32.xlu1 %v397_v4  ;;  %v403_v14 = vsel %vm384_vm0, %v382_v12, 0.0  ;;  %v406_v15 = vsel %vm384_vm0, %v383_v13, 0.0 }
  0x16   : > { %389 = vadd.xlane.f32.xlu0 %v388_v6 }
  0x17   : > { %401 = vadd.xlane.f32.xlu1 %v400_v7 }
  0x1a   : > { %392 = vadd.xlane.f32.xlu0 %v391_v10 }
  0x1b   : > { %395 = vadd.xlane.f32.xlu1 %v394_v11 }
  0x1e   : > { %404 = vadd.xlane.f32.xlu0 %v403_v14 }
  0x1f   : > { %407 = vadd.xlane.f32.xlu1 %v406_v15 }
  0x9f   : > { %v387_v16 = vpop.xlane.xlu0 %386 }
  0xa0   : > { %v399_v17 = vpop.xlane.xlu1 %398  ;;  %v410_v18 = vmul.f32 0.03125, %v387_v16 }
  0xa1   : > { %v414_v19 = vmul.f32 0.03125, %v399_v17 }
  0xa2   : > { %v907_v20 = vsub.f32 %v376_v0, %v410_v18  ;;  %v962_v18 = vld [vmem:[%s1071_s4] ss:$0 sm:$0xff] }
  0xa3   : > { %v909_v21 = vsub.f32 %v380_v1, %v414_v19  ;;  %v390_v22 = vpop.xlane.xlu0 %389 }
  0xa4   : > { %v402_v23 = vpop.xlane.xlu1 %401  ;;  %v411_v24 = vmul.f32 0.03125, %v390_v22  ;;  %v426_v26 = vmul.f32 %v907_v20, %v907_v20 }
  0xa5   : > { %v415_v25 = vmul.f32 0.03125, %v402_v23  ;;  %v430_v27 = vmul.f32 %v909_v21, %v909_v21 }
  0xa6   : > { %v915_v28 = vsub.f32 %v377_v2, %v411_v24  ;;  %v434_v30 = vsel %vm384_vm0, %v426_v26, 0.0  ;;  %v968_v26 = vld [vmem:[%s1072_s5] ss:$0 sm:$0xff] }
  0xa7   : > { %v917_v29 = vsub.f32 %v381_v5, %v415_v25  ;;  %435 = vadd.xlane.f32.xlu0 %v434_v30  ;;  %v393_v31 = vpop.xlane.xlu0 %392  ;;  %v446_v33 = vsel %vm384_vm0, %v430_v27, 0.0 }
  0xa8   : > { %v396_v32 = vpop.xlane.xlu1 %395  ;;  %v412_v34 = vmul.f32 0.03125, %v393_v31  ;;  %v427_v36 = vmul.f32 %v915_v28, %v915_v28 }
  0xa9   : > { %v413_v35 = vmul.f32 0.03125, %v396_v32  ;;  %v431_v37 = vmul.f32 %v917_v29, %v917_v29 }
  0xaa   : > { %v925_v38 = vsub.f32 %v378_v8, %v412_v34  ;;  %v437_v40 = vsel %vm384_vm0, %v427_v36, 0.0  ;;  %v520_v34 = vld [vmem:[%s974_s26] sm:$0xff] }
  0xab   : > { %v927_v39 = vsub.f32 %v379_v9, %v413_v35  ;;  %447 = vadd.xlane.f32.xlu0 %v446_v33  ;;  %438 = vadd.xlane.f32.xlu1 %v437_v40  ;;  %v405_v41 = vpop.xlane.xlu0 %404  ;;  %v449_v43 = vsel %vm384_vm0, %v431_v37, 0.0  ;;  %v521_v40 = vld [vmem:[%s974_s26 + $0x8] sm:$0xff] }
  0xac   : > { %v408_v42 = vpop.xlane.xlu1 %407  ;;  %v416_v44 = vmul.f32 0.03125, %v405_v41  ;;  %v428_v46 = vmul.f32 %v925_v38, %v925_v38 }
  0xad   : > { %v417_v45 = vmul.f32 0.03125, %v408_v42  ;;  %v429_v47 = vmul.f32 %v927_v39, %v927_v39 }
  0xae   : > { %v935_v48 = vsub.f32 %v382_v12, %v416_v44  ;;  %v440_v50 = vsel %vm384_vm0, %v428_v46, 0.0  ;;  %v524_v44 = vld [vmem:[%s974_s26 + $0x20] sm:$0xff] }
  0xaf   : > { %v937_v49 = vsub.f32 %v383_v13, %v417_v45  ;;  %450 = vadd.xlane.f32.xlu1 %v449_v43  ;;  %441 = vadd.xlane.f32.xlu0 %v440_v50  ;;  %v443_v51 = vsel %vm384_vm0, %v429_v47, 0.0  ;;  %v536_v46 = vld [vmem:[%s985_s9] sm:$0xff]  ;;  %v537_v47 = vld [vmem:[%s985_s9 + $0x8] sm:$0xff] }
  0xb0   : > { %v432_v52 = vmul.f32 %v935_v48, %v935_v48 }
  0xb1   : > { %v433_v53 = vmul.f32 %v937_v49, %v937_v49 }
  0xb2   : > { %v452_v54 = vsel %vm384_vm0, %v432_v52, 0.0 }
  0xb3   : > { %444 = vadd.xlane.f32.xlu1 %v443_v51  ;;  %453 = vadd.xlane.f32.xlu0 %v452_v54  ;;  %v455_v55 = vsel %vm384_vm0, %v433_v53, 0.0 }
  0xb7   : > { %456 = vadd.xlane.f32.xlu1 %v455_v55  ;;  %v525_v55 = vld [vmem:[%s974_s26 + $0x28] sm:$0xff] }
 0x134   : > { %v436_v62 = vpop.xlane.xlu0 %435 }
 0x135   : > { %v458_v63 = vmul.f32 0.03125, %v436_v62  ;;  %v541_v62 = vld [vmem:[%s985_s9 + $0x28] sm:$0xff] }
 0x137   : > { %v466_v0 = vadd.f32 1e-06, %v458_v63 }
 0x138   : > { %v439_v1 = vpop.xlane.xlu1 %438  ;;  %v448_v2 = vpop.xlane.xlu0 %447 }
 0x139   : > { %816 = vrsqrt.f32 %v466_v0  ;;  %v459_v3 = vmul.f32 0.03125, %v439_v1  ;;  %v462_v4 = vmul.f32 0.03125, %v448_v2  ;;  %v522_v0 = vld [vmem:[%s974_s26 + $0x10] sm:$0xff] }
 0x13b   : > { %v467_v5 = vadd.f32 1e-06, %v459_v3  ;;  %v470_v6 = vadd.f32 1e-06, %v462_v4 }
 0x13c   : > { %v451_v7 = vpop.xlane.xlu1 %450  ;;  %v442_v8 = vpop.xlane.xlu0 %441 }
 0x13d   : > { %818 = vrsqrt.f32 %v467_v5  ;;  %v463_v9 = vmul.f32 0.03125, %v451_v7  ;;  %v460_v10 = vmul.f32 0.03125, %v442_v8 }
 0x13e   : > { %820 = vrsqrt.f32 %v470_v6  ;;  %v523_v6 = vld [vmem:[%s974_s26 + $0x18] sm:$0xff] }
 0x13f   : > { %v471_v11 = vadd.f32 1e-06, %v463_v9  ;;  %v468_v12 = vadd.f32 1e-06, %v460_v10  ;;  %v538_v10 = vld [vmem:[%s985_s9 + $0x10] sm:$0xff] }
 0x140   : > { %v445_v13 = vpop.xlane.xlu1 %444  ;;  %v454_v14 = vpop.xlane.xlu0 %453 }
 0x141   : > { %822 = vrsqrt.f32 %v471_v11  ;;  %v461_v15 = vmul.f32 0.03125, %v445_v13  ;;  %v464_v16 = vmul.f32 0.03125, %v454_v14  ;;  %v539_v11 = vld [vmem:[%s985_s9 + $0x18] sm:$0xff]  ;;  %v526_v13 = vld [vmem:[%s974_s26 + $0x30] sm:$0xff] }
 0x142   : > { %824 = vrsqrt.f32 %v468_v12 }
 0x143   : > { %v817_v17 = vpop.eup %816  ;;  %v469_v19 = vadd.f32 1e-06, %v461_v15  ;;  %v472_v22 = vadd.f32 1e-06, %v464_v16 }
 0x144   : > { %v457_v23 = vpop.xlane.xlu1 %456  ;;  %v482_v24 = vmul.f32 %v817_v17, %v907_v20  ;;  %v527_v17 = vld [vmem:[%s974_s26 + $0x38] sm:$0xff] }
 0x145   : > { %826 = vrsqrt.f32 %v469_v19  ;;  %v465_v25 = vmul.f32 0.03125, %v457_v23 }
 0x146   : > { %828 = vrsqrt.f32 %v472_v22  ;;  %v497_v27 = vmul.f32 %v962_v18, %v482_v24  ;;  %v542_v24 = vld [vmem:[%s985_s9 + $0x30] sm:$0xff] }
 0x147   : > { %v819_v30 = vpop.eup %818  ;;  %v473_v31 = vadd.f32 1e-06, %v465_v25  ;;  %v543_v25 = vld [vmem:[%s985_s9 + $0x38] sm:$0xff] }
 0x148   : > { %v821_v20 = vpop.eup %820  ;;  %v483_v32 = vmul.f32 %v819_v30, %v915_v28  ;;  %v512_v33 = vadd.f32 %v968_v26, %v497_v27 }
 0x149   : > { %830 = vrsqrt.f32 %v473_v31  ;;  %v486_v35 = vmul.f32 %v821_v20, %v909_v21 }
 0x14a   : > { %v498_v36 = vmul.f32 %v962_v18, %v483_v32  ;;  %v528_v43 = vadd.f32 %v520_v34, %v512_v33  ;;  %v648_v33 = vld [vmem:[%s1029_s12 + $0x10] sm:$0xff] }
 0x14b   : > { %v823_v37 = vpop.eup %822  ;;  %v501_v28 = vmul.f32 %v962_v18, %v486_v35 }
 0x14c   : > { %v825_v41 = vpop.eup %824  ;;  %v513_v42 = vadd.f32 %v968_v26, %v498_v36  ;;  %v487_v21 = vmul.f32 %v823_v37, %v917_v29  ;;  %v544_v58 = vadd.f32 %v536_v46, %v528_v43  ;;  %v646_v36 = vld [vmem:[%s1029_s12] sm:$0xff] }
 0x14d   : > { %v484_v45 = vmul.f32 %v825_v41, %v925_v38  ;;  %v516_v50 = vadd.f32 %v968_v26, %v501_v28  ;;  %v649_v28 = vld [vmem:[%s1029_s12 + $0x18] sm:$0xff] }
 0x14e   : > { %v529_v51 = vadd.f32 %v521_v40, %v513_v42  ;;  %v502_v52 = vmul.f32 %v962_v18, %v487_v21  ;;  %v647_v21 = vld [vmem:[%s1029_s12 + $0x8] sm:$0xff] }
 0x14f   : > { %v827_v53 = vpop.eup %826  ;;  %v499_v54 = vmul.f32 %v962_v18, %v484_v45  ;;  %v532_v56 = vadd.f32 %v524_v44, %v516_v50 }
 0x150   : > { %v829_v57 = vpop.eup %828  ;;  %v485_v29 = vmul.f32 %v827_v53, %v927_v39  ;;  %v545_v38 = vadd.f32 %v537_v47, %v529_v51  ;;  %v517_v59 = vadd.f32 %v968_v26, %v502_v52  ;;  %v652_v47 = vld [vmem:[%s1029_s12 + $0x30] sm:$0xff]  ;;  %v650_v53 = vld [vmem:[%s1029_s12 + $0x20] sm:$0xff] }
 0x151   : > { %v488_v61 = vmul.f32 %v829_v57, %v935_v48  ;;  %v514_v63 = vadd.f32 %v968_v26, %v499_v54  ;;  %v548_v5 = vadd.f32 %v540_v60, %v532_v56  ;;  %v653_v57 = vld [vmem:[%s1029_s12 + $0x38] sm:$0xff] }
 0x152   : > { %v500_v1 = vmul.f32 %v962_v18, %v485_v29  ;;  %v552_v2 = vpack.c.bf16 %v545_v38, %v544_v58  ;;  %v533_v3 = vadd.f32 %v525_v55, %v517_v59  ;;  %v651_v59 = vld [vmem:[%s1029_s12 + $0x28] sm:$0xff] }
 0x153   : > { %v831_v4 = vpop.eup %830  ;;  %v503_v39 = vmul.f32 %v962_v18, %v488_v61  ;;  %v530_v9 = vadd.f32 %v522_v0, %v514_v63 }
 0x154   : > { %v489_v7 = vmul.f32 %v831_v4, %v937_v49  ;;  %796 = vmatprep.mubr.msk.bf16.mxu0 %vm384_vm0, %v552_v2  ;;  %v549_v48 = vadd.f32 %v541_v62, %v533_v3  ;;  %v515_v8 = vadd.f32 %v968_v26, %v500_v1 }
 0x155   : > { %v518_v12 = vadd.f32 %v968_v26, %v503_v39  ;;  %v546_v49 = vadd.f32 %v538_v10, %v530_v9 }
 0x156   : > { %v504_v14 = vmul.f32 %v962_v18, %v489_v7  ;;  %v554_v15 = vpack.c.bf16 %v549_v48, %v548_v5  ;;  %v531_v16 = vadd.f32 %v523_v6, %v515_v8 }
 0x157   : > { %v534_v23 = vadd.f32 %v526_v13, %v518_v12 }
 0x158   : > { %800 = vmatprep.mubr.msk.bf16.mxu1 %vm384_vm0, %v554_v15  ;;  %v547_v19 = vadd.f32 %v539_v11, %v531_v16  ;;  %v519_v22 = vadd.f32 %v968_v26, %v504_v14  ;;  %v779_v26 = vld [vmem:[%s1074_s7] ss:$0 sm:$0xff] }
 0x159   : > { %v550_v31 = vadd.f32 %v542_v24, %v534_v23 }
 0x15a   : > { %v553_v27 = vpack.c.bf16 %v547_v19, %v546_v49  ;;  %v535_v30 = vadd.f32 %v527_v17, %v519_v22 }
 0x15c   : > { %797 = vmatmul.mubr.msk.bf16.vlgmr.msra.gmra.mrb[0].mxu0 %vm384_vm0, %v553_v27  ;;  %v551_v18 = vadd.f32 %v543_v25, %v535_v30 }
 0x15e   : > { %v555_v20 = vpack.c.bf16 %v551_v18, %v550_v31 }
 0x160   : > { %801 = vmatmul.mubr.msk.bf16.vlgmr.msra.gmra.mrb[0].mxu1 %vm384_vm0, %v555_v20 }
 0x22f   : > { %v798_v32 = vpop.f32.mrb[0].mxu0 }
 0x230   : > { %v624_v34 = vadd.f32 %v798_v32, %v779_v26  ;;  %v615_v35 = vpop.f32.mrb[1].mxu0 }
 0x231   : > { %v616_v37 = vadd.f32 %v779_v26, %v615_v35  ;;  %v799_v40 = vpop.f32.mrb[2].mxu0 }
 0x232   : > { %v656_v41 = vadd.f32 %v648_v33, %v624_v34  ;;  %v627_v42 = vadd.f32 %v799_v40, %v779_v26  ;;  %v618_v43 = vpop.f32.mrb[3].mxu0 }
 0x233   : > { %v654_v44 = vadd.f32 %v646_v36, %v616_v37  ;;  %v619_v45 = vadd.f32 %v779_v26, %v618_v43  ;;  %v802_v46 = vpop.f32.mrb[0].mxu1 }
 0x234   : > { %664 = vst.msk [vmem:[%s1040_s17 + $0x10] sm:$0xff] %vm384_vm0, %v656_v41  ;;  %v657_v50 = vadd.f32 %v649_v28, %v627_v42  ;;  %v640_v51 = vadd.f32 %v802_v46, %v779_v26  ;;  %v631_v52 = vpop.f32.mrb[1].mxu1 }
 0x235   : > { %662 = vst.msk [vmem:[%s1040_s17] sm:$0xff] %vm384_vm0, %v654_v44  ;;  %v655_v54 = vadd.f32 %v647_v21, %v619_v45  ;;  %v632_v55 = vadd.f32 %v779_v26, %v631_v52  ;;  %v803_v56 = vpop.f32.mrb[2].mxu1 }
 0x236   : > { %665 = vst.msk [vmem:[%s1040_s17 + $0x18] sm:$0xff] %vm384_vm0, %v657_v50  ;;  %v660_v29 = vadd.f32 %v652_v47, %v640_v51  ;;  %v643_v58 = vadd.f32 %v803_v56, %v779_v26  ;;  %v634_v38 = vpop.f32.mrb[3].mxu1 }
 0x237   : > { %663 = vst.msk [vmem:[%s1040_s17 + $0x8] sm:$0xff] %vm384_vm0, %v655_v54  ;;  %v658_v60 = vadd.f32 %v650_v53, %v632_v55  ;;  %v635_v61 = vadd.f32 %v779_v26, %v634_v38 }
 0x238   : > { %668 = vst.msk [vmem:[%s1040_s17 + $0x30] sm:$0xff] %vm384_vm0, %v660_v29  ;;  %v661_v62 = vadd.f32 %v653_v57, %v643_v58 }
 0x239   : > { %666 = vst.msk [vmem:[%s1040_s17 + $0x20] sm:$0xff] %vm384_vm0, %v658_v60  ;;  %v659_v63 = vadd.f32 %v651_v59, %v635_v61 }
 0x23a   : > { %669 = vst.msk [vmem:[%s1040_s17 + $0x38] sm:$0xff] %vm384_vm0, %v661_v62 }
 0x23b   : > { %667 = vst.msk [vmem:[%s1040_s17 + $0x28] sm:$0xff] %vm384_vm0, %v659_v63 }
 0x23c PF: > { %s18_s27 = sadd.s32 1, %s838_s27  }
 0x23d   : > { %p15_p4 = scmp.ge.s32.totalorder %s18_s27, 4  }
 0x23f   :  { %17 = sbr.rel (!%p15_p4) target bundleno = 1 (0x1), region = 91 }

// kernel: block_forward.18
= control target key start
LH: loop header
LB: loop body
LE: loop exit
PB: predicated region body
PF: predicated region fallthrough
CT: control target
= control target key end

     0   :  { %s634_s18 = smov 0   ;;  %s747_s0 = inlined_call_operand.vmem [shape: f32[128,32], index: 0, kind: input, shape index: {}]   ;;  %s748_s1 = inlined_call_operand.vmem [shape: f32[1,32], index: 1, kind: input, shape index: {}]   ;;  %s749_s2 = inlined_call_operand.vmem [shape: f32[1,32], index: 2, kind: input, shape index: {}]   ;;  %s750_s3 = inlined_call_operand.vmem [shape: f32[32,64], index: 3, kind: input, shape index: {}]   ;;  %s751_s4 = inlined_call_operand.vmem [shape: f32[1,64], index: 4, kind: input, shape index: {}]   ;;  %s752_s5 = inlined_call_operand.vmem [shape: f32[128,64], index: 5, kind: output, shape index: {}]  }
   0x1 LB: > { %s532_s19 = sadd.s32 4294967295, %s602_s18   ;;  %p536_p0 = scmp.ge.s32.totalorder %s602_s18, 1  ;;  %s602_s18 = sphi %s634_s18, %s15_s18  }
   0x2   : > { %p188_p1 = scmp.lt.s32.totalorder %s602_s18, 3 }
   0x4   : > { %p189_p2 = pnand %p536_p0, %p188_p1 }
   0x5   : > { %s537_s20 = sshll.u32 (!%p189_p2), %s532_s19, 3  ;;  %vm237_vm0 = vcmask (!%p189_p2), 261120   ;;  %v377_v56 = vld [vmem:[%s750_s3] sm:$0xff] (!%p189_p2)  ;;  %v378_v57 = vld [vmem:[%s750_s3 + $0x8] sm:$0xff] (!%p189_p2)  ;;  %v379_v59 = vld [vmem:[%s750_s3 + $0x10] sm:$0xff] (!%p189_p2)  ;;  %vm467_vm1 = vcmask (!%p189_p2), 523264  }
   0x6   : > { %192 = sbr.rel (%p189_p2) target bundleno = 566 (0x236), region = 40  ;;  %p217_p3 = scmp.lt.s32.totalorder (!%p189_p2), %s537_s20, 15  ;;  %v381_v58 = vpack.c.bf16 (!%p189_p2), %v378_v57, %v377_v56  ;;  %v380_v60 = vld [vmem:[%s750_s3 + $0x18] sm:$0xff] (!%p189_p2) }
   0x7   : > { %v382_v61 = vpack.c.bf16 (!%p189_p2), %v380_v60, %v379_v59 }
   0x8   : > { %556 = vmatprep.subr.bf16.mxu0 (!%p189_p2), %v381_v58  ;;  %568 = vmatprep.subr.bf16.mxu1 (!%p189_p2), %v381_v58 }
   0x9   : > { %557 = vmatpush3.bf16.msra.mxu0 (!%p189_p2), %v381_v58  ;;  %570 = vmatpush3.bf16.msra.mxu1 (!%p189_p2), %v381_v58 }
   0xa   : > { %558 = vmatprep.subr.bf16.mxu0 (!%p189_p2), %v382_v61  ;;  %569 = vmatprep.subr.bf16.mxu1 (!%p189_p2), %v382_v61 }
   0xd   : > { %s754_s20 = smov (!%p217_p3, %s537_s20), 15  ;;  %559 = vmatpush3.bf16.msra.mxu0 %v382_v61  ;;  %571 = vmatpush3.bf16.msra.mxu1 %v382_v61 }
   0xe   : > { %s538_s21 = sshll.u32 %s754_s20, 3 }
   0xf   : > { %s220_s24 = scalar_lea.vmem %s747_s0, %s538_s21  ;;  %s226_s16 = scalar_lea.vmem %s752_s5, %s538_s21 }
  0x10   : > { %v229_v0 = vld [vmem:[%s220_s24] sm:$0xff]  ;;  %v230_v2 = vld [vmem:[%s220_s24 + $0x8] sm:$0xff]  ;;  %v231_v8 = vld [vmem:[%s220_s24 + $0x10] sm:$0xff] }
  0x11   : > { %v233_v1 = vld [vmem:[%s220_s24 + $0x20] sm:$0xff]  ;;  %v238_v3 = vsel %vm237_vm0, %v229_v0, 0.0  ;;  %v234_v5 = vld [vmem:[%s220_s24 + $0x28] sm:$0xff]  ;;  %v241_v6 = vsel %vm237_vm0, %v230_v2, 0.0  ;;  %v232_v9 = vld [vmem:[%s220_s24 + $0x18] sm:$0xff]  ;;  %v244_v10 = vsel %vm237_vm0, %v231_v8, 0.0 }
  0x12   : > { %v250_v4 = vsel %vm237_vm0, %v233_v1, 0.0  ;;  %239 = vadd.xlane.f32.xlu0 %v238_v3  ;;  %v253_v7 = vsel %vm237_vm0, %v234_v5, 0.0  ;;  %v247_v11 = vsel %vm237_vm0, %v232_v9, 0.0  ;;  %v235_v12 = vld [vmem:[%s220_s24 + $0x30] sm:$0xff]  ;;  %v236_v13 = vld [vmem:[%s220_s24 + $0x38] sm:$0xff] }
  0x13   : > { %251 = vadd.xlane.f32.xlu1 %v250_v4  ;;  %v256_v14 = vsel %vm237_vm0, %v235_v12, 0.0  ;;  %v259_v15 = vsel %vm237_vm0, %v236_v13, 0.0 }
  0x16   : > { %242 = vadd.xlane.f32.xlu0 %v241_v6 }
  0x17   : > { %254 = vadd.xlane.f32.xlu1 %v253_v7 }
  0x1a   : > { %245 = vadd.xlane.f32.xlu0 %v244_v10 }
  0x1b   : > { %248 = vadd.xlane.f32.xlu1 %v247_v11 }
  0x1e   : > { %257 = vadd.xlane.f32.xlu0 %v256_v14 }
  0x1f   : > { %260 = vadd.xlane.f32.xlu1 %v259_v15 }
  0x9f   : > { %v240_v16 = vpop.xlane.xlu0 %239 }
  0xa0   : > { %v252_v17 = vpop.xlane.xlu1 %251  ;;  %v263_v18 = vmul.f32 0.03125, %v240_v16 }
  0xa1   : > { %v267_v19 = vmul.f32 0.03125, %v252_v17 }
  0xa2   : > { %v658_v20 = vsub.f32 %v229_v0, %v263_v18 }
  0xa3   : > { %v660_v21 = vsub.f32 %v233_v1, %v267_v19  ;;  %v243_v22 = vpop.xlane.xlu0 %242 }
  0xa4   : > { %v255_v23 = vpop.xlane.xlu1 %254  ;;  %v264_v24 = vmul.f32 0.03125, %v243_v22  ;;  %v279_v26 = vmul.f32 %v658_v20, %v658_v20 }
  0xa5   : > { %v268_v25 = vmul.f32 0.03125, %v255_v23  ;;  %v283_v27 = vmul.f32 %v660_v21, %v660_v21 }
  0xa6   : > { %v666_v28 = vsub.f32 %v230_v2, %v264_v24  ;;  %v287_v30 = vsel %vm237_vm0, %v279_v26, 0.0 }
  0xa7   : > { %v668_v29 = vsub.f32 %v234_v5, %v268_v25  ;;  %288 = vadd.xlane.f32.xlu0 %v287_v30  ;;  %v246_v31 = vpop.xlane.xlu0 %245  ;;  %v299_v33 = vsel %vm237_vm0, %v283_v27, 0.0  ;;  %v541_v25 = vld [vmem:[%s748_s1] ss:$0 sm:$0xff] }
  0xa8   : > { %v249_v32 = vpop.xlane.xlu1 %248  ;;  %v265_v34 = vmul.f32 0.03125, %v246_v31  ;;  %v280_v36 = vmul.f32 %v666_v28, %v666_v28 }
  0xa9   : > { %v266_v35 = vmul.f32 0.03125, %v249_v32  ;;  %v284_v37 = vmul.f32 %v668_v29, %v668_v29 }
  0xaa   : > { %v676_v38 = vsub.f32 %v231_v8, %v265_v34  ;;  %v290_v40 = vsel %vm237_vm0, %v280_v36, 0.0 }
  0xab   : > { %v678_v39 = vsub.f32 %v232_v9, %v266_v35  ;;  %300 = vadd.xlane.f32.xlu0 %v299_v33  ;;  %291 = vadd.xlane.f32.xlu1 %v290_v40  ;;  %v258_v41 = vpop.xlane.xlu0 %257  ;;  %v302_v43 = vsel %vm237_vm0, %v284_v37, 0.0  ;;  %v542_v33 = vld [vmem:[%s749_s2] ss:$0 sm:$0xff] }
  0xac   : > { %v261_v42 = vpop.xlane.xlu1 %260  ;;  %v269_v44 = vmul.f32 0.03125, %v258_v41  ;;  %v281_v46 = vmul.f32 %v676_v38, %v676_v38 }
  0xad   : > { %v270_v45 = vmul.f32 0.03125, %v261_v42  ;;  %v282_v47 = vmul.f32 %v678_v39, %v678_v39 }
  0xae   : > { %v686_v48 = vsub.f32 %v235_v12, %v269_v44  ;;  %v293_v50 = vsel %vm237_vm0, %v281_v46, 0.0 }
  0xaf   : > { %v688_v49 = vsub.f32 %v236_v13, %v270_v45  ;;  %303 = vadd.xlane.f32.xlu1 %v302_v43  ;;  %294 = vadd.xlane.f32.xlu0 %v293_v50  ;;  %v296_v51 = vsel %vm237_vm0, %v282_v47, 0.0 }
  0xb0   : > { %v285_v52 = vmul.f32 %v686_v48, %v686_v48 }
  0xb1   : > { %v286_v53 = vmul.f32 %v688_v49, %v688_v49 }
  0xb2   : > { %v305_v54 = vsel %vm237_vm0, %v285_v52, 0.0 }
  0xb3   : > { %297 = vadd.xlane.f32.xlu1 %v296_v51  ;;  %306 = vadd.xlane.f32.xlu0 %v305_v54  ;;  %v308_v55 = vsel %vm237_vm0, %v286_v53, 0.0 }
  0xb7   : > { %309 = vadd.xlane.f32.xlu1 %v308_v55 }
 0x134   : > { %v289_v62 = vpop.xlane.xlu0 %288 }
 0x135   : > { %v311_v63 = vmul.f32 0.03125, %v289_v62 }
 0x137   : > { %v319_v0 = vadd.f32 1e-06, %v311_v63 }
 0x138   : > { %v292_v1 = vpop.xlane.xlu1 %291  ;;  %v301_v2 = vpop.xlane.xlu0 %300 }
 0x139   : > { %580 = vrsqrt.f32 %v319_v0  ;;  %v312_v3 = vmul.f32 0.03125, %v292_v1  ;;  %v315_v4 = vmul.f32 0.03125, %v301_v2 }
 0x13b   : > { %v320_v5 = vadd.f32 1e-06, %v312_v3  ;;  %v323_v6 = vadd.f32 1e-06, %v315_v4 }
 0x13c   : > { %v304_v7 = vpop.xlane.xlu1 %303  ;;  %v295_v8 = vpop.xlane.xlu0 %294 }
 0x13d   : > { %582 = vrsqrt.f32 %v320_v5  ;;  %v316_v9 = vmul.f32 0.03125, %v304_v7  ;;  %v313_v10 = vmul.f32 0.03125, %v295_v8 }
 0x13e   : > { %584 = vrsqrt.f32 %v323_v6 }
 0x13f   : > { %v324_v11 = vadd.f32 1e-06, %v316_v9  ;;  %v321_v12 = vadd.f32 1e-06, %v313_v10 }
 0x140   : > { %v298_v13 = vpop.xlane.xlu1 %297  ;;  %v307_v14 = vpop.xlane.xlu0 %306 }
 0x141   : > { %586 = vrsqrt.f32 %v324_v11  ;;  %v314_v15 = vmul.f32 0.03125, %v298_v13  ;;  %v317_v16 = vmul.f32 0.03125, %v307_v14 }
 0x142   : > { %588 = vrsqrt.f32 %v321_v12 }
 0x143   : > { %v581_v17 = vpop.eup %580  ;;  %v322_v18 = vadd.f32 1e-06, %v314_v15  ;;  %v325_v19 = vadd.f32 1e-06, %v317_v16 }
 0x144   : > { %v310_v22 = vpop.xlane.xlu1 %309  ;;  %v335_v23 = vmul.f32 %v581_v17, %v658_v20 }
 0x145   : > { %590 = vrsqrt.f32 %v322_v18  ;;  %v318_v24 = vmul.f32 0.03125, %v310_v22 }
 0x146   : > { %592 = vrsqrt.f32 %v325_v19  ;;  %v350_v32 = vmul.f32 %v541_v25, %v335_v23 }
 0x147   : > { %v583_v26 = vpop.eup %582  ;;  %v326_v27 = vadd.f32 1e-06, %v318_v24 }
 0x148   : > { %v585_v30 = vpop.eup %584  ;;  %v336_v31 = vmul.f32 %v583_v26, %v666_v28  ;;  %v365_v37 = vadd.f32 %v542_v33, %v350_v32 }
 0x149   : > { %594 = vrsqrt.f32 %v326_v27  ;;  %v339_v20 = vmul.f32 %v585_v30, %v660_v21 }
 0x14a   : > { %v351_v34 = vmul.f32 %v541_v25, %v336_v31 }
 0x14b   : > { %v587_v35 = vpop.eup %586  ;;  %v354_v42 = vmul.f32 %v541_v25, %v339_v20 }
 0x14c   : > { %v589_v36 = vpop.eup %588  ;;  %v366_v40 = vadd.f32 %v542_v33, %v351_v34  ;;  %v340_v41 = vmul.f32 %v587_v35, %v668_v29 }
 0x14d   : > { %v337_v43 = vmul.f32 %v589_v36, %v676_v38  ;;  %v369_v50 = vadd.f32 %v542_v33, %v354_v42 }
 0x14e   : > { %v373_v44 = vpack.c.bf16 %v366_v40, %v365_v37  ;;  %v355_v28 = vmul.f32 %v541_v25, %v340_v41 }
 0x14f   : > { %v591_v45 = vpop.eup %590  ;;  %v352_v51 = vmul.f32 %v541_v25, %v337_v43 }
 0x150   : > { %v593_v46 = vpop.eup %592  ;;  %v338_v47 = vmul.f32 %v591_v45, %v678_v39  ;;  %560 = vmatprep.mubr.msk.bf16.mxu0 %vm237_vm0, %v373_v44  ;;  %v370_v21 = vadd.f32 %v542_v33, %v355_v28 }
 0x151   : > { %v341_v52 = vmul.f32 %v593_v46, %v686_v48  ;;  %v367_v38 = vadd.f32 %v542_v33, %v352_v51  ;;  %v543_v48 = vld [vmem:[%s751_s4] ss:$0 sm:$0xff] }
 0x152   : > { %v375_v53 = vpack.c.bf16 %v370_v21, %v369_v50  ;;  %v353_v54 = vmul.f32 %v541_v25, %v338_v47 }
 0x153   : > { %v595_v29 = vpop.eup %594  ;;  %v356_v57 = vmul.f32 %v541_v25, %v341_v52 }
 0x154   : > { %v342_v55 = vmul.f32 %v595_v29, %v688_v49  ;;  %564 = vmatprep.mubr.msk.bf16.mxu1 %vm237_vm0, %v375_v53  ;;  %v368_v56 = vadd.f32 %v542_v33, %v353_v54 }
 0x155   : > { %v371_v59 = vadd.f32 %v542_v33, %v356_v57 }
 0x156   : > { %v374_v58 = vpack.c.bf16 %v368_v56, %v367_v38  ;;  %v357_v39 = vmul.f32 %v541_v25, %v342_v55 }
 0x158   : > { %561 = vmatmul.mubr.msk.bf16.vlgmr.msra.gmra.mrb[0].mxu0 %vm237_vm0, %v374_v58  ;;  %v372_v60 = vadd.f32 %v542_v33, %v357_v39 }
 0x15a   : > { %v376_v61 = vpack.c.bf16 %v372_v60, %v371_v59 }
 0x15c   : > { %565 = vmatmul.mubr.msk.bf16.vlgmr.msra.gmra.mrb[0].mxu1 %vm237_vm0, %v376_v61 }
 0x22b   : > { %v562_v49 = vpop.f32.mrb[0].mxu0 }
 0x22c   : > { %v445_v62 = vadd.f32 %v562_v49, %v543_v48  ;;  %v436_v63 = vpop.f32.mrb[1].mxu0 }
 0x22d   : > { %v437_v0 = vadd.f32 %v543_v48, %v436_v63  ;;  %v563_v1 = vpop.f32.mrb[2].mxu0 }
 0x22e   : > { %470 = vst.msk [vmem:[%s226_s16 + $0x10] sm:$0xff] %vm467_vm1, %v445_v62  ;;  %v448_v2 = vadd.f32 %v563_v1, %v543_v48  ;;  %v439_v3 = vpop.f32.mrb[3].mxu0 }
 0x22f   : > { %468 = vst.msk [vmem:[%s226_s16] sm:$0xff] %vm467_vm1, %v437_v0  ;;  %v440_v4 = vadd.f32 %v543_v48, %v439_v3  ;;  %v566_v5 = vpop.f32.mrb[0].mxu1 }
 0x230   : > { %471 = vst.msk [vmem:[%s226_s16 + $0x18] sm:$0xff] %vm467_vm1, %v448_v2  ;;  %v461_v6 = vadd.f32 %v566_v5, %v543_v48  ;;  %v452_v7 = vpop.f32.mrb[1].mxu1 }
 0x231   : > { %469 = vst.msk [vmem:[%s226_s16 + $0x8] sm:$0xff] %vm467_vm1, %v440_v4  ;;  %v453_v8 = vadd.f32 %v543_v48, %v452_v7  ;;  %v567_v9 = vpop.f32.mrb[2].mxu1 }
 0x232   : > { %474 = vst.msk [vmem:[%s226_s16 + $0x30] sm:$0xff] %vm467_vm1, %v461_v6  ;;  %v464_v10 = vadd.f32 %v567_v9, %v543_v48  ;;  %v455_v11 = vpop.f32.mrb[3].mxu1 }
 0x233   : > { %472 = vst.msk [vmem:[%s226_s16 + $0x20] sm:$0xff] %vm467_vm1, %v453_v8  ;;  %v456_v12 = vadd.f32 %v543_v48, %v455_v11 }
 0x234   : > { %475 = vst.msk [vmem:[%s226_s16 + $0x38] sm:$0xff] %vm467_vm1, %v464_v10 }
 0x235   : > { %473 = vst.msk [vmem:[%s226_s16 + $0x28] sm:$0xff] %vm467_vm1, %v456_v12 }
 0x236 PF: > { %s15_s18 = sadd.s32 1, %s602_s18  }
 0x237   : > { %p12_p4 = scmp.ge.s32.totalorder %s15_s18, 4  }
 0x239   :  { %14 = sbr.rel (!%p12_p4) target bundleno = 1 (0x1), region = 70 }

// kernel: block_forward.12
= control target key start
LH: loop header
LB: loop body
LE: loop exit
PB: predicated region body
PF: predicated region fallthrough
CT: control target
= control target key end

     0   :  { %s1097_s12 = smov 0   ;;  %s1837_s0 = inlined_call_operand.vmem [shape: f32[2,8,8,32], index: 0, kind: input, shape index: {}]   ;;  %s1838_s1 = inlined_call_operand.vmem [shape: f32[25,32], index: 1, kind: input, shape index: {}]   ;;  %s1839_s2 = inlined_call_operand.vmem [shape: f32[1,32], index: 2, kind: input, shape index: {}]   ;;  %s1840_s3 = inlined_call_operand.vmem [shape: f32[2,8,8,32], index: 3, kind: output, shape index: {}]  }
   0x1 LB: > { %s1020_s13 = sadd.s32 4294967295, %s1074_s12   ;;  %p1024_p0 = scmp.ge.s32.totalorder %s1074_s12, 1  ;;  %s1074_s12 = sphi %s1097_s12, %s13_s12  }
   0x2   : > { %p137_p1 = scmp.lt.s32.totalorder %s1074_s12, 3 }
   0x4   : > { %p138_p2 = pnand %p1024_p0, %p137_p1 }
   0x6   : > { %141 = sbr.rel (%p138_p2) target bundleno = 144 (0x90), region = 32 }
   0xd   : > { %vm179_vm0 = vcmask 261120   ;;  %vm181_vm1 = vcmask 257024   ;;  %p1107_p3 = scmp.lt.s32.totalorder %s1020_s13, 1  ;;  %v1076_v0 = vmov 0.0   ;;  %v1144_v1 = vld [vmem:[%s1838_s1] ss:$0 sm:$0xff] }
   0xe   : > { %180 = vst.msk [vmem:[#allocation2] sm:$0xff] %vm179_vm0, %v1076_v0  ;;  %183 = vst.msk [vmem:[#allocation2 + $0x10] sm:$0xff] %vm179_vm0, %v1076_v0  ;;  %v1149_v2 = vld [vmem:[%s1838_s1 + $0x1] ss:$0 sm:$0xff]  ;;  %v1154_v3 = vld [vmem:[%s1838_s1 + $0x2] ss:$0 sm:$0xff] }
   0xf   : > { %185 = vst.msk [vmem:[#allocation2 + $0x20] sm:$0xff] %vm179_vm0, %v1076_v0  ;;  %187 = vst.msk [vmem:[#allocation2 + $0x30] sm:$0xff] %vm179_vm0, %v1076_v0  ;;  %s1911_s13 = smov (!%p1107_p3, %s1020_s13), 1  ;;  %v1160_v4 = vld [vmem:[%s1838_s1 + $0x3] ss:$0 sm:$0xff] }
  0x10   : > { %189 = vst.msk [vmem:[#allocation2 + $0x40] sm:$0xff] %vm179_vm0, %v1076_v0  ;;  %191 = vst.msk [vmem:[#allocation2 + $0x50] sm:$0xff] %vm179_vm0, %v1076_v0  ;;  %s1057_s21 = sshll.u32 %s1911_s13, 6  ;;  %v1165_v8 = vld [vmem:[%s1838_s1 + $0x4] ss:$0 sm:$0xff] }
  0x11   : > { %193 = vst.msk [vmem:[#allocation2 + $0x60] sm:$0xff] %vm179_vm0, %v1076_v0  ;;  %195 = vst.msk [vmem:[#allocation2 + $0x70] sm:$0xff] %vm179_vm0, %v1076_v0  ;;  %s1172_s28 = scalar_lea.vmem %s1837_s0, %s1057_s21  ;;  %v1204_v36 = vld [vmem:[%s1838_s1 + $0x5] ss:$0 sm:$0xff]  ;;  %v1214_v40 = vld [vmem:[%s1838_s1 + $0x6] ss:$0 sm:$0xff]  ;;  %s1709_s25 = scalar_lea.vmem %s1840_s3, %s1057_s21 }
  0x12   : > { %197 = vst.msk [vmem:[#allocation2 + $0x80] sm:$0xff] %vm179_vm0, %v1076_v0  ;;  %199 = vst.msk [vmem:[#allocation2 + $0x90] sm:$0xff] %vm179_vm0, %v1076_v0  ;;  %v171_v24 = vld [vmem:[%s1172_s28] sm:$0xff]  ;;  %v172_v25 = vld [vmem:[%s1172_s28 + $0x8] sm:$0xff] }
  0x13   : > { %201 = vst.msk [vmem:[#allocation2 + $0xa0] sm:$0xff] %vm179_vm0, %v1076_v0  ;;  %203 = vst.msk [vmem:[#allocation2 + $0xb0] sm:$0xff] %vm179_vm0, %v1076_v0  ;;  %v173_v26 = vld [vmem:[%s1172_s28 + $0x10] sm:$0xff]  ;;  %v174_v27 = vld [vmem:[%s1172_s28 + $0x18] sm:$0xff] }
  0x14   : > { %182 = vst.msk [vmem:[#allocation2 + $0x8] sm:$0xf] %vm181_vm1, %v1076_v0  ;;  %184 = vst.msk [vmem:[#allocation2 + $0x18] sm:$0xf] %vm181_vm1, %v1076_v0  ;;  %v175_v28 = vld [vmem:[%s1172_s28 + $0x20] sm:$0xff]  ;;  %v176_v33 = vld [vmem:[%s1172_s28 + $0x28] sm:$0xff] }
  0x15   : > { %186 = vst.msk [vmem:[#allocation2 + $0x28] sm:$0xf] %vm181_vm1, %v1076_v0  ;;  %188 = vst.msk [vmem:[#allocation2 + $0x38] sm:$0xf] %vm181_vm1, %v1076_v0  ;;  %v214_v5 = vld [vmem:[#allocation2] sm:$0xff]  ;;  %v215_v14 = vld [vmem:[#allocation2 + $0x10] sm:$0xff] }
  0x16   : > { %190 = vst.msk [vmem:[#allocation2 + $0x48] sm:$0xf] %vm181_vm1, %v1076_v0  ;;  %192 = vst.msk [vmem:[#allocation2 + $0x58] sm:$0xf] %vm181_vm1, %v1076_v0  ;;  %v227_v9 = vmul.f32 %v1144_v1, %v214_v5  ;;  %v228_v15 = vmul.f32 %v1144_v1, %v215_v14  ;;  %v177_v34 = vld [vmem:[%s1172_s28 + $0x30] sm:$0xff]  ;;  %v178_v35 = vld [vmem:[%s1172_s28 + $0x38] sm:$0xff]  ;;  %v373_v43 = vmul.f32 %v1204_v36, %v215_v14 }
  0x17   : > { %194 = vst.msk [vmem:[#allocation2 + $0x68] sm:$0xf] %vm181_vm1, %v1076_v0  ;;  %196 = vst.msk [vmem:[#allocation2 + $0x78] sm:$0xf] %vm181_vm1, %v1076_v0  ;;  %v1223_v50 = vld [vmem:[%s1838_s1 + $0x7] ss:$0 sm:$0xff] }
  0x18   : > { %198 = vst.msk [vmem:[#allocation2 + $0x88] sm:$0xf] %vm181_vm1, %v1076_v0  ;;  %200 = vst.msk [vmem:[#allocation2 + $0x98] sm:$0xf] %vm181_vm1, %v1076_v0  ;;  %v1246_v5 = vld [vmem:[%s1838_s1 + $0x8] ss:$0 sm:$0xff] }
  0x19   : > { %202 = vst.msk [vmem:[#allocation2 + $0xa8] sm:$0xf] %vm181_vm1, %v1076_v0  ;;  %204 = vst.msk [vmem:[#allocation2 + $0xb8] sm:$0xf] %vm181_vm1, %v1076_v0  ;;  %v1260_v14 = vld [vmem:[%s1838_s1 + $0x9] ss:$0 sm:$0xff] }
  0x1a   : > { %206 = vst.msk [vmem:[#allocation2 + $0x22] sm:$0xff] %vm179_vm0, %v171_v24  ;;  %207 = vst.msk [vmem:[#allocation2 + $0x32] sm:$0xff] %vm179_vm0, %v172_v25 }
  0x1b   : > { %v243_v6 = vld [vmem:[#allocation2 + $0x1] sm:$0xff]  ;;  %v244_v16 = vld [vmem:[#allocation2 + $0x11] sm:$0xff]  ;;  %208 = vst.msk [vmem:[#allocation2 + $0x42] sm:$0xff] %vm179_vm0, %v173_v26  ;;  %209 = vst.msk [vmem:[#allocation2 + $0x52] sm:$0xff] %vm179_vm0, %v174_v27 }
  0x1c   : > { %v272_v7 = vld [vmem:[#allocation2 + $0x2] sm:$0xff]  ;;  %v256_v10 = vmul.f32 %v1149_v2, %v243_v6  ;;  %v273_v17 = vld [vmem:[#allocation2 + $0x12] sm:$0xff]  ;;  %v257_v21 = vmul.f32 %v1149_v2, %v244_v16  ;;  %210 = vst.msk [vmem:[#allocation2 + $0x62] sm:$0xff] %vm179_vm0, %v175_v28  ;;  %211 = vst.msk [vmem:[#allocation2 + $0x72] sm:$0xff] %vm179_vm0, %v176_v33  ;;  %v402_v46 = vmul.f32 %v1214_v40, %v244_v16 }
  0x1d   : > { %v285_v11 = vmul.f32 %v1154_v3, %v272_v7  ;;  %v301_v12 = vld [vmem:[#allocation2 + $0x3] sm:$0xff]  ;;  %v1178_v18 = vld [vmem:[#allocation2 + $0x13] sm:$0xff]  ;;  %v286_v22 = vmul.f32 %v1154_v3, %v273_v17  ;;  %212 = vst.msk [vmem:[#allocation2 + $0x82] sm:$0xff] %vm179_vm0, %v177_v34  ;;  %213 = vst.msk [vmem:[#allocation2 + $0x92] sm:$0xff] %vm179_vm0, %v178_v35  ;;  %v431_v62 = vmul.f32 %v1223_v50, %v273_v17 }
  0x1e   : > { %v330_v13 = vld [vmem:[#allocation2 + $0x4] sm:$0xff]  ;;  %v264_v19 = vadd.f32 %v256_v10, %v227_v9  ;;  %v314_v20 = vmul.f32 %v1160_v4, %v301_v12  ;;  %v1183_v23 = vld [vmem:[#allocation2 + $0x14] sm:$0xff]  ;;  %v265_v31 = vadd.f32 %v257_v21, %v228_v15  ;;  %v315_v32 = vmul.f32 %v1160_v4, %v1178_v18 }
  0x1f   : > { %v343_v30 = vmul.f32 %v1165_v8, %v330_v13  ;;  %v344_v39 = vmul.f32 %v1165_v8, %v1183_v23  ;;  %v1290_v33 = vld [vmem:[%s1838_s1 + $0xb] ss:$0 sm:$0xff] }
  0x20   : > { %v293_v29 = vadd.f32 %v285_v11, %v264_v19  ;;  %v294_v38 = vadd.f32 %v286_v22, %v265_v31  ;;  %v460_v22 = vmul.f32 %v1246_v5, %v1178_v18  ;;  %v1285_v18 = vld [vmem:[%s1838_s1 + $0xa] ss:$0 sm:$0xff] }
  0x21   : > { %v216_v47 = vld [vmem:[#allocation2 + $0x20] sm:$0xff]  ;;  %v1230_v56 = vld [vmem:[#allocation2 + $0x30] sm:$0xff] }
  0x22   : > { %v322_v37 = vadd.f32 %v314_v20, %v293_v29  ;;  %v323_v42 = vadd.f32 %v315_v32, %v294_v38  ;;  %v245_v48 = vld [vmem:[#allocation2 + $0x21] sm:$0xff]  ;;  %v229_v51 = vmul.f32 %v1144_v1, %v216_v47  ;;  %v374_v54 = vmul.f32 %v1204_v36, %v216_v47  ;;  %v1232_v57 = vld [vmem:[#allocation2 + $0x31] sm:$0xff] }
  0x23   : > { %v1218_v49 = vld [vmem:[#allocation2 + $0x22] sm:$0xff]  ;;  %v258_v52 = vmul.f32 %v1149_v2, %v245_v48  ;;  %v1241_v0 = vld [vmem:[#allocation2 + $0x32] sm:$0xff]  ;;  %v403_v7 = vmul.f32 %v1214_v40, %v245_v48  ;;  %v230_v9 = vmul.f32 %v1144_v1, %v1230_v56  ;;  %v259_v10 = vmul.f32 %v1149_v2, %v1232_v57 }
  0x24   : > { %v351_v41 = vadd.f32 %v343_v30, %v322_v37  ;;  %v352_v44 = vadd.f32 %v344_v39, %v323_v42  ;;  %v1227_v53 = vld [vmem:[#allocation2 + $0x23] sm:$0xff]  ;;  %v287_v59 = vmul.f32 %v1154_v3, %v1218_v49  ;;  %v1255_v13 = vld [vmem:[#allocation2 + $0x33] sm:$0xff]  ;;  %v288_v19 = vmul.f32 %v1154_v3, %v1241_v0 }
  0x25   : > { %v266_v58 = vadd.f32 %v258_v52, %v229_v51  ;;  %v1236_v60 = vld [vmem:[#allocation2 + $0x24] sm:$0xff]  ;;  %v316_v63 = vmul.f32 %v1160_v4, %v1227_v53  ;;  %v267_v17 = vadd.f32 %v259_v10, %v230_v9  ;;  %v432_v24 = vmul.f32 %v1223_v50, %v1218_v49  ;;  %v1272_v25 = vld [vmem:[#allocation2 + $0x34] sm:$0xff] }
  0x26   : > { %v381_v45 = vadd.f32 %v373_v43, %v351_v41  ;;  %v382_v61 = vadd.f32 %v374_v54, %v352_v44  ;;  %v345_v12 = vmul.f32 %v1165_v8, %v1236_v60  ;;  %v1264_v20 = vld [vmem:[#allocation2 + $0x40] sm:$0xff]  ;;  %v317_v28 = vmul.f32 %v1160_v4, %v1255_v13  ;;  %v1330_v10 = vld [vmem:[#allocation2 + $0x52] sm:$0xff] }
  0x27   : > { %v295_v6 = vadd.f32 %v287_v59, %v266_v58  ;;  %v1266_v21 = vld [vmem:[#allocation2 + $0x41] sm:$0xff]  ;;  %v296_v27 = vadd.f32 %v288_v19, %v267_v17  ;;  %v375_v29 = vmul.f32 %v1204_v36, %v1230_v56  ;;  %v489_v32 = vmul.f32 %v1260_v14, %v1183_v23  ;;  %v1318_v59 = vld [vmem:[#allocation2 + $0x51] sm:$0xff]  ;;  %1869 = vst [vmem:[#allocation4_spill] sm:$0xff] %v1330_v10 }
  0x28   : > { %v410_v55 = vadd.f32 %v402_v46, %v381_v45  ;;  %v411_v16 = vadd.f32 %v403_v7, %v382_v61  ;;  %v1278_v30 = vld [vmem:[#allocation2 + $0x42] sm:$0xff]  ;;  %v231_v34 = vmul.f32 %v1144_v1, %v1264_v20  ;;  %v260_v35 = vmul.f32 %v1149_v2, %v1266_v21  ;;  %v1306_v46 = vld [vmem:[#allocation2 + $0x50] sm:$0xff] }
  0x29   : > { %v324_v15 = vadd.f32 %v316_v63, %v295_v6  ;;  %v325_v38 = vadd.f32 %v317_v28, %v296_v27  ;;  %v346_v23 = vmul.f32 %v1165_v8, %v1272_v25  ;;  %v1298_v41 = vld [vmem:[#allocation2 + $0x43] sm:$0xff]  ;;  %v461_v42 = vmul.f32 %v1246_v5, %v1227_v53  ;;  %v1336_v17 = vld [vmem:[#allocation2 + $0x53] sm:$0xff] }
  0x2a   : > { %v439_v11 = vadd.f32 %v431_v62, %v410_v55  ;;  %v440_v37 = vadd.f32 %v432_v24, %v411_v16  ;;  %v490_v43 = vmul.f32 %v1260_v14, %v1236_v60  ;;  %v268_v44 = vadd.f32 %v260_v35, %v231_v34  ;;  %v1316_v58 = vld [vmem:[#allocation2 + $0x44] sm:$0xff] }
  0x2b   : > { %v353_v26 = vadd.f32 %v345_v12, %v324_v15  ;;  %v289_v45 = vmul.f32 %v1154_v3, %v1278_v30  ;;  %v1309_v51 = vmul.f32 %v1285_v18, %v216_v47  ;;  %v1312_v52 = vmul.f32 %v1290_v33, %v245_v48  ;;  %1868 = vst [vmem:[#allocation3_spill] sm:$0xff] %v1316_v58  ;;  %v1354_v34 = vld [vmem:[#allocation2 + $0x61] sm:$0xff] }
  0x2c   : > { %v468_v31 = vadd.f32 %v460_v22, %v439_v11  ;;  %v354_v54 = vadd.f32 %v346_v23, %v325_v38  ;;  %v404_v55 = vmul.f32 %v1214_v40, %v1232_v57  ;;  %v318_v63 = vmul.f32 %v1160_v4, %v1298_v41 }
  0x2d   : > { %v383_v39 = vadd.f32 %v375_v29, %v353_v26  ;;  %v297_v62 = vadd.f32 %v289_v45, %v268_v44  ;;  %v376_v47 = vmul.f32 %v1204_v36, %v1264_v20  ;;  %v469_v6 = vadd.f32 %v461_v42, %v440_v37 }
  0x2e   : > { %v1320_v61 = vadd.f32 %v489_v32, %v468_v31  ;;  %v433_v7 = vmul.f32 %v1223_v50, %v1241_v0  ;;  %v232_v9 = vmul.f32 %v1144_v1, %v1306_v46  ;;  %v347_v12 = vmul.f32 %v1165_v8, %v1316_v58  ;;  %v1352_v32 = vld [vmem:[#allocation2 + $0x60] sm:$0xff] }
  0x2f   : > { %v412_v48 = vadd.f32 %v404_v55, %v383_v39  ;;  %v326_v11 = vadd.f32 %v318_v63, %v297_v62  ;;  %v384_v15 = vadd.f32 %v376_v47, %v354_v54  ;;  %v261_v16 = vmul.f32 %v1149_v2, %v1318_v59  ;;  %v1364_v39 = vld [vmem:[#allocation2 + $0x54] sm:$0xff]  ;;  %v1368_v55 = vld [vmem:[#allocation2 + $0x62] sm:$0xff] }
  0x30   : > { %v462_v19 = vmul.f32 %v1246_v5, %v1255_v13  ;;  %v491_v22 = vmul.f32 %v1260_v14, %v1272_v25  ;;  %v1344_v24 = vmul.f32 %v1285_v18, %v1230_v56  ;;  %v405_v26 = vmul.f32 %v1214_v40, %v1266_v21 }
  0x31   : > { %v355_v27 = vadd.f32 %v347_v12, %v326_v11  ;;  %v269_v28 = vadd.f32 %v261_v16, %v232_v9  ;;  %v290_v29 = vmul.f32 %v1154_v3, %v1330_v10  ;;  %v377_v31 = vmul.f32 %v1204_v36, %v1306_v46  ;;  %v1382_v11 = vld [vmem:[#allocation2 + $0x63] sm:$0xff] }
  0x32   : > { %v1356_v35 = vadd.f32 %v490_v43, %v469_v6  ;;  %v441_v37 = vadd.f32 %v433_v7, %v412_v48  ;;  %v1360_v38 = vmul.f32 %v1290_v33, %v1232_v57  ;;  %v319_v23 = vmul.f32 %v1160_v4, %v1336_v17 }
  0x33   : > { %v413_v42 = vadd.f32 %v405_v26, %v384_v15  ;;  %v298_v44 = vadd.f32 %v290_v29, %v269_v28  ;;  %v385_v45 = vadd.f32 %v377_v31, %v355_v27  ;;  %v406_v54 = vmul.f32 %v1214_v40, %v1318_v59  ;;  %v1390_v27 = vld [vmem:[#allocation2 + $0x70] sm:$0xff] }
  0x34   : > { %v434_v43 = vmul.f32 %v1223_v50, %v1278_v30  ;;  %v463_v62 = vmul.f32 %v1246_v5, %v1298_v41  ;;  %v233_v63 = vmul.f32 %v1144_v1, %v1352_v32  ;;  %v262_v47 = vmul.f32 %v1149_v2, %v1354_v34  ;;  %v1392_v28 = vld [vmem:[#allocation2 + $0x71] sm:$0xff] }
  0x35   : > { %v492_v6 = vmul.f32 %v1260_v14, %v1316_v58  ;;  %v327_v48 = vadd.f32 %v319_v23, %v298_v44  ;;  %v348_v7 = vmul.f32 %v1165_v8, %v1364_v39  ;;  %v414_v9 = vadd.f32 %v406_v54, %v385_v45  ;;  %1871 = vst [vmem:[#allocation6_spill] sm:$0xff] %v1392_v28  ;;  %v1396_v44 = vld [vmem:[#allocation2 + $0x64] sm:$0xff]  ;;  %v1420_v58 = vld [vmem:[#allocation2 + $0x73] sm:$0xff] }
  0x36   : > { %v470_v12 = vadd.f32 %v462_v19, %v441_v37  ;;  %v1386_v15 = vmul.f32 %v1285_v18, %v1264_v20  ;;  %v270_v16 = vadd.f32 %v262_v47, %v233_v63  ;;  %v291_v26 = vmul.f32 %v1154_v3, %v1368_v55  ;;  %1874 = vst [vmem:[#allocation9_spill] sm:$0xff] %v1420_v58 }
  0x37   : > { %v442_v29 = vadd.f32 %v434_v43, %v413_v42  ;;  %v356_v31 = vadd.f32 %v348_v7, %v327_v48  ;;  %v435_v23 = vmul.f32 %v1223_v50, %v1330_v10  ;;  %v378_v19 = vmul.f32 %v1204_v36, %v1352_v32  ;;  %v1408_v43 = vld [vmem:[#allocation2 + $0x72] sm:$0xff] }
  0x38   : > { %1870 = vst [vmem:[#allocation5_spill] sm:$0xff] %v1386_v15  ;;  %v1402_v37 = vmul.f32 %v1290_v33, %v1266_v21  ;;  %v299_v45 = vadd.f32 %v291_v26, %v270_v16  ;;  %v320_v54 = vmul.f32 %v1160_v4, %v1382_v11  ;;  %v407_v42 = vmul.f32 %v1214_v40, %v1354_v34 }
  0x39   : > { %1873 = vst [vmem:[#allocation8_spill] sm:$0xff] %v1408_v43  ;;  %v443_v63 = vadd.f32 %v435_v23, %v414_v9  ;;  %v386_v47 = vadd.f32 %v378_v19, %v356_v31  ;;  %v234_v48 = vmul.f32 %v1144_v1, %v1390_v27  ;;  %v263_v7 = vmul.f32 %v1149_v2, %v1392_v28  ;;  %v1428_v23 = vld [vmem:[#allocation2 + $0x74] sm:$0xff] }
  0x3a   : > { %1872 = vst [vmem:[#allocation7_spill] sm:$0xff] %v1402_v37  ;;  %v1414_v10 = vadd.f32 %v491_v22, %v470_v12  ;;  %v464_v16 = vmul.f32 %v1246_v5, %v1336_v17  ;;  %v328_v26 = vadd.f32 %v320_v54, %v299_v45  ;;  %v349_v37 = vmul.f32 %v1165_v8, %v1396_v44  ;;  %v1432_v45 = vld [vmem:[#allocation2 + $0x80] sm:$0xff] }
  0x3b   : > { %v471_v15 = vadd.f32 %v463_v62, %v442_v29  ;;  %v415_v9 = vadd.f32 %v407_v42, %v386_v47  ;;  %v271_v31 = vadd.f32 %v263_v7, %v234_v48  ;;  %v292_v1 = vmul.f32 %v1154_v3, %v1408_v43  ;;  %1875 = vst [vmem:[#allocation10_spill] sm:$0xff] %v1428_v23 }
  0x3c   : > { %v493_v2 = vmul.f32 %v1260_v14, %v1364_v39  ;;  %v357_v22 = vadd.f32 %v349_v37, %v328_v26  ;;  %v436_v12 = vmul.f32 %v1223_v50, %v1368_v55  ;;  %v379_v19 = vmul.f32 %v1204_v36, %v1390_v27  ;;  %1876 = vst [vmem:[#allocation11_spill] sm:$0xff] %v1432_v45 }
  0x3d   : > { %v472_v62 = vadd.f32 %v464_v16, %v443_v63  ;;  %v1436_v29 = vmul.f32 %v1285_v18, %v1306_v46  ;;  %v300_v3 = vadd.f32 %v292_v1, %v271_v31  ;;  %v321_v54 = vmul.f32 %v1160_v4, %v1420_v58 }
  0x3e   : > { %v1442_v37 = vmul.f32 %v1290_v33, %v1318_v59  ;;  %v444_v42 = vadd.f32 %v436_v12, %v415_v9  ;;  %v387_v47 = vadd.f32 %v379_v19, %v357_v22  ;;  %v408_v48 = vmul.f32 %v1214_v40, %v1392_v28  ;;  %v1470_v12 = vld [vmem:[#allocation2 + $0x82] sm:$0xff]  ;;  %v1475_v19 = vld [vmem:[%s1838_s1 + $0xc] ss:$0 sm:$0xff] }
  0x3f   : > { %v1446_v7 = vadd.f32 %v492_v6, %v471_v15  ;;  %v329_v63 = vadd.f32 %v321_v54, %v300_v3  ;;  %v350_v16 = vmul.f32 %v1165_v8, %v1428_v23  ;;  %v380_v26 = vmul.f32 %v1204_v36, %v1432_v45  ;;  %v1460_v6 = vld [vmem:[#allocation2 + $0x81] sm:$0xff]  ;;  %1878 = vst [vmem:[#allocation13_spill] sm:$0xff] %v1470_v12 }
  0x40   : > { %v465_v4 = vmul.f32 %v1246_v5, %v1382_v11  ;;  %v494_v31 = vmul.f32 %v1260_v14, %v1396_v44  ;;  %v1458_v9 = vmul.f32 %v1285_v18, %v1352_v32  ;;  %v416_v1 = vadd.f32 %v408_v48, %v387_v47  ;;  %1877 = vst [vmem:[#allocation12_spill] sm:$0xff] %v1460_v6  ;;  %v1481_v54 = vld [vmem:[#allocation2 + $0x83] sm:$0xff] }
  0x41   : > { %v1462_v15 = vadd.f32 %v493_v2, %v472_v62  ;;  %v1466_v8 = vmul.f32 %v1290_v33, %v1354_v34  ;;  %v358_v36 = vadd.f32 %v350_v16, %v329_v63  ;;  %v437_v22 = vmul.f32 %v1223_v50, %v1408_v43  ;;  %1879 = vst [vmem:[#allocation14_spill] sm:$0xff] %v1481_v54  ;;  %v1483_v47 = vld [vmem:[#allocation2 + $0x84] sm:$0xff] }
  0x42   : > { %v473_v3 = vadd.f32 %v465_v4, %v444_v42  ;;  %v466_v2 = vmul.f32 %v1246_v5, %v1420_v58  ;;  %v495_v62 = vmul.f32 %v1260_v14, %v1428_v23  ;;  %1880 = vst [vmem:[#allocation15_spill] sm:$0xff] %v1483_v47  ;;  %v526_v48 = vadd.f32 %v1309_v51, %v1320_v61  ;;  %v1496_v4 = vld [vmem:[%s1838_s1 + $0xd] ss:$0 sm:$0xff]  ;;  %v1504_v61 = vld [vmem:[#allocation2 + $0x90] sm:$0xff] }
  0x43   : > { %v445_v63 = vadd.f32 %v437_v22, %v416_v1  ;;  %v1489_v16 = vmul.f32 %v1285_v18, %v1390_v27  ;;  %v388_v43 = vadd.f32 %v380_v26, %v358_v36  ;;  %v409_v42 = vmul.f32 %v1214_v40, %v1460_v6  ;;  %1882 = vst [vmem:[#allocation17_spill] sm:$0xff] %v1504_v61  ;;  %v1506_v1 = vld [vmem:[#allocation2 + $0x91] sm:$0xff] }
  0x44   : > { %v1500_v23 = vmul.f32 %v1290_v33, %v1392_v28  ;;  %v438_v51 = vmul.f32 %v1223_v50, %v1470_v12  ;;  %1883 = vst [vmem:[#allocation18_spill] sm:$0xff] %v1506_v1  ;;  %v555_v26 = vadd.f32 %v1312_v52, %v526_v48  ;;  %v576_v40 = vmul.f32 %v1475_v19, %v1218_v49  ;;  %v1522_v50 = vld [vmem:[%s1838_s1 + $0xe] ss:$0 sm:$0xff]  ;;  %v1527_v49 = vld [vmem:[%s1838_s1 + $0xf] ss:$0 sm:$0xff] }
  0x45   : > { %v417_v36 = vadd.f32 %v409_v42, %v388_v43  ;;  %v467_v22 = vmul.f32 %v1246_v5, %v1481_v54  ;;  %v496_v58 = vmul.f32 %v1260_v14, %v1483_v47  ;;  %v1532_v5 = vld [vmem:[%s1838_s1 + $0x10] ss:$0 sm:$0xff]  ;;  %v1534_v14 = vadd.f32 %v494_v31, %v473_v3  ;;  %v1545_v42 = vld [vmem:[%s1838_s1 + $0x11] ss:$0 sm:$0xff]  ;;  %v1558_v3 = vld [vmem:[%s1838_s1 + $0x12] ss:$0 sm:$0xff] }
  0x46   : > { %1881 = vst [vmem:[#allocation16_spill] sm:$0xff] %v1500_v23  ;;  %v1517_v23 = vmul.f32 %v1285_v18, %v1432_v45  ;;  %v1538_v52 = vmul.f32 %v1290_v33, %v1460_v6  ;;  %v584_v43 = vadd.f32 %v576_v40, %v555_v26  ;;  %v605_v48 = vmul.f32 %v1496_v4, %v1227_v53  ;;  %v1563_v53 = vld [vmem:[%s1838_s1 + $0x13] ss:$0 sm:$0xff] }
  0x47   : > { %v474_v47 = vadd.f32 %v466_v2, %v445_v63  ;;  %v1549_v54 = vmul.f32 %v1285_v18, %v1504_v61  ;;  %v1553_v31 = vmul.f32 %v1290_v33, %v1506_v1  ;;  %v1568_v2 = vld [vmem:[%s1838_s1 + $0x14] ss:$0 sm:$0xff]  ;;  %v527_v18 = vadd.f32 %v1344_v24, %v1356_v35  ;;  %v1581_v1 = vld [vmem:[%s1838_s1 + $0x15] ss:$0 sm:$0xff]  ;;  %v1588_v24 = vld [vmem:[%s1838_s1 + $0x16] ss:$0 sm:$0xff] }
  0x48   : > { %1884 = vst [vmem:[#allocation19_spill] sm:$0xff] %v1517_v23  ;;  %1885 = vst [vmem:[#allocation20_spill] sm:$0xff] %v1538_v52  ;;  %v613_v33 = vadd.f32 %v605_v48, %v584_v43  ;;  %v634_v63 = vmul.f32 %v1522_v50, %v1236_v60  ;;  %v664_v26 = vmul.f32 %v1527_v49, %v1230_v56  ;;  %v1593_v56 = vld [vmem:[%s1838_s1 + $0x17] ss:$0 sm:$0xff]  ;;  %v1607_v48 = vld [vmem:[%s1838_s1 + $0x18] ss:$0 sm:$0xff] }
  0x49   : > { %1886 = vst [vmem:[#allocation21_spill] sm:$0xff] %v1549_v54  ;;  %1887 = vst [vmem:[#allocation22_spill] sm:$0xff] %v1553_v31  ;;  %v693_v40 = vmul.f32 %v1532_v5, %v1232_v57  ;;  %v446_v61 = vadd.f32 %v438_v51, %v417_v36  ;;  %v722_v31 = vmul.f32 %v1545_v42, %v1241_v0  ;;  %v1889_v52 = vld [vmem:[#allocation5_spill] sm:$0xff] }
  0x4a   : > { %v556_v57 = vadd.f32 %v1360_v38, %v527_v18  ;;  %v577_v60 = vmul.f32 %v1475_v19, %v1241_v0  ;;  %v642_v35 = vadd.f32 %v634_v63, %v613_v33  ;;  %v751_v51 = vmul.f32 %v1558_v3, %v1255_v13 }
  0x4b   : > { %v780_v36 = vmul.f32 %v1563_v53, %v1272_v25  ;;  %v810_v43 = vmul.f32 %v1568_v2, %v1264_v20  ;;  %v1609_v54 = vadd.f32 %v495_v62, %v474_v47  ;;  %v839_v0 = vmul.f32 %v1581_v1, %v1266_v21  ;;  %v1890_v62 = vld [vmem:[#allocation3_spill] sm:$0xff] }
  0x4c   : > { %v585_v38 = vadd.f32 %v577_v60, %v556_v57  ;;  %v606_v18 = vmul.f32 %v1496_v4, %v1255_v13  ;;  %v672_v33 = vadd.f32 %v664_v26, %v642_v35  ;;  %v868_v63 = vmul.f32 %v1588_v24, %v1278_v30  ;;  %v1891_v60 = vld [vmem:[#allocation7_spill] sm:$0xff] }
  0x4d   : > { %1888 = vst [vmem:[#allocation23_spill] sm:$0xff] %v1609_v54  ;;  %v897_v12 = vmul.f32 %v1593_v56, %v1298_v41  ;;  %v528_v6 = vadd.f32 %v1889_v52, %v1414_v10  ;;  %v475_v23 = vadd.f32 %v467_v22, %v446_v61  ;;  %v1623_v47 = vmul.f32 %v1607_v48, %v1890_v62 }
  0x4e   : > { %v614_v54 = vadd.f32 %v606_v18, %v585_v38  ;;  %v635_v57 = vmul.f32 %v1522_v50, %v1272_v25  ;;  %v701_v13 = vadd.f32 %v693_v40, %v672_v33  ;;  %v665_v26 = vmul.f32 %v1527_v49, %v1264_v20 }
  0x4f   : > { %v557_v35 = vadd.f32 %v1891_v60, %v528_v6  ;;  %v578_v45 = vmul.f32 %v1475_v19, %v1278_v30  ;;  %v694_v10 = vmul.f32 %v1532_v5, %v1266_v21  ;;  %v723_v61 = vmul.f32 %v1545_v42, %v1278_v30 }
  0x50   : > { %v643_v28 = vadd.f32 %v635_v57, %v614_v54  ;;  %v752_v22 = vmul.f32 %v1558_v3, %v1298_v41  ;;  %v730_v25 = vadd.f32 %v722_v31, %v701_v13  ;;  %v781_v52 = vmul.f32 %v1563_v53, %v1890_v62  ;;  %v1892_v57 = vld [vmem:[#allocation4_spill] sm:$0xff] }
  0x51   : > { %v586_v20 = vadd.f32 %v578_v45, %v557_v35  ;;  %v607_v6 = vmul.f32 %v1496_v4, %v1298_v41  ;;  %v1642_v40 = vadd.f32 %v496_v58, %v475_v23  ;;  %v811_v21 = vmul.f32 %v1568_v2, %v1306_v46 }
  0x52   : > { %v673_v54 = vadd.f32 %v665_v26, %v643_v28  ;;  %v840_v30 = vmul.f32 %v1581_v1, %v1318_v59  ;;  %v759_v38 = vadd.f32 %v751_v51, %v730_v25  ;;  %v636_v31 = vmul.f32 %v1522_v50, %v1890_v62 }
  0x53   : > { %v615_v18 = vadd.f32 %v607_v6, %v586_v20  ;;  %v529_v45 = vadd.f32 %v1436_v29, %v1446_v7  ;;  %v869_v41 = vmul.f32 %v1588_v24, %v1892_v57  ;;  %v898_v58 = vmul.f32 %v1593_v56, %v1336_v17 }
  0x54   : > { %v702_v33 = vadd.f32 %v694_v10, %v673_v54  ;;  %v666_v28 = vmul.f32 %v1527_v49, %v1306_v46  ;;  %v788_v23 = vadd.f32 %v780_v36, %v759_v38  ;;  %v579_v62 = vmul.f32 %v1475_v19, %v1892_v57 }
  0x55   : > { %v644_v13 = vadd.f32 %v636_v31, %v615_v18  ;;  %v558_v51 = vadd.f32 %v1442_v37, %v529_v45  ;;  %v927_v29 = vmul.f32 %v1607_v48, %v1364_v39  ;;  %v695_v7 = vmul.f32 %v1532_v5, %v1318_v59 }
  0x56   : > { %v731_v26 = vadd.f32 %v723_v61, %v702_v33  ;;  %v724_v60 = vmul.f32 %v1545_v42, %v1892_v57  ;;  %v818_v35 = vadd.f32 %v810_v43, %v788_v23  ;;  %v608_v36 = vmul.f32 %v1496_v4, %v1336_v17 }
  0x57   : > { %v674_v10 = vadd.f32 %v666_v28, %v644_v13  ;;  %v587_v46 = vadd.f32 %v579_v62, %v558_v51  ;;  %v753_v25 = vmul.f32 %v1558_v3, %v1336_v17  ;;  %v782_v61 = vmul.f32 %v1563_v53, %v1364_v39 }
  0x58   : > { %v760_v37 = vadd.f32 %v752_v22, %v731_v26  ;;  %v812_v20 = vmul.f32 %v1568_v2, %v1352_v32  ;;  %v847_v59 = vadd.f32 %v839_v0, %v818_v35  ;;  %v637_v43 = vmul.f32 %v1522_v50, %v1364_v39 }
  0x59   : > { %v703_v6 = vadd.f32 %v695_v7, %v674_v10  ;;  %v616_v54 = vadd.f32 %v608_v36, %v587_v46  ;;  %v841_v18 = vmul.f32 %v1581_v1, %v1354_v34  ;;  %v870_v22 = vmul.f32 %v1588_v24, %v1368_v55 }
  0x5a   : > { %v789_v38 = vadd.f32 %v781_v52, %v760_v37  ;;  %v530_v17 = vadd.f32 %v1458_v9, %v1462_v15  ;;  %v876_v31 = vadd.f32 %v868_v63, %v847_v59  ;;  %v667_v0 = vmul.f32 %v1527_v49, %v1352_v32  ;;  %v1695_v32 = vld [vmem:[%s1839_s2] ss:$0 sm:$0xff] }
  0x5b   : > { %v732_v45 = vadd.f32 %v724_v60, %v703_v6  ;;  %v645_v33 = vadd.f32 %v637_v43, %v616_v54  ;;  %v899_v39 = vmul.f32 %v1593_v56, %v1382_v11  ;;  %v580_v28 = vmul.f32 %v1475_v19, %v1368_v55 }
  0x5c   : > { %v819_v57 = vadd.f32 %v811_v21, %v789_v38  ;;  %v559_v52 = vadd.f32 %v1466_v8, %v530_v17  ;;  %v905_v23 = vadd.f32 %v897_v12, %v876_v31  ;;  %v696_v9 = vmul.f32 %v1532_v5, %v1354_v34  ;;  %v1895_v38 = vld [vmem:[#allocation8_spill] sm:$0xff] }
  0x5d   : > { %v761_v13 = vadd.f32 %v753_v25, %v732_v45  ;;  %v675_v51 = vadd.f32 %v667_v0, %v645_v33  ;;  %v928_v63 = vmul.f32 %v1607_v48, %v1396_v44  ;;  %v609_v8 = vmul.f32 %v1496_v4, %v1382_v11 }
  0x5e   : > { %v848_v15 = vadd.f32 %v840_v30, %v819_v57  ;;  %v588_v21 = vadd.f32 %v580_v28, %v559_v52  ;;  %v934_v12 = vadd.f32 %v1623_v47, %v905_v23  ;;  %v725_v34 = vmul.f32 %v1545_v42, %v1368_v55 }
  0x5f   : > { %v790_v62 = vadd.f32 %v782_v61, %v761_v13  ;;  %v704_v26 = vadd.f32 %v696_v9, %v675_v51  ;;  %v754_v7 = vmul.f32 %v1558_v3, %v1382_v11  ;;  %v638_v47 = vmul.f32 %v1522_v50, %v1396_v44  ;;  %v1897_v9 = vld [vmem:[#allocation10_spill] sm:$0xff] }
  0x60   : > { %v877_v30 = vadd.f32 %v869_v41, %v848_v15  ;;  %v617_v60 = vadd.f32 %v609_v8, %v588_v21  ;;  %v949_v35 = vadd.f32 %v1695_v32, %v934_v12  ;;  %v783_v55 = vmul.f32 %v1563_v53, %v1396_v44 }
  0x61   : > { %v820_v10 = vadd.f32 %v812_v20, %v790_v62  ;;  %v733_v46 = vadd.f32 %v725_v34, %v704_v26  ;;  %v668_v25 = vmul.f32 %v1527_v49, %v1390_v27  ;;  %v531_v41 = vadd.f32 %v1489_v16, %v1534_v14  ;;  %v1893_v20 = vld [vmem:[#allocation6_spill] sm:$0xff]  ;;  %v1898_v34 = vld [vmem:[#allocation11_spill] sm:$0xff] }
  0x62   : > { %v906_v36 = vadd.f32 %v898_v58, %v877_v30  ;;  %v646_v37 = vadd.f32 %v638_v47, %v617_v60  ;;  %957 = vst.msk [vmem:[%s1709_s25] sm:$0xff] %vm179_vm0, %v949_v35  ;;  %v813_v59 = vmul.f32 %v1568_v2, %v1390_v27  ;;  %v697_v6 = vmul.f32 %v1532_v5, %v1893_v20  ;;  %v1894_v58 = vld [vmem:[#allocation16_spill] sm:$0xff]  ;;  %v1900_v60 = vld [vmem:[#allocation19_spill] sm:$0xff] }
  0x63   : > { %v849_v11 = vadd.f32 %v841_v18, %v820_v10  ;;  %v762_v61 = vadd.f32 %v754_v7, %v733_v46  ;;  %v560_v43 = vadd.f32 %v1894_v58, %v531_v41  ;;  %v581_v17 = vmul.f32 %v1475_v19, %v1895_v38  ;;  %v1899_v7 = vld [vmem:[#allocation23_spill] sm:$0xff]  ;;  %v1901_v46 = vld [vmem:[#allocation12_spill] sm:$0xff] }
  0x64   : > { %v935_v54 = vadd.f32 %v927_v29, %v906_v36  ;;  %v676_v44 = vadd.f32 %v668_v25, %v646_v37  ;;  %v842_v14 = vmul.f32 %v1581_v1, %v1893_v20  ;;  %v726_v18 = vmul.f32 %v1545_v42, %v1895_v38  ;;  %v1896_v29 = vld [vmem:[#allocation9_spill] sm:$0xff]  ;;  %v1902_v25 = vld [vmem:[#allocation20_spill] sm:$0xff] }
  0x65   : > { %v878_v31 = vadd.f32 %v870_v22, %v849_v11  ;;  %v791_v16 = vadd.f32 %v783_v55, %v762_v61  ;;  %v589_v33 = vadd.f32 %v581_v17, %v560_v43  ;;  %v610_v0 = vmul.f32 %v1496_v4, %v1896_v29  ;;  %v1903_v11 = vld [vmem:[#allocation13_spill] sm:$0xff]  ;;  %v1904_v17 = vld [vmem:[#allocation14_spill] sm:$0xff] }
  0x66   : > { %v950_v27 = vadd.f32 %v1695_v32, %v935_v54  ;;  %v705_v45 = vadd.f32 %v697_v6, %v676_v44  ;;  %v871_v28 = vmul.f32 %v1588_v24, %v1895_v38  ;;  %v900_v22 = vmul.f32 %v1593_v56, %v1896_v29  ;;  %v570_v44 = vld [vmem:[#allocation2 + $0x92] sm:$0xff] }
  0x67   : > { %v907_v57 = vadd.f32 %v899_v39, %v878_v31  ;;  %v821_v52 = vadd.f32 %v813_v59, %v791_v16  ;;  %v755_v13 = vmul.f32 %v1558_v3, %v1896_v29  ;;  %v618_v51 = vadd.f32 %v610_v0, %v589_v33  ;;  %v889_v0 = vld [vmem:[#allocation2 + $0x93] sm:$0xff] }
  0x68   : > { %958 = vst.msk [vmem:[%s1709_s25 + $0x8] sm:$0xff] %vm179_vm0, %v950_v27  ;;  %v734_v23 = vadd.f32 %v726_v18, %v705_v45  ;;  %v639_v15 = vmul.f32 %v1522_v50, %v1897_v9  ;;  %v929_v8 = vmul.f32 %v1607_v48, %v1897_v9  ;;  %v784_v12 = vmul.f32 %v1563_v53, %v1897_v9  ;;  %v1905_v27 = vld [vmem:[#allocation21_spill] sm:$0xff] }
  0x69   : > { %v936_v21 = vadd.f32 %v928_v63, %v907_v57  ;;  %v850_v39 = vadd.f32 %v842_v14, %v821_v52  ;;  %v669_v30 = vmul.f32 %v1527_v49, %v1898_v34  ;;  %v532_v47 = vadd.f32 %v1900_v60, %v1899_v7  ;;  %v1906_v52 = vld [vmem:[#allocation15_spill] sm:$0xff] }
  0x6a   : > { %v763_v62 = vadd.f32 %v755_v13, %v734_v23  ;;  %v647_v26 = vadd.f32 %v639_v15, %v618_v51  ;;  %v814_v63 = vmul.f32 %v1568_v2, %v1898_v34  ;;  %v698_v55 = vmul.f32 %v1532_v5, %v1901_v46  ;;  %v1907_v13 = vld [vmem:[#allocation22_spill] sm:$0xff] }
  0x6b   : > { %v951_v35 = vadd.f32 %v1695_v32, %v936_v21  ;;  %v879_v10 = vadd.f32 %v871_v28, %v850_v39  ;;  %v561_v41 = vadd.f32 %v1902_v25, %v532_v47  ;;  %v582_v61 = vmul.f32 %v1475_v19, %v1903_v11 }
  0x6c   : > { %v792_v36 = vadd.f32 %v784_v12, %v763_v62  ;;  %v677_v37 = vadd.f32 %v669_v30, %v647_v26  ;;  %v843_v20 = vmul.f32 %v1581_v1, %v1901_v46  ;;  %v872_v6 = vmul.f32 %v1588_v24, %v1903_v11  ;;  %v803_v62 = vld [vmem:[#allocation2 + $0xa0] sm:$0xff] }
  0x6d   : > { %959 = vst.msk [vmem:[%s1709_s25 + $0x10] sm:$0xff] %vm179_vm0, %v951_v35  ;;  %v908_v59 = vadd.f32 %v900_v22, %v879_v10  ;;  %v727_v54 = vmul.f32 %v1545_v42, %v1903_v11  ;;  %v590_v38 = vadd.f32 %v582_v61, %v561_v41  ;;  %v611_v31 = vmul.f32 %v1496_v4, %v1904_v17  ;;  %v1909_v35 = vld [vmem:[#allocation18_spill] sm:$0xff]  ;;  %v832_v11 = vld [vmem:[#allocation2 + $0xa1] sm:$0xff] }
  0x6e   : > { %v822_v58 = vadd.f32 %v814_v63, %v792_v36  ;;  %v706_v43 = vadd.f32 %v698_v55, %v677_v37  ;;  %v901_v14 = vmul.f32 %v1593_v56, %v1904_v17  ;;  %v756_v18 = vmul.f32 %v1558_v3, %v1904_v17 }
  0x6f   : > { %v937_v16 = vadd.f32 %v929_v8, %v908_v59  ;;  %v533_v45 = vadd.f32 %v1905_v27, %v1642_v40  ;;  %v619_v57 = vadd.f32 %v611_v31, %v590_v38  ;;  %v640_v28 = vmul.f32 %v1522_v50, %v1906_v52  ;;  %v918_v40 = vld [vmem:[#allocation2 + $0x94] sm:$0xff] }
  0x70   : > { %v851_v33 = vadd.f32 %v843_v20, %v822_v58  ;;  %v735_v29 = vadd.f32 %v727_v54, %v706_v43  ;;  %v785_v23 = vmul.f32 %v1563_v53, %v1906_v52  ;;  %v583_v9 = vmul.f32 %v1475_v19, %v570_v44  ;;  %v1908_v8 = vld [vmem:[#allocation17_spill] sm:$0xff]  ;;  %v861_v43 = vld [vmem:[#allocation2 + $0xa2] sm:$0xff] }
  0x71   : > { %v952_v22 = vadd.f32 %v1695_v32, %v937_v16  ;;  %v562_v51 = vadd.f32 %v1907_v13, %v533_v45  ;;  %v648_v39 = vadd.f32 %v640_v28, %v619_v57  ;;  %v670_v12 = vmul.f32 %v1527_v49, %v1908_v8  ;;  %v804_v57 = vld [vmem:[#allocation2 + $0xb0] sm:$0xff] }
  0x72   : > { %v880_v15 = vadd.f32 %v872_v6, %v851_v33  ;;  %v764_v21 = vadd.f32 %v756_v18, %v735_v29  ;;  %v930_v26 = vmul.f32 %v1607_v48, %v1906_v52  ;;  %v815_v34 = vmul.f32 %v1568_v2, %v1908_v8 }
  0x73   : > { %960 = vst.msk [vmem:[%s1709_s25 + $0x18] sm:$0xff] %vm179_vm0, %v952_v22  ;;  %v591_v30 = vadd.f32 %v583_v9, %v562_v51  ;;  %v612_v7 = vmul.f32 %v1496_v4, %v889_v0  ;;  %v678_v47 = vadd.f32 %v670_v12, %v648_v39  ;;  %v699_v10 = vmul.f32 %v1532_v5, %v1909_v35  ;;  %v862_v12 = vld [vmem:[#allocation2 + $0xb2] sm:$0xff] }
  0x74   : > { %v909_v19 = vadd.f32 %v901_v14, %v880_v15  ;;  %v793_v60 = vadd.f32 %v785_v23, %v764_v21  ;;  %v844_v63 = vmul.f32 %v1581_v1, %v1909_v35  ;;  %v641_v55 = vmul.f32 %v1522_v50, %v918_v40 }
  0x75   : > { %v620_v46 = vadd.f32 %v612_v7, %v591_v30  ;;  %v671_v36 = vmul.f32 %v1527_v49, %v803_v62  ;;  %v707_v41 = vadd.f32 %v699_v10, %v678_v47  ;;  %v728_v4 = vmul.f32 %v1545_v42, %v570_v44 }
  0x76   : > { %v938_v37 = vadd.f32 %v930_v26, %v909_v19  ;;  %v823_v25 = vadd.f32 %v815_v34, %v793_v60  ;;  %v873_v61 = vmul.f32 %v1588_v24, %v570_v44  ;;  %v757_v58 = vmul.f32 %v1558_v3, %v889_v0  ;;  %v890_v44 = vld [vmem:[#allocation2 + $0xa3] sm:$0xff]  ;;  %v891_v34 = vld [vmem:[#allocation2 + $0xb3] sm:$0xff] }
  0x77   : > { %v649_v59 = vadd.f32 %v641_v55, %v620_v46  ;;  %v736_v54 = vadd.f32 %v728_v4, %v707_v41  ;;  %v700_v38 = vmul.f32 %v1532_v5, %v832_v11  ;;  %v902_v17 = vmul.f32 %v1593_v56, %v889_v0  ;;  %v919_v5 = vld [vmem:[#allocation2 + $0xa4] sm:$0xff]  ;;  %v920_v60 = vld [vmem:[#allocation2 + $0xb4] sm:$0xff] }
  0x78   : > { %v953_v20 = vadd.f32 %v1695_v32, %v938_v37  ;;  %v852_v6 = vadd.f32 %v844_v63, %v823_v25  ;;  %v786_v16 = vmul.f32 %v1563_v53, %v918_v40  ;;  %v729_v18 = vmul.f32 %v1545_v42, %v861_v43 }
  0x79   : > { %v679_v50 = vadd.f32 %v671_v36, %v649_v59  ;;  %v765_v31 = vadd.f32 %v757_v58, %v736_v54  ;;  %v931_v45 = vmul.f32 %v1607_v48, %v918_v40  ;;  %v816_v29 = vmul.f32 %v1568_v2, %v803_v62  ;;  %v833_v40 = vld [vmem:[#allocation2 + $0xb1] sm:$0xff] }
  0x7a   : > { %961 = vst.msk [vmem:[%s1709_s25 + $0x20] sm:$0xff] %vm179_vm0, %v953_v20  ;;  %v881_v49 = vadd.f32 %v873_v61, %v852_v6  ;;  %v758_v28 = vmul.f32 %v1558_v3, %v890_v44  ;;  %v845_v23 = vmul.f32 %v1581_v1, %v832_v11  ;;  %v787_v51 = vmul.f32 %v1563_v53, %v919_v5 }
  0x7b   : > { %v708_v14 = vadd.f32 %v700_v38, %v679_v50  ;;  %v794_v33 = vadd.f32 %v786_v16, %v765_v31  ;;  %v817_v42 = vmul.f32 %v1568_v2, %v804_v57  ;;  %v874_v21 = vmul.f32 %v1588_v24, %v861_v43 }
  0x7c   : > { %v910_v27 = vadd.f32 %v902_v17, %v881_v49  ;;  %v903_v3 = vmul.f32 %v1593_v56, %v890_v44  ;;  %v846_v26 = vmul.f32 %v1581_v1, %v833_v40  ;;  %v932_v2 = vmul.f32 %v1607_v48, %v919_v5 }
  0x7d   : > { %v737_v52 = vadd.f32 %v729_v18, %v708_v14  ;;  %v824_v22 = vadd.f32 %v816_v29, %v794_v33  ;;  %v875_v7 = vmul.f32 %v1588_v24, %v862_v12  ;;  %v904_v35 = vmul.f32 %v1593_v56, %v891_v34 }
  0x7e   : > { %v939_v0 = vadd.f32 %v931_v45, %v910_v27  ;;  %v933_v46 = vmul.f32 %v1607_v48, %v920_v60 }
  0x7f   : > { %v766_v13 = vadd.f32 %v758_v28, %v737_v52  ;;  %v853_v15 = vadd.f32 %v845_v23, %v824_v22 }
  0x80   : > { %v954_v9 = vadd.f32 %v1695_v32, %v939_v0 }
  0x81   : > { %v795_v39 = vadd.f32 %v787_v51, %v766_v13  ;;  %v882_v8 = vadd.f32 %v874_v21, %v853_v15 }
  0x82   : > { %962 = vst.msk [vmem:[%s1709_s25 + $0x28] sm:$0xff] %vm179_vm0, %v954_v9 }
  0x83   : > { %v825_v62 = vadd.f32 %v817_v42, %v795_v39  ;;  %v911_v53 = vadd.f32 %v903_v3, %v882_v8 }
  0x85   : > { %v854_v30 = vadd.f32 %v846_v26, %v825_v62  ;;  %v940_v19 = vadd.f32 %v932_v2, %v911_v53 }
  0x87   : > { %v883_v47 = vadd.f32 %v875_v7, %v854_v30  ;;  %v955_v10 = vadd.f32 %v1695_v32, %v940_v19 }
  0x89   : > { %v912_v63 = vadd.f32 %v904_v35, %v883_v47  ;;  %963 = vst.msk [vmem:[%s1709_s25 + $0x30] sm:$0xff] %vm179_vm0, %v955_v10 }
  0x8b   : > { %v941_v1 = vadd.f32 %v933_v46, %v912_v63 }
  0x8d   : > { %v956_v55 = vadd.f32 %v1695_v32, %v941_v1 }
  0x8f   : > { %964 = vst.msk [vmem:[%s1709_s25 + $0x38] sm:$0xff] %vm179_vm0, %v956_v55 }
  0x90 PF: > { %s13_s12 = sadd.s32 1, %s1074_s12  }
  0x91   : > { %p10_p4 = scmp.ge.s32.totalorder %s13_s12, 4  }
  0x93   :  { %12 = sbr.rel (!%p10_p4) target bundleno = 1 (0x1), region = 66 }

// kernel: block_forward.19
= control target key start
LH: loop header
LB: loop body
LE: loop exit
PB: predicated region body
PF: predicated region fallthrough
CT: control target
= control target key end

     0   :  { %11 = vsyncpa [#allocation4], 0  ;;  %s1621_s0 = inlined_call_operand.vmem [shape: f32[2,8,8,64], index: 0, kind: input, shape index: {}]   ;;  %s1622_s1 = inlined_call_operand.vmem [shape: f32[2,8,8,32], index: 1, kind: input, shape index: {}]   ;;  %s1623_s2 = inlined_call_operand.vmem [shape: f32[9,64], index: 2, kind: input, shape index: {}]   ;;  %s1624_s3 = inlined_call_operand.vmem [shape: f32[1,64], index: 3, kind: input, shape index: {}]   ;;  %s1625_s4 = inlined_call_operand.vmem [shape: f32[64,32], index: 4, kind: input, shape index: {}]   ;;  %s1626_s5 = inlined_call_operand.vmem [shape: f32[1,32], index: 5, kind: input, shape index: {}]   ;;  %s1627_s6 = inlined_call_operand.hbm [shape: f32[2,8,8,32], index: 6, kind: output, shape index: {}]  }
   0x1   :  { %13 = vsyncpa [#allocation4 + $0x1], 0  ;;  %s1105_s21 = smov 0   ;;  %s1107_s22 = smov 0  }
   0x2   :  { %s1109_s23 = smov 0   ;;  %s1111_s24 = smov 0  }
   0x3 LB: > { %s1126_s25 = sadd.s32 4294967295, %s1064_s24   ;;  %s880_s26 = sadd.s32 4294967294, %s1064_s24   ;;  %s1064_s24 = sphi %s1111_s24, %s1633_s24   ;;  %s1060_s23 = sphi %s1109_s23, %s1632_s23   ;;  %s1056_s22 = sphi %s1107_s22, %s1631_s22   ;;  %s1052_s21 = sphi %s1105_s21, %s1630_s21  }
   0x4   : > { %s1130_s27 = sadd.s32 1, %s1064_s24   ;;  %s162_s28 = sadd.s32 1, %s1060_s23 }
   0x5   : > { %s159_s29 = ssub.s32 %s1064_s24, %s1130_s27  ;;  %p172_p0 = scmp.ne.s32.totalorder %s1060_s23, %s1056_s22 }
   0x6   : > { %p160_p1 = scmp.eq.s32.totalorder %s159_s29, 0  ;;  %p173_p2 = scmp.eq.s32.totalorder %s1126_s25, 1 }
   0x7   : > { %p178_p3 = scmp.ne.s32.totalorder %s1056_s22, %s1052_s21  ;;  %p179_p4 = scmp.eq.s32.totalorder %s880_s26, 1 }
   0x8   : > { %s1141_s30 = scalar_select %p160_p1, %s1060_s23, %s162_s28  }
   0x9   : > { %p1143_p5 = por %p173_p2, %p172_p0  ;;  %p1147_p6 = por %p179_p4, %p178_p3 }
   0xa   : > { %p883_p7 = scmp.ge.s32.totalorder %s1064_s24, 1  ;;  %p225_p8 = scmp.lt.s32.totalorder %s1064_s24, 3 }
   0xc   : > { %p226_p9 = pnand %p883_p7, %p225_p8 }
   0xd   : > { %v671_v0 = vld [vmem:[%s1625_s4] sm:$0xff] (!%p226_p9)  ;;  %v672_v1 = vld [vmem:[%s1625_s4 + $0x8] sm:$0xff] (!%p226_p9)  ;;  %v673_v2 = vld [vmem:[%s1625_s4 + $0x10] sm:$0xff] (!%p226_p9)  ;;  %p260_p10 = scmp.lt.s32.totalorder (!%p226_p9), %s1126_s25, 1  ;;  %vm351_vm0 = vcmask (!%p226_p9), 523264   ;;  %v1066_v5 = vmov (!%p226_p9), 0.0  }
   0xe   : > { %229 = sbr.rel (%p226_p9) target bundleno = 348 (0x15c), region = 44  ;;  %v679_v3 = vpack.c.bf16 (!%p226_p9), %v672_v1, %v671_v0  ;;  %v674_v4 = vld [vmem:[%s1625_s4 + $0x18] sm:$0xff] (!%p226_p9)  ;;  %352 = vst.msk [vmem:[#allocation2] sm:$0xff] (!%p226_p9), %vm351_vm0, %v1066_v5  ;;  %vm353_vm1 = vcmask (!%p226_p9), 517120   ;;  %355 = vst.msk [vmem:[#allocation2 + $0x10] sm:$0xff] (!%p226_p9), %vm351_vm0, %v1066_v5  ;;  %v675_v7 = vld [vmem:[%s1625_s4 + $0x20] sm:$0xff] (!%p226_p9) }
   0xf   : > { %357 = vst.msk [vmem:[#allocation2 + $0x20] sm:$0xff] (!%p226_p9), %vm351_vm0, %v1066_v5  ;;  %359 = vst.msk [vmem:[#allocation2 + $0x30] sm:$0xff] (!%p226_p9), %vm351_vm0, %v1066_v5  ;;  %v680_v6 = vpack.c.bf16 (!%p226_p9), %v674_v4, %v673_v2  ;;  %v676_v8 = vld [vmem:[%s1625_s4 + $0x28] sm:$0xff] (!%p226_p9)  ;;  %v677_v10 = vld [vmem:[%s1625_s4 + $0x30] sm:$0xff] (!%p226_p9)  ;;  %s257_s9 = sand.u32 (!%p226_p9), 1, %s1056_s22   ;;  %vm783_vm2 = vcmask (!%p226_p9), 261120  }
  0x10   : > { %361 = vst.msk [vmem:[#allocation2 + $0x40] sm:$0xff] (!%p226_p9), %vm351_vm0, %v1066_v5  ;;  %363 = vst.msk [vmem:[#allocation2 + $0x50] sm:$0xff] (!%p226_p9), %vm351_vm0, %v1066_v5  ;;  %920 = vmatprep.subr.bf16.mxu0 (!%p226_p9), %v679_v3  ;;  %936 = vmatprep.subr.bf16.mxu1 (!%p226_p9), %v679_v3  ;;  %v681_v9 = vpack.c.bf16 (!%p226_p9), %v676_v8, %v675_v7  ;;  %v678_v11 = vld [vmem:[%s1625_s4 + $0x38] sm:$0xff] (!%p226_p9)  ;;  %v1271_v63 = vld [vmem:[%s1623_s2] ss:$0 sm:$0xff] (!%p226_p9)  ;;  %s884_s15 = sshll.u32 (!%p226_p9), %s257_s9, 6 }
  0x11   : > { %365 = vst.msk [vmem:[#allocation2 + $0x60] sm:$0xff] (!%p226_p9), %vm351_vm0, %v1066_v5  ;;  %367 = vst.msk [vmem:[#allocation2 + $0x70] sm:$0xff] (!%p226_p9), %vm351_vm0, %v1066_v5  ;;  %921 = vmatpush3.bf16.msra.mxu0 (!%p226_p9), %v679_v3  ;;  %940 = vmatpush3.bf16.msra.mxu1 (!%p226_p9), %v679_v3  ;;  %v682_v19 = vpack.c.bf16 (!%p226_p9), %v678_v11, %v677_v10  ;;  %v1277_v3 = vld [vmem:[%s1623_s2 + $0x1] ss:$0 sm:$0xff] (!%p226_p9)  ;;  %s1067_s29 = smov (!%p226_p9), [#allocation3]  }
  0x12   : > { %369 = vst.msk [vmem:[#allocation2 + $0x80] sm:$0xff] (!%p226_p9), %vm351_vm0, %v1066_v5  ;;  %371 = vst.msk [vmem:[#allocation2 + $0x90] sm:$0xff] (!%p226_p9), %vm351_vm0, %v1066_v5  ;;  %922 = vmatprep.subr.bf16.mxu0 (!%p226_p9), %v680_v6  ;;  %937 = vmatprep.subr.bf16.mxu1 (!%p226_p9), %v680_v6  ;;  %s1006_s10 = sshll.u32 (!%p226_p9), %s1067_s29, 4  ;;  %s1007_s10 = int_to_ptr.vmem [resolvable:$false] %s1006_s10 }
  0x13   : > { %354 = vst.msk [vmem:[#allocation2 + $0x8] sm:$0x3] (!%p226_p9), %vm353_vm1, %v1066_v5  ;;  %356 = vst.msk [vmem:[#allocation2 + $0x18] sm:$0x3] (!%p226_p9), %vm353_vm1, %v1066_v5  ;;  %s1008_s11 = scalar_lea.vmem (!%p226_p9), %s1007_s10, 2048 }
  0x14   : > { %358 = vst.msk [vmem:[#allocation2 + $0x28] sm:$0x3] (!%p226_p9), %vm353_vm1, %v1066_v5  ;;  %360 = vst.msk [vmem:[#allocation2 + $0x38] sm:$0x3] (!%p226_p9), %vm353_vm1, %v1066_v5 }
  0x15   : > { %s1185_s26 = scalar_select %p260_p10, %s1126_s25, 1  ;;  %362 = vst.msk [vmem:[#allocation2 + $0x48] sm:$0x3] %vm353_vm1, %v1066_v5  ;;  %364 = vst.msk [vmem:[#allocation2 + $0x58] sm:$0x3] %vm353_vm1, %v1066_v5  ;;  %923 = vmatpush3.bf16.msra.mxu0 %v680_v6  ;;  %941 = vmatpush3.bf16.msra.mxu1 %v680_v6  ;;  %v382_v62 = vld [vmem:[#allocation2] sm:$0xff] }
  0x16   : > { %366 = vst.msk [vmem:[#allocation2 + $0x68] sm:$0x3] %vm353_vm1, %v1066_v5  ;;  %368 = vst.msk [vmem:[#allocation2 + $0x78] sm:$0x3] %vm353_vm1, %v1066_v5  ;;  %924 = vmatprep.subr.bf16.mxu0 %v681_v9  ;;  %938 = vmatprep.subr.bf16.mxu1 %v681_v9  ;;  %v395_v10 = vmul.f32 %v1271_v63, %v382_v62 }
  0x17   : > { %370 = vst.msk [vmem:[#allocation2 + $0x88] sm:$0x3] %vm353_vm1, %v1066_v5  ;;  %372 = vst.msk [vmem:[#allocation2 + $0x98] sm:$0x3] %vm353_vm1, %v1066_v5  ;;  %s909_s28 = sshll.u32 %s1185_s26, 6  ;;  %s259_s26 = scalar_lea.vmem [#allocation3], %s884_s15 }
  0x18   : > { %s1209_s14 = scalar_lea.vmem %s1621_s0, %s909_s28  ;;  %s1547_s12 = scalar_lea.vmem %s1622_s1, %s909_s28 }
  0x19   : > { %v1212_v12 = vld [vmem:[%s1209_s14] sm:$0xff]  ;;  %v1215_v13 = vld [vmem:[%s1209_s14 + $0x8] sm:$0xff]  ;;  %v1218_v14 = vld [vmem:[%s1209_s14 + $0x10] sm:$0xff]  ;;  %925 = vmatpush3.bf16.msra.mxu0 %v681_v9  ;;  %942 = vmatpush3.bf16.msra.mxu1 %v681_v9  ;;  %s911_s28 = sshll.u32 %s1126_s25, 10  ;;  %s806_s16 = sshll.u32 %s259_s26, 4  ;;  %s1573_s16 = int_to_ptr.vmem [resolvable:$true] %s806_s16 }
  0x1a   : > { %v1221_v15 = vld [vmem:[%s1209_s14 + $0x18] sm:$0xff]  ;;  %v1224_v16 = vld [vmem:[%s1209_s14 + $0x30] sm:$0xff]  ;;  %v287_v17 = vmul.f32 0.044715, %v1212_v12  ;;  %v288_v18 = vmul.f32 0.044715, %v1215_v13  ;;  %926 = vmatprep.subr.bf16.mxu0 %v682_v19  ;;  %939 = vmatprep.subr.bf16.mxu1 %v682_v19  ;;  %s1571_s19 = scalar_lea.hbm %s1627_s6, %s911_s28  ;;  %p1009_p0 = scmp.lt.s32.totalorder %s1573_s16, %s1007_s10 }
  0x1b   : > { %v289_v20 = vmul.f32 0.044715, %v1218_v14  ;;  %v290_v21 = vmul.f32 0.044715, %v1221_v15  ;;  %v293_v22 = vmul.f32 0.044715, %v1224_v16 }
  0x1c   : > { %v295_v23 = vmul.f32 %v287_v17, %v1212_v12  ;;  %v296_v24 = vmul.f32 %v288_v18, %v1215_v13  ;;  %v1234_v25 = vld [vmem:[%s1209_s14 + $0x20] sm:$0xff]  ;;  %v1240_v29 = vld [vmem:[%s1209_s14 + $0x28] sm:$0xff]  ;;  %v1256_v43 = vld [vmem:[%s1209_s14 + $0x38] sm:$0xff]  ;;  %v279_v61 = vmul.f32 0.5, %v1212_v12  ;;  %v280_v1 = vmul.f32 0.5, %v1215_v13  ;;  %s1580_s25 = scalar_lea.sflag [#allocation4], %s257_s9 }
  0x1d   : > { %v297_v26 = vmul.f32 %v289_v20, %v1218_v14  ;;  %v298_v27 = vmul.f32 %v290_v21, %v1221_v15  ;;  %v301_v28 = vmul.f32 %v293_v22, %v1224_v16  ;;  %v291_v35 = vmul.f32 0.044715, %v1234_v25  ;;  %927 = vmatpush3.bf16.msra.mxu0 %v682_v19  ;;  %943 = vmatpush3.bf16.msra.mxu1 %v682_v19  ;;  %v411_v2 = vld [vmem:[#allocation2 + $0x1] sm:$0xff]  ;;  %s1002_s20 = scalar_lea.vmem %s1573_s16, 1024 }
  0x1e   : > { %v303_v30 = vmul.f32 %v295_v23, %v1212_v12  ;;  %v304_v31 = vmul.f32 %v296_v24, %v1215_v13  ;;  %v292_v38 = vmul.f32 0.044715, %v1240_v29  ;;  %v294_v52 = vmul.f32 0.044715, %v1256_v43  ;;  %p1003_p11 = scmp.ne.s32.totalorder %s1573_s16, %s1002_s20  ;;  %p1010_p1 = scmp.lt.s32.totalorder %s1008_s11, %s1002_s20 }
  0x1f   : > { %v305_v32 = vmul.f32 %v297_v26, %v1218_v14  ;;  %v306_v33 = vmul.f32 %v298_v27, %v1221_v15  ;;  %v309_v34 = vmul.f32 %v301_v28, %v1224_v16  ;;  %v299_v42 = vmul.f32 %v291_v35, %v1234_v25 }
  0x20   : > { %v311_v36 = vadd.f32 %v303_v30, %v1212_v12  ;;  %v312_v37 = vadd.f32 %v304_v31, %v1215_v13  ;;  %v300_v46 = vmul.f32 %v292_v38, %v1240_v29  ;;  %v302_v55 = vmul.f32 %v294_v52, %v1256_v43  ;;  %p1004_p12 = pnand %p1003_p11, %p1143_p5  ;;  %p1011_p2 = por %p1010_p1, %p1009_p0 }
  0x21   : > { %v313_v39 = vadd.f32 %v305_v32, %v1218_v14  ;;  %v314_v40 = vadd.f32 %v306_v33, %v1221_v15  ;;  %v317_v41 = vadd.f32 %v309_v34, %v1224_v16  ;;  %v307_v49 = vmul.f32 %v299_v42, %v1234_v25 }
  0x22   : > { %v319_v44 = vmul.f32 0.7978846, %v311_v36  ;;  %v320_v45 = vmul.f32 0.7978846, %v312_v37  ;;  %v308_v51 = vmul.f32 %v300_v46, %v1240_v29  ;;  %v310_v58 = vmul.f32 %v302_v55, %v1256_v43  ;;  %v1319_v36 = vld [vmem:[%s1623_s2 + $0x3] ss:$0 sm:$0xff]  ;;  %p1005_p13 = pneg %p1004_p12 }
  0x23   : > { %v321_v47 = vmul.f32 0.7978846, %v313_v39  ;;  %v322_v48 = vmul.f32 0.7978846, %v314_v40  ;;  %v325_v50 = vmul.f32 0.7978846, %v317_v41  ;;  %v315_v53 = vadd.f32 %v307_v49, %v1234_v25 }
  0x24   : > { %986 = vtanh.f32 %v319_v44  ;;  %v316_v54 = vadd.f32 %v308_v51, %v1240_v29  ;;  %v318_v59 = vadd.f32 %v310_v58, %v1256_v43  ;;  %v281_v5 = vmul.f32 0.5, %v1218_v14  ;;  %v440_v14 = vld [vmem:[#allocation2 + $0x2] sm:$0xff]  ;;  %p1012_p3 = pnand %p1011_p2, %p1005_p13 }
  0x25   : > { %988 = vtanh.f32 %v320_v45  ;;  %v323_v56 = vmul.f32 0.7978846, %v315_v53  ;;  %v282_v8 = vmul.f32 0.5, %v1221_v15  ;;  %v424_v17 = vmul.f32 %v1277_v3, %v411_v2  ;;  %v1291_v15 = vld [vmem:[%s1623_s2 + $0x2] ss:$0 sm:$0xff] }
  0x26   : > { %990 = vtanh.f32 %v321_v47  ;;  %v324_v57 = vmul.f32 0.7978846, %v316_v54  ;;  %v326_v60 = vmul.f32 0.7978846, %v318_v59  ;;  %v285_v18 = vmul.f32 0.5, %v1224_v16 }
  0x27   : > { %992 = vtanh.f32 %v322_v48  ;;  %v283_v22 = vmul.f32 0.5, %v1234_v25  ;;  %v284_v16 = vmul.f32 0.5, %v1240_v29  ;;  %v432_v25 = vadd.f32 %v424_v17, %v395_v10  ;;  %v1324_v37 = vld [vmem:[%s1623_s2 + $0x4] ss:$0 sm:$0xff]  ;;  %v1331_v39 = vld [vmem:[%s1623_s2 + $0x5] ss:$0 sm:$0xff] }
  0x28   : > { %994 = vtanh.f32 %v325_v50  ;;  %v453_v31 = vmul.f32 %v1291_v15, %v440_v14  ;;  %v1336_v40 = vld [vmem:[%s1623_s2 + $0x6] ss:$0 sm:$0xff]  ;;  %v1341_v41 = vld [vmem:[%s1623_s2 + $0x7] ss:$0 sm:$0xff]  ;;  %v1346_v46 = vmul.f32 0.5, %v1256_v43 }
  0x29   : > { %996 = vtanh.f32 %v323_v56  ;;  %v1361_v54 = vld [vmem:[%s1623_s2 + $0x8] ss:$0 sm:$0xff] }
  0x2a   : > { %998 = vtanh.f32 %v324_v57  ;;  %v461_v38 = vadd.f32 %v453_v31, %v432_v25 }
  0x2b   : > { %1000 = vtanh.f32 %v326_v60 }
  0x2e   : > { %v987_v0 = vpop.eup %986 }
  0x2f   : > { %v989_v4 = vpop.eup %988  ;;  %v335_v6 = vadd.f32 1.0, %v987_v0 }
  0x30   : > { %v991_v7 = vpop.eup %990  ;;  %v336_v9 = vadd.f32 1.0, %v989_v4 }
  0x31   : > { %v993_v11 = vpop.eup %992  ;;  %v337_v12 = vadd.f32 1.0, %v991_v7  ;;  %v1282_v13 = vmul.f32 %v335_v6, %v279_v61 }
  0x32   : > { %v995_v19 = vpop.eup %994  ;;  %v338_v20 = vadd.f32 1.0, %v993_v11  ;;  %v1286_v21 = vmul.f32 %v336_v9, %v280_v1 }
  0x33   : > { %v997_v23 = vpop.eup %996  ;;  %v1294_v24 = vmul.f32 %v337_v12, %v281_v5  ;;  %374 = vst.msk [vmem:[#allocation2 + $0x11] sm:$0xff] %vm351_vm0, %v1282_v13  ;;  %v341_v26 = vadd.f32 1.0, %v995_v19 }
  0x34   : > { %v999_v27 = vpop.eup %998  ;;  %v1299_v28 = vmul.f32 %v338_v20, %v282_v8  ;;  %375 = vst.msk [vmem:[#allocation2 + $0x21] sm:$0xff] %vm351_vm0, %v1286_v21  ;;  %v339_v30 = vadd.f32 1.0, %v997_v23 }
  0x35   : > { %376 = vst.msk [vmem:[#allocation2 + $0x31] sm:$0xff] %vm351_vm0, %v1294_v24  ;;  %v340_v32 = vadd.f32 1.0, %v999_v27  ;;  %v1306_v33 = vmul.f32 %v341_v26, %v285_v18  ;;  %v1001_v35 = vpop.eup %1000 }
  0x36   : > { %v1308_v34 = vmul.f32 %v339_v30, %v283_v22  ;;  %377 = vst.msk [vmem:[#allocation2 + $0x41] sm:$0xff] %vm351_vm0, %v1299_v28  ;;  %v1348_v47 = vadd.f32 1.0, %v1001_v35 }
  0x37   : > { %v1312_v29 = vmul.f32 %v340_v32, %v284_v16  ;;  %380 = vst.msk [vmem:[#allocation2 + $0x71] sm:$0xff] %vm351_vm0, %v1306_v33 }
  0x38   : > { %378 = vst.msk [vmem:[#allocation2 + $0x51] sm:$0xff] %vm351_vm0, %v1308_v34 }
  0x39   : > { %379 = vst.msk [vmem:[#allocation2 + $0x61] sm:$0xff] %vm351_vm0, %v1312_v29 }
  0x3a   : > { %v383_v42 = vld [vmem:[#allocation2 + $0x10] sm:$0xff] }
  0x3b   : > { %v412_v44 = vld [vmem:[#allocation2 + $0x11] sm:$0xff]  ;;  %v396_v48 = vmul.f32 %v1271_v63, %v383_v42  ;;  %v1353_v51 = vld [vmem:[#allocation2 + $0x20] sm:$0xff]  ;;  %v482_v52 = vmul.f32 %v1319_v36, %v383_v42 }
  0x3c   : > { %v441_v45 = vld [vmem:[#allocation2 + $0x12] sm:$0xff]  ;;  %v425_v49 = vmul.f32 %v1277_v3, %v412_v44  ;;  %v1356_v53 = vld [vmem:[#allocation2 + $0x21] sm:$0xff]  ;;  %v483_v43 = vmul.f32 %v1319_v36, %v1353_v51  ;;  %v511_v55 = vmul.f32 %v1324_v37, %v412_v44  ;;  %v570_v1 = vmul.f32 %v1336_v40, %v1353_v51 }
  0x3d   : > { %v454_v50 = vmul.f32 %v1291_v15, %v441_v45  ;;  %v512_v56 = vmul.f32 %v1324_v37, %v1356_v53  ;;  %v1368_v57 = vld [vmem:[#allocation2 + $0x22] sm:$0xff]  ;;  %v540_v58 = vmul.f32 %v1331_v39, %v441_v45  ;;  %v1371_v59 = vld [vmem:[#allocation2 + $0x30] sm:$0xff]  ;;  %v490_v62 = vadd.f32 %v482_v52, %v461_v38 }
  0x3e   : > { %v1373_v60 = vld [vmem:[#allocation2 + $0x31] sm:$0xff]  ;;  %v433_v61 = vadd.f32 %v425_v49, %v396_v48  ;;  %v541_v0 = vmul.f32 %v1331_v39, %v1368_v57  ;;  %v1379_v2 = vld [vmem:[#allocation2 + $0x40] sm:$0xff]  ;;  %v571_v6 = vmul.f32 %v1336_v40, %v1371_v59  ;;  %v599_v7 = vmul.f32 %v1341_v41, %v1356_v53 }
  0x3f   : > { %v1381_v4 = vld [vmem:[#allocation2 + $0x41] sm:$0xff]  ;;  %v600_v8 = vmul.f32 %v1341_v41, %v1373_v60  ;;  %v1391_v9 = vld [vmem:[#allocation2 + $0x32] sm:$0xff]  ;;  %v628_v10 = vmul.f32 %v1361_v54, %v1368_v57  ;;  %v519_v12 = vadd.f32 %v511_v55, %v490_v62  ;;  %v399_v19 = vmul.f32 %v1271_v63, %v1379_v2 }
  0x40   : > { %v1383_v5 = vld [vmem:[#allocation2 + $0x42] sm:$0xff]  ;;  %v462_v11 = vadd.f32 %v454_v50, %v433_v61  ;;  %v629_v17 = vmul.f32 %v1361_v54, %v1391_v9  ;;  %v1397_v18 = vld [vmem:[#allocation2 + $0x50] sm:$0xff]  ;;  %v428_v23 = vmul.f32 %v1277_v3, %v1381_v4 }
  0x41   : > { %v1401_v20 = vld [vmem:[#allocation2 + $0x51] sm:$0xff]  ;;  %v400_v22 = vmul.f32 %v1271_v63, %v1397_v18  ;;  %v457_v26 = vmul.f32 %v1291_v15, %v1383_v5  ;;  %v548_v30 = vadd.f32 %v540_v58, %v519_v12  ;;  %v1415_v31 = vld [vmem:[#allocation2 + $0x60] sm:$0xff]  ;;  %v486_v32 = vmul.f32 %v1319_v36, %v1397_v18 }
  0x42   : > { %v1403_v14 = vld [vmem:[#allocation2 + $0x52] sm:$0xff]  ;;  %v429_v16 = vmul.f32 %v1277_v3, %v1401_v20  ;;  %v491_v27 = vadd.f32 %v483_v43, %v462_v11  ;;  %v436_v35 = vadd.f32 %v428_v23, %v399_v19  ;;  %v487_v42 = vmul.f32 %v1319_v36, %v1415_v31  ;;  %v1421_v44 = vld [vmem:[#allocation2 + $0x61] sm:$0xff] }
  0x43   : > { %v458_v25 = vmul.f32 %v1291_v15, %v1403_v14  ;;  %v515_v45 = vmul.f32 %v1324_v37, %v1401_v20  ;;  %v578_v49 = vadd.f32 %v570_v1, %v548_v30  ;;  %v516_v50 = vmul.f32 %v1324_v37, %v1421_v44  ;;  %v1427_v52 = vld [vmem:[#allocation2 + $0x62] sm:$0xff]  ;;  %v1433_v62 = vld [vmem:[#allocation2 + $0x70] sm:$0xff] }
  0x44   : > { %v437_v38 = vadd.f32 %v429_v16, %v400_v22  ;;  %v520_v48 = vadd.f32 %v512_v56, %v491_v27  ;;  %v544_v43 = vmul.f32 %v1331_v39, %v1403_v14  ;;  %v465_v55 = vadd.f32 %v457_v26, %v436_v35  ;;  %v1439_v19 = vld [vmem:[#allocation2 + $0x71] sm:$0xff] }
  0x45   : > { %v545_v61 = vmul.f32 %v1331_v39, %v1427_v52  ;;  %v574_v11 = vmul.f32 %v1336_v40, %v1415_v31  ;;  %v607_v1 = vadd.f32 %v599_v7, %v578_v49  ;;  %v575_v12 = vmul.f32 %v1336_v40, %v1433_v62  ;;  %v1445_v27 = vld [vmem:[#allocation2 + $0x72] sm:$0xff] }
  0x46   : > { %v466_v58 = vadd.f32 %v458_v25, %v437_v38  ;;  %v549_v56 = vadd.f32 %v541_v0, %v520_v48  ;;  %v603_v22 = vmul.f32 %v1341_v41, %v1421_v44  ;;  %v494_v23 = vadd.f32 %v486_v32, %v465_v55  ;;  %v1456_v32 = vld [vmem:[%s1624_s3] ss:$0 sm:$0xff] }
  0x47   : > { %v604_v26 = vmul.f32 %v1341_v41, %v1439_v19  ;;  %v632_v30 = vmul.f32 %v1361_v54, %v1427_v52  ;;  %v636_v7 = vadd.f32 %v628_v10, %v607_v1  ;;  %v633_v25 = vmul.f32 %v1361_v54, %v1445_v27 }
  0x48   : > { %v495_v16 = vadd.f32 %v487_v42, %v466_v58  ;;  %v579_v0 = vadd.f32 %v571_v6, %v549_v56  ;;  %v397_v35 = vmul.f32 %v1271_v63, %v1353_v51  ;;  %v523_v38 = vadd.f32 %v515_v45, %v494_v23 }
  0x49   : > { %v398_v48 = vmul.f32 %v1271_v63, %v1371_v59  ;;  %v426_v6 = vmul.f32 %v1277_v3, %v1356_v53  ;;  %v644_v49 = vadd.f32 %v636_v7, %v1282_v13  ;;  %v427_v55 = vmul.f32 %v1277_v3, %v1373_v60 }
  0x4a   : > { %v524_v42 = vadd.f32 %v516_v50, %v495_v16  ;;  %v608_v10 = vadd.f32 %v600_v8, %v579_v0  ;;  %v455_v51 = vmul.f32 %v1291_v15, %v1368_v57  ;;  %v552_v58 = vadd.f32 %v544_v43, %v523_v38 }
  0x4b   : > { %v434_v1 = vadd.f32 %v426_v6, %v397_v35  ;;  %v456_v45 = vmul.f32 %v1291_v15, %v1391_v9  ;;  %v659_v23 = vadd.f32 %v1456_v32, %v644_v49  ;;  %v435_v16 = vadd.f32 %v427_v55, %v398_v48 }
  0x4c   : > { %v553_v56 = vadd.f32 %v545_v61, %v524_v42  ;;  %v637_v50 = vadd.f32 %v629_v17, %v608_v10  ;;  %v484_v53 = vmul.f32 %v1319_v36, %v1371_v59  ;;  %v582_v13 = vadd.f32 %v574_v11, %v552_v58 }
  0x4d   : > { %v463_v0 = vadd.f32 %v455_v51, %v434_v1  ;;  %v485_v7 = vmul.f32 %v1319_v36, %v1379_v2  ;;  %v464_v43 = vadd.f32 %v456_v45, %v435_v16  ;;  %v513_v61 = vmul.f32 %v1324_v37, %v1373_v60 }
  0x4e   : > { %v583_v8 = vadd.f32 %v575_v12, %v553_v56  ;;  %v645_v57 = vadd.f32 %v637_v50, %v1286_v21  ;;  %v514_v17 = vmul.f32 %v1324_v37, %v1381_v4  ;;  %v611_v35 = vadd.f32 %v603_v22, %v582_v13 }
  0x4f   : > { %v492_v42 = vadd.f32 %v484_v53, %v463_v0  ;;  %v542_v59 = vmul.f32 %v1331_v39, %v1391_v9  ;;  %v493_v12 = vadd.f32 %v485_v7, %v464_v43  ;;  %v543_v48 = vmul.f32 %v1331_v39, %v1383_v5 }
  0x50   : > { %v612_v38 = vadd.f32 %v604_v26, %v583_v8  ;;  %v660_v11 = vadd.f32 %v1456_v32, %v645_v57  ;;  %v572_v21 = vmul.f32 %v1336_v40, %v1379_v2  ;;  %v640_v6 = vadd.f32 %v632_v30, %v611_v35 }
  0x51   : > { %v521_v10 = vadd.f32 %v513_v61, %v492_v42  ;;  %v573_v22 = vmul.f32 %v1336_v40, %v1397_v18  ;;  %v522_v49 = vadd.f32 %v514_v17, %v493_v12  ;;  %v601_v9 = vmul.f32 %v1341_v41, %v1381_v4 }
  0x52   : > { %v641_v60 = vadd.f32 %v633_v25, %v612_v38  ;;  %v667_v26 = vpack.c.bf16 %v660_v11, %v659_v23  ;;  %v602_v55 = vmul.f32 %v1341_v41, %v1401_v20  ;;  %v648_v51 = vadd.f32 %v640_v6, %v1308_v34 }
  0x53   : > { %v550_v56 = vadd.f32 %v542_v59, %v521_v10  ;;  %v630_v2 = vmul.f32 %v1361_v54, %v1383_v5  ;;  %v551_v30 = vadd.f32 %v543_v48, %v522_v49  ;;  %v631_v18 = vmul.f32 %v1361_v54, %v1403_v14  ;;  %v622_v10 = vld [vmem:[#allocation2 + $0x92] sm:$0xff] }
  0x54   : > { %v649_v58 = vadd.f32 %v641_v60, %v1312_v29  ;;  %928 = vmatprep.mubr.msk.bf16.mxu0 %vm351_vm0, %v667_v26  ;;  %v350_v4 = vmul.f32 %v1348_v47, %v1346_v46  ;;  %v401_v20 = vmul.f32 %v1271_v63, %v1415_v31  ;;  %v663_v34 = vadd.f32 %v1456_v32, %v648_v51 }
  0x55   : > { %v580_v25 = vadd.f32 %v572_v21, %v550_v56  ;;  %v402_v5 = vmul.f32 %v1271_v63, %v1433_v62  ;;  %v581_v1 = vadd.f32 %v573_v22, %v551_v30  ;;  %v430_v14 = vmul.f32 %v1277_v3, %v1421_v44  ;;  %v593_v21 = vld [vmem:[#allocation2 + $0x91] sm:$0xff] }
  0x56   : > { %v664_v29 = vadd.f32 %v1456_v32, %v649_v58  ;;  %381 = vst.msk [vmem:[#allocation2 + $0x81] sm:$0xff] %vm351_vm0, %v350_v4  ;;  %v431_v46 = vmul.f32 %v1277_v3, %v1439_v19  ;;  %v459_v47 = vmul.f32 %v1291_v15, %v1427_v52  ;;  %v460_v50 = vmul.f32 %v1291_v15, %v1445_v27 }
  0x57   : > { %v609_v45 = vadd.f32 %v601_v9, %v580_v25  ;;  %v610_v23 = vadd.f32 %v602_v55, %v581_v1  ;;  %v438_v16 = vadd.f32 %v430_v14, %v401_v20  ;;  %v488_v53 = vmul.f32 %v1319_v36, %v1433_v62  ;;  %v767_v20 = vld [vmem:[%s1547_s12] sm:$0xff]  ;;  %v770_v25 = vld [vmem:[%s1547_s12 + $0x18] sm:$0xff] }
  0x58   : > { %v669_v31 = vpack.c.bf16 %v664_v29, %v663_v34  ;;  %v439_v63 = vadd.f32 %v431_v46, %v402_v5  ;;  %v517_v3 = vmul.f32 %v1324_v37, %v1439_v19  ;;  %v546_v57 = vmul.f32 %v1331_v39, %v1445_v27  ;;  %v768_v46 = vld [vmem:[%s1547_s12 + $0x8] sm:$0xff] }
  0x59   : > { %v638_v44 = vadd.f32 %v630_v2, %v609_v45  ;;  %v639_v13 = vadd.f32 %v631_v18, %v610_v23  ;;  %v467_v8 = vadd.f32 %v459_v47, %v438_v16  ;;  %v606_v22 = vmul.f32 %v1341_v41, %v593_v21  ;;  %v773_v16 = vld [vmem:[%s1547_s12 + $0x30] sm:$0xff] }
  0x5a   : > { %932 = vmatprep.mubr.msk.bf16.mxu1 %vm351_vm0, %v669_v31  ;;  %v468_v7 = vadd.f32 %v460_v50, %v439_v63  ;;  %v635_v9 = vmul.f32 %v1361_v54, %v622_v10 }
  0x5b   : > { %v646_v52 = vadd.f32 %v638_v44, %v1294_v24  ;;  %v647_v0 = vadd.f32 %v639_v13, %v1299_v28  ;;  %v496_v15 = vadd.f32 %v488_v53, %v467_v8  ;;  %v564_v28 = vld [vmem:[#allocation2 + $0x90] sm:$0xff]  ;;  %v771_v44 = vld [vmem:[%s1547_s12 + $0x20] sm:$0xff] }
  0x5c   : > { %v577_v60 = vmul.f32 %v1336_v40, %v564_v28 }
  0x5d   : > { %v661_v43 = vadd.f32 %v1456_v32, %v646_v52  ;;  %v476_v62 = vld [vmem:[#allocation2 + $0x80] sm:$0xff]  ;;  %v662_v35 = vadd.f32 %v1456_v32, %v647_v0  ;;  %v525_v42 = vadd.f32 %v517_v3, %v496_v15  ;;  %v774_v3 = vld [vmem:[%s1547_s12 + $0x38] sm:$0xff]  ;;  %v772_v15 = vld [vmem:[%s1547_s12 + $0x28] sm:$0xff] }
  0x5e   : > { %v505_v61 = vld [vmem:[#allocation2 + $0x81] sm:$0xff]  ;;  %v489_v38 = vmul.f32 %v1319_v36, %v476_v62  ;;  %v576_v59 = vmul.f32 %v1336_v40, %v476_v62 }
  0x5f   : > { %v534_v17 = vld [vmem:[#allocation2 + $0x82] sm:$0xff]  ;;  %v518_v19 = vmul.f32 %v1324_v37, %v505_v61  ;;  %v668_v11 = vpack.c.bf16 %v662_v35, %v661_v43  ;;  %v554_v27 = vadd.f32 %v546_v57, %v525_v42  ;;  %v605_v48 = vmul.f32 %v1341_v41, %v505_v61 }
  0x60   : > { %v547_v24 = vmul.f32 %v1331_v39, %v534_v17  ;;  %v497_v12 = vadd.f32 %v489_v38, %v468_v7  ;;  %v634_v37 = vmul.f32 %v1361_v54, %v534_v17  ;;  %v769_v54 = vld [vmem:[%s1547_s12 + $0x10] sm:$0xff] }
  0x61   : > { %929 = vmatmul.mubr.msk.bf16.vlgmr.msra.gmra.mrb[0].mxu0 %vm351_vm0, %v668_v11  ;;  %v584_v36 = vadd.f32 %v576_v59, %v554_v27 }
  0x62   : > { %v526_v6 = vadd.f32 %v518_v19, %v497_v12 }
  0x63   : > { %v613_v26 = vadd.f32 %v605_v48, %v584_v36 }
  0x64   : > { %v555_v39 = vadd.f32 %v547_v24, %v526_v6 }
  0x65   : > { %v642_v55 = vadd.f32 %v634_v37, %v613_v26 }
  0x66   : > { %v585_v49 = vadd.f32 %v577_v60, %v555_v39 }
  0x67   : > { %v650_v58 = vadd.f32 %v642_v55, %v1306_v33  ;;  %v899_v33 = vld [vmem:[%s1626_s5] ss:$0 sm:$0xff] }
  0x68   : > { %v614_v51 = vadd.f32 %v606_v22, %v585_v49 }
  0x69   : > { %v665_v2 = vadd.f32 %v1456_v32, %v650_v58 }
  0x6a   : > { %v643_v56 = vadd.f32 %v635_v9, %v614_v51 }
  0x6c   : > { %v651_v40 = vadd.f32 %v643_v56, %v350_v4 }
  0x6e   : > { %v666_v30 = vadd.f32 %v1456_v32, %v651_v40 }
  0x70   : > { %v670_v18 = vpack.c.bf16 %v666_v30, %v665_v2 }
  0x72   : > { %933 = vmatmul.mubr.msk.bf16.vlgmr.msra.gmra.mrb[0].mxu1 %vm351_vm0, %v670_v18 }
 0x134   : > { %v930_v41 = vpop.f32.mrb[0].mxu0 }
 0x135   : > { %v745_v32 = vadd.f32 %v930_v41, %v899_v33  ;;  %v736_v4 = vpop.f32.mrb[1].mxu0 }
 0x136   : > { %v737_v34 = vadd.f32 %v899_v33, %v736_v4  ;;  %v931_v29 = vpop.f32.mrb[2].mxu0 }
 0x137   : > { %v777_v5 = vadd.f32 %v769_v54, %v745_v32  ;;  %v748_v1 = vadd.f32 %v931_v29, %v899_v33  ;;  %v739_v14 = vpop.f32.mrb[3].mxu0 }
 0x138   : > { %v775_v47 = vadd.f32 %v767_v20, %v737_v34  ;;  %v740_v31 = vadd.f32 %v899_v33, %v739_v14 }
 0x139   : > { %786 = vst.msk [vmem:[%s259_s26 + $0x10] sm:$0xff] %vm783_vm2, %v777_v5  ;;  %v778_v45 = vadd.f32 %v770_v25, %v748_v1 }
 0x13a   : > { %784 = vst.msk [vmem:[%s259_s26] sm:$0xff] %vm783_vm2, %v775_v47  ;;  %v776_v50 = vadd.f32 %v768_v46, %v740_v31 }
 0x13b   : > { %787 = vst.msk [vmem:[%s259_s26 + $0x18] sm:$0xff] %vm783_vm2, %v778_v45 }
 0x13c   : > { %785 = vst.msk [vmem:[%s259_s26 + $0x8] sm:$0xff] %vm783_vm2, %v776_v50 }
 0x145   : > { %v934_v23 = vpop.f32.mrb[0].mxu1 }
 0x146   : > { %v761_v63 = vadd.f32 %v934_v23, %v899_v33  ;;  %v752_v53 = vpop.f32.mrb[1].mxu1 }
 0x147   : > { %v753_v13 = vadd.f32 %v899_v33, %v752_v53  ;;  %v935_v8 = vpop.f32.mrb[2].mxu1 }
 0x148   : > { %v781_v52 = vadd.f32 %v773_v16, %v761_v63  ;;  %v764_v0 = vadd.f32 %v935_v8, %v899_v33  ;;  %v755_v7 = vpop.f32.mrb[3].mxu1 }
 0x149   : > { %v779_v57 = vadd.f32 %v771_v44, %v753_v13  ;;  %v756_v43 = vadd.f32 %v899_v33, %v755_v7 }
 0x14a   : > { %790 = vst.msk [vmem:[%s259_s26 + $0x30] sm:$0xff] %vm783_vm2, %v781_v52  ;;  %v782_v62 = vadd.f32 %v774_v3, %v764_v0 }
 0x14b   : > { %788 = vst.msk [vmem:[%s259_s26 + $0x20] sm:$0xff] %vm783_vm2, %v779_v57  ;;  %v780_v61 = vadd.f32 %v772_v15, %v756_v43 }
 0x14c   : > { %791 = vst.msk [vmem:[%s259_s26 + $0x38] sm:$0xff] %vm783_vm2, %v782_v62 }
 0x14d   : > { %789 = vst.msk [vmem:[%s259_s26 + $0x28] sm:$0xff] %vm783_vm2, %v780_v61 }
 0x14e   : > { %1015 = shalt.err (!%p1012_p3)
}
 0x14f   : > { %s1016_s9 = scalar_lea.hbm %s1571_s19, 1024  ;;  %s1020_s14 = scalar_lea.hbm %s1627_s6, 2048 }
 0x150   : > { %p1017_p4 = scmp.ne.s32.totalorder %s1571_s19, %s1016_s9  ;;  %p1021_p9 = scmp.lt.u32.totalorder %s1571_s19, %s1627_s6 }
 0x151   : > { %p1022_p10 = scmp.lt.u32.totalorder %s1020_s14, %s1016_s9  ;;  %p1024_p12 = scmp.lt.u32.totalorder %s1016_s9, %s1571_s19 }
 0x152   : > { %p1018_p7 = pnand %p1017_p4, %p1143_p5 }
 0x153   : > { %p1023_p11 = por %p1022_p10, %p1021_p9 }
 0x154   : > { %p1019_p8 = pneg %p1018_p7 }
 0x155   : > { %p1025_p13 = por %p1024_p12, %p1023_p11 }
 0x157   : > { %p1026_p0 = pnand %p1025_p13, %p1019_p8 }
 0x159   : > { %1029 = shalt.err (!%p1026_p0)
}
 0x15a   : > { %s1068_s28 = smov 128   ;;  %s1069_s17 = smov 8  }
 0x15b   : > { %944 = dma.vmem_to_hbm [thread:$0]  (%p1143_p5), %s1573_s16, 1024, %s1571_s19, %s1580_s25, %s1068_s28, %s1068_s28, %s1069_s17  }
 0x15c PF: > { %p950_p1 = scmp.ge.s32.totalorder %s1064_s24, 2  ;;  %s821_s18 = sand.u32 1, %s1052_s21  }
 0x15d   : > { %s822_s20 = scalar_lea.sflag [#allocation4], %s821_s18 }
 0x15e   : > { %p947_p2 = pnand %p950_p1, %p1147_p6 }
 0x160   : > { %1047 = dma.done.wait (!%p947_p2), %s822_s20, 1024  }
 0x161   : > { %1049 = vsyncadd (!%p947_p2), %s822_s20, 4294966272  ;;  %p16_p3 = scmp.ge.s32.totalorder %s1130_s27, 4   ;;  %s1630_s21 = smov %s1056_s22 }
 0x162   : > { %s1631_s22 = smov %s1060_s23  ;;  %s1632_s23 = smov %s1141_s30 }
 0x163   : > { %s1633_s24 = smov %s1130_s27  ;;  %18 = sbr.rel (!%p16_p3) target bundleno = 3 (0x3), region = 84 }
 0x16a   :  { %827 = vsyncpa [#allocation4], 1 }
 0x16b   :  { %829 = vsyncpa [#allocation4 + $0x1], 1 }

</bundles_post_ra>
